<compile_context>
chip_gen: v6e
topology: v6e:2x2x1
jax: 0.10.0
libtpu: 0.0.40
codegen_flags: <defaults>
</compile_context>

<pallas_src>
import functools

import jax
import jax.numpy as jnp
from jax.experimental import pallas as pl
from jax.experimental.pallas import tpu as pltpu


VMEM = pl.BlockSpec(memory_space=pltpu.MemorySpace.VMEM)

# Tile caps (largest tile that divides the padded dim is chosen per conv).
_TM_CAP = 256   # patch-matrix rows per block
_TN_CAP = 256   # output channels per block
_TK_CAP = 512   # reduction (kh*kw*Cin) per block
_VMEM_LIMIT = 48 * 1024 * 1024  # raised-but-bounded (fits v7x 64 MiB / v6e,v5e 128 MiB)


def _round_up(x, m):
    return (x + m - 1) // m * m


def _divisor_tile(padded, align, cap):
    """Largest multiple of `align` that is <= cap and divides `padded`."""
    best = align
    t = align
    limit = min(cap, padded)
    while t <= limit:
        if padded % t == 0:
            best = t
        t += align
    return best


# ------------------------------------------------------------------ kernels

def _mm_kernel(x_ref, w_ref, b_ref, o_ref, acc_ref, *, relu):
    """bf16 matmul tile with f32 accumulation; bias(+ReLU) epilogue at last K."""
    k = pl.program_id(2)

    @pl.when(k == 0)
    def _():
        acc_ref[...] = jnp.zeros_like(acc_ref)

    acc_ref[...] += jnp.dot(x_ref[...], w_ref[...],
                            preferred_element_type=jnp.float32)

    @pl.when(k == pl.num_programs(2) - 1)
    def _():
        y = acc_ref[...] + b_ref[...]
        if relu:
            y = jnp.maximum(y, 0.0)
        o_ref[...] = y


def _mm_res_kernel(x_ref, w_ref, b_ref, r_ref, o_ref, acc_ref):
    """Same as _mm_kernel but fuses residual add + ReLU in the epilogue."""
    k = pl.program_id(2)

    @pl.when(k == 0)
    def _():
        acc_ref[...] = jnp.zeros_like(acc_ref)

    acc_ref[...] += jnp.dot(x_ref[...], w_ref[...],
                            preferred_element_type=jnp.float32)

    @pl.when(k == pl.num_programs(2) - 1)
    def _():
        o_ref[...] = jnp.maximum(acc_ref[...] + b_ref[...] + r_ref[...], 0.0)


def _maxpool9_kernel(x0, x1, x2, x3, x4, x5, x6, x7, x8, o_ref):
    m = x0[...]
    for r in (x1, x2, x3, x4, x5, x6, x7, x8):
        m = jnp.maximum(m, r[...])
    o_ref[...] = m


def _gap_fc_kernel(x_ref, w_ref, b_ref, o_ref, *, inv_hw):
    # x_ref: [N, HW, C] (C lane-dense); pool over the sublane HW axis in f32,
    # then a bf16 MXU matmul for the classifier.
    pooled = jnp.sum(x_ref[...], axis=1) * inv_hw                 # [N, C] f32
    o_ref[...] = jnp.dot(pooled.astype(jnp.bfloat16), w_ref[...],
                         preferred_element_type=jnp.float32) + b_ref[...]


# ----------------------------------------------------------------- wrappers

def _matmul_bias_tiled(x_bf16, w_bf16, bias_f32, residual_f32=None, relu=False):
    """Gridded matmul: (Mp,Kp)bf16 @ (Kp,Np)bf16 + bias[+res][+relu] -> (Mp,Np)f32."""
    Mp, Kp = x_bf16.shape
    Kp2, Np = w_bf16.shape
    assert Kp == Kp2

    tm = _divisor_tile(Mp, 16, _TM_CAP)     # 16: bf16 sublane packing
    tn = _divisor_tile(Np, 128, _TN_CAP)
    tk = _divisor_tile(Kp, 128, _TK_CAP)
    grid = (Mp // tm, Np // tn, Kp // tk)

    in_specs = [
        pl.BlockSpec((tm, tk), lambda i, j, k: (i, k)),
        pl.BlockSpec((tk, tn), lambda i, j, k: (k, j)),
        pl.BlockSpec((1, tn), lambda i, j, k: (0, j)),
    ]
    args = [x_bf16, w_bf16, bias_f32]
    if residual_f32 is not None:
        in_specs.append(pl.BlockSpec((tm, tn), lambda i, j, k: (i, j)))
        args.append(residual_f32)
        kernel = _mm_res_kernel
    else:
        kernel = functools.partial(_mm_kernel, relu=relu)

    return pl.pallas_call(
        kernel,
        out_shape=jax.ShapeDtypeStruct((Mp, Np), jnp.float32),
        grid_spec=pltpu.PrefetchScalarGridSpec(
            num_scalar_prefetch=0,
            grid=grid,
            in_specs=in_specs,
            out_specs=pl.BlockSpec((tm, tn), lambda i, j, k: (i, j)),
            scratch_shapes=[pltpu.VMEM((tm, tn), jnp.float32)],
        ),
        compiler_params=pltpu.CompilerParams(
            dimension_semantics=("parallel", "parallel", "arbitrary"),
            vmem_limit_bytes=_VMEM_LIMIT,
        ),
    )(*args)


def _im2col(x_nhwc, kh, kw, stride, pad):
    N, H, W, C = x_nhwc.shape
    xp = jnp.pad(x_nhwc, ((0, 0), (pad, pad), (pad, pad), (0, 0)))
    OH = (H + 2 * pad - kh) // stride + 1
    OW = (W + 2 * pad - kw) // stride + 1
    cols = []
    for i in range(kh):
        for j in range(kw):
            cols.append(xp[:, i:i + stride * (OH - 1) + 1:stride,
                           j:j + stride * (OW - 1) + 1:stride, :])
    patches = jnp.concatenate(cols, axis=-1)          # [N, OH, OW, kh*kw*C]
    return patches.reshape(N * OH * OW, kh * kw * C), OH, OW


def conv2d_fused(x_nhwc, cp, relu=False, residual=None):
    """Conv (+folded BN) (+residual) (+ReLU) using prepared weights `cp`."""
    patches, OH, OW = _im2col(x_nhwc, cp['kh'], cp['kw'], cp['stride'], cp['pad'])
    M, K = patches.shape
    Kp, Np = cp['w'].shape
    Mp = _round_up(M, 16)

    xp = jnp.pad(patches, ((0, Mp - M), (0, Kp - K))).astype(jnp.bfloat16)
    res = None
    if residual is not None:
        r = residual.reshape(M, cp['cout']).astype(jnp.float32)
        res = jnp.pad(r, ((0, Mp - M), (0, Np - cp['cout'])))

    out = _matmul_bias_tiled(xp, cp['w'], cp['b'], residual_f32=res, relu=relu)
    N = x_nhwc.shape[0]
    return out[:M, :cp['cout']].reshape(N, OH, OW, cp['cout'])


def maxpool_3x3_s2_p1(x_nhwc):
    N, H, W, C = x_nhwc.shape
    k, stride, pad = 3, 2, 1
    xp = jnp.pad(x_nhwc, ((0, 0), (pad, pad), (pad, pad), (0, 0)),
                 constant_values=-jnp.inf)
    OH = (H + 2 * pad - k) // stride + 1
    OW = (W + 2 * pad - k) // stride + 1
    wins = []
    for i in range(k):
        for j in range(k):
            w = xp[:, i:i + stride * (OH - 1) + 1:stride,
                   j:j + stride * (OW - 1) + 1:stride, :]
            # lane-dense layout: (N*OH, OW*C) with OW*C a multiple of 128
            wins.append(w.reshape(N * OH, OW * C))
    out = pl.pallas_call(
        _maxpool9_kernel,
        out_shape=jax.ShapeDtypeStruct((N * OH, OW * C), jnp.float32),
        in_specs=[VMEM] * 9,
        out_specs=VMEM,
    )(*wins)
    return out.reshape(N, OH, OW, C)


def gap_fc(x_nhwc, fcp):
    N, H, W, C = x_nhwc.shape
    Nb = _round_up(N, 8)
    x = x_nhwc.reshape(N, H * W, C)                    # C stays lane-dense
    xp = jnp.pad(x, ((0, Nb - N), (0, 0), (0, 0)))
    out = pl.pallas_call(
        functools.partial(_gap_fc_kernel, inv_hw=1.0 / float(H * W)),
        out_shape=jax.ShapeDtypeStruct((Nb, fcp['w'].shape[1]), jnp.float32),
        in_specs=[VMEM] * 3,
        out_specs=VMEM,
    )(xp, fcp['w'], fcp['b'])
    return out[:N, :fcp['cout']]


# -------------------------------------------------- parameter preparation

def _fold_bn(w_oihw, conv_b, bn):
    if bn is None:
        return w_oihw, conv_b
    gamma, beta, mean, var, eps = bn
    scale = gamma / jnp.sqrt(var + eps)
    w = w_oihw * scale[:, None, None, None]
    bias = (conv_b - mean) * scale + beta
    return w, bias


def _prep_conv(w_oihw, conv_b, bn, stride, pad):
    """Fold BN into weights, pre-transpose / pre-pad / pre-cast to bf16 once."""
    w, bias = _fold_bn(w_oihw, conv_b, bn)
    cout, cin, kh, kw = w.shape
    K = kh * kw * cin
    wmat = jnp.transpose(w, (2, 3, 1, 0)).reshape(K, cout)
    Kp = _round_up(K, 128)
    Np = _round_up(cout, 128)
    wp = jnp.pad(wmat, ((0, Kp - K), (0, Np - cout))).astype(jnp.bfloat16)
    bp = jnp.pad(bias.reshape(1, cout),
                 ((0, 0), (0, Np - cout))).astype(jnp.float32)
    return {'w': wp, 'b': bp, 'kh': kh, 'kw': kw, 'cin': cin, 'cout': cout,
            'stride': stride, 'pad': pad}


def prepare_params(raw):
    prep = {'stem': _prep_conv(raw['stem_w'], raw['stem_b'], raw['stem_bn'],
                               stride=2, pad=3)}
    blocks = []
    for blk in raw['blocks']:
        pb = []
        for r in blk:
            pr = {'conv1': _prep_conv(r['w1'], r['b1'], r['bn1'],
                                      r['stride'], 1),
                  'conv2': _prep_conv(r['w2'], r['b2'], r['bn2'], 1, 1)}
            if 'w3' in r:
                # NB: per the reference module, the 1x1 shortcut conv has no BN.
                pr['conv3'] = _prep_conv(r['w3'], r['b3'], None, r['stride'], 0)
            pb.append(pr)
        blocks.append(pb)
    prep['blocks'] = blocks

    cout = raw['fc_w'].shape[0]
    cop = _round_up(cout, 128)
    wfc = jnp.pad(raw['fc_w'].T, ((0, 0), (0, cop - cout))).astype(jnp.bfloat16)
    bfc = jnp.pad(raw['fc_b'].reshape(1, cout),
                  ((0, 0), (0, cop - cout))).astype(jnp.float32)
    prep['fc'] = {'w': wfc, 'b': bfc, 'cout': cout}
    return prep


# ------------------------------------------------------------------- model

def residual_forward(x, pr):
    y = conv2d_fused(x, pr['conv1'], relu=True)
    if 'conv3' in pr:
        shortcut = conv2d_fused(x, pr['conv3'], relu=False)
    else:
        shortcut = x
    # conv2 + bn2 + residual add + relu fused in one gridded Pallas kernel
    return conv2d_fused(y, pr['conv2'], residual=shortcut)


def resnet18_forward(img_nchw, prep):
    x = jnp.transpose(img_nchw, (0, 2, 3, 1)).astype(jnp.float32)  # -> NHWC
    x = conv2d_fused(x, prep['stem'], relu=True)          # conv7x7 s2 + BN + ReLU
    x = maxpool_3x3_s2_p1(x)
    for blk in prep['blocks']:
        for pr in blk:
            x = residual_forward(x, pr)
    return gap_fc(x, prep['fc'])


def init_params(key):
    eps = 1e-5
    keys = [key]

    def nxt():
        keys[0], sub = jax.random.split(keys[0])
        return sub

    def conv_p(cout, cin, kh, kw):
        fan_in = cin * kh * kw
        w = jax.random.normal(nxt(), (cout, cin, kh, kw),
                              jnp.float32) / jnp.sqrt(fan_in)
        b = 0.01 * jax.random.normal(nxt(), (cout,), jnp.float32)
        return w, b

    def bn_p(c):
        # PyTorch defaults: weight=1, bias=0, running_mean=0, running_var=1
        return (jnp.ones((c,), jnp.float32), jnp.zeros((c,), jnp.float32),
                jnp.zeros((c,), jnp.float32), jnp.ones((c,), jnp.float32), eps)

    params = {}
    params['stem_w'], params['stem_b'] = conv_p(64, 1, 7, 7)
    params['stem_bn'] = bn_p(64)

    block_defs = [(64, 64, 2, True), (64, 128, 2, False),
                  (128, 256, 2, False), (256, 512, 2, False)]
    blocks = []
    for in_c, out_c, n_res, first in block_defs:
        blk = []
        for i in range(n_res):
            if i == 0 and not first:
                r = {'stride': 2}
                cin = in_c
                r['w3'], r['b3'] = conv_p(out_c, cin, 1, 1)
            else:
                r = {'stride': 1}
                cin = out_c
            r['w1'], r['b1'] = conv_p(out_c, cin, 3, 3)
            r['bn1'] = bn_p(out_c)
            r['w2'], r['b2'] = conv_p(out_c, out_c, 3, 3)
            r['bn2'] = bn_p(out_c)
            blk.append(r)
        blocks.append(blk)
    params['blocks'] = blocks

    params['fc_w'] = jax.random.normal(nxt(), (10, 512),
                                       jnp.float32) / jnp.sqrt(512.0)
    params['fc_b'] = jnp.zeros((10,), jnp.float32)
    return params


if __name__ == "__main__":
    key = jax.random.PRNGKey(0)
    pkey, xkey = jax.random.split(key)
    raw_params = init_params(pkey)
    prep = prepare_params(raw_params)   # BN fold / transpose / pad / bf16: once

    # PyTorch-style NCHW input: batch=2, 1 channel (stem conv is 1->64), 32x32
    x = jax.random.normal(xkey, (2, 1, 32, 32), jnp.float32)

    fwd = jax.jit(lambda img: resnet18_forward(img, prep))
    out = jax.block_until_ready(fwd(x))
    assert out.shape == (2, 10) and out.dtype == jnp.float32
    assert bool(jnp.all(jnp.isfinite(out)))
    print("KERNEL_OK")
</pallas_src>

<mosaic_0001>
module attributes {stable_mosaic.version = 11 : i64} {
  func.func @_mm_kernel(%arg0: i32, %arg1: i32, %arg2: i32, %arg3: memref<256x128xbf16, #tpu.memory_space<vmem>>, %arg4: memref<128x128xbf16, #tpu.memory_space<vmem>>, %arg5: memref<1x128xf32, #tpu.memory_space<vmem>>, %arg6: memref<256x128xf32, #tpu.memory_space<vmem>>, %arg7: memref<256x128xf32, #tpu.memory_space<vmem>>) attributes {dimension_semantics = [#tpu.dimension_semantics<parallel>, #tpu.dimension_semantics<parallel>, #tpu.dimension_semantics<arbitrary>], iteration_bounds = array<i64: 2, 1, 1>, scalar_prefetch = 0 : i64, scratch_operands = 1 : i64, tpu.core_type = #tpu.core_type<tc>, window_params = [{transform_indices = @transform_0, window_bounds = array<i64: 256, 128>}, {transform_indices = @transform_1, window_bounds = array<i64: 128, 128>}, {transform_indices = @transform_2, window_bounds = array<i64: 1, 128>}, {transform_indices = @transform_3, window_bounds = array<i64: 256, 128>}]} {
    %c0_i32 = arith.constant 0 : i32
    %0 = arith.cmpi eq, %arg2, %c0_i32 : i32
    %1 = arith.extui %0 : i1 to i32
    %c0_i32_0 = arith.constant 0 : i32
    %2 = arith.cmpi ne, %1, %c0_i32_0 : i32
    scf.if %2 {
      %cst_10 = arith.constant 0.000000e+00 : f32
      %12 = vector.broadcast %cst_10 : f32 to vector<256x128xf32>
      %c0_11 = arith.constant 0 : index
      %c0_12 = arith.constant 0 : index
      %13 = vector.load %arg7[%c0_11, %c0_12] : memref<256x128xf32, #tpu.memory_space<vmem>>, vector<256x128xf32>
      tpu.vector_store %arg7[%c0_11, %c0_12], %12 {strides = array<i32>} : memref<256x128xf32, #tpu.memory_space<vmem>>, vector<256x128xf32>,
    } else {
    }
    %c0 = arith.constant 0 : index
    %c0_1 = arith.constant 0 : index
    %3 = vector.load %arg7[%c0, %c0_1] : memref<256x128xf32, #tpu.memory_space<vmem>>, vector<256x128xf32>
    %c0_2 = arith.constant 0 : index
    %c0_3 = arith.constant 0 : index
    %4 = vector.load %arg3[%c0_2, %c0_3] : memref<256x128xbf16, #tpu.memory_space<vmem>>, vector<256x128xbf16>
    %c0_4 = arith.constant 0 : index
    %c0_5 = arith.constant 0 : index
    %5 = vector.load %arg4[%c0_4, %c0_5] : memref<128x128xbf16, #tpu.memory_space<vmem>>, vector<128x128xbf16>
    %cst = arith.constant dense<0.000000e+00> : vector<256x128xf32>
    %6 = tpu.matmul %4, %5, %cst {dimension_numbers = #tpu.dot_dimension_numbers<[1], [0], [0], [1], [0, 0, 1, 1], [], []>} : vector<256x128xbf16>, vector<128x128xbf16>, vector<256x128xf32> -> vector<256x128xf32>
    %7 = arith.addf %3, %6 : vector<256x128xf32>
    %c0_6 = arith.constant 0 : index
    %c0_7 = arith.constant 0 : index
    %8 = vector.load %arg7[%c0_6, %c0_7] : memref<256x128xf32, #tpu.memory_space<vmem>>, vector<256x128xf32>
    tpu.vector_store %arg7[%c0_6, %c0_7], %7 {strides = array<i32>} : memref<256x128xf32, #tpu.memory_space<vmem>>, vector<256x128xf32>,
    %c0_i32_8 = arith.constant 0 : i32
    %9 = arith.cmpi eq, %arg2, %c0_i32_8 : i32
    %10 = arith.extui %9 : i1 to i32
    %c0_i32_9 = arith.constant 0 : i32
    %11 = arith.cmpi ne, %10, %c0_i32_9 : i32
    scf.if %11 {
      %c0_10 = arith.constant 0 : index
      %c0_11 = arith.constant 0 : index
      %12 = vector.load %arg7[%c0_10, %c0_11] : memref<256x128xf32, #tpu.memory_space<vmem>>, vector<256x128xf32>
      %c0_12 = arith.constant 0 : index
      %c0_13 = arith.constant 0 : index
      %13 = vector.load %arg5[%c0_12, %c0_13] : memref<1x128xf32, #tpu.memory_space<vmem>>, vector<1x128xf32>
      %14 = vector.broadcast %13 : vector<1x128xf32> to vector<256x128xf32>
      %15 = arith.addf %12, %14 : vector<256x128xf32>
      %cst_14 = arith.constant 0.000000e+00 : f32
      %16 = vector.broadcast %cst_14 : f32 to vector<256x128xf32>
      %17 = arith.maximumf %15, %16 : vector<256x128xf32>
      %c0_15 = arith.constant 0 : index
      %c0_16 = arith.constant 0 : index
      %18 = vector.load %arg6[%c0_15, %c0_16] : memref<256x128xf32, #tpu.memory_space<vmem>>, vector<256x128xf32>
      tpu.vector_store %arg6[%c0_15, %c0_16], %17 {strides = array<i32>} : memref<256x128xf32, #tpu.memory_space<vmem>>, vector<256x128xf32>,
    } else {
    }
    return
  }
  func.func @transform_0(%arg0: i32, %arg1: i32, %arg2: i32) -> (i32, i32) {
    %c0_i32 = arith.constant 0 : i32
    return %arg0, %arg2 : i32, i32
  }
  func.func @transform_1(%arg0: i32, %arg1: i32, %arg2: i32) -> (i32, i32) {
    %c0_i32 = arith.constant 0 : i32
    return %arg2, %arg1 : i32, i32
  }
  func.func @transform_2(%arg0: i32, %arg1: i32, %arg2: i32) -> (i32, i32) {
    %c0_i32 = arith.constant 0 : i32
    %c0_i32_0 = arith.constant 0 : i32
    return %c0_i32, %arg1 : i32, i32
  }
  func.func @transform_3(%arg0: i32, %arg1: i32, %arg2: i32) -> (i32, i32) {
    %c0_i32 = arith.constant 0 : i32
    return %arg0, %arg1 : i32, i32
  }
}

module attributes {stable_mosaic.version = 11 : i64} {
  func.func @_maxpool9_kernel(%arg0: memref<16x512xf32, #tpu.memory_space<vmem>>, %arg1: memref<16x512xf32, #tpu.memory_space<vmem>>, %arg2: memref<16x512xf32, #tpu.memory_space<vmem>>, %arg3: memref<16x512xf32, #tpu.memory_space<vmem>>, %arg4: memref<16x512xf32, #tpu.memory_space<vmem>>, %arg5: memref<16x512xf32, #tpu.memory_space<vmem>>, %arg6: memref<16x512xf32, #tpu.memory_space<vmem>>, %arg7: memref<16x512xf32, #tpu.memory_space<vmem>>, %arg8: memref<16x512xf32, #tpu.memory_space<vmem>>, %arg9: memref<16x512xf32, #tpu.memory_space<vmem>>) attributes {dimension_semantics = [], scalar_prefetch = 0 : i64, scratch_operands = 0 : i64, tpu.core_type = #tpu.core_type<tc>} {
    %c0 = arith.constant 0 : index
    %c0_0 = arith.constant 0 : index
    %0 = vector.load %arg0[%c0, %c0_0] : memref<16x512xf32, #tpu.memory_space<vmem>>, vector<16x512xf32>
    %c0_1 = arith.constant 0 : index
    %c0_2 = arith.constant 0 : index
    %1 = vector.load %arg1[%c0_1, %c0_2] : memref<16x512xf32, #tpu.memory_space<vmem>>, vector<16x512xf32>
    %2 = arith.maximumf %0, %1 : vector<16x512xf32>
    %c0_3 = arith.constant 0 : index
    %c0_4 = arith.constant 0 : index
    %3 = vector.load %arg2[%c0_3, %c0_4] : memref<16x512xf32, #tpu.memory_space<vmem>>, vector<16x512xf32>
    %4 = arith.maximumf %2, %3 : vector<16x512xf32>
    %c0_5 = arith.constant 0 : index
    %c0_6 = arith.constant 0 : index
    %5 = vector.load %arg3[%c0_5, %c0_6] : memref<16x512xf32, #tpu.memory_space<vmem>>, vector<16x512xf32>
    %6 = arith.maximumf %4, %5 : vector<16x512xf32>
    %c0_7 = arith.constant 0 : index
    %c0_8 = arith.constant 0 : index
    %7 = vector.load %arg4[%c0_7, %c0_8] : memref<16x512xf32, #tpu.memory_space<vmem>>, vector<16x512xf32>
    %8 = arith.maximumf %6, %7 : vector<16x512xf32>
    %c0_9 = arith.constant 0 : index
    %c0_10 = arith.constant 0 : index
    %9 = vector.load %arg5[%c0_9, %c0_10] : memref<16x512xf32, #tpu.memory_space<vmem>>, vector<16x512xf32>
    %10 = arith.maximumf %8, %9 : vector<16x512xf32>
    %c0_11 = arith.constant 0 : index
    %c0_12 = arith.constant 0 : index
    %11 = vector.load %arg6[%c0_11, %c0_12] : memref<16x512xf32, #tpu.memory_space<vmem>>, vector<16x512xf32>
    %12 = arith.maximumf %10, %11 : vector<16x512xf32>
    %c0_13 = arith.constant 0 : index
    %c0_14 = arith.constant 0 : index
    %13 = vector.load %arg7[%c0_13, %c0_14] : memref<16x512xf32, #tpu.memory_space<vmem>>, vector<16x512xf32>
    %14 = arith.maximumf %12, %13 : vector<16x512xf32>
    %c0_15 = arith.constant 0 : index
    %c0_16 = arith.constant 0 : index
    %15 = vector.load %arg8[%c0_15, %c0_16] : memref<16x512xf32, #tpu.memory_space<vmem>>, vector<16x512xf32>
    %16 = arith.maximumf %14, %15 : vector<16x512xf32>
    %c0_17 = arith.constant 0 : index
    %c0_18 = arith.constant 0 : index
    %17 = vector.load %arg9[%c0_17, %c0_18] : memref<16x512xf32, #tpu.memory_space<vmem>>, vector<16x512xf32>
    tpu.vector_store %arg9[%c0_17, %c0_18], %16 {strides = array<i32>} : memref<16x512xf32, #tpu.memory_space<vmem>>, vector<16x512xf32>,
    return
  }
}

module attributes {stable_mosaic.version = 11 : i64} {
  func.func @_mm_kernel(%arg0: i32, %arg1: i32, %arg2: i32, %arg3: memref<128x128xbf16, #tpu.memory_space<vmem>>, %arg4: memref<128x128xbf16, #tpu.memory_space<vmem>>, %arg5: memref<1x128xf32, #tpu.memory_space<vmem>>, %arg6: memref<128x128xf32, #tpu.memory_space<vmem>>, %arg7: memref<128x128xf32, #tpu.memory_space<vmem>>) attributes {dimension_semantics = [#tpu.dimension_semantics<parallel>, #tpu.dimension_semantics<parallel>, #tpu.dimension_semantics<arbitrary>], iteration_bounds = array<i64: 1, 1, 5>, scalar_prefetch = 0 : i64, scratch_operands = 1 : i64, tpu.core_type = #tpu.core_type<tc>, window_params = [{transform_indices = @transform_0, window_bounds = array<i64: 128, 128>}, {transform_indices = @transform_1, window_bounds = array<i64: 128, 128>}, {transform_indices = @transform_2, window_bounds = array<i64: 1, 128>}, {transform_indices = @transform_3, window_bounds = array<i64: 128, 128>}]} {
    %c0_i32 = arith.constant 0 : i32
    %0 = arith.cmpi eq, %arg2, %c0_i32 : i32
    %1 = arith.extui %0 : i1 to i32
    %c0_i32_0 = arith.constant 0 : i32
    %2 = arith.cmpi ne, %1, %c0_i32_0 : i32
    scf.if %2 {
      %cst_9 = arith.constant 0.000000e+00 : f32
      %12 = vector.broadcast %cst_9 : f32 to vector<128x128xf32>
      %c0_10 = arith.constant 0 : index
      %c0_11 = arith.constant 0 : index
      %13 = vector.load %arg7[%c0_10, %c0_11] : memref<128x128xf32, #tpu.memory_space<vmem>>, vector<128x128xf32>
      tpu.vector_store %arg7[%c0_10, %c0_11], %12 {strides = array<i32>} : memref<128x128xf32, #tpu.memory_space<vmem>>, vector<128x128xf32>,
    } else {
    }
    %c0 = arith.constant 0 : index
    %c0_1 = arith.constant 0 : index
    %3 = vector.load %arg7[%c0, %c0_1] : memref<128x128xf32, #tpu.memory_space<vmem>>, vector<128x128xf32>
    %c0_2 = arith.constant 0 : index
    %c0_3 = arith.constant 0 : index
    %4 = vector.load %arg3[%c0_2, %c0_3] : memref<128x128xbf16, #tpu.memory_space<vmem>>, vector<128x128xbf16>
    %c0_4 = arith.constant 0 : index
    %c0_5 = arith.constant 0 : index
    %5 = vector.load %arg4[%c0_4, %c0_5] : memref<128x128xbf16, #tpu.memory_space<vmem>>, vector<128x128xbf16>
    %cst = arith.constant dense<0.000000e+00> : vector<128x128xf32>
    %6 = tpu.matmul %4, %5, %cst {dimension_numbers = #tpu.dot_dimension_numbers<[1], [0], [0], [1], [0, 0, 1, 1], [], []>} : vector<128x128xbf16>, vector<128x128xbf16>, vector<128x128xf32> -> vector<128x128xf32>
    %7 = arith.addf %3, %6 : vector<128x128xf32>
    %c0_6 = arith.constant 0 : index
    %c0_7 = arith.constant 0 : index
    %8 = vector.load %arg7[%c0_6, %c0_7] : memref<128x128xf32, #tpu.memory_space<vmem>>, vector<128x128xf32>
    tpu.vector_store %arg7[%c0_6, %c0_7], %7 {strides = array<i32>} : memref<128x128xf32, #tpu.memory_space<vmem>>, vector<128x128xf32>,
    %c4_i32 = arith.constant 4 : i32
    %9 = arith.cmpi eq, %arg2, %c4_i32 : i32
    %10 = arith.extui %9 : i1 to i32
    %c0_i32_8 = arith.constant 0 : i32
    %11 = arith.cmpi ne, %10, %c0_i32_8 : i32
    scf.if %11 {
      %c0_9 = arith.constant 0 : index
      %c0_10 = arith.constant 0 : index
      %12 = vector.load %arg7[%c0_9, %c0_10] : memref<128x128xf32, #tpu.memory_space<vmem>>, vector<128x128xf32>
      %c0_11 = arith.constant 0 : index
      %c0_12 = arith.constant 0 : index
      %13 = vector.load %arg5[%c0_11, %c0_12] : memref<1x128xf32, #tpu.memory_space<vmem>>, vector<1x128xf32>
      %14 = vector.broadcast %13 : vector<1x128xf32> to vector<128x128xf32>
      %15 = arith.addf %12, %14 : vector<128x128xf32>
      %cst_13 = arith.constant 0.000000e+00 : f32
      %16 = vector.broadcast %cst_13 : f32 to vector<128x128xf32>
      %17 = arith.maximumf %15, %16 : vector<128x128xf32>
      %c0_14 = arith.constant 0 : index
      %c0_15 = arith.constant 0 : index
      %18 = vector.load %arg6[%c0_14, %c0_15] : memref<128x128xf32, #tpu.memory_space<vmem>>, vector<128x128xf32>
      tpu.vector_store %arg6[%c0_14, %c0_15], %17 {strides = array<i32>} : memref<128x128xf32, #tpu.memory_space<vmem>>, vector<128x128xf32>,
    } else {
    }
    return
  }
  func.func @transform_0(%arg0: i32, %arg1: i32, %arg2: i32) -> (i32, i32) {
    %c0_i32 = arith.constant 0 : i32
    return %arg0, %arg2 : i32, i32
  }
  func.func @transform_1(%arg0: i32, %arg1: i32, %arg2: i32) -> (i32, i32) {
    %c0_i32 = arith.constant 0 : i32
    return %arg2, %arg1 : i32, i32
  }
  func.func @transform_2(%arg0: i32, %arg1: i32, %arg2: i32) -> (i32, i32) {
    %c0_i32 = arith.constant 0 : i32
    %c0_i32_0 = arith.constant 0 : i32
    return %c0_i32, %arg1 : i32, i32
  }
  func.func @transform_3(%arg0: i32, %arg1: i32, %arg2: i32) -> (i32, i32) {
    %c0_i32 = arith.constant 0 : i32
    return %arg0, %arg1 : i32, i32
  }
}

module attributes {stable_mosaic.version = 11 : i64} {
  func.func @_mm_res_kernel(%arg0: i32, %arg1: i32, %arg2: i32, %arg3: memref<128x128xbf16, #tpu.memory_space<vmem>>, %arg4: memref<128x128xbf16, #tpu.memory_space<vmem>>, %arg5: memref<1x128xf32, #tpu.memory_space<vmem>>, %arg6: memref<128x128xf32, #tpu.memory_space<vmem>>, %arg7: memref<128x128xf32, #tpu.memory_space<vmem>>, %arg8: memref<128x128xf32, #tpu.memory_space<vmem>>) attributes {dimension_semantics = [#tpu.dimension_semantics<parallel>, #tpu.dimension_semantics<parallel>, #tpu.dimension_semantics<arbitrary>], iteration_bounds = array<i64: 1, 1, 5>, scalar_prefetch = 0 : i64, scratch_operands = 1 : i64, tpu.core_type = #tpu.core_type<tc>, window_params = [{transform_indices = @transform_0, window_bounds = array<i64: 128, 128>}, {transform_indices = @transform_1, window_bounds = array<i64: 128, 128>}, {transform_indices = @transform_2, window_bounds = array<i64: 1, 128>}, {transform_indices = @transform_3, window_bounds = array<i64: 128, 128>}, {transform_indices = @transform_4, window_bounds = array<i64: 128, 128>}]} {
    %c0_i32 = arith.constant 0 : i32
    %0 = arith.cmpi eq, %arg2, %c0_i32 : i32
    %1 = arith.extui %0 : i1 to i32
    %c0_i32_0 = arith.constant 0 : i32
    %2 = arith.cmpi ne, %1, %c0_i32_0 : i32
    scf.if %2 {
      %cst_9 = arith.constant 0.000000e+00 : f32
      %12 = vector.broadcast %cst_9 : f32 to vector<128x128xf32>
      %c0_10 = arith.constant 0 : index
      %c0_11 = arith.constant 0 : index
      %13 = vector.load %arg8[%c0_10, %c0_11] : memref<128x128xf32, #tpu.memory_space<vmem>>, vector<128x128xf32>
      tpu.vector_store %arg8[%c0_10, %c0_11], %12 {strides = array<i32>} : memref<128x128xf32, #tpu.memory_space<vmem>>, vector<128x128xf32>,
    } else {
    }
    %c0 = arith.constant 0 : index
    %c0_1 = arith.constant 0 : index
    %3 = vector.load %arg8[%c0, %c0_1] : memref<128x128xf32, #tpu.memory_space<vmem>>, vector<128x128xf32>
    %c0_2 = arith.constant 0 : index
    %c0_3 = arith.constant 0 : index
    %4 = vector.load %arg3[%c0_2, %c0_3] : memref<128x128xbf16, #tpu.memory_space<vmem>>, vector<128x128xbf16>
    %c0_4 = arith.constant 0 : index
    %c0_5 = arith.constant 0 : index
    %5 = vector.load %arg4[%c0_4, %c0_5] : memref<128x128xbf16, #tpu.memory_space<vmem>>, vector<128x128xbf16>
    %cst = arith.constant dense<0.000000e+00> : vector<128x128xf32>
    %6 = tpu.matmul %4, %5, %cst {dimension_numbers = #tpu.dot_dimension_numbers<[1], [0], [0], [1], [0, 0, 1, 1], [], []>} : vector<128x128xbf16>, vector<128x128xbf16>, vector<128x128xf32> -> vector<128x128xf32>
    %7 = arith.addf %3, %6 : vector<128x128xf32>
    %c0_6 = arith.constant 0 : index
    %c0_7 = arith.constant 0 : index
    %8 = vector.load %arg8[%c0_6, %c0_7] : memref<128x128xf32, #tpu.memory_space<vmem>>, vector<128x128xf32>
    tpu.vector_store %arg8[%c0_6, %c0_7], %7 {strides = array<i32>} : memref<128x128xf32, #tpu.memory_space<vmem>>, vector<128x128xf32>,
    %c4_i32 = arith.constant 4 : i32
    %9 = arith.cmpi eq, %arg2, %c4_i32 : i32
    %10 = arith.extui %9 : i1 to i32
    %c0_i32_8 = arith.constant 0 : i32
    %11 = arith.cmpi ne, %10, %c0_i32_8 : i32
    scf.if %11 {
      %c0_9 = arith.constant 0 : index
      %c0_10 = arith.constant 0 : index
      %12 = vector.load %arg8[%c0_9, %c0_10] : memref<128x128xf32, #tpu.memory_space<vmem>>, vector<128x128xf32>
      %c0_11 = arith.constant 0 : index
      %c0_12 = arith.constant 0 : index
      %13 = vector.load %arg5[%c0_11, %c0_12] : memref<1x128xf32, #tpu.memory_space<vmem>>, vector<1x128xf32>
      %14 = vector.broadcast %13 : vector<1x128xf32> to vector<128x128xf32>
      %15 = arith.addf %12, %14 : vector<128x128xf32>
      %c0_13 = arith.constant 0 : index
      %c0_14 = arith.constant 0 : index
      %16 = vector.load %arg6[%c0_13, %c0_14] : memref<128x128xf32, #tpu.memory_space<vmem>>, vector<128x128xf32>
      %17 = arith.addf %15, %16 : vector<128x128xf32>
      %cst_15 = arith.constant 0.000000e+00 : f32
      %18 = vector.broadcast %cst_15 : f32 to vector<128x128xf32>
      %19 = arith.maximumf %17, %18 : vector<128x128xf32>
      %c0_16 = arith.constant 0 : index
      %c0_17 = arith.constant 0 : index
      %20 = vector.load %arg7[%c0_16, %c0_17] : memref<128x128xf32, #tpu.memory_space<vmem>>, vector<128x128xf32>
      tpu.vector_store %arg7[%c0_16, %c0_17], %19 {strides = array<i32>} : memref<128x128xf32, #tpu.memory_space<vmem>>, vector<128x128xf32>,
    } else {
    }
    return
  }
  func.func @transform_0(%arg0: i32, %arg1: i32, %arg2: i32) -> (i32, i32) {
    %c0_i32 = arith.constant 0 : i32
    return %arg0, %arg2 : i32, i32
  }
  func.func @transform_1(%arg0: i32, %arg1: i32, %arg2: i32) -> (i32, i32) {
    %c0_i32 = arith.constant 0 : i32
    return %arg2, %arg1 : i32, i32
  }
  func.func @transform_2(%arg0: i32, %arg1: i32, %arg2: i32) -> (i32, i32) {
    %c0_i32 = arith.constant 0 : i32
    %c0_i32_0 = arith.constant 0 : i32
    return %c0_i32, %arg1 : i32, i32
  }
  func.func @transform_3(%arg0: i32, %arg1: i32, %arg2: i32) -> (i32, i32) {
    %c0_i32 = arith.constant 0 : i32
    return %arg0, %arg1 : i32, i32
  }
  func.func @transform_4(%arg0: i32, %arg1: i32, %arg2: i32) -> (i32, i32) {
    %c0_i32 = arith.constant 0 : i32
    return %arg0, %arg1 : i32, i32
  }
}

module attributes {stable_mosaic.version = 11 : i64} {
  func.func @_mm_kernel(%arg0: i32, %arg1: i32, %arg2: i32, %arg3: memref<32x128xbf16, #tpu.memory_space<vmem>>, %arg4: memref<128x128xbf16, #tpu.memory_space<vmem>>, %arg5: memref<1x128xf32, #tpu.memory_space<vmem>>, %arg6: memref<32x128xf32, #tpu.memory_space<vmem>>, %arg7: memref<32x128xf32, #tpu.memory_space<vmem>>) attributes {dimension_semantics = [#tpu.dimension_semantics<parallel>, #tpu.dimension_semantics<parallel>, #tpu.dimension_semantics<arbitrary>], iteration_bounds = array<i64: 1, 1, 5>, scalar_prefetch = 0 : i64, scratch_operands = 1 : i64, tpu.core_type = #tpu.core_type<tc>, window_params = [{transform_indices = @transform_0, window_bounds = array<i64: 32, 128>}, {transform_indices = @transform_1, window_bounds = array<i64: 128, 128>}, {transform_indices = @transform_2, window_bounds = array<i64: 1, 128>}, {transform_indices = @transform_3, window_bounds = array<i64: 32, 128>}]} {
    %c0_i32 = arith.constant 0 : i32
    %0 = arith.cmpi eq, %arg2, %c0_i32 : i32
    %1 = arith.extui %0 : i1 to i32
    %c0_i32_0 = arith.constant 0 : i32
    %2 = arith.cmpi ne, %1, %c0_i32_0 : i32
    scf.if %2 {
      %cst_9 = arith.constant 0.000000e+00 : f32
      %12 = vector.broadcast %cst_9 : f32 to vector<32x128xf32>
      %c0_10 = arith.constant 0 : index
      %c0_11 = arith.constant 0 : index
      %13 = vector.load %arg7[%c0_10, %c0_11] : memref<32x128xf32, #tpu.memory_space<vmem>>, vector<32x128xf32>
      tpu.vector_store %arg7[%c0_10, %c0_11], %12 {strides = array<i32>} : memref<32x128xf32, #tpu.memory_space<vmem>>, vector<32x128xf32>,
    } else {
    }
    %c0 = arith.constant 0 : index
    %c0_1 = arith.constant 0 : index
    %3 = vector.load %arg7[%c0, %c0_1] : memref<32x128xf32, #tpu.memory_space<vmem>>, vector<32x128xf32>
    %c0_2 = arith.constant 0 : index
    %c0_3 = arith.constant 0 : index
    %4 = vector.load %arg3[%c0_2, %c0_3] : memref<32x128xbf16, #tpu.memory_space<vmem>>, vector<32x128xbf16>
    %c0_4 = arith.constant 0 : index
    %c0_5 = arith.constant 0 : index
    %5 = vector.load %arg4[%c0_4, %c0_5] : memref<128x128xbf16, #tpu.memory_space<vmem>>, vector<128x128xbf16>
    %cst = arith.constant dense<0.000000e+00> : vector<32x128xf32>
    %6 = tpu.matmul %4, %5, %cst {dimension_numbers = #tpu.dot_dimension_numbers<[1], [0], [0], [1], [0, 0, 1, 1], [], []>} : vector<32x128xbf16>, vector<128x128xbf16>, vector<32x128xf32> -> vector<32x128xf32>
    %7 = arith.addf %3, %6 : vector<32x128xf32>
    %c0_6 = arith.constant 0 : index
    %c0_7 = arith.constant 0 : index
    %8 = vector.load %arg7[%c0_6, %c0_7] : memref<32x128xf32, #tpu.memory_space<vmem>>, vector<32x128xf32>
    tpu.vector_store %arg7[%c0_6, %c0_7], %7 {strides = array<i32>} : memref<32x128xf32, #tpu.memory_space<vmem>>, vector<32x128xf32>,
    %c4_i32 = arith.constant 4 : i32
    %9 = arith.cmpi eq, %arg2, %c4_i32 : i32
    %10 = arith.extui %9 : i1 to i32
    %c0_i32_8 = arith.constant 0 : i32
    %11 = arith.cmpi ne, %10, %c0_i32_8 : i32
    scf.if %11 {
      %c0_9 = arith.constant 0 : index
      %c0_10 = arith.constant 0 : index
      %12 = vector.load %arg7[%c0_9, %c0_10] : memref<32x128xf32, #tpu.memory_space<vmem>>, vector<32x128xf32>
      %c0_11 = arith.constant 0 : index
      %c0_12 = arith.constant 0 : index
      %13 = vector.load %arg5[%c0_11, %c0_12] : memref<1x128xf32, #tpu.memory_space<vmem>>, vector<1x128xf32>
      %14 = vector.broadcast %13 : vector<1x128xf32> to vector<32x128xf32>
      %15 = arith.addf %12, %14 : vector<32x128xf32>
      %cst_13 = arith.constant 0.000000e+00 : f32
      %16 = vector.broadcast %cst_13 : f32 to vector<32x128xf32>
      %17 = arith.maximumf %15, %16 : vector<32x128xf32>
      %c0_14 = arith.constant 0 : index
      %c0_15 = arith.constant 0 : index
      %18 = vector.load %arg6[%c0_14, %c0_15] : memref<32x128xf32, #tpu.memory_space<vmem>>, vector<32x128xf32>
      tpu.vector_store %arg6[%c0_14, %c0_15], %17 {strides = array<i32>} : memref<32x128xf32, #tpu.memory_space<vmem>>, vector<32x128xf32>,
    } else {
    }
    return
  }
  func.func @transform_0(%arg0: i32, %arg1: i32, %arg2: i32) -> (i32, i32) {
    %c0_i32 = arith.constant 0 : i32
    return %arg0, %arg2 : i32, i32
  }
  func.func @transform_1(%arg0: i32, %arg1: i32, %arg2: i32) -> (i32, i32) {
    %c0_i32 = arith.constant 0 : i32
    return %arg2, %arg1 : i32, i32
  }
  func.func @transform_2(%arg0: i32, %arg1: i32, %arg2: i32) -> (i32, i32) {
    %c0_i32 = arith.constant 0 : i32
    %c0_i32_0 = arith.constant 0 : i32
    return %c0_i32, %arg1 : i32, i32
  }
  func.func @transform_3(%arg0: i32, %arg1: i32, %arg2: i32) -> (i32, i32) {
    %c0_i32 = arith.constant 0 : i32
    return %arg0, %arg1 : i32, i32
  }
}

module attributes {stable_mosaic.version = 11 : i64} {
  func.func @_mm_res_kernel(%arg0: i32, %arg1: i32, %arg2: i32, %arg3: memref<32x384xbf16, #tpu.memory_space<vmem>>, %arg4: memref<384x128xbf16, #tpu.memory_space<vmem>>, %arg5: memref<1x128xf32, #tpu.memory_space<vmem>>, %arg6: memref<32x128xf32, #tpu.memory_space<vmem>>, %arg7: memref<32x128xf32, #tpu.memory_space<vmem>>, %arg8: memref<32x128xf32, #tpu.memory_space<vmem>>) attributes {dimension_semantics = [#tpu.dimension_semantics<parallel>, #tpu.dimension_semantics<parallel>, #tpu.dimension_semantics<arbitrary>], iteration_bounds = array<i64: 1, 1, 3>, scalar_prefetch = 0 : i64, scratch_operands = 1 : i64, tpu.core_type = #tpu.core_type<tc>, window_params = [{transform_indices = @transform_0, window_bounds = array<i64: 32, 384>}, {transform_indices = @transform_1, window_bounds = array<i64: 384, 128>}, {transform_indices = @transform_2, window_bounds = array<i64: 1, 128>}, {transform_indices = @transform_3, window_bounds = array<i64: 32, 128>}, {transform_indices = @transform_4, window_bounds = array<i64: 32, 128>}]} {
    %c0_i32 = arith.constant 0 : i32
    %0 = arith.cmpi eq, %arg2, %c0_i32 : i32
    %1 = arith.extui %0 : i1 to i32
    %c0_i32_0 = arith.constant 0 : i32
    %2 = arith.cmpi ne, %1, %c0_i32_0 : i32
    scf.if %2 {
      %cst_9 = arith.constant 0.000000e+00 : f32
      %12 = vector.broadcast %cst_9 : f32 to vector<32x128xf32>
      %c0_10 = arith.constant 0 : index
      %c0_11 = arith.constant 0 : index
      %13 = vector.load %arg8[%c0_10, %c0_11] : memref<32x128xf32, #tpu.memory_space<vmem>>, vector<32x128xf32>
      tpu.vector_store %arg8[%c0_10, %c0_11], %12 {strides = array<i32>} : memref<32x128xf32, #tpu.memory_space<vmem>>, vector<32x128xf32>,
    } else {
    }
    %c0 = arith.constant 0 : index
    %c0_1 = arith.constant 0 : index
    %3 = vector.load %arg8[%c0, %c0_1] : memref<32x128xf32, #tpu.memory_space<vmem>>, vector<32x128xf32>
    %c0_2 = arith.constant 0 : index
    %c0_3 = arith.constant 0 : index
    %4 = vector.load %arg3[%c0_2, %c0_3] : memref<32x384xbf16, #tpu.memory_space<vmem>>, vector<32x384xbf16>
    %c0_4 = arith.constant 0 : index
    %c0_5 = arith.constant 0 : index
    %5 = vector.load %arg4[%c0_4, %c0_5] : memref<384x128xbf16, #tpu.memory_space<vmem>>, vector<384x128xbf16>
    %cst = arith.constant dense<0.000000e+00> : vector<32x128xf32>
    %6 = tpu.matmul %4, %5, %cst {dimension_numbers = #tpu.dot_dimension_numbers<[1], [0], [0], [1], [0, 0, 1, 1], [], []>} : vector<32x384xbf16>, vector<384x128xbf16>, vector<32x128xf32> -> vector<32x128xf32>
    %7 = arith.addf %3, %6 : vector<32x128xf32>
    %c0_6 = arith.constant 0 : index
    %c0_7 = arith.constant 0 : index
    %8 = vector.load %arg8[%c0_6, %c0_7] : memref<32x128xf32, #tpu.memory_space<vmem>>, vector<32x128xf32>
    tpu.vector_store %arg8[%c0_6, %c0_7], %7 {strides = array<i32>} : memref<32x128xf32, #tpu.memory_space<vmem>>, vector<32x128xf32>,
    %c2_i32 = arith.constant 2 : i32
    %9 = arith.cmpi eq, %arg2, %c2_i32 : i32
    %10 = arith.extui %9 : i1 to i32
    %c0_i32_8 = arith.constant 0 : i32
    %11 = arith.cmpi ne, %10, %c0_i32_8 : i32
    scf.if %11 {
      %c0_9 = arith.constant 0 : index
      %c0_10 = arith.constant 0 : index
      %12 = vector.load %arg8[%c0_9, %c0_10] : memref<32x128xf32, #tpu.memory_space<vmem>>, vector<32x128xf32>
      %c0_11 = arith.constant 0 : index
      %c0_12 = arith.constant 0 : index
      %13 = vector.load %arg5[%c0_11, %c0_12] : memref<1x128xf32, #tpu.memory_space<vmem>>, vector<1x128xf32>
      %14 = vector.broadcast %13 : vector<1x128xf32> to vector<32x128xf32>
      %15 = arith.addf %12, %14 : vector<32x128xf32>
      %c0_13 = arith.constant 0 : index
      %c0_14 = arith.constant 0 : index
      %16 = vector.load %arg6[%c0_13, %c0_14] : memref<32x128xf32, #tpu.memory_space<vmem>>, vector<32x128xf32>
      %17 = arith.addf %15, %16 : vector<32x128xf32>
      %cst_15 = arith.constant 0.000000e+00 : f32
      %18 = vector.broadcast %cst_15 : f32 to vector<32x128xf32>
      %19 = arith.maximumf %17, %18 : vector<32x128xf32>
      %c0_16 = arith.constant 0 : index
      %c0_17 = arith.constant 0 : index
      %20 = vector.load %arg7[%c0_16, %c0_17] : memref<32x128xf32, #tpu.memory_space<vmem>>, vector<32x128xf32>
      tpu.vector_store %arg7[%c0_16, %c0_17], %19 {strides = array<i32>} : memref<32x128xf32, #tpu.memory_space<vmem>>, vector<32x128xf32>,
    } else {
    }
    return
  }
  func.func @transform_0(%arg0: i32, %arg1: i32, %arg2: i32) -> (i32, i32) {
    %c0_i32 = arith.constant 0 : i32
    return %arg0, %arg2 : i32, i32
  }
  func.func @transform_1(%arg0: i32, %arg1: i32, %arg2: i32) -> (i32, i32) {
    %c0_i32 = arith.constant 0 : i32
    return %arg2, %arg1 : i32, i32
  }
  func.func @transform_2(%arg0: i32, %arg1: i32, %arg2: i32) -> (i32, i32) {
    %c0_i32 = arith.constant 0 : i32
    %c0_i32_0 = arith.constant 0 : i32
    return %c0_i32, %arg1 : i32, i32
  }
  func.func @transform_3(%arg0: i32, %arg1: i32, %arg2: i32) -> (i32, i32) {
    %c0_i32 = arith.constant 0 : i32
    return %arg0, %arg1 : i32, i32
  }
  func.func @transform_4(%arg0: i32, %arg1: i32, %arg2: i32) -> (i32, i32) {
    %c0_i32 = arith.constant 0 : i32
    return %arg0, %arg1 : i32, i32
  }
}

module attributes {stable_mosaic.version = 11 : i64} {
  func.func @_mm_kernel(%arg0: i32, %arg1: i32, %arg2: i32, %arg3: memref<32x384xbf16, #tpu.memory_space<vmem>>, %arg4: memref<384x128xbf16, #tpu.memory_space<vmem>>, %arg5: memref<1x128xf32, #tpu.memory_space<vmem>>, %arg6: memref<32x128xf32, #tpu.memory_space<vmem>>, %arg7: memref<32x128xf32, #tpu.memory_space<vmem>>) attributes {dimension_semantics = [#tpu.dimension_semantics<parallel>, #tpu.dimension_semantics<parallel>, #tpu.dimension_semantics<arbitrary>], iteration_bounds = array<i64: 1, 1, 3>, scalar_prefetch = 0 : i64, scratch_operands = 1 : i64, tpu.core_type = #tpu.core_type<tc>, window_params = [{transform_indices = @transform_0, window_bounds = array<i64: 32, 384>}, {transform_indices = @transform_1, window_bounds = array<i64: 384, 128>}, {transform_indices = @transform_2, window_bounds = array<i64: 1, 128>}, {transform_indices = @transform_3, window_bounds = array<i64: 32, 128>}]} {
    %c0_i32 = arith.constant 0 : i32
    %0 = arith.cmpi eq, %arg2, %c0_i32 : i32
    %1 = arith.extui %0 : i1 to i32
    %c0_i32_0 = arith.constant 0 : i32
    %2 = arith.cmpi ne, %1, %c0_i32_0 : i32
    scf.if %2 {
      %cst_9 = arith.constant 0.000000e+00 : f32
      %12 = vector.broadcast %cst_9 : f32 to vector<32x128xf32>
      %c0_10 = arith.constant 0 : index
      %c0_11 = arith.constant 0 : index
      %13 = vector.load %arg7[%c0_10, %c0_11] : memref<32x128xf32, #tpu.memory_space<vmem>>, vector<32x128xf32>
      tpu.vector_store %arg7[%c0_10, %c0_11], %12 {strides = array<i32>} : memref<32x128xf32, #tpu.memory_space<vmem>>, vector<32x128xf32>,
    } else {
    }
    %c0 = arith.constant 0 : index
    %c0_1 = arith.constant 0 : index
    %3 = vector.load %arg7[%c0, %c0_1] : memref<32x128xf32, #tpu.memory_space<vmem>>, vector<32x128xf32>
    %c0_2 = arith.constant 0 : index
    %c0_3 = arith.constant 0 : index
    %4 = vector.load %arg3[%c0_2, %c0_3] : memref<32x384xbf16, #tpu.memory_space<vmem>>, vector<32x384xbf16>
    %c0_4 = arith.constant 0 : index
    %c0_5 = arith.constant 0 : index
    %5 = vector.load %arg4[%c0_4, %c0_5] : memref<384x128xbf16, #tpu.memory_space<vmem>>, vector<384x128xbf16>
    %cst = arith.constant dense<0.000000e+00> : vector<32x128xf32>
    %6 = tpu.matmul %4, %5, %cst {dimension_numbers = #tpu.dot_dimension_numbers<[1], [0], [0], [1], [0, 0, 1, 1], [], []>} : vector<32x384xbf16>, vector<384x128xbf16>, vector<32x128xf32> -> vector<32x128xf32>
    %7 = arith.addf %3, %6 : vector<32x128xf32>
    %c0_6 = arith.constant 0 : index
    %c0_7 = arith.constant 0 : index
    %8 = vector.load %arg7[%c0_6, %c0_7] : memref<32x128xf32, #tpu.memory_space<vmem>>, vector<32x128xf32>
    tpu.vector_store %arg7[%c0_6, %c0_7], %7 {strides = array<i32>} : memref<32x128xf32, #tpu.memory_space<vmem>>, vector<32x128xf32>,
    %c2_i32 = arith.constant 2 : i32
    %9 = arith.cmpi eq, %arg2, %c2_i32 : i32
    %10 = arith.extui %9 : i1 to i32
    %c0_i32_8 = arith.constant 0 : i32
    %11 = arith.cmpi ne, %10, %c0_i32_8 : i32
    scf.if %11 {
      %c0_9 = arith.constant 0 : index
      %c0_10 = arith.constant 0 : index
      %12 = vector.load %arg7[%c0_9, %c0_10] : memref<32x128xf32, #tpu.memory_space<vmem>>, vector<32x128xf32>
      %c0_11 = arith.constant 0 : index
      %c0_12 = arith.constant 0 : index
      %13 = vector.load %arg5[%c0_11, %c0_12] : memref<1x128xf32, #tpu.memory_space<vmem>>, vector<1x128xf32>
      %14 = vector.broadcast %13 : vector<1x128xf32> to vector<32x128xf32>
      %15 = arith.addf %12, %14 : vector<32x128xf32>
      %cst_13 = arith.constant 0.000000e+00 : f32
      %16 = vector.broadcast %cst_13 : f32 to vector<32x128xf32>
      %17 = arith.maximumf %15, %16 : vector<32x128xf32>
      %c0_14 = arith.constant 0 : index
      %c0_15 = arith.constant 0 : index
      %18 = vector.load %arg6[%c0_14, %c0_15] : memref<32x128xf32, #tpu.memory_space<vmem>>, vector<32x128xf32>
      tpu.vector_store %arg6[%c0_14, %c0_15], %17 {strides = array<i32>} : memref<32x128xf32, #tpu.memory_space<vmem>>, vector<32x128xf32>,
    } else {
    }
    return
  }
  func.func @transform_0(%arg0: i32, %arg1: i32, %arg2: i32) -> (i32, i32) {
    %c0_i32 = arith.constant 0 : i32
    return %arg0, %arg2 : i32, i32
  }
  func.func @transform_1(%arg0: i32, %arg1: i32, %arg2: i32) -> (i32, i32) {
    %c0_i32 = arith.constant 0 : i32
    return %arg2, %arg1 : i32, i32
  }
  func.func @transform_2(%arg0: i32, %arg1: i32, %arg2: i32) -> (i32, i32) {
    %c0_i32 = arith.constant 0 : i32
    %c0_i32_0 = arith.constant 0 : i32
    return %c0_i32, %arg1 : i32, i32
  }
  func.func @transform_3(%arg0: i32, %arg1: i32, %arg2: i32) -> (i32, i32) {
    %c0_i32 = arith.constant 0 : i32
    return %arg0, %arg1 : i32, i32
  }
}

module attributes {stable_mosaic.version = 11 : i64} {
  func.func @_mm_kernel(%arg0: i32, %arg1: i32, %arg2: i32, %arg3: memref<32x128xbf16, #tpu.memory_space<vmem>>, %arg4: memref<128x128xbf16, #tpu.memory_space<vmem>>, %arg5: memref<1x128xf32, #tpu.memory_space<vmem>>, %arg6: memref<32x128xf32, #tpu.memory_space<vmem>>, %arg7: memref<32x128xf32, #tpu.memory_space<vmem>>) attributes {dimension_semantics = [#tpu.dimension_semantics<parallel>, #tpu.dimension_semantics<parallel>, #tpu.dimension_semantics<arbitrary>], iteration_bounds = array<i64: 1, 1, 1>, scalar_prefetch = 0 : i64, scratch_operands = 1 : i64, tpu.core_type = #tpu.core_type<tc>, window_params = [{transform_indices = @transform_0, window_bounds = array<i64: 32, 128>}, {transform_indices = @transform_1, window_bounds = array<i64: 128, 128>}, {transform_indices = @transform_2, window_bounds = array<i64: 1, 128>}, {transform_indices = @transform_3, window_bounds = array<i64: 32, 128>}]} {
    %c0_i32 = arith.constant 0 : i32
    %0 = arith.cmpi eq, %arg2, %c0_i32 : i32
    %1 = arith.extui %0 : i1 to i32
    %c0_i32_0 = arith.constant 0 : i32
    %2 = arith.cmpi ne, %1, %c0_i32_0 : i32
    scf.if %2 {
      %cst_10 = arith.constant 0.000000e+00 : f32
      %12 = vector.broadcast %cst_10 : f32 to vector<32x128xf32>
      %c0_11 = arith.constant 0 : index
      %c0_12 = arith.constant 0 : index
      %13 = vector.load %arg7[%c0_11, %c0_12] : memref<32x128xf32, #tpu.memory_space<vmem>>, vector<32x128xf32>
      tpu.vector_store %arg7[%c0_11, %c0_12], %12 {strides = array<i32>} : memref<32x128xf32, #tpu.memory_space<vmem>>, vector<32x128xf32>,
    } else {
    }
    %c0 = arith.constant 0 : index
    %c0_1 = arith.constant 0 : index
    %3 = vector.load %arg7[%c0, %c0_1] : memref<32x128xf32, #tpu.memory_space<vmem>>, vector<32x128xf32>
    %c0_2 = arith.constant 0 : index
    %c0_3 = arith.constant 0 : index
    %4 = vector.load %arg3[%c0_2, %c0_3] : memref<32x128xbf16, #tpu.memory_space<vmem>>, vector<32x128xbf16>
    %c0_4 = arith.constant 0 : index
    %c0_5 = arith.constant 0 : index
    %5 = vector.load %arg4[%c0_4, %c0_5] : memref<128x128xbf16, #tpu.memory_space<vmem>>, vector<128x128xbf16>
    %cst = arith.constant dense<0.000000e+00> : vector<32x128xf32>
    %6 = tpu.matmul %4, %5, %cst {dimension_numbers = #tpu.dot_dimension_numbers<[1], [0], [0], [1], [0, 0, 1, 1], [], []>} : vector<32x128xbf16>, vector<128x128xbf16>, vector<32x128xf32> -> vector<32x128xf32>
    %7 = arith.addf %3, %6 : vector<32x128xf32>
    %c0_6 = arith.constant 0 : index
    %c0_7 = arith.constant 0 : index
    %8 = vector.load %arg7[%c0_6, %c0_7] : memref<32x128xf32, #tpu.memory_space<vmem>>, vector<32x128xf32>
    tpu.vector_store %arg7[%c0_6, %c0_7], %7 {strides = array<i32>} : memref<32x128xf32, #tpu.memory_space<vmem>>, vector<32x128xf32>,
    %c0_i32_8 = arith.constant 0 : i32
    %9 = arith.cmpi eq, %arg2, %c0_i32_8 : i32
    %10 = arith.extui %9 : i1 to i32
    %c0_i32_9 = arith.constant 0 : i32
    %11 = arith.cmpi ne, %10, %c0_i32_9 : i32
    scf.if %11 {
      %c0_10 = arith.constant 0 : index
      %c0_11 = arith.constant 0 : index
      %12 = vector.load %arg7[%c0_10, %c0_11] : memref<32x128xf32, #tpu.memory_space<vmem>>, vector<32x128xf32>
      %c0_12 = arith.constant 0 : index
      %c0_13 = arith.constant 0 : index
      %13 = vector.load %arg5[%c0_12, %c0_13] : memref<1x128xf32, #tpu.memory_space<vmem>>, vector<1x128xf32>
      %14 = vector.broadcast %13 : vector<1x128xf32> to vector<32x128xf32>
      %15 = arith.addf %12, %14 : vector<32x128xf32>
      %c0_14 = arith.constant 0 : index
      %c0_15 = arith.constant 0 : index
      %16 = vector.load %arg6[%c0_14, %c0_15] : memref<32x128xf32, #tpu.memory_space<vmem>>, vector<32x128xf32>
      tpu.vector_store %arg6[%c0_14, %c0_15], %15 {strides = array<i32>} : memref<32x128xf32, #tpu.memory_space<vmem>>, vector<32x128xf32>,
    } else {
    }
    return
  }
  func.func @transform_0(%arg0: i32, %arg1: i32, %arg2: i32) -> (i32, i32) {
    %c0_i32 = arith.constant 0 : i32
    return %arg0, %arg2 : i32, i32
  }
  func.func @transform_1(%arg0: i32, %arg1: i32, %arg2: i32) -> (i32, i32) {
    %c0_i32 = arith.constant 0 : i32
    return %arg2, %arg1 : i32, i32
  }
  func.func @transform_2(%arg0: i32, %arg1: i32, %arg2: i32) -> (i32, i32) {
    %c0_i32 = arith.constant 0 : i32
    %c0_i32_0 = arith.constant 0 : i32
    return %c0_i32, %arg1 : i32, i32
  }
  func.func @transform_3(%arg0: i32, %arg1: i32, %arg2: i32) -> (i32, i32) {
    %c0_i32 = arith.constant 0 : i32
    return %arg0, %arg1 : i32, i32
  }
}

module attributes {stable_mosaic.version = 11 : i64} {
  func.func @_mm_kernel(%arg0: i32, %arg1: i32, %arg2: i32, %arg3: memref<16x384xbf16, #tpu.memory_space<vmem>>, %arg4: memref<384x256xbf16, #tpu.memory_space<vmem>>, %arg5: memref<1x256xf32, #tpu.memory_space<vmem>>, %arg6: memref<16x256xf32, #tpu.memory_space<vmem>>, %arg7: memref<16x256xf32, #tpu.memory_space<vmem>>) attributes {dimension_semantics = [#tpu.dimension_semantics<parallel>, #tpu.dimension_semantics<parallel>, #tpu.dimension_semantics<arbitrary>], iteration_bounds = array<i64: 1, 1, 3>, scalar_prefetch = 0 : i64, scratch_operands = 1 : i64, tpu.core_type = #tpu.core_type<tc>, window_params = [{transform_indices = @transform_0, window_bounds = array<i64: 16, 384>}, {transform_indices = @transform_1, window_bounds = array<i64: 384, 256>}, {transform_indices = @transform_2, window_bounds = array<i64: 1, 256>}, {transform_indices = @transform_3, window_bounds = array<i64: 16, 256>}]} {
    %c0_i32 = arith.constant 0 : i32
    %0 = arith.cmpi eq, %arg2, %c0_i32 : i32
    %1 = arith.extui %0 : i1 to i32
    %c0_i32_0 = arith.constant 0 : i32
    %2 = arith.cmpi ne, %1, %c0_i32_0 : i32
    scf.if %2 {
      %cst_9 = arith.constant 0.000000e+00 : f32
      %12 = vector.broadcast %cst_9 : f32 to vector<16x256xf32>
      %c0_10 = arith.constant 0 : index
      %c0_11 = arith.constant 0 : index
      %13 = vector.load %arg7[%c0_10, %c0_11] : memref<16x256xf32, #tpu.memory_space<vmem>>, vector<16x256xf32>
      tpu.vector_store %arg7[%c0_10, %c0_11], %12 {strides = array<i32>} : memref<16x256xf32, #tpu.memory_space<vmem>>, vector<16x256xf32>,
    } else {
    }
    %c0 = arith.constant 0 : index
    %c0_1 = arith.constant 0 : index
    %3 = vector.load %arg7[%c0, %c0_1] : memref<16x256xf32, #tpu.memory_space<vmem>>, vector<16x256xf32>
    %c0_2 = arith.constant 0 : index
    %c0_3 = arith.constant 0 : index
    %4 = vector.load %arg3[%c0_2, %c0_3] : memref<16x384xbf16, #tpu.memory_space<vmem>>, vector<16x384xbf16>
    %c0_4 = arith.constant 0 : index
    %c0_5 = arith.constant 0 : index
    %5 = vector.load %arg4[%c0_4, %c0_5] : memref<384x256xbf16, #tpu.memory_space<vmem>>, vector<384x256xbf16>
    %cst = arith.constant dense<0.000000e+00> : vector<16x256xf32>
    %6 = tpu.matmul %4, %5, %cst {dimension_numbers = #tpu.dot_dimension_numbers<[1], [0], [0], [1], [0, 0, 1, 1], [], []>} : vector<16x384xbf16>, vector<384x256xbf16>, vector<16x256xf32> -> vector<16x256xf32>
    %7 = arith.addf %3, %6 : vector<16x256xf32>
    %c0_6 = arith.constant 0 : index
    %c0_7 = arith.constant 0 : index
    %8 = vector.load %arg7[%c0_6, %c0_7] : memref<16x256xf32, #tpu.memory_space<vmem>>, vector<16x256xf32>
    tpu.vector_store %arg7[%c0_6, %c0_7], %7 {strides = array<i32>} : memref<16x256xf32, #tpu.memory_space<vmem>>, vector<16x256xf32>,
    %c2_i32 = arith.constant 2 : i32
    %9 = arith.cmpi eq, %arg2, %c2_i32 : i32
    %10 = arith.extui %9 : i1 to i32
    %c0_i32_8 = arith.constant 0 : i32
    %11 = arith.cmpi ne, %10, %c0_i32_8 : i32
    scf.if %11 {
      %c0_9 = arith.constant 0 : index
      %c0_10 = arith.constant 0 : index
      %12 = vector.load %arg7[%c0_9, %c0_10] : memref<16x256xf32, #tpu.memory_space<vmem>>, vector<16x256xf32>
      %c0_11 = arith.constant 0 : index
      %c0_12 = arith.constant 0 : index
      %13 = vector.load %arg5[%c0_11, %c0_12] : memref<1x256xf32, #tpu.memory_space<vmem>>, vector<1x256xf32>
      %14 = vector.broadcast %13 : vector<1x256xf32> to vector<16x256xf32>
      %15 = arith.addf %12, %14 : vector<16x256xf32>
      %cst_13 = arith.constant 0.000000e+00 : f32
      %16 = vector.broadcast %cst_13 : f32 to vector<16x256xf32>
      %17 = arith.maximumf %15, %16 : vector<16x256xf32>
      %c0_14 = arith.constant 0 : index
      %c0_15 = arith.constant 0 : index
      %18 = vector.load %arg6[%c0_14, %c0_15] : memref<16x256xf32, #tpu.memory_space<vmem>>, vector<16x256xf32>
      tpu.vector_store %arg6[%c0_14, %c0_15], %17 {strides = array<i32>} : memref<16x256xf32, #tpu.memory_space<vmem>>, vector<16x256xf32>,
    } else {
    }
    return
  }
  func.func @transform_0(%arg0: i32, %arg1: i32, %arg2: i32) -> (i32, i32) {
    %c0_i32 = arith.constant 0 : i32
    return %arg0, %arg2 : i32, i32
  }
  func.func @transform_1(%arg0: i32, %arg1: i32, %arg2: i32) -> (i32, i32) {
    %c0_i32 = arith.constant 0 : i32
    return %arg2, %arg1 : i32, i32
  }
  func.func @transform_2(%arg0: i32, %arg1: i32, %arg2: i32) -> (i32, i32) {
    %c0_i32 = arith.constant 0 : i32
    %c0_i32_0 = arith.constant 0 : i32
    return %c0_i32, %arg1 : i32, i32
  }
  func.func @transform_3(%arg0: i32, %arg1: i32, %arg2: i32) -> (i32, i32) {
    %c0_i32 = arith.constant 0 : i32
    return %arg0, %arg1 : i32, i32
  }
}

module attributes {stable_mosaic.version = 11 : i64} {
  func.func @_mm_kernel(%arg0: i32, %arg1: i32, %arg2: i32, %arg3: memref<16x128xbf16, #tpu.memory_space<vmem>>, %arg4: memref<128x256xbf16, #tpu.memory_space<vmem>>, %arg5: memref<1x256xf32, #tpu.memory_space<vmem>>, %arg6: memref<16x256xf32, #tpu.memory_space<vmem>>, %arg7: memref<16x256xf32, #tpu.memory_space<vmem>>) attributes {dimension_semantics = [#tpu.dimension_semantics<parallel>, #tpu.dimension_semantics<parallel>, #tpu.dimension_semantics<arbitrary>], iteration_bounds = array<i64: 1, 1, 1>, scalar_prefetch = 0 : i64, scratch_operands = 1 : i64, tpu.core_type = #tpu.core_type<tc>, window_params = [{transform_indices = @transform_0, window_bounds = array<i64: 16, 128>}, {transform_indices = @transform_1, window_bounds = array<i64: 128, 256>}, {transform_indices = @transform_2, window_bounds = array<i64: 1, 256>}, {transform_indices = @transform_3, window_bounds = array<i64: 16, 256>}]} {
    %c0_i32 = arith.constant 0 : i32
    %0 = arith.cmpi eq, %arg2, %c0_i32 : i32
    %1 = arith.extui %0 : i1 to i32
    %c0_i32_0 = arith.constant 0 : i32
    %2 = arith.cmpi ne, %1, %c0_i32_0 : i32
    scf.if %2 {
      %cst_10 = arith.constant 0.000000e+00 : f32
      %12 = vector.broadcast %cst_10 : f32 to vector<16x256xf32>
      %c0_11 = arith.constant 0 : index
      %c0_12 = arith.constant 0 : index
      %13 = vector.load %arg7[%c0_11, %c0_12] : memref<16x256xf32, #tpu.memory_space<vmem>>, vector<16x256xf32>
      tpu.vector_store %arg7[%c0_11, %c0_12], %12 {strides = array<i32>} : memref<16x256xf32, #tpu.memory_space<vmem>>, vector<16x256xf32>,
    } else {
    }
    %c0 = arith.constant 0 : index
    %c0_1 = arith.constant 0 : index
    %3 = vector.load %arg7[%c0, %c0_1] : memref<16x256xf32, #tpu.memory_space<vmem>>, vector<16x256xf32>
    %c0_2 = arith.constant 0 : index
    %c0_3 = arith.constant 0 : index
    %4 = vector.load %arg3[%c0_2, %c0_3] : memref<16x128xbf16, #tpu.memory_space<vmem>>, vector<16x128xbf16>
    %c0_4 = arith.constant 0 : index
    %c0_5 = arith.constant 0 : index
    %5 = vector.load %arg4[%c0_4, %c0_5] : memref<128x256xbf16, #tpu.memory_space<vmem>>, vector<128x256xbf16>
    %cst = arith.constant dense<0.000000e+00> : vector<16x256xf32>
    %6 = tpu.matmul %4, %5, %cst {dimension_numbers = #tpu.dot_dimension_numbers<[1], [0], [0], [1], [0, 0, 1, 1], [], []>} : vector<16x128xbf16>, vector<128x256xbf16>, vector<16x256xf32> -> vector<16x256xf32>
    %7 = arith.addf %3, %6 : vector<16x256xf32>
    %c0_6 = arith.constant 0 : index
    %c0_7 = arith.constant 0 : index
    %8 = vector.load %arg7[%c0_6, %c0_7] : memref<16x256xf32, #tpu.memory_space<vmem>>, vector<16x256xf32>
    tpu.vector_store %arg7[%c0_6, %c0_7], %7 {strides = array<i32>} : memref<16x256xf32, #tpu.memory_space<vmem>>, vector<16x256xf32>,
    %c0_i32_8 = arith.constant 0 : i32
    %9 = arith.cmpi eq, %arg2, %c0_i32_8 : i32
    %10 = arith.extui %9 : i1 to i32
    %c0_i32_9 = arith.constant 0 : i32
    %11 = arith.cmpi ne, %10, %c0_i32_9 : i32
    scf.if %11 {
      %c0_10 = arith.constant 0 : index
      %c0_11 = arith.constant 0 : index
      %12 = vector.load %arg7[%c0_10, %c0_11] : memref<16x256xf32, #tpu.memory_space<vmem>>, vector<16x256xf32>
      %c0_12 = arith.constant 0 : index
      %c0_13 = arith.constant 0 : index
      %13 = vector.load %arg5[%c0_12, %c0_13] : memref<1x256xf32, #tpu.memory_space<vmem>>, vector<1x256xf32>
      %14 = vector.broadcast %13 : vector<1x256xf32> to vector<16x256xf32>
      %15 = arith.addf %12, %14 : vector<16x256xf32>
      %c0_14 = arith.constant 0 : index
      %c0_15 = arith.constant 0 : index
      %16 = vector.load %arg6[%c0_14, %c0_15] : memref<16x256xf32, #tpu.memory_space<vmem>>, vector<16x256xf32>
      tpu.vector_store %arg6[%c0_14, %c0_15], %15 {strides = array<i32>} : memref<16x256xf32, #tpu.memory_space<vmem>>, vector<16x256xf32>,
    } else {
    }
    return
  }
  func.func @transform_0(%arg0: i32, %arg1: i32, %arg2: i32) -> (i32, i32) {
    %c0_i32 = arith.constant 0 : i32
    return %arg0, %arg2 : i32, i32
  }
  func.func @transform_1(%arg0: i32, %arg1: i32, %arg2: i32) -> (i32, i32) {
    %c0_i32 = arith.constant 0 : i32
    return %arg2, %arg1 : i32, i32
  }
  func.func @transform_2(%arg0: i32, %arg1: i32, %arg2: i32) -> (i32, i32) {
    %c0_i32 = arith.constant 0 : i32
    %c0_i32_0 = arith.constant 0 : i32
    return %c0_i32, %arg1 : i32, i32
  }
  func.func @transform_3(%arg0: i32, %arg1: i32, %arg2: i32) -> (i32, i32) {
    %c0_i32 = arith.constant 0 : i32
    return %arg0, %arg1 : i32, i32
  }
}

module attributes {stable_mosaic.version = 11 : i64} {
  func.func @_mm_kernel(%arg0: i32, %arg1: i32, %arg2: i32, %arg3: memref<16x384xbf16, #tpu.memory_space<vmem>>, %arg4: memref<384x256xbf16, #tpu.memory_space<vmem>>, %arg5: memref<1x256xf32, #tpu.memory_space<vmem>>, %arg6: memref<16x256xf32, #tpu.memory_space<vmem>>, %arg7: memref<16x256xf32, #tpu.memory_space<vmem>>) attributes {dimension_semantics = [#tpu.dimension_semantics<parallel>, #tpu.dimension_semantics<parallel>, #tpu.dimension_semantics<arbitrary>], iteration_bounds = array<i64: 1, 1, 6>, scalar_prefetch = 0 : i64, scratch_operands = 1 : i64, tpu.core_type = #tpu.core_type<tc>, window_params = [{transform_indices = @transform_0, window_bounds = array<i64: 16, 384>}, {transform_indices = @transform_1, window_bounds = array<i64: 384, 256>}, {transform_indices = @transform_2, window_bounds = array<i64: 1, 256>}, {transform_indices = @transform_3, window_bounds = array<i64: 16, 256>}]} {
    %c0_i32 = arith.constant 0 : i32
    %0 = arith.cmpi eq, %arg2, %c0_i32 : i32
    %1 = arith.extui %0 : i1 to i32
    %c0_i32_0 = arith.constant 0 : i32
    %2 = arith.cmpi ne, %1, %c0_i32_0 : i32
    scf.if %2 {
      %cst_9 = arith.constant 0.000000e+00 : f32
      %12 = vector.broadcast %cst_9 : f32 to vector<16x256xf32>
      %c0_10 = arith.constant 0 : index
      %c0_11 = arith.constant 0 : index
      %13 = vector.load %arg7[%c0_10, %c0_11] : memref<16x256xf32, #tpu.memory_space<vmem>>, vector<16x256xf32>
      tpu.vector_store %arg7[%c0_10, %c0_11], %12 {strides = array<i32>} : memref<16x256xf32, #tpu.memory_space<vmem>>, vector<16x256xf32>,
    } else {
    }
    %c0 = arith.constant 0 : index
    %c0_1 = arith.constant 0 : index
    %3 = vector.load %arg7[%c0, %c0_1] : memref<16x256xf32, #tpu.memory_space<vmem>>, vector<16x256xf32>
    %c0_2 = arith.constant 0 : index
    %c0_3 = arith.constant 0 : index
    %4 = vector.load %arg3[%c0_2, %c0_3] : memref<16x384xbf16, #tpu.memory_space<vmem>>, vector<16x384xbf16>
    %c0_4 = arith.constant 0 : index
    %c0_5 = arith.constant 0 : index
    %5 = vector.load %arg4[%c0_4, %c0_5] : memref<384x256xbf16, #tpu.memory_space<vmem>>, vector<384x256xbf16>
    %cst = arith.constant dense<0.000000e+00> : vector<16x256xf32>
    %6 = tpu.matmul %4, %5, %cst {dimension_numbers = #tpu.dot_dimension_numbers<[1], [0], [0], [1], [0, 0, 1, 1], [], []>} : vector<16x384xbf16>, vector<384x256xbf16>, vector<16x256xf32> -> vector<16x256xf32>
    %7 = arith.addf %3, %6 : vector<16x256xf32>
    %c0_6 = arith.constant 0 : index
    %c0_7 = arith.constant 0 : index
    %8 = vector.load %arg7[%c0_6, %c0_7] : memref<16x256xf32, #tpu.memory_space<vmem>>, vector<16x256xf32>
    tpu.vector_store %arg7[%c0_6, %c0_7], %7 {strides = array<i32>} : memref<16x256xf32, #tpu.memory_space<vmem>>, vector<16x256xf32>,
    %c5_i32 = arith.constant 5 : i32
    %9 = arith.cmpi eq, %arg2, %c5_i32 : i32
    %10 = arith.extui %9 : i1 to i32
    %c0_i32_8 = arith.constant 0 : i32
    %11 = arith.cmpi ne, %10, %c0_i32_8 : i32
    scf.if %11 {
      %c0_9 = arith.constant 0 : index
      %c0_10 = arith.constant 0 : index
      %12 = vector.load %arg7[%c0_9, %c0_10] : memref<16x256xf32, #tpu.memory_space<vmem>>, vector<16x256xf32>
      %c0_11 = arith.constant 0 : index
      %c0_12 = arith.constant 0 : index
      %13 = vector.load %arg5[%c0_11, %c0_12] : memref<1x256xf32, #tpu.memory_space<vmem>>, vector<1x256xf32>
      %14 = vector.broadcast %13 : vector<1x256xf32> to vector<16x256xf32>
      %15 = arith.addf %12, %14 : vector<16x256xf32>
      %cst_13 = arith.constant 0.000000e+00 : f32
      %16 = vector.broadcast %cst_13 : f32 to vector<16x256xf32>
      %17 = arith.maximumf %15, %16 : vector<16x256xf32>
      %c0_14 = arith.constant 0 : index
      %c0_15 = arith.constant 0 : index
      %18 = vector.load %arg6[%c0_14, %c0_15] : memref<16x256xf32, #tpu.memory_space<vmem>>, vector<16x256xf32>
      tpu.vector_store %arg6[%c0_14, %c0_15], %17 {strides = array<i32>} : memref<16x256xf32, #tpu.memory_space<vmem>>, vector<16x256xf32>,
    } else {
    }
    return
  }
  func.func @transform_0(%arg0: i32, %arg1: i32, %arg2: i32) -> (i32, i32) {
    %c0_i32 = arith.constant 0 : i32
    return %arg0, %arg2 : i32, i32
  }
  func.func @transform_1(%arg0: i32, %arg1: i32, %arg2: i32) -> (i32, i32) {
    %c0_i32 = arith.constant 0 : i32
    return %arg2, %arg1 : i32, i32
  }
  func.func @transform_2(%arg0: i32, %arg1: i32, %arg2: i32) -> (i32, i32) {
    %c0_i32 = arith.constant 0 : i32
    %c0_i32_0 = arith.constant 0 : i32
    return %c0_i32, %arg1 : i32, i32
  }
  func.func @transform_3(%arg0: i32, %arg1: i32, %arg2: i32) -> (i32, i32) {
    %c0_i32 = arith.constant 0 : i32
    return %arg0, %arg1 : i32, i32
  }
}

module attributes {stable_mosaic.version = 11 : i64} {
  func.func @_mm_res_kernel(%arg0: i32, %arg1: i32, %arg2: i32, %arg3: memref<16x384xbf16, #tpu.memory_space<vmem>>, %arg4: memref<384x256xbf16, #tpu.memory_space<vmem>>, %arg5: memref<1x256xf32, #tpu.memory_space<vmem>>, %arg6: memref<16x256xf32, #tpu.memory_space<vmem>>, %arg7: memref<16x256xf32, #tpu.memory_space<vmem>>, %arg8: memref<16x256xf32, #tpu.memory_space<vmem>>) attributes {dimension_semantics = [#tpu.dimension_semantics<parallel>, #tpu.dimension_semantics<parallel>, #tpu.dimension_semantics<arbitrary>], iteration_bounds = array<i64: 1, 1, 6>, scalar_prefetch = 0 : i64, scratch_operands = 1 : i64, tpu.core_type = #tpu.core_type<tc>, window_params = [{transform_indices = @transform_0, window_bounds = array<i64: 16, 384>}, {transform_indices = @transform_1, window_bounds = array<i64: 384, 256>}, {transform_indices = @transform_2, window_bounds = array<i64: 1, 256>}, {transform_indices = @transform_3, window_bounds = array<i64: 16, 256>}, {transform_indices = @transform_4, window_bounds = array<i64: 16, 256>}]} {
    %c0_i32 = arith.constant 0 : i32
    %0 = arith.cmpi eq, %arg2, %c0_i32 : i32
    %1 = arith.extui %0 : i1 to i32
    %c0_i32_0 = arith.constant 0 : i32
    %2 = arith.cmpi ne, %1, %c0_i32_0 : i32
    scf.if %2 {
      %cst_9 = arith.constant 0.000000e+00 : f32
      %12 = vector.broadcast %cst_9 : f32 to vector<16x256xf32>
      %c0_10 = arith.constant 0 : index
      %c0_11 = arith.constant 0 : index
      %13 = vector.load %arg8[%c0_10, %c0_11] : memref<16x256xf32, #tpu.memory_space<vmem>>, vector<16x256xf32>
      tpu.vector_store %arg8[%c0_10, %c0_11], %12 {strides = array<i32>} : memref<16x256xf32, #tpu.memory_space<vmem>>, vector<16x256xf32>,
    } else {
    }
    %c0 = arith.constant 0 : index
    %c0_1 = arith.constant 0 : index
    %3 = vector.load %arg8[%c0, %c0_1] : memref<16x256xf32, #tpu.memory_space<vmem>>, vector<16x256xf32>
    %c0_2 = arith.constant 0 : index
    %c0_3 = arith.constant 0 : index
    %4 = vector.load %arg3[%c0_2, %c0_3] : memref<16x384xbf16, #tpu.memory_space<vmem>>, vector<16x384xbf16>
    %c0_4 = arith.constant 0 : index
    %c0_5 = arith.constant 0 : index
    %5 = vector.load %arg4[%c0_4, %c0_5] : memref<384x256xbf16, #tpu.memory_space<vmem>>, vector<384x256xbf16>
    %cst = arith.constant dense<0.000000e+00> : vector<16x256xf32>
    %6 = tpu.matmul %4, %5, %cst {dimension_numbers = #tpu.dot_dimension_numbers<[1], [0], [0], [1], [0, 0, 1, 1], [], []>} : vector<16x384xbf16>, vector<384x256xbf16>, vector<16x256xf32> -> vector<16x256xf32>
    %7 = arith.addf %3, %6 : vector<16x256xf32>
    %c0_6 = arith.constant 0 : index
    %c0_7 = arith.constant 0 : index
    %8 = vector.load %arg8[%c0_6, %c0_7] : memref<16x256xf32, #tpu.memory_space<vmem>>, vector<16x256xf32>
    tpu.vector_store %arg8[%c0_6, %c0_7], %7 {strides = array<i32>} : memref<16x256xf32, #tpu.memory_space<vmem>>, vector<16x256xf32>,
    %c5_i32 = arith.constant 5 : i32
    %9 = arith.cmpi eq, %arg2, %c5_i32 : i32
    %10 = arith.extui %9 : i1 to i32
    %c0_i32_8 = arith.constant 0 : i32
    %11 = arith.cmpi ne, %10, %c0_i32_8 : i32
    scf.if %11 {
      %c0_9 = arith.constant 0 : index
      %c0_10 = arith.constant 0 : index
      %12 = vector.load %arg8[%c0_9, %c0_10] : memref<16x256xf32, #tpu.memory_space<vmem>>, vector<16x256xf32>
      %c0_11 = arith.constant 0 : index
      %c0_12 = arith.constant 0 : index
      %13 = vector.load %arg5[%c0_11, %c0_12] : memref<1x256xf32, #tpu.memory_space<vmem>>, vector<1x256xf32>
      %14 = vector.broadcast %13 : vector<1x256xf32> to vector<16x256xf32>
      %15 = arith.addf %12, %14 : vector<16x256xf32>
      %c0_13 = arith.constant 0 : index
      %c0_14 = arith.constant 0 : index
      %16 = vector.load %arg6[%c0_13, %c0_14] : memref<16x256xf32, #tpu.memory_space<vmem>>, vector<16x256xf32>
      %17 = arith.addf %15, %16 : vector<16x256xf32>
      %cst_15 = arith.constant 0.000000e+00 : f32
      %18 = vector.broadcast %cst_15 : f32 to vector<16x256xf32>
      %19 = arith.maximumf %17, %18 : vector<16x256xf32>
      %c0_16 = arith.constant 0 : index
      %c0_17 = arith.constant 0 : index
      %20 = vector.load %arg7[%c0_16, %c0_17] : memref<16x256xf32, #tpu.memory_space<vmem>>, vector<16x256xf32>
      tpu.vector_store %arg7[%c0_16, %c0_17], %19 {strides = array<i32>} : memref<16x256xf32, #tpu.memory_space<vmem>>, vector<16x256xf32>,
    } else {
    }
    return
  }
  func.func @transform_0(%arg0: i32, %arg1: i32, %arg2: i32) -> (i32, i32) {
    %c0_i32 = arith.constant 0 : i32
    return %arg0, %arg2 : i32, i32
  }
  func.func @transform_1(%arg0: i32, %arg1: i32, %arg2: i32) -> (i32, i32) {
    %c0_i32 = arith.constant 0 : i32
    return %arg2, %arg1 : i32, i32
  }
  func.func @transform_2(%arg0: i32, %arg1: i32, %arg2: i32) -> (i32, i32) {
    %c0_i32 = arith.constant 0 : i32
    %c0_i32_0 = arith.constant 0 : i32
    return %c0_i32, %arg1 : i32, i32
  }
  func.func @transform_3(%arg0: i32, %arg1: i32, %arg2: i32) -> (i32, i32) {
    %c0_i32 = arith.constant 0 : i32
    return %arg0, %arg1 : i32, i32
  }
  func.func @transform_4(%arg0: i32, %arg1: i32, %arg2: i32) -> (i32, i32) {
    %c0_i32 = arith.constant 0 : i32
    return %arg0, %arg1 : i32, i32
  }
}

module attributes {stable_mosaic.version = 11 : i64} {
  func.func @_mm_kernel(%arg0: i32, %arg1: i32, %arg2: i32, %arg3: memref<16x384xbf16, #tpu.memory_space<vmem>>, %arg4: memref<384x256xbf16, #tpu.memory_space<vmem>>, %arg5: memref<1x256xf32, #tpu.memory_space<vmem>>, %arg6: memref<16x256xf32, #tpu.memory_space<vmem>>, %arg7: memref<16x256xf32, #tpu.memory_space<vmem>>) attributes {dimension_semantics = [#tpu.dimension_semantics<parallel>, #tpu.dimension_semantics<parallel>, #tpu.dimension_semantics<arbitrary>], iteration_bounds = array<i64: 1, 2, 6>, scalar_prefetch = 0 : i64, scratch_operands = 1 : i64, tpu.core_type = #tpu.core_type<tc>, window_params = [{transform_indices = @transform_0, window_bounds = array<i64: 16, 384>}, {transform_indices = @transform_1, window_bounds = array<i64: 384, 256>}, {transform_indices = @transform_2, window_bounds = array<i64: 1, 256>}, {transform_indices = @transform_3, window_bounds = array<i64: 16, 256>}]} {
    %c0_i32 = arith.constant 0 : i32
    %0 = arith.cmpi eq, %arg2, %c0_i32 : i32
    %1 = arith.extui %0 : i1 to i32
    %c0_i32_0 = arith.constant 0 : i32
    %2 = arith.cmpi ne, %1, %c0_i32_0 : i32
    scf.if %2 {
      %cst_9 = arith.constant 0.000000e+00 : f32
      %12 = vector.broadcast %cst_9 : f32 to vector<16x256xf32>
      %c0_10 = arith.constant 0 : index
      %c0_11 = arith.constant 0 : index
      %13 = vector.load %arg7[%c0_10, %c0_11] : memref<16x256xf32, #tpu.memory_space<vmem>>, vector<16x256xf32>
      tpu.vector_store %arg7[%c0_10, %c0_11], %12 {strides = array<i32>} : memref<16x256xf32, #tpu.memory_space<vmem>>, vector<16x256xf32>,
    } else {
    }
    %c0 = arith.constant 0 : index
    %c0_1 = arith.constant 0 : index
    %3 = vector.load %arg7[%c0, %c0_1] : memref<16x256xf32, #tpu.memory_space<vmem>>, vector<16x256xf32>
    %c0_2 = arith.constant 0 : index
    %c0_3 = arith.constant 0 : index
    %4 = vector.load %arg3[%c0_2, %c0_3] : memref<16x384xbf16, #tpu.memory_space<vmem>>, vector<16x384xbf16>
    %c0_4 = arith.constant 0 : index
    %c0_5 = arith.constant 0 : index
    %5 = vector.load %arg4[%c0_4, %c0_5] : memref<384x256xbf16, #tpu.memory_space<vmem>>, vector<384x256xbf16>
    %cst = arith.constant dense<0.000000e+00> : vector<16x256xf32>
    %6 = tpu.matmul %4, %5, %cst {dimension_numbers = #tpu.dot_dimension_numbers<[1], [0], [0], [1], [0, 0, 1, 1], [], []>} : vector<16x384xbf16>, vector<384x256xbf16>, vector<16x256xf32> -> vector<16x256xf32>
    %7 = arith.addf %3, %6 : vector<16x256xf32>
    %c0_6 = arith.constant 0 : index
    %c0_7 = arith.constant 0 : index
    %8 = vector.load %arg7[%c0_6, %c0_7] : memref<16x256xf32, #tpu.memory_space<vmem>>, vector<16x256xf32>
    tpu.vector_store %arg7[%c0_6, %c0_7], %7 {strides = array<i32>} : memref<16x256xf32, #tpu.memory_space<vmem>>, vector<16x256xf32>,
    %c5_i32 = arith.constant 5 : i32
    %9 = arith.cmpi eq, %arg2, %c5_i32 : i32
    %10 = arith.extui %9 : i1 to i32
    %c0_i32_8 = arith.constant 0 : i32
    %11 = arith.cmpi ne, %10, %c0_i32_8 : i32
    scf.if %11 {
      %c0_9 = arith.constant 0 : index
      %c0_10 = arith.constant 0 : index
      %12 = vector.load %arg7[%c0_9, %c0_10] : memref<16x256xf32, #tpu.memory_space<vmem>>, vector<16x256xf32>
      %c0_11 = arith.constant 0 : index
      %c0_12 = arith.constant 0 : index
      %13 = vector.load %arg5[%c0_11, %c0_12] : memref<1x256xf32, #tpu.memory_space<vmem>>, vector<1x256xf32>
      %14 = vector.broadcast %13 : vector<1x256xf32> to vector<16x256xf32>
      %15 = arith.addf %12, %14 : vector<16x256xf32>
      %cst_13 = arith.constant 0.000000e+00 : f32
      %16 = vector.broadcast %cst_13 : f32 to vector<16x256xf32>
      %17 = arith.maximumf %15, %16 : vector<16x256xf32>
      %c0_14 = arith.constant 0 : index
      %c0_15 = arith.constant 0 : index
      %18 = vector.load %arg6[%c0_14, %c0_15] : memref<16x256xf32, #tpu.memory_space<vmem>>, vector<16x256xf32>
      tpu.vector_store %arg6[%c0_14, %c0_15], %17 {strides = array<i32>} : memref<16x256xf32, #tpu.memory_space<vmem>>, vector<16x256xf32>,
    } else {
    }
    return
  }
  func.func @transform_0(%arg0: i32, %arg1: i32, %arg2: i32) -> (i32, i32) {
    %c0_i32 = arith.constant 0 : i32
    return %arg0, %arg2 : i32, i32
  }
  func.func @transform_1(%arg0: i32, %arg1: i32, %arg2: i32) -> (i32, i32) {
    %c0_i32 = arith.constant 0 : i32
    return %arg2, %arg1 : i32, i32
  }
  func.func @transform_2(%arg0: i32, %arg1: i32, %arg2: i32) -> (i32, i32) {
    %c0_i32 = arith.constant 0 : i32
    %c0_i32_0 = arith.constant 0 : i32
    return %c0_i32, %arg1 : i32, i32
  }
  func.func @transform_3(%arg0: i32, %arg1: i32, %arg2: i32) -> (i32, i32) {
    %c0_i32 = arith.constant 0 : i32
    return %arg0, %arg1 : i32, i32
  }
}

module attributes {stable_mosaic.version = 11 : i64} {
  func.func @_mm_kernel(%arg0: i32, %arg1: i32, %arg2: i32, %arg3: memref<16x256xbf16, #tpu.memory_space<vmem>>, %arg4: memref<256x256xbf16, #tpu.memory_space<vmem>>, %arg5: memref<1x256xf32, #tpu.memory_space<vmem>>, %arg6: memref<16x256xf32, #tpu.memory_space<vmem>>, %arg7: memref<16x256xf32, #tpu.memory_space<vmem>>) attributes {dimension_semantics = [#tpu.dimension_semantics<parallel>, #tpu.dimension_semantics<parallel>, #tpu.dimension_semantics<arbitrary>], iteration_bounds = array<i64: 1, 2, 1>, scalar_prefetch = 0 : i64, scratch_operands = 1 : i64, tpu.core_type = #tpu.core_type<tc>, window_params = [{transform_indices = @transform_0, window_bounds = array<i64: 16, 256>}, {transform_indices = @transform_1, window_bounds = array<i64: 256, 256>}, {transform_indices = @transform_2, window_bounds = array<i64: 1, 256>}, {transform_indices = @transform_3, window_bounds = array<i64: 16, 256>}]} {
    %c0_i32 = arith.constant 0 : i32
    %0 = arith.cmpi eq, %arg2, %c0_i32 : i32
    %1 = arith.extui %0 : i1 to i32
    %c0_i32_0 = arith.constant 0 : i32
    %2 = arith.cmpi ne, %1, %c0_i32_0 : i32
    scf.if %2 {
      %cst_10 = arith.constant 0.000000e+00 : f32
      %12 = vector.broadcast %cst_10 : f32 to vector<16x256xf32>
      %c0_11 = arith.constant 0 : index
      %c0_12 = arith.constant 0 : index
      %13 = vector.load %arg7[%c0_11, %c0_12] : memref<16x256xf32, #tpu.memory_space<vmem>>, vector<16x256xf32>
      tpu.vector_store %arg7[%c0_11, %c0_12], %12 {strides = array<i32>} : memref<16x256xf32, #tpu.memory_space<vmem>>, vector<16x256xf32>,
    } else {
    }
    %c0 = arith.constant 0 : index
    %c0_1 = arith.constant 0 : index
    %3 = vector.load %arg7[%c0, %c0_1] : memref<16x256xf32, #tpu.memory_space<vmem>>, vector<16x256xf32>
    %c0_2 = arith.constant 0 : index
    %c0_3 = arith.constant 0 : index
    %4 = vector.load %arg3[%c0_2, %c0_3] : memref<16x256xbf16, #tpu.memory_space<vmem>>, vector<16x256xbf16>
    %c0_4 = arith.constant 0 : index
    %c0_5 = arith.constant 0 : index
    %5 = vector.load %arg4[%c0_4, %c0_5] : memref<256x256xbf16, #tpu.memory_space<vmem>>, vector<256x256xbf16>
    %cst = arith.constant dense<0.000000e+00> : vector<16x256xf32>
    %6 = tpu.matmul %4, %5, %cst {dimension_numbers = #tpu.dot_dimension_numbers<[1], [0], [0], [1], [0, 0, 1, 1], [], []>} : vector<16x256xbf16>, vector<256x256xbf16>, vector<16x256xf32> -> vector<16x256xf32>
    %7 = arith.addf %3, %6 : vector<16x256xf32>
    %c0_6 = arith.constant 0 : index
    %c0_7 = arith.constant 0 : index
    %8 = vector.load %arg7[%c0_6, %c0_7] : memref<16x256xf32, #tpu.memory_space<vmem>>, vector<16x256xf32>
    tpu.vector_store %arg7[%c0_6, %c0_7], %7 {strides = array<i32>} : memref<16x256xf32, #tpu.memory_space<vmem>>, vector<16x256xf32>,
    %c0_i32_8 = arith.constant 0 : i32
    %9 = arith.cmpi eq, %arg2, %c0_i32_8 : i32
    %10 = arith.extui %9 : i1 to i32
    %c0_i32_9 = arith.constant 0 : i32
    %11 = arith.cmpi ne, %10, %c0_i32_9 : i32
    scf.if %11 {
      %c0_10 = arith.constant 0 : index
      %c0_11 = arith.constant 0 : index
      %12 = vector.load %arg7[%c0_10, %c0_11] : memref<16x256xf32, #tpu.memory_space<vmem>>, vector<16x256xf32>
      %c0_12 = arith.constant 0 : index
      %c0_13 = arith.constant 0 : index
      %13 = vector.load %arg5[%c0_12, %c0_13] : memref<1x256xf32, #tpu.memory_space<vmem>>, vector<1x256xf32>
      %14 = vector.broadcast %13 : vector<1x256xf32> to vector<16x256xf32>
      %15 = arith.addf %12, %14 : vector<16x256xf32>
      %c0_14 = arith.constant 0 : index
      %c0_15 = arith.constant 0 : index
      %16 = vector.load %arg6[%c0_14, %c0_15] : memref<16x256xf32, #tpu.memory_space<vmem>>, vector<16x256xf32>
      tpu.vector_store %arg6[%c0_14, %c0_15], %15 {strides = array<i32>} : memref<16x256xf32, #tpu.memory_space<vmem>>, vector<16x256xf32>,
    } else {
    }
    return
  }
  func.func @transform_0(%arg0: i32, %arg1: i32, %arg2: i32) -> (i32, i32) {
    %c0_i32 = arith.constant 0 : i32
    return %arg0, %arg2 : i32, i32
  }
  func.func @transform_1(%arg0: i32, %arg1: i32, %arg2: i32) -> (i32, i32) {
    %c0_i32 = arith.constant 0 : i32
    return %arg2, %arg1 : i32, i32
  }
  func.func @transform_2(%arg0: i32, %arg1: i32, %arg2: i32) -> (i32, i32) {
    %c0_i32 = arith.constant 0 : i32
    %c0_i32_0 = arith.constant 0 : i32
    return %c0_i32, %arg1 : i32, i32
  }
  func.func @transform_3(%arg0: i32, %arg1: i32, %arg2: i32) -> (i32, i32) {
    %c0_i32 = arith.constant 0 : i32
    return %arg0, %arg1 : i32, i32
  }
}

module attributes {stable_mosaic.version = 11 : i64} {
  func.func @_mm_kernel(%arg0: i32, %arg1: i32, %arg2: i32, %arg3: memref<16x512xbf16, #tpu.memory_space<vmem>>, %arg4: memref<512x256xbf16, #tpu.memory_space<vmem>>, %arg5: memref<1x256xf32, #tpu.memory_space<vmem>>, %arg6: memref<16x256xf32, #tpu.memory_space<vmem>>, %arg7: memref<16x256xf32, #tpu.memory_space<vmem>>) attributes {dimension_semantics = [#tpu.dimension_semantics<parallel>, #tpu.dimension_semantics<parallel>, #tpu.dimension_semantics<arbitrary>], iteration_bounds = array<i64: 1, 2, 9>, scalar_prefetch = 0 : i64, scratch_operands = 1 : i64, tpu.core_type = #tpu.core_type<tc>, window_params = [{transform_indices = @transform_0, window_bounds = array<i64: 16, 512>}, {transform_indices = @transform_1, window_bounds = array<i64: 512, 256>}, {transform_indices = @transform_2, window_bounds = array<i64: 1, 256>}, {transform_indices = @transform_3, window_bounds = array<i64: 16, 256>}]} {
    %c0_i32 = arith.constant 0 : i32
    %0 = arith.cmpi eq, %arg2, %c0_i32 : i32
    %1 = arith.extui %0 : i1 to i32
    %c0_i32_0 = arith.constant 0 : i32
    %2 = arith.cmpi ne, %1, %c0_i32_0 : i32
    scf.if %2 {
      %cst_9 = arith.constant 0.000000e+00 : f32
      %12 = vector.broadcast %cst_9 : f32 to vector<16x256xf32>
      %c0_10 = arith.constant 0 : index
      %c0_11 = arith.constant 0 : index
      %13 = vector.load %arg7[%c0_10, %c0_11] : memref<16x256xf32, #tpu.memory_space<vmem>>, vector<16x256xf32>
      tpu.vector_store %arg7[%c0_10, %c0_11], %12 {strides = array<i32>} : memref<16x256xf32, #tpu.memory_space<vmem>>, vector<16x256xf32>,
    } else {
    }
    %c0 = arith.constant 0 : index
    %c0_1 = arith.constant 0 : index
    %3 = vector.load %arg7[%c0, %c0_1] : memref<16x256xf32, #tpu.memory_space<vmem>>, vector<16x256xf32>
    %c0_2 = arith.constant 0 : index
    %c0_3 = arith.constant 0 : index
    %4 = vector.load %arg3[%c0_2, %c0_3] : memref<16x512xbf16, #tpu.memory_space<vmem>>, vector<16x512xbf16>
    %c0_4 = arith.constant 0 : index
    %c0_5 = arith.constant 0 : index
    %5 = vector.load %arg4[%c0_4, %c0_5] : memref<512x256xbf16, #tpu.memory_space<vmem>>, vector<512x256xbf16>
    %cst = arith.constant dense<0.000000e+00> : vector<16x256xf32>
    %6 = tpu.matmul %4, %5, %cst {dimension_numbers = #tpu.dot_dimension_numbers<[1], [0], [0], [1], [0, 0, 1, 1], [], []>} : vector<16x512xbf16>, vector<512x256xbf16>, vector<16x256xf32> -> vector<16x256xf32>
    %7 = arith.addf %3, %6 : vector<16x256xf32>
    %c0_6 = arith.constant 0 : index
    %c0_7 = arith.constant 0 : index
    %8 = vector.load %arg7[%c0_6, %c0_7] : memref<16x256xf32, #tpu.memory_space<vmem>>, vector<16x256xf32>
    tpu.vector_store %arg7[%c0_6, %c0_7], %7 {strides = array<i32>} : memref<16x256xf32, #tpu.memory_space<vmem>>, vector<16x256xf32>,
    %c8_i32 = arith.constant 8 : i32
    %9 = arith.cmpi eq, %arg2, %c8_i32 : i32
    %10 = arith.extui %9 : i1 to i32
    %c0_i32_8 = arith.constant 0 : i32
    %11 = arith.cmpi ne, %10, %c0_i32_8 : i32
    scf.if %11 {
      %c0_9 = arith.constant 0 : index
      %c0_10 = arith.constant 0 : index
      %12 = vector.load %arg7[%c0_9, %c0_10] : memref<16x256xf32, #tpu.memory_space<vmem>>, vector<16x256xf32>
      %c0_11 = arith.constant 0 : index
      %c0_12 = arith.constant 0 : index
      %13 = vector.load %arg5[%c0_11, %c0_12] : memref<1x256xf32, #tpu.memory_space<vmem>>, vector<1x256xf32>
      %14 = vector.broadcast %13 : vector<1x256xf32> to vector<16x256xf32>
      %15 = arith.addf %12, %14 : vector<16x256xf32>
      %cst_13 = arith.constant 0.000000e+00 : f32
      %16 = vector.broadcast %cst_13 : f32 to vector<16x256xf32>
      %17 = arith.maximumf %15, %16 : vector<16x256xf32>
      %c0_14 = arith.constant 0 : index
      %c0_15 = arith.constant 0 : index
      %18 = vector.load %arg6[%c0_14, %c0_15] : memref<16x256xf32, #tpu.memory_space<vmem>>, vector<16x256xf32>
      tpu.vector_store %arg6[%c0_14, %c0_15], %17 {strides = array<i32>} : memref<16x256xf32, #tpu.memory_space<vmem>>, vector<16x256xf32>,
    } else {
    }
    return
  }
  func.func @transform_0(%arg0: i32, %arg1: i32, %arg2: i32) -> (i32, i32) {
    %c0_i32 = arith.constant 0 : i32
    return %arg0, %arg2 : i32, i32
  }
  func.func @transform_1(%arg0: i32, %arg1: i32, %arg2: i32) -> (i32, i32) {
    %c0_i32 = arith.constant 0 : i32
    return %arg2, %arg1 : i32, i32
  }
  func.func @transform_2(%arg0: i32, %arg1: i32, %arg2: i32) -> (i32, i32) {
    %c0_i32 = arith.constant 0 : i32
    %c0_i32_0 = arith.constant 0 : i32
    return %c0_i32, %arg1 : i32, i32
  }
  func.func @transform_3(%arg0: i32, %arg1: i32, %arg2: i32) -> (i32, i32) {
    %c0_i32 = arith.constant 0 : i32
    return %arg0, %arg1 : i32, i32
  }
}

module attributes {stable_mosaic.version = 11 : i64} {
  func.func @_mm_res_kernel(%arg0: i32, %arg1: i32, %arg2: i32, %arg3: memref<16x512xbf16, #tpu.memory_space<vmem>>, %arg4: memref<512x256xbf16, #tpu.memory_space<vmem>>, %arg5: memref<1x256xf32, #tpu.memory_space<vmem>>, %arg6: memref<16x256xf32, #tpu.memory_space<vmem>>, %arg7: memref<16x256xf32, #tpu.memory_space<vmem>>, %arg8: memref<16x256xf32, #tpu.memory_space<vmem>>) attributes {dimension_semantics = [#tpu.dimension_semantics<parallel>, #tpu.dimension_semantics<parallel>, #tpu.dimension_semantics<arbitrary>], iteration_bounds = array<i64: 1, 2, 9>, scalar_prefetch = 0 : i64, scratch_operands = 1 : i64, tpu.core_type = #tpu.core_type<tc>, window_params = [{transform_indices = @transform_0, window_bounds = array<i64: 16, 512>}, {transform_indices = @transform_1, window_bounds = array<i64: 512, 256>}, {transform_indices = @transform_2, window_bounds = array<i64: 1, 256>}, {transform_indices = @transform_3, window_bounds = array<i64: 16, 256>}, {transform_indices = @transform_4, window_bounds = array<i64: 16, 256>}]} {
    %c0_i32 = arith.constant 0 : i32
    %0 = arith.cmpi eq, %arg2, %c0_i32 : i32
    %1 = arith.extui %0 : i1 to i32
    %c0_i32_0 = arith.constant 0 : i32
    %2 = arith.cmpi ne, %1, %c0_i32_0 : i32
    scf.if %2 {
      %cst_9 = arith.constant 0.000000e+00 : f32
      %12 = vector.broadcast %cst_9 : f32 to vector<16x256xf32>
      %c0_10 = arith.constant 0 : index
      %c0_11 = arith.constant 0 : index
      %13 = vector.load %arg8[%c0_10, %c0_11] : memref<16x256xf32, #tpu.memory_space<vmem>>, vector<16x256xf32>
      tpu.vector_store %arg8[%c0_10, %c0_11], %12 {strides = array<i32>} : memref<16x256xf32, #tpu.memory_space<vmem>>, vector<16x256xf32>,
    } else {
    }
    %c0 = arith.constant 0 : index
    %c0_1 = arith.constant 0 : index
    %3 = vector.load %arg8[%c0, %c0_1] : memref<16x256xf32, #tpu.memory_space<vmem>>, vector<16x256xf32>
    %c0_2 = arith.constant 0 : index
    %c0_3 = arith.constant 0 : index
    %4 = vector.load %arg3[%c0_2, %c0_3] : memref<16x512xbf16, #tpu.memory_space<vmem>>, vector<16x512xbf16>
    %c0_4 = arith.constant 0 : index
    %c0_5 = arith.constant 0 : index
    %5 = vector.load %arg4[%c0_4, %c0_5] : memref<512x256xbf16, #tpu.memory_space<vmem>>, vector<512x256xbf16>
    %cst = arith.constant dense<0.000000e+00> : vector<16x256xf32>
    %6 = tpu.matmul %4, %5, %cst {dimension_numbers = #tpu.dot_dimension_numbers<[1], [0], [0], [1], [0, 0, 1, 1], [], []>} : vector<16x512xbf16>, vector<512x256xbf16>, vector<16x256xf32> -> vector<16x256xf32>
    %7 = arith.addf %3, %6 : vector<16x256xf32>
    %c0_6 = arith.constant 0 : index
    %c0_7 = arith.constant 0 : index
    %8 = vector.load %arg8[%c0_6, %c0_7] : memref<16x256xf32, #tpu.memory_space<vmem>>, vector<16x256xf32>
    tpu.vector_store %arg8[%c0_6, %c0_7], %7 {strides = array<i32>} : memref<16x256xf32, #tpu.memory_space<vmem>>, vector<16x256xf32>,
    %c8_i32 = arith.constant 8 : i32
    %9 = arith.cmpi eq, %arg2, %c8_i32 : i32
    %10 = arith.extui %9 : i1 to i32
    %c0_i32_8 = arith.constant 0 : i32
    %11 = arith.cmpi ne, %10, %c0_i32_8 : i32
    scf.if %11 {
      %c0_9 = arith.constant 0 : index
      %c0_10 = arith.constant 0 : index
      %12 = vector.load %arg8[%c0_9, %c0_10] : memref<16x256xf32, #tpu.memory_space<vmem>>, vector<16x256xf32>
      %c0_11 = arith.constant 0 : index
      %c0_12 = arith.constant 0 : index
      %13 = vector.load %arg5[%c0_11, %c0_12] : memref<1x256xf32, #tpu.memory_space<vmem>>, vector<1x256xf32>
      %14 = vector.broadcast %13 : vector<1x256xf32> to vector<16x256xf32>
      %15 = arith.addf %12, %14 : vector<16x256xf32>
      %c0_13 = arith.constant 0 : index
      %c0_14 = arith.constant 0 : index
      %16 = vector.load %arg6[%c0_13, %c0_14] : memref<16x256xf32, #tpu.memory_space<vmem>>, vector<16x256xf32>
      %17 = arith.addf %15, %16 : vector<16x256xf32>
      %cst_15 = arith.constant 0.000000e+00 : f32
      %18 = vector.broadcast %cst_15 : f32 to vector<16x256xf32>
      %19 = arith.maximumf %17, %18 : vector<16x256xf32>
      %c0_16 = arith.constant 0 : index
      %c0_17 = arith.constant 0 : index
      %20 = vector.load %arg7[%c0_16, %c0_17] : memref<16x256xf32, #tpu.memory_space<vmem>>, vector<16x256xf32>
      tpu.vector_store %arg7[%c0_16, %c0_17], %19 {strides = array<i32>} : memref<16x256xf32, #tpu.memory_space<vmem>>, vector<16x256xf32>,
    } else {
    }
    return
  }
  func.func @transform_0(%arg0: i32, %arg1: i32, %arg2: i32) -> (i32, i32) {
    %c0_i32 = arith.constant 0 : i32
    return %arg0, %arg2 : i32, i32
  }
  func.func @transform_1(%arg0: i32, %arg1: i32, %arg2: i32) -> (i32, i32) {
    %c0_i32 = arith.constant 0 : i32
    return %arg2, %arg1 : i32, i32
  }
  func.func @transform_2(%arg0: i32, %arg1: i32, %arg2: i32) -> (i32, i32) {
    %c0_i32 = arith.constant 0 : i32
    %c0_i32_0 = arith.constant 0 : i32
    return %c0_i32, %arg1 : i32, i32
  }
  func.func @transform_3(%arg0: i32, %arg1: i32, %arg2: i32) -> (i32, i32) {
    %c0_i32 = arith.constant 0 : i32
    return %arg0, %arg1 : i32, i32
  }
  func.func @transform_4(%arg0: i32, %arg1: i32, %arg2: i32) -> (i32, i32) {
    %c0_i32 = arith.constant 0 : i32
    return %arg0, %arg1 : i32, i32
  }
}

module attributes {stable_mosaic.version = 11 : i64} {
  func.func @_gap_fc_kernel(%arg0: memref<8x1x512xf32, #tpu.memory_space<vmem>>, %arg1: memref<512x128xbf16, #tpu.memory_space<vmem>>, %arg2: memref<1x128xf32, #tpu.memory_space<vmem>>, %arg3: memref<8x128xf32, #tpu.memory_space<vmem>>) attributes {dimension_semantics = [], scalar_prefetch = 0 : i64, scratch_operands = 0 : i64, tpu.core_type = #tpu.core_type<tc>} {
    %c0 = arith.constant 0 : index
    %c0_0 = arith.constant 0 : index
    %c0_1 = arith.constant 0 : index
    %0 = vector.load %arg0[%c0, %c0_0, %c0_1] : memref<8x1x512xf32, #tpu.memory_space<vmem>>, vector<8x1x512xf32>
    %cst = arith.constant dense<0.000000e+00> : vector<8x512xf32>
    %1 = vector.multi_reduction <add>, %0, %cst [1] : vector<8x1x512xf32> to vector<8x512xf32>
    %cst_2 = arith.constant 1.000000e+00 : f32
    %2 = vector.broadcast %cst_2 : f32 to vector<8x512xf32>
    %3 = arith.mulf %1, %2 : vector<8x512xf32>
    %4 = arith.truncf %3 : vector<8x512xf32> to vector<8x512xbf16>
    %c0_3 = arith.constant 0 : index
    %c0_4 = arith.constant 0 : index
    %5 = vector.load %arg1[%c0_3, %c0_4] : memref<512x128xbf16, #tpu.memory_space<vmem>>, vector<512x128xbf16>
    %cst_5 = arith.constant dense<0.000000e+00> : vector<8x128xf32>
    %6 = tpu.matmul %4, %5, %cst_5 {dimension_numbers = #tpu.dot_dimension_numbers<[1], [0], [0], [1], [0, 0, 1, 1], [], []>} : vector<8x512xbf16>, vector<512x128xbf16>, vector<8x128xf32> -> vector<8x128xf32>
    %c0_6 = arith.constant 0 : index
    %c0_7 = arith.constant 0 : index
    %7 = vector.load %arg2[%c0_6, %c0_7] : memref<1x128xf32, #tpu.memory_space<vmem>>, vector<1x128xf32>
    %8 = vector.broadcast %7 : vector<1x128xf32> to vector<8x128xf32>
    %9 = arith.addf %6, %8 : vector<8x128xf32>
    %c0_8 = arith.constant 0 : index
    %c0_9 = arith.constant 0 : index
    %10 = vector.load %arg3[%c0_8, %c0_9] : memref<8x128xf32, #tpu.memory_space<vmem>>, vector<8x128xf32>
    tpu.vector_store %arg3[%c0_8, %c0_9], %9 {strides = array<i32>} : memref<8x128xf32, #tpu.memory_space<vmem>>, vector<8x128xf32>,
    return
  }
}

</mosaic_0001>

<bundles_post_ra>
// kernel: _lambda_.23
= control target key start
LH: loop header
LB: loop body
LE: loop exit
PB: predicated region body
PF: predicated region fallthrough
CT: control target
= control target key end

     0   :  { %s470_s0 = inlined_call_operand.vmem [shape: f32[16,512], index: 0, kind: input, shape index: {}]   ;;  %s471_s1 = inlined_call_operand.vmem [shape: f32[16,512], index: 1, kind: input, shape index: {}]   ;;  %s472_s2 = inlined_call_operand.vmem [shape: f32[16,512], index: 2, kind: input, shape index: {}]   ;;  %s473_s3 = inlined_call_operand.vmem [shape: f32[16,512], index: 3, kind: input, shape index: {}]   ;;  %s474_s4 = inlined_call_operand.vmem [shape: f32[16,512], index: 4, kind: input, shape index: {}]   ;;  %s475_s5 = inlined_call_operand.vmem [shape: f32[16,512], index: 5, kind: input, shape index: {}]   ;;  %s476_s6 = inlined_call_operand.vmem [shape: f32[16,512], index: 6, kind: input, shape index: {}]   ;;  %s477_s7 = inlined_call_operand.vmem [shape: f32[16,512], index: 7, kind: input, shape index: {}]   ;;  %s478_s8 = inlined_call_operand.vmem [shape: f32[16,512], index: 8, kind: input, shape index: {}]   ;;  %s479_s9 = inlined_call_operand.vmem [shape: f32[16,512], index: 9, kind: output, shape index: {}]  }
   0x1   :  { %v32_v0 = vld [vmem:[%s470_s0] sm:$0xff]  ;;  %v33_v6 = vld [vmem:[%s470_s0 + $0x8] sm:$0xff]  ;;  %v34_v15 = vld [vmem:[%s470_s0 + $0x10] sm:$0xff] }
   0x2   :  { %v40_v1 = vld [vmem:[%s471_s1] sm:$0xff]  ;;  %v41_v7 = vld [vmem:[%s471_s1 + $0x8] sm:$0xff]  ;;  %v42_v16 = vld [vmem:[%s471_s1 + $0x10] sm:$0xff] }
   0x3   :  { %v56_v2 = vld [vmem:[%s472_s2] sm:$0xff]  ;;  %v48_v3 = vmax.f32 %v32_v0, %v40_v1  ;;  %v57_v8 = vld [vmem:[%s472_s2 + $0x8] sm:$0xff]  ;;  %v49_v10 = vmax.f32 %v33_v6, %v41_v7  ;;  %v58_v17 = vld [vmem:[%s472_s2 + $0x10] sm:$0xff]  ;;  %v50_v20 = vmax.f32 %v34_v15, %v42_v16 }
   0x4   :  { %v72_v4 = vld [vmem:[%s473_s3] sm:$0xff]  ;;  %v73_v13 = vld [vmem:[%s473_s3 + $0x8] sm:$0xff]  ;;  %v74_v24 = vld [vmem:[%s473_s3 + $0x10] sm:$0xff] }
   0x5   :  { %v64_v5 = vmax.f32 %v48_v3, %v56_v2  ;;  %v88_v9 = vld [vmem:[%s474_s4] sm:$0xff]  ;;  %v65_v14 = vmax.f32 %v49_v10, %v57_v8  ;;  %v89_v19 = vld [vmem:[%s474_s4 + $0x8] sm:$0xff]  ;;  %v66_v26 = vmax.f32 %v50_v20, %v58_v17  ;;  %v35_v27 = vld [vmem:[%s470_s0 + $0x18] sm:$0xff] }
   0x6   :  { %v104_v12 = vld [vmem:[%s475_s5] sm:$0xff]  ;;  %v105_v23 = vld [vmem:[%s475_s5 + $0x8] sm:$0xff]  ;;  %v43_v28 = vld [vmem:[%s471_s1 + $0x18] sm:$0xff] }
   0x7   :  { %v80_v11 = vmax.f32 %v64_v5, %v72_v4  ;;  %v120_v21 = vld [vmem:[%s476_s6] sm:$0xff]  ;;  %v81_v22 = vmax.f32 %v65_v14, %v73_v13  ;;  %v59_v29 = vld [vmem:[%s472_s2 + $0x18] sm:$0xff]  ;;  %v90_v33 = vld [vmem:[%s474_s4 + $0x10] sm:$0xff]  ;;  %v51_v34 = vmax.f32 %v35_v27, %v43_v28  ;;  %v82_v37 = vmax.f32 %v66_v26, %v74_v24 }
   0x8   :  { %v136_v30 = vld [vmem:[%s477_s7] sm:$0xff]  ;;  %v121_v36 = vld [vmem:[%s476_s6 + $0x8] sm:$0xff]  ;;  %v106_v38 = vld [vmem:[%s475_s5 + $0x10] sm:$0xff] }
   0x9   :  { %v96_v18 = vmax.f32 %v80_v11, %v88_v9  ;;  %v152_v31 = vld [vmem:[%s478_s8] sm:$0xff]  ;;  %v97_v32 = vmax.f32 %v81_v22, %v89_v19  ;;  %v75_v39 = vld [vmem:[%s473_s3 + $0x18] sm:$0xff]  ;;  %v67_v41 = vmax.f32 %v51_v34, %v59_v29  ;;  %v137_v46 = vld [vmem:[%s477_s7 + $0x8] sm:$0xff]  ;;  %v98_v48 = vmax.f32 %v82_v37, %v90_v33 }
   0xa   :  { %v36_v42 = vld [vmem:[%s470_s0 + $0x20] sm:$0xff]  ;;  %v153_v47 = vld [vmem:[%s478_s8 + $0x8] sm:$0xff]  ;;  %v91_v49 = vld [vmem:[%s474_s4 + $0x18] sm:$0xff] }
   0xb   :  { %v112_v25 = vmax.f32 %v96_v18, %v104_v12  ;;  %v113_v40 = vmax.f32 %v97_v32, %v105_v23  ;;  %v44_v43 = vld [vmem:[%s471_s1 + $0x20] sm:$0xff]  ;;  %v122_v52 = vld [vmem:[%s476_s6 + $0x10] sm:$0xff]  ;;  %v83_v53 = vmax.f32 %v67_v41, %v75_v39  ;;  %v107_v54 = vld [vmem:[%s475_s5 + $0x18] sm:$0xff]  ;;  %v114_v57 = vmax.f32 %v98_v48, %v106_v38 }
   0xc   :  { %v60_v44 = vld [vmem:[%s472_s2 + $0x20] sm:$0xff]  ;;  %v52_v50 = vmax.f32 %v36_v42, %v44_v43  ;;  %v37_v59 = vld [vmem:[%s470_s0 + $0x28] sm:$0xff]  ;;  %v138_v63 = vld [vmem:[%s477_s7 + $0x10] sm:$0xff] }
   0xd   :  { %v128_v35 = vmax.f32 %v112_v25, %v120_v21  ;;  %v129_v51 = vmax.f32 %v113_v40, %v121_v36  ;;  %v76_v55 = vld [vmem:[%s473_s3 + $0x20] sm:$0xff]  ;;  %v45_v60 = vld [vmem:[%s471_s1 + $0x28] sm:$0xff]  ;;  %v154_v0 = vld [vmem:[%s478_s8 + $0x10] sm:$0xff]  ;;  %v99_v1 = vmax.f32 %v83_v53, %v91_v49  ;;  %v130_v4 = vmax.f32 %v114_v57, %v122_v52 }
   0xe   :  { %v68_v58 = vmax.f32 %v52_v50, %v60_v44  ;;  %v61_v61 = vld [vmem:[%s472_s2 + $0x28] sm:$0xff]  ;;  %v92_v2 = vld [vmem:[%s474_s4 + $0x20] sm:$0xff]  ;;  %v53_v3 = vmax.f32 %v37_v59, %v45_v60  ;;  %v123_v5 = vld [vmem:[%s476_s6 + $0x18] sm:$0xff] }
   0xf   :  { %v144_v45 = vmax.f32 %v128_v35, %v136_v30  ;;  %v145_v62 = vmax.f32 %v129_v51, %v137_v46  ;;  %v108_v7 = vld [vmem:[%s475_s5 + $0x20] sm:$0xff]  ;;  %v77_v8 = vld [vmem:[%s473_s3 + $0x28] sm:$0xff]  ;;  %v115_v10 = vmax.f32 %v99_v1, %v107_v54  ;;  %v38_v12 = vld [vmem:[%s470_s0 + $0x30] sm:$0xff]  ;;  %v146_v15 = vmax.f32 %v130_v4, %v138_v63 }
  0x10   :  { %v84_v6 = vmax.f32 %v68_v58, %v76_v55  ;;  %v69_v11 = vmax.f32 %v53_v3, %v61_v61  ;;  %v46_v13 = vld [vmem:[%s471_s1 + $0x30] sm:$0xff]  ;;  %v139_v16 = vld [vmem:[%s477_s7 + $0x18] sm:$0xff]  ;;  %v93_v19 = vld [vmem:[%s474_s4 + $0x28] sm:$0xff] }
  0x11   :  { %v160_v56 = vmax.f32 %v144_v45, %v152_v31  ;;  %v161_v9 = vmax.f32 %v145_v62, %v153_v47  ;;  %v62_v14 = vld [vmem:[%s472_s2 + $0x30] sm:$0xff]  ;;  %v155_v17 = vld [vmem:[%s478_s8 + $0x18] sm:$0xff]  ;;  %v54_v20 = vmax.f32 %v38_v12, %v46_v13  ;;  %v131_v21 = vmax.f32 %v115_v10, %v123_v5  ;;  %v124_v22 = vld [vmem:[%s476_s6 + $0x20] sm:$0xff] }
  0x12   :  { %v100_v18 = vmax.f32 %v84_v6, %v92_v2  ;;  %v85_v23 = vmax.f32 %v69_v11, %v77_v8  ;;  %v109_v24 = vld [vmem:[%s475_s5 + $0x28] sm:$0xff]  ;;  %v78_v25 = vld [vmem:[%s473_s3 + $0x30] sm:$0xff]  ;;  %v162_v26 = vmax.f32 %v146_v15, %v154_v0  ;;  %v39_v29 = vld [vmem:[%s470_s0 + $0x38] sm:$0xff] }
  0x13   :  { %168 = vst [vmem:[%s479_s9] sm:$0xff] %v160_v56  ;;  %169 = vst [vmem:[%s479_s9 + $0x8] sm:$0xff] %v161_v9  ;;  %v70_v28 = vmax.f32 %v54_v20, %v62_v14  ;;  %v47_v30 = vld [vmem:[%s471_s1 + $0x38] sm:$0xff]  ;;  %v147_v32 = vmax.f32 %v131_v21, %v139_v16  ;;  %v140_v33 = vld [vmem:[%s477_s7 + $0x20] sm:$0xff] }
  0x14   :  { %v116_v27 = vmax.f32 %v100_v18, %v108_v7  ;;  %v63_v31 = vld [vmem:[%s472_s2 + $0x38] sm:$0xff]  ;;  %v101_v34 = vmax.f32 %v85_v23, %v93_v19  ;;  %v94_v35 = vld [vmem:[%s474_s4 + $0x30] sm:$0xff]  ;;  %v55_v36 = vmax.f32 %v39_v29, %v47_v30  ;;  %170 = vst [vmem:[%s479_s9 + $0x10] sm:$0xff] %v162_v26  ;;  %v125_v38 = vld [vmem:[%s476_s6 + $0x28] sm:$0xff] }
  0x15   :  { %v86_v39 = vmax.f32 %v70_v28, %v78_v25  ;;  %v79_v40 = vld [vmem:[%s473_s3 + $0x38] sm:$0xff]  ;;  %v163_v41 = vmax.f32 %v147_v32, %v155_v17  ;;  %v156_v42 = vld [vmem:[%s478_s8 + $0x20] sm:$0xff]  ;;  %v110_v44 = vld [vmem:[%s475_s5 + $0x30] sm:$0xff] }
  0x16   :  { %v132_v37 = vmax.f32 %v116_v27, %v124_v22  ;;  %v117_v43 = vmax.f32 %v101_v34, %v109_v24  ;;  %v71_v45 = vmax.f32 %v55_v36, %v63_v31  ;;  %v141_v47 = vld [vmem:[%s477_s7 + $0x28] sm:$0xff]  ;;  %v95_v49 = vld [vmem:[%s474_s4 + $0x38] sm:$0xff]  ;;  %v126_v51 = vld [vmem:[%s476_s6 + $0x30] sm:$0xff] }
  0x17   :  { %v102_v48 = vmax.f32 %v86_v39, %v94_v35  ;;  %171 = vst [vmem:[%s479_s9 + $0x18] sm:$0xff] %v163_v41  ;;  %v157_v54 = vld [vmem:[%s478_s8 + $0x28] sm:$0xff]  ;;  %v111_v56 = vld [vmem:[%s475_s5 + $0x38] sm:$0xff]  ;;  %v142_v58 = vld [vmem:[%s477_s7 + $0x30] sm:$0xff] }
  0x18   :  { %v148_v46 = vmax.f32 %v132_v37, %v140_v33  ;;  %v133_v50 = vmax.f32 %v117_v43, %v125_v38  ;;  %v87_v52 = vmax.f32 %v71_v45, %v79_v40  ;;  %v127_v61 = vld [vmem:[%s476_s6 + $0x38] sm:$0xff]  ;;  %v158_v63 = vld [vmem:[%s478_s8 + $0x30] sm:$0xff] }
  0x19   :  { %v118_v55 = vmax.f32 %v102_v48, %v110_v44  ;;  %v143_v2 = vld [vmem:[%s477_s7 + $0x38] sm:$0xff] }
  0x1a   :  { %v164_v53 = vmax.f32 %v148_v46, %v156_v42  ;;  %v149_v57 = vmax.f32 %v133_v50, %v141_v47  ;;  %v103_v59 = vmax.f32 %v87_v52, %v95_v49  ;;  %v159_v5 = vld [vmem:[%s478_s8 + $0x38] sm:$0xff] }
  0x1b   :  { %v134_v60 = vmax.f32 %v118_v55, %v126_v51 }
  0x1c   :  { %172 = vst [vmem:[%s479_s9 + $0x20] sm:$0xff] %v164_v53  ;;  %v165_v62 = vmax.f32 %v149_v57, %v157_v54  ;;  %v119_v0 = vmax.f32 %v103_v59, %v111_v56 }
  0x1d   :  { %v150_v1 = vmax.f32 %v134_v60, %v142_v58 }
  0x1e   :  { %173 = vst [vmem:[%s479_s9 + $0x28] sm:$0xff] %v165_v62  ;;  %v135_v3 = vmax.f32 %v119_v0, %v127_v61 }
  0x1f   :  { %v166_v4 = vmax.f32 %v150_v1, %v158_v63 }
  0x20   :  { %v151_v6 = vmax.f32 %v135_v3, %v143_v2 }
  0x21   :  { %174 = vst [vmem:[%s479_s9 + $0x30] sm:$0xff] %v166_v4 }
  0x22   :  { %v167_v7 = vmax.f32 %v151_v6, %v159_v5 }
  0x24   :  { %175 = vst [vmem:[%s479_s9 + $0x38] sm:$0xff] %v167_v7 }

// kernel: _lambda_.22
= control target key start
LH: loop header
LB: loop body
LE: loop exit
PB: predicated region body
PF: predicated region fallthrough
CT: control target
= control target key end

     0   :  { %s1212_s12 = smov 0   ;;  %s1214_s13 = smov 0   ;;  %s1362_s0 = inlined_call_operand.vmem [shape: bf16[512,128], index: 0, kind: input, shape index: {}]   ;;  %s1363_s1 = inlined_call_operand.vmem [shape: bf16[128,128], index: 1, kind: input, shape index: {}]   ;;  %s1364_s2 = inlined_call_operand.vmem [shape: f32[1,128], index: 2, kind: input, shape index: {}]   ;;  %s1365_s3 = inlined_call_operand.vmem [shape: f32[512,128], index: 3, kind: output, shape index: {}]  }
   0x1   :  { %s1216_s14 = smov 0  }
   0x2 LB: > { %s32_s15 = sadd.s32 1, %s1186_s13  ;;  %p1000_p0 = scmp.ge.s32.totalorder %s1190_s14, 1  ;;  %s1190_s14 = sphi %s1216_s14, %s13_s14   ;;  %s1186_s13 = sphi %s1214_s13, %s1367_s13   ;;  %s1182_s12 = sphi %s1212_s12, %s1366_s12  }
   0x3   : > { %p34_p1 = scmp.ge.s32.totalorder %s32_s15, 2  ;;  %p188_p2 = scmp.lt.s32.totalorder %s1190_s14, 3 }
   0x5   : > { %s1369_s15 = smov (%p34_p1, %s32_s15), 0  ;;  %p189_p3 = pnand %p1000_p0, %p188_p2 }
   0x6   : > { %s1001_s18 = sshll.u32 (!%p189_p3), %s1182_s12, 5 }
   0x7   : > { %192 = sbr.rel (%p189_p3) target bundleno = 273 (0x111), region = 32  ;;  %p230_p4 = scmp.lt.s32.totalorder (!%p189_p3), %s1001_s18, 63 }
   0xc   : > { %v1144_v0 = vld [vmem:[%s1363_s1 + $0x38] sm:$0xff]   ;;  %v1145_v1 = vld [vmem:[%s1363_s1 + $0x30] sm:$0xff]   ;;  %s1371_s18 = smov (!%p230_p4, %s1001_s18), 63  ;;  %v1146_v2 = vld [vmem:[%s1363_s1 + $0x28] sm:$0xff]  }
   0xd   : > { %1056 = vmatprep.subr.bf16.mxu0 %v1144_v0  ;;  %1104 = vmatprep.subr.bf16.mxu1 %v1144_v0  ;;  %s1002_s23 = sshll.u32 %s1371_s18, 2  ;;  %v1147_v3 = vld [vmem:[%s1363_s1 + $0x20] sm:$0xff]   ;;  %v1148_v6 = vld [vmem:[%s1363_s1 + $0x18] sm:$0xff]   ;;  %v1149_v7 = vld [vmem:[%s1363_s1 + $0x10] sm:$0xff]   ;;  %s1004_s12 = sshll.u32 %s1371_s18, 3 }
   0xe   : > { %1057 = vmatpush3.bf16.msra.mxu0 %v1144_v0  ;;  %1112 = vmatpush3.bf16.msra.mxu1 %v1144_v0  ;;  %s1245_s26 = scalar_lea.vmem %s1362_s0, %s1002_s23  ;;  %v1150_v8 = vld [vmem:[%s1363_s1 + $0x8] sm:$0xff]   ;;  %v1151_v9 = vld [vmem:[%s1363_s1] sm:$0xff]   ;;  %s1289_s19 = scalar_lea.vmem %s1365_s3, %s1004_s12 }
   0xf   : > { %1058 = vmatprep.subr.bf16.mxu0 %v1145_v1  ;;  %1105 = vmatprep.subr.bf16.mxu1 %v1145_v1  ;;  %v1152_v4 = vld [vmem:[%s1245_s26] sm:$0xff]   ;;  %v1154_v10 = vld [vmem:[%s1245_s26 + $0x8] sm:$0xff]   ;;  %v1156_v12 = vld [vmem:[%s1245_s26 + $0x10] sm:$0xff]  }
  0x10   : > { %v1153_v5 = vld [vmem:[%s1245_s26 + $0x40] sm:$0xff]   ;;  %1072 = vmatprep.mubr.bf16.mxu0 %v1152_v4  ;;  %v1155_v11 = vld [vmem:[%s1245_s26 + $0x48] sm:$0xff]   ;;  %v1157_v13 = vld [vmem:[%s1245_s26 + $0x50] sm:$0xff]  }
  0x11   : > { %1088 = vmatprep.mubr.bf16.mxu1 %v1153_v5  ;;  %v1158_v14 = vld [vmem:[%s1245_s26 + $0x18] sm:$0xff]   ;;  %v1160_v16 = vld [vmem:[%s1245_s26 + $0x20] sm:$0xff]   ;;  %v1162_v18 = vld [vmem:[%s1245_s26 + $0x28] sm:$0xff]  }
  0x12   : > { %1059 = vmatpush3.bf16.msra.mxu0 %v1145_v1  ;;  %1113 = vmatpush3.bf16.msra.mxu1 %v1145_v1  ;;  %v1159_v15 = vld [vmem:[%s1245_s26 + $0x58] sm:$0xff]   ;;  %v1161_v17 = vld [vmem:[%s1245_s26 + $0x60] sm:$0xff]   ;;  %v1163_v19 = vld [vmem:[%s1245_s26 + $0x68] sm:$0xff]  }
  0x13   : > { %1060 = vmatprep.subr.bf16.mxu0 %v1146_v2  ;;  %1106 = vmatprep.subr.bf16.mxu1 %v1146_v2  ;;  %v1164_v20 = vld [vmem:[%s1245_s26 + $0x30] sm:$0xff]   ;;  %v1166_v22 = vld [vmem:[%s1245_s26 + $0x38] sm:$0xff]   ;;  %v1281_v24 = vld [vmem:[%s1364_s2] ss:$0 sm:$0xff] }
  0x14   : > { %v1165_v21 = vld [vmem:[%s1245_s26 + $0x70] sm:$0xff]   ;;  %v1167_v23 = vld [vmem:[%s1245_s26 + $0x78] sm:$0xff]  }
  0x16   : > { %1061 = vmatpush3.bf16.msra.mxu0 %v1146_v2  ;;  %1114 = vmatpush3.bf16.msra.mxu1 %v1146_v2 }
  0x17   : > { %1062 = vmatprep.subr.bf16.mxu0 %v1147_v3  ;;  %1107 = vmatprep.subr.bf16.mxu1 %v1147_v3 }
  0x1a   : > { %1063 = vmatpush3.bf16.msra.mxu0 %v1147_v3  ;;  %1115 = vmatpush3.bf16.msra.mxu1 %v1147_v3 }
  0x1b   : > { %1064 = vmatprep.subr.bf16.mxu0 %v1148_v6  ;;  %1108 = vmatprep.subr.bf16.mxu1 %v1148_v6 }
  0x1e   : > { %1065 = vmatpush3.bf16.msra.mxu0 %v1148_v6  ;;  %1116 = vmatpush3.bf16.msra.mxu1 %v1148_v6 }
  0x1f   : > { %1066 = vmatprep.subr.bf16.mxu0 %v1149_v7  ;;  %1109 = vmatprep.subr.bf16.mxu1 %v1149_v7 }
  0x22   : > { %1067 = vmatpush3.bf16.msra.mxu0 %v1149_v7  ;;  %1117 = vmatpush3.bf16.msra.mxu1 %v1149_v7 }
  0x23   : > { %1068 = vmatprep.subr.bf16.mxu0 %v1150_v8  ;;  %1110 = vmatprep.subr.bf16.mxu1 %v1150_v8 }
  0x26   : > { %1069 = vmatpush3.bf16.msra.mxu0 %v1150_v8  ;;  %1118 = vmatpush3.bf16.msra.mxu1 %v1150_v8 }
  0x27   : > { %1070 = vmatprep.subr.bf16.mxu0 %v1151_v9  ;;  %1111 = vmatprep.subr.bf16.mxu1 %v1151_v9 }
  0x2a   : > { %1071 = vmatpush3.bf16.msra.mxu0 %v1151_v9  ;;  %1119 = vmatpush3.bf16.msra.mxu1 %v1151_v9 }
  0x2d   : > { %1073 = vmatmul.mubr.bf16.vlgmr.msra.gmra.mxu0 %v1154_v10  ;;  %1089 = vmatmul.mubr.bf16.vlgmr.msra.gmra.mxu1 %v1155_v11 }
  0x2e   : > { %1076 = vmatprep.mubr.bf16.mxu0 %v1156_v12  ;;  %1092 = vmatprep.mubr.bf16.mxu1 %v1157_v13 }
  0x35   : > { %1077 = vmatmul.mubr.bf16.gmra.mxu0 %v1158_v14  ;;  %1093 = vmatmul.mubr.bf16.gmra.mxu1 %v1159_v15 }
  0x36   : > { %1080 = vmatprep.mubr.bf16.mxu0 %v1160_v16  ;;  %1096 = vmatprep.mubr.bf16.mxu1 %v1161_v17 }
  0x3d   : > { %1081 = vmatmul.mubr.bf16.gmra.mxu0 %v1162_v18  ;;  %1097 = vmatmul.mubr.bf16.gmra.mxu1 %v1163_v19 }
  0x3e   : > { %1084 = vmatprep.mubr.bf16.mxu0 %v1164_v20  ;;  %1100 = vmatprep.mubr.bf16.mxu1 %v1165_v21 }
  0x45   : > { %1085 = vmatmul.mubr.bf16.gmra.mxu0 %v1166_v22  ;;  %1101 = vmatmul.mubr.bf16.gmra.mxu1 %v1167_v23 }
  0xed   : > { %v1074_v25 = vpop.f32.mrf.mxu0  ;;  %v1090_v26 = vpop.f32.mrf.mxu1 }
  0xee   : > { %v789_v27 = vadd.f32 %v1074_v25, %v1281_v24  ;;  %v805_v28 = vadd.f32 %v1090_v26, %v1281_v24 }
  0xef   : > { %v554_v29 = vpop.f32.mrf.mxu0  ;;  %v618_v30 = vpop.f32.mrf.mxu1 }
  0xf0   : > { %v821_v31 = vmax.f32 %v789_v27, 0.0  ;;  %v837_v32 = vmax.f32 %v805_v28, 0.0  ;;  %v787_v33 = vadd.f32 %v1281_v24, %v554_v29  ;;  %v803_v34 = vadd.f32 %v1281_v24, %v618_v30 }
  0xf1   : > { %v1075_v35 = vpop.f32.mrf.mxu0  ;;  %v1091_v36 = vpop.f32.mrf.mxu1 }
  0xf2   : > { %853 = vst [vmem:[%s1289_s19 + $0x10] sm:$0xff] %v821_v31  ;;  %869 = vst [vmem:[%s1289_s19 + $0x90] sm:$0xff] %v837_v32  ;;  %v819_v37 = vmax.f32 %v787_v33, 0.0  ;;  %v835_v38 = vmax.f32 %v803_v34, 0.0  ;;  %v790_v39 = vadd.f32 %v1075_v35, %v1281_v24  ;;  %v806_v40 = vadd.f32 %v1091_v36, %v1281_v24 }
  0xf3   : > { %v557_v41 = vpop.f32.mrf.mxu0  ;;  %v621_v42 = vpop.f32.mrf.mxu1 }
  0xf4   : > { %851 = vst [vmem:[%s1289_s19] sm:$0xff] %v819_v37  ;;  %867 = vst [vmem:[%s1289_s19 + $0x80] sm:$0xff] %v835_v38  ;;  %v822_v43 = vmax.f32 %v790_v39, 0.0  ;;  %v838_v44 = vmax.f32 %v806_v40, 0.0  ;;  %v788_v45 = vadd.f32 %v1281_v24, %v557_v41  ;;  %v804_v46 = vadd.f32 %v1281_v24, %v621_v42 }
  0xf5   : > { %v1078_v47 = vpop.f32.mrf.mxu0  ;;  %v1094_v48 = vpop.f32.mrf.mxu1 }
  0xf6   : > { %854 = vst [vmem:[%s1289_s19 + $0x18] sm:$0xff] %v822_v43  ;;  %870 = vst [vmem:[%s1289_s19 + $0x98] sm:$0xff] %v838_v44  ;;  %v820_v49 = vmax.f32 %v788_v45, 0.0  ;;  %v836_v50 = vmax.f32 %v804_v46, 0.0  ;;  %v793_v51 = vadd.f32 %v1078_v47, %v1281_v24  ;;  %v809_v52 = vadd.f32 %v1094_v48, %v1281_v24 }
  0xf7   : > { %v570_v53 = vpop.f32.mrf.mxu0  ;;  %v634_v54 = vpop.f32.mrf.mxu1 }
  0xf8   : > { %852 = vst [vmem:[%s1289_s19 + $0x8] sm:$0xff] %v820_v49  ;;  %868 = vst [vmem:[%s1289_s19 + $0x88] sm:$0xff] %v836_v50  ;;  %v825_v55 = vmax.f32 %v793_v51, 0.0  ;;  %v841_v56 = vmax.f32 %v809_v52, 0.0  ;;  %v791_v57 = vadd.f32 %v1281_v24, %v570_v53  ;;  %v807_v58 = vadd.f32 %v1281_v24, %v634_v54 }
  0xf9   : > { %v1079_v59 = vpop.f32.mrf.mxu0  ;;  %v1095_v60 = vpop.f32.mrf.mxu1 }
  0xfa   : > { %857 = vst [vmem:[%s1289_s19 + $0x30] sm:$0xff] %v825_v55  ;;  %873 = vst [vmem:[%s1289_s19 + $0xb0] sm:$0xff] %v841_v56  ;;  %v823_v61 = vmax.f32 %v791_v57, 0.0  ;;  %v839_v62 = vmax.f32 %v807_v58, 0.0  ;;  %v794_v63 = vadd.f32 %v1079_v59, %v1281_v24  ;;  %v810_v0 = vadd.f32 %v1095_v60, %v1281_v24 }
  0xfb   : > { %v573_v1 = vpop.f32.mrf.mxu0  ;;  %v637_v2 = vpop.f32.mrf.mxu1 }
  0xfc   : > { %855 = vst [vmem:[%s1289_s19 + $0x20] sm:$0xff] %v823_v61  ;;  %871 = vst [vmem:[%s1289_s19 + $0xa0] sm:$0xff] %v839_v62  ;;  %v826_v3 = vmax.f32 %v794_v63, 0.0  ;;  %v842_v4 = vmax.f32 %v810_v0, 0.0  ;;  %v792_v5 = vadd.f32 %v1281_v24, %v573_v1  ;;  %v808_v6 = vadd.f32 %v1281_v24, %v637_v2 }
  0xfd   : > { %v1082_v7 = vpop.f32.mrf.mxu0  ;;  %v1098_v8 = vpop.f32.mrf.mxu1 }
  0xfe   : > { %858 = vst [vmem:[%s1289_s19 + $0x38] sm:$0xff] %v826_v3  ;;  %874 = vst [vmem:[%s1289_s19 + $0xb8] sm:$0xff] %v842_v4  ;;  %v824_v9 = vmax.f32 %v792_v5, 0.0  ;;  %v840_v10 = vmax.f32 %v808_v6, 0.0  ;;  %v797_v11 = vadd.f32 %v1082_v7, %v1281_v24  ;;  %v813_v12 = vadd.f32 %v1098_v8, %v1281_v24 }
  0xff   : > { %v586_v13 = vpop.f32.mrf.mxu0  ;;  %v650_v14 = vpop.f32.mrf.mxu1 }
 0x100   : > { %856 = vst [vmem:[%s1289_s19 + $0x28] sm:$0xff] %v824_v9  ;;  %872 = vst [vmem:[%s1289_s19 + $0xa8] sm:$0xff] %v840_v10  ;;  %v829_v15 = vmax.f32 %v797_v11, 0.0  ;;  %v845_v16 = vmax.f32 %v813_v12, 0.0  ;;  %v795_v17 = vadd.f32 %v1281_v24, %v586_v13  ;;  %v811_v18 = vadd.f32 %v1281_v24, %v650_v14 }
 0x101   : > { %v1083_v19 = vpop.f32.mrf.mxu0  ;;  %v1099_v20 = vpop.f32.mrf.mxu1 }
 0x102   : > { %861 = vst [vmem:[%s1289_s19 + $0x50] sm:$0xff] %v829_v15  ;;  %877 = vst [vmem:[%s1289_s19 + $0xd0] sm:$0xff] %v845_v16  ;;  %v827_v21 = vmax.f32 %v795_v17, 0.0  ;;  %v843_v22 = vmax.f32 %v811_v18, 0.0  ;;  %v798_v23 = vadd.f32 %v1083_v19, %v1281_v24  ;;  %v814_v25 = vadd.f32 %v1099_v20, %v1281_v24 }
 0x103   : > { %v589_v26 = vpop.f32.mrf.mxu0  ;;  %v653_v27 = vpop.f32.mrf.mxu1 }
 0x104   : > { %859 = vst [vmem:[%s1289_s19 + $0x40] sm:$0xff] %v827_v21  ;;  %875 = vst [vmem:[%s1289_s19 + $0xc0] sm:$0xff] %v843_v22  ;;  %v830_v28 = vmax.f32 %v798_v23, 0.0  ;;  %v846_v29 = vmax.f32 %v814_v25, 0.0  ;;  %v796_v30 = vadd.f32 %v1281_v24, %v589_v26  ;;  %v812_v31 = vadd.f32 %v1281_v24, %v653_v27 }
 0x105   : > { %v1086_v32 = vpop.f32.mrf.mxu0  ;;  %v1102_v33 = vpop.f32.mrf.mxu1 }
 0x106   : > { %862 = vst [vmem:[%s1289_s19 + $0x58] sm:$0xff] %v830_v28  ;;  %878 = vst [vmem:[%s1289_s19 + $0xd8] sm:$0xff] %v846_v29  ;;  %v828_v34 = vmax.f32 %v796_v30, 0.0  ;;  %v844_v35 = vmax.f32 %v812_v31, 0.0  ;;  %v801_v36 = vadd.f32 %v1086_v32, %v1281_v24  ;;  %v817_v37 = vadd.f32 %v1102_v33, %v1281_v24 }
 0x107   : > { %v602_v38 = vpop.f32.mrf.mxu0  ;;  %v666_v39 = vpop.f32.mrf.mxu1 }
 0x108   : > { %860 = vst [vmem:[%s1289_s19 + $0x48] sm:$0xff] %v828_v34  ;;  %876 = vst [vmem:[%s1289_s19 + $0xc8] sm:$0xff] %v844_v35  ;;  %v833_v40 = vmax.f32 %v801_v36, 0.0  ;;  %v849_v41 = vmax.f32 %v817_v37, 0.0  ;;  %v799_v42 = vadd.f32 %v1281_v24, %v602_v38  ;;  %v815_v43 = vadd.f32 %v1281_v24, %v666_v39 }
 0x109   : > { %v1087_v44 = vpop.f32.mrf.mxu0  ;;  %v1103_v45 = vpop.f32.mrf.mxu1 }
 0x10a   : > { %865 = vst [vmem:[%s1289_s19 + $0x70] sm:$0xff] %v833_v40  ;;  %881 = vst [vmem:[%s1289_s19 + $0xf0] sm:$0xff] %v849_v41  ;;  %v831_v46 = vmax.f32 %v799_v42, 0.0  ;;  %v847_v47 = vmax.f32 %v815_v43, 0.0  ;;  %v802_v48 = vadd.f32 %v1087_v44, %v1281_v24  ;;  %v818_v49 = vadd.f32 %v1103_v45, %v1281_v24 }
 0x10b   : > { %v605_v50 = vpop.f32.mrf.mxu0  ;;  %v669_v51 = vpop.f32.mrf.mxu1 }
 0x10c   : > { %863 = vst [vmem:[%s1289_s19 + $0x60] sm:$0xff] %v831_v46  ;;  %879 = vst [vmem:[%s1289_s19 + $0xe0] sm:$0xff] %v847_v47  ;;  %v834_v52 = vmax.f32 %v802_v48, 0.0  ;;  %v850_v53 = vmax.f32 %v818_v49, 0.0  ;;  %v800_v54 = vadd.f32 %v1281_v24, %v605_v50  ;;  %v816_v55 = vadd.f32 %v1281_v24, %v669_v51 }
 0x10e   : > { %866 = vst [vmem:[%s1289_s19 + $0x78] sm:$0xff] %v834_v52  ;;  %882 = vst [vmem:[%s1289_s19 + $0xf8] sm:$0xff] %v850_v53  ;;  %v832_v56 = vmax.f32 %v800_v54, 0.0  ;;  %v848_v57 = vmax.f32 %v816_v55, 0.0 }
 0x110   : > { %864 = vst [vmem:[%s1289_s19 + $0x68] sm:$0xff] %v832_v56  ;;  %880 = vst [vmem:[%s1289_s19 + $0xe8] sm:$0xff] %v848_v57 }
 0x111 PF: > { %s13_s14 = sadd.s32 1, %s1190_s14   ;;  %s1366_s12 = smov %s1186_s13 }
 0x112   : > { %p10_p5 = scmp.ge.s32.totalorder %s13_s14, 4   ;;  %s1367_s13 = smov %s1369_s15 }
 0x114   :  { %12 = sbr.rel (!%p10_p5) target bundleno = 2 (0x2), region = 76 }

// kernel: _lambda_.24
= control target key start
LH: loop header
LB: loop body
LE: loop exit
PB: predicated region body
PF: predicated region fallthrough
CT: control target
= control target key end

     0   :  { %s1049_s12 = smov 0   ;;  %s1051_s13 = smov 0   ;;  %s1205_s0 = inlined_call_operand.vmem [shape: bf16[128,640], index: 0, kind: input, shape index: {}]   ;;  %s1206_s1 = inlined_call_operand.vmem [shape: bf16[640,128], index: 1, kind: input, shape index: {}]   ;;  %s1207_s2 = inlined_call_operand.vmem [shape: f32[1,128], index: 2, kind: input, shape index: {}]   ;;  %s1208_s3 = inlined_call_operand.vmem [shape: f32[128,128], index: 3, kind: output, shape index: {}]  }
   0x1   :  { %s1053_s14 = smov 0   ;;  %s1055_s15 = smov 0  }
   0x2   :  { %s1057_s16 = smov 0  }
   0x3 LB: > { %s25_s17 = sadd.s32 1, %s1022_s15  ;;  %p48_p1 = scmp.ne.s32.totalorder %s1014_s13, %s1010_s12  ;;  %s1026_s16 = sphi %s1057_s16, %s13_s16   ;;  %s1022_s15 = sphi %s1055_s15, %s1212_s15   ;;  %s1018_s14 = sphi %s1053_s14, %s1211_s14   ;;  %s1014_s13 = sphi %s1051_s13, %s1210_s13   ;;  %s1010_s12 = sphi %s1049_s12, %s1209_s12  }
   0x4   : > { %p26_p0 = scmp.ge.s32.totalorder %s25_s17, 5  ;;  %p49_p2 = scmp.eq.s32.totalorder %s1026_s16, 0 }
   0x5   : > { %s41_s19 = sadd.s32 1, %s1014_s13  ;;  %p837_p5 = scmp.ge.s32.totalorder %s1026_s16, 5 }
   0x6   : > { %s1214_s17 = smov (%p26_p0, %s25_s17), 0  ;;  %p50_p3 = por %p49_p2, %p48_p1 }
   0x7   : > { %s37_s18 = ssub.s32 %s1022_s15, %s1214_s17  ;;  %162 = sbr.rel (%p837_p5) target bundleno = 26 (0x1a), region = 20 }
   0x8   : > { %p39_p4 = scmp.eq.s32.totalorder %s37_s18, 0 }
   0xa   : > { %s1084_s20 = scalar_select %p39_p4, %s1014_s13, %s41_s19  }
   0xc   : > { %165 = sbr.rel (!%p50_p3) target bundleno = 26 (0x1a), region = 24  ;;  %s167_s21 = sand.u32 (%p50_p3), 1, %s1014_s13  }
   0xd   : > { %s839_s22 = sshll.u32 (%p50_p3), %s1022_s15, 2  ;;  %s838_s23 = sshll.u32 (%p50_p3), %s167_s21, 6 }
   0xe   : > { %s1092_s26 = scalar_lea.vmem (%p50_p3), %s1205_s0, %s839_s22  ;;  %s169_s27 = scalar_lea.vmem (%p50_p3), [#allocation3], %s838_s23 }
   0xf   : > { %v191_v0 = vld [vmem:[%s1092_s26] sm:$0xf] (%p50_p3)  ;;  %v193_v1 = vld [vmem:[%s1092_s26 + $0x14] sm:$0xf] (%p50_p3)  ;;  %v195_v2 = vld [vmem:[%s1092_s26 + $0x28] sm:$0xf] (%p50_p3) }
  0x10   : > { %192 = vst [vmem:[%s169_s27] sm:$0xf] (%p50_p3), %v191_v0  ;;  %194 = vst [vmem:[%s169_s27 + $0x4] sm:$0xf] (%p50_p3), %v193_v1  ;;  %v197_v3 = vld [vmem:[%s1092_s26 + $0x3c] sm:$0xf] (%p50_p3) }
  0x11   : > { %v199_v4 = vld [vmem:[%s1092_s26 + $0x50] sm:$0xf]  ;;  %196 = vst [vmem:[%s169_s27 + $0x8] sm:$0xf] %v195_v2  ;;  %198 = vst [vmem:[%s169_s27 + $0xc] sm:$0xf] %v197_v3 }
  0x12   : > { %200 = vst [vmem:[%s169_s27 + $0x10] sm:$0xf] %v199_v4  ;;  %v201_v5 = vld [vmem:[%s1092_s26 + $0x64] sm:$0xf]  ;;  %v203_v6 = vld [vmem:[%s1092_s26 + $0x78] sm:$0xf] }
  0x13   : > { %v205_v7 = vld [vmem:[%s1092_s26 + $0x8c] sm:$0xf]  ;;  %202 = vst [vmem:[%s169_s27 + $0x14] sm:$0xf] %v201_v5  ;;  %204 = vst [vmem:[%s169_s27 + $0x18] sm:$0xf] %v203_v6 }
  0x14   : > { %206 = vst [vmem:[%s169_s27 + $0x1c] sm:$0xf] %v205_v7  ;;  %v207_v8 = vld [vmem:[%s1092_s26 + $0xa0] sm:$0xf]  ;;  %v209_v9 = vld [vmem:[%s1092_s26 + $0xb4] sm:$0xf] }
  0x15   : > { %v211_v10 = vld [vmem:[%s1092_s26 + $0xc8] sm:$0xf]  ;;  %208 = vst [vmem:[%s169_s27 + $0x20] sm:$0xf] %v207_v8  ;;  %210 = vst [vmem:[%s169_s27 + $0x24] sm:$0xf] %v209_v9 }
  0x16   : > { %212 = vst [vmem:[%s169_s27 + $0x28] sm:$0xf] %v211_v10  ;;  %v213_v11 = vld [vmem:[%s1092_s26 + $0xdc] sm:$0xf]  ;;  %v215_v12 = vld [vmem:[%s1092_s26 + $0xf0] sm:$0xf] }
  0x17   : > { %v217_v13 = vld [vmem:[%s1092_s26 + $0x104] sm:$0xf]  ;;  %214 = vst [vmem:[%s169_s27 + $0x2c] sm:$0xf] %v213_v11  ;;  %216 = vst [vmem:[%s169_s27 + $0x30] sm:$0xf] %v215_v12 }
  0x18   : > { %218 = vst [vmem:[%s169_s27 + $0x34] sm:$0xf] %v217_v13  ;;  %v219_v14 = vld [vmem:[%s1092_s26 + $0x118] sm:$0xf]  ;;  %v221_v15 = vld [vmem:[%s1092_s26 + $0x12c] sm:$0xf] }
  0x19   : > { %220 = vst [vmem:[%s169_s27 + $0x38] sm:$0xf] %v219_v14  ;;  %222 = vst [vmem:[%s169_s27 + $0x3c] sm:$0xf] %v221_v15 }
  0x1a PF: > { %p840_p6 = scmp.ge.s32.totalorder %s1026_s16, 1  ;;  %p289_p7 = scmp.lt.s32.totalorder %s1026_s16, 6 }
  0x1c   : > { %p290_p8 = pnand %p840_p6, %p289_p7 }
  0x1d   : > { %s296_s28 = sand.u32 (!%p290_p8), 1, %s1010_s12   ;;  %s842_s29 = sshll.u32 (!%p290_p8), %s1018_s14, 4 }
  0x1e   : > { %293 = sbr.rel (%p290_p8) target bundleno = 305 (0x131), region = 69  ;;  %s841_s30 = sshll.u32 (!%p290_p8), %s296_s28, 6 }
  0x1f   : > { %p335_p9 = scmp.lt.s32.totalorder (!%p290_p8), %s842_s29, 79  ;;  %s1119_s8 = scalar_lea.vmem (!%p290_p8), [#allocation3], %s841_s30 }
  0x20   : > { %p844_p10 = scmp.ne.s32.totalorder (!%p290_p8), %s1018_s14, 0 }
  0x23   : > { %s1216_s29 = smov (!%p335_p9, %s842_s29), 79  ;;  %359 = sbr.rel (%p844_p10) target bundleno = 49 (0x31), region = 77 }
  0x24   : > { %s843_s4 = sshll.u32 %s1216_s29, 2 }
  0x25   : > { %s1117_s7 = scalar_lea.vmem %s1206_s1, %s843_s4 }
  0x28   : > { %v1028_v16 = vmov 0.0  }
  0x29   : > { %360 = vst [vmem:[#allocation2 + $0x30] sm:$0xff] %v1028_v16  ;;  %361 = vst [vmem:[#allocation2] sm:$0xff] %v1028_v16 }
  0x2a   : > { %362 = vst [vmem:[#allocation2 + $0x58] sm:$0xff] %v1028_v16  ;;  %363 = vst [vmem:[#allocation2 + $0x18] sm:$0xff] %v1028_v16 }
  0x2b   : > { %364 = vst [vmem:[#allocation2 + $0x50] sm:$0xff] %v1028_v16  ;;  %365 = vst [vmem:[#allocation2 + $0x68] sm:$0xff] %v1028_v16 }
  0x2c   : > { %366 = vst [vmem:[#allocation2 + $0x8] sm:$0xff] %v1028_v16  ;;  %367 = vst [vmem:[#allocation2 + $0x48] sm:$0xff] %v1028_v16 }
  0x2d   : > { %368 = vst [vmem:[#allocation2 + $0x40] sm:$0xff] %v1028_v16  ;;  %369 = vst [vmem:[#allocation2 + $0x20] sm:$0xff] %v1028_v16 }
  0x2e   : > { %370 = vst [vmem:[#allocation2 + $0x10] sm:$0xff] %v1028_v16  ;;  %371 = vst [vmem:[#allocation2 + $0x38] sm:$0xff] %v1028_v16 }
  0x2f   : > { %372 = vst [vmem:[#allocation2 + $0x60] sm:$0xff] %v1028_v16  ;;  %373 = vst [vmem:[#allocation2 + $0x70] sm:$0xff] %v1028_v16 }
  0x30   : > { %374 = vst [vmem:[#allocation2 + $0x78] sm:$0xff] %v1028_v16  ;;  %375 = vst [vmem:[#allocation2 + $0x28] sm:$0xff] %v1028_v16 }
  0x31 PF: > { %v972_v17 = vld [vmem:[%s1117_s7 + $0x38] sm:$0xff]   ;;  %v973_v18 = vld [vmem:[%s1117_s7 + $0x30] sm:$0xff]   ;;  %v974_v19 = vld [vmem:[%s1117_s7 + $0x28] sm:$0xff]   ;;  %p861_p11 = scmp.ne.s32.totalorder %s1018_s14, 4 }
  0x32   : > { %883 = vmatprep.subr.bf16.mxu0 %v972_v17  ;;  %915 = vmatprep.subr.bf16.mxu1 %v972_v17  ;;  %v975_v20 = vld [vmem:[%s1117_s7 + $0x20] sm:$0xff]   ;;  %v976_v23 = vld [vmem:[%s1117_s7 + $0x18] sm:$0xff]   ;;  %v977_v24 = vld [vmem:[%s1117_s7 + $0x10] sm:$0xff]  }
  0x33   : > { %884 = vmatpush3.bf16.msra.mxu0 %v972_v17  ;;  %923 = vmatpush3.bf16.msra.mxu1 %v972_v17  ;;  %v980_v21 = vld [vmem:[%s1119_s8] sm:$0xff]   ;;  %v978_v25 = vld [vmem:[%s1117_s7 + $0x8] sm:$0xff]   ;;  %v984_v29 = vld [vmem:[%s1119_s8 + $0x10] sm:$0xff]  }
  0x34   : > { %885 = vmatprep.subr.bf16.mxu0 %v973_v18  ;;  %916 = vmatprep.subr.bf16.mxu1 %v973_v18  ;;  %v981_v22 = vld [vmem:[%s1119_s8 + $0x20] sm:$0xff]   ;;  %v982_v27 = vld [vmem:[%s1119_s8 + $0x8] sm:$0xff]   ;;  %v985_v30 = vld [vmem:[%s1119_s8 + $0x30] sm:$0xff]  }
  0x35   : > { %899 = vmatprep.mubr.bf16.mxu0 %v980_v21  ;;  %907 = vmatprep.mubr.bf16.mxu1 %v981_v22  ;;  %v979_v26 = vld [vmem:[%s1117_s7] sm:$0xff]   ;;  %v983_v28 = vld [vmem:[%s1119_s8 + $0x28] sm:$0xff]   ;;  %v986_v31 = vld [vmem:[%s1119_s8 + $0x18] sm:$0xff]  }
  0x36   : > { %v987_v32 = vld [vmem:[%s1119_s8 + $0x38] sm:$0xff]   ;;  %v386_v34 = vld [vmem:[#allocation2 + $0x10] sm:$0xff]  ;;  %v384_v38 = vld [vmem:[#allocation2 + $0x40] sm:$0xff] }
  0x37   : > { %886 = vmatpush3.bf16.msra.mxu0 %v973_v18  ;;  %924 = vmatpush3.bf16.msra.mxu1 %v973_v18  ;;  %v378_v33 = vld [vmem:[#allocation2 + $0x58] sm:$0xff]  ;;  %v376_v37 = vld [vmem:[#allocation2 + $0x30] sm:$0xff]  ;;  %v377_v49 = vld [vmem:[#allocation2] sm:$0xff] }
  0x38   : > { %887 = vmatprep.subr.bf16.mxu0 %v974_v19  ;;  %917 = vmatprep.subr.bf16.mxu1 %v974_v19  ;;  %v379_v43 = vld [vmem:[#allocation2 + $0x18] sm:$0xff]  ;;  %v385_v50 = vld [vmem:[#allocation2 + $0x20] sm:$0xff]  ;;  %v382_v55 = vld [vmem:[#allocation2 + $0x8] sm:$0xff] }
  0x39   : > { %v387_v44 = vld [vmem:[#allocation2 + $0x38] sm:$0xff]  ;;  %v380_v61 = vld [vmem:[#allocation2 + $0x50] sm:$0xff]  ;;  %v388_v62 = vld [vmem:[#allocation2 + $0x60] sm:$0xff] }
  0x3a   : > { %v390_v56 = vld [vmem:[#allocation2 + $0x78] sm:$0xff]  ;;  %v383_v3 = vld [vmem:[#allocation2 + $0x48] sm:$0xff]  ;;  %v389_v10 = vld [vmem:[#allocation2 + $0x70] sm:$0xff] }
  0x3b   : > { %888 = vmatpush3.bf16.msra.mxu0 %v974_v19  ;;  %925 = vmatpush3.bf16.msra.mxu1 %v974_v19  ;;  %v391_v4 = vld [vmem:[#allocation2 + $0x28] sm:$0xff] }
  0x3c   : > { %889 = vmatprep.subr.bf16.mxu0 %v975_v20  ;;  %918 = vmatprep.subr.bf16.mxu1 %v975_v20  ;;  %v381_v9 = vld [vmem:[#allocation2 + $0x68] sm:$0xff] }
  0x3f   : > { %890 = vmatpush3.bf16.msra.mxu0 %v975_v20  ;;  %926 = vmatpush3.bf16.msra.mxu1 %v975_v20 }
  0x40   : > { %891 = vmatprep.subr.bf16.mxu0 %v976_v23  ;;  %919 = vmatprep.subr.bf16.mxu1 %v976_v23 }
  0x43   : > { %892 = vmatpush3.bf16.msra.mxu0 %v976_v23  ;;  %927 = vmatpush3.bf16.msra.mxu1 %v976_v23 }
  0x44   : > { %893 = vmatprep.subr.bf16.mxu0 %v977_v24  ;;  %920 = vmatprep.subr.bf16.mxu1 %v977_v24 }
  0x47   : > { %894 = vmatpush3.bf16.msra.mxu0 %v977_v24  ;;  %928 = vmatpush3.bf16.msra.mxu1 %v977_v24 }
  0x48   : > { %895 = vmatprep.subr.bf16.mxu0 %v978_v25  ;;  %921 = vmatprep.subr.bf16.mxu1 %v978_v25 }
  0x4b   : > { %896 = vmatpush3.bf16.msra.mxu0 %v978_v25  ;;  %929 = vmatpush3.bf16.msra.mxu1 %v978_v25 }
  0x4c   : > { %897 = vmatprep.subr.bf16.mxu0 %v979_v26  ;;  %922 = vmatprep.subr.bf16.mxu1 %v979_v26 }
  0x4f   : > { %898 = vmatpush3.bf16.msra.mxu0 %v979_v26  ;;  %930 = vmatpush3.bf16.msra.mxu1 %v979_v26 }
  0x52   : > { %900 = vmatmul.mubr.bf16.vlgmr.msra.gmra.mxu0 %v982_v27  ;;  %908 = vmatmul.mubr.bf16.vlgmr.msra.gmra.mxu1 %v983_v28 }
  0x53   : > { %903 = vmatprep.mubr.bf16.mxu0 %v984_v29  ;;  %911 = vmatprep.mubr.bf16.mxu1 %v985_v30 }
  0x5a   : > { %904 = vmatmul.mubr.bf16.gmra.mxu0 %v986_v31  ;;  %912 = vmatmul.mubr.bf16.gmra.mxu1 %v987_v32 }
 0x112   : > { %v901_v35 = vpop.f32.mrf.mxu0  ;;  %v909_v36 = vpop.f32.mrf.mxu1 }
 0x113   : > { %v619_v39 = vadd.f32 %v901_v35, %v378_v33  ;;  %v627_v40 = vadd.f32 %v909_v36, %v386_v34 }
 0x114   : > { %v554_v41 = vpop.f32.mrf.mxu0  ;;  %v586_v42 = vpop.f32.mrf.mxu1 }
 0x115   : > { %635 = vst [vmem:[#allocation2 + $0x58] sm:$0xff] %v619_v39  ;;  %643 = vst [vmem:[#allocation2 + $0x10] sm:$0xff] %v627_v40  ;;  %v617_v45 = vadd.f32 %v554_v41, %v376_v37  ;;  %v625_v46 = vadd.f32 %v586_v42, %v384_v38 }
 0x116   : > { %v902_v47 = vpop.f32.mrf.mxu0  ;;  %v910_v48 = vpop.f32.mrf.mxu1 }
 0x117   : > { %633 = vst [vmem:[#allocation2 + $0x30] sm:$0xff] %v617_v45  ;;  %641 = vst [vmem:[#allocation2 + $0x40] sm:$0xff] %v625_v46  ;;  %v620_v51 = vadd.f32 %v902_v47, %v379_v43  ;;  %v628_v52 = vadd.f32 %v910_v48, %v387_v44 }
 0x118   : > { %v557_v53 = vpop.f32.mrf.mxu0  ;;  %v589_v54 = vpop.f32.mrf.mxu1 }
 0x119   : > { %636 = vst [vmem:[#allocation2 + $0x18] sm:$0xff] %v620_v51  ;;  %644 = vst [vmem:[#allocation2 + $0x38] sm:$0xff] %v628_v52  ;;  %v618_v57 = vadd.f32 %v557_v53, %v377_v49  ;;  %v626_v58 = vadd.f32 %v589_v54, %v385_v50 }
 0x11a   : > { %v905_v59 = vpop.f32.mrf.mxu0  ;;  %v913_v60 = vpop.f32.mrf.mxu1 }
 0x11b   : > { %634 = vst [vmem:[#allocation2] sm:$0xff] %v618_v57  ;;  %642 = vst [vmem:[#allocation2 + $0x20] sm:$0xff] %v626_v58  ;;  %v623_v63 = vadd.f32 %v905_v59, %v382_v55  ;;  %v631_v0 = vadd.f32 %v913_v60, %v390_v56 }
 0x11c   : > { %v570_v1 = vpop.f32.mrf.mxu0  ;;  %v602_v2 = vpop.f32.mrf.mxu1 }
 0x11d   : > { %639 = vst [vmem:[#allocation2 + $0x8] sm:$0xff] %v623_v63  ;;  %647 = vst [vmem:[#allocation2 + $0x78] sm:$0xff] %v631_v0  ;;  %v621_v5 = vadd.f32 %v570_v1, %v380_v61  ;;  %v629_v6 = vadd.f32 %v602_v2, %v388_v62 }
 0x11e   : > { %v906_v7 = vpop.f32.mrf.mxu0  ;;  %v914_v8 = vpop.f32.mrf.mxu1 }
 0x11f   : > { %637 = vst [vmem:[#allocation2 + $0x50] sm:$0xff] %v621_v5  ;;  %645 = vst [vmem:[#allocation2 + $0x60] sm:$0xff] %v629_v6  ;;  %v624_v11 = vadd.f32 %v906_v7, %v383_v3  ;;  %v632_v12 = vadd.f32 %v914_v8, %v391_v4  ;;  %652 = sbr.rel (%p861_p11) target bundleno = 305 (0x131), region = 81 }
 0x120   : > { %v573_v13 = vpop.f32.mrf.mxu0  ;;  %v605_v14 = vpop.f32.mrf.mxu1 }
 0x121   : > { %640 = vst [vmem:[#allocation2 + $0x48] sm:$0xff] %v624_v11  ;;  %648 = vst [vmem:[#allocation2 + $0x28] sm:$0xff] %v632_v12  ;;  %v622_v15 = vadd.f32 %v573_v13, %v381_v9  ;;  %v630_v16 = vadd.f32 %v605_v14, %v389_v10 }
 0x123   : > { %638 = vst [vmem:[#allocation2 + $0x68] sm:$0xff] %v622_v15  ;;  %646 = vst [vmem:[#allocation2 + $0x70] sm:$0xff] %v630_v16 }
 0x124   : > { %v653_v17 = vld [vmem:[#allocation2 + $0x30] sm:$0xff]  ;;  %v862_v18 = vld [vmem:[%s1207_s2] ss:$0 sm:$0xff]  ;;  %v655_v22 = vld [vmem:[#allocation2 + $0x58] sm:$0xff] }
 0x125   : > { %v654_v19 = vld [vmem:[#allocation2] sm:$0xff]  ;;  %v676_v20 = vadd.f32 %v862_v18, %v653_v17  ;;  %v656_v23 = vld [vmem:[#allocation2 + $0x18] sm:$0xff]  ;;  %v678_v25 = vadd.f32 %v862_v18, %v655_v22  ;;  %v659_v29 = vld [vmem:[#allocation2 + $0x8] sm:$0xff] }
 0x126   : > { %v677_v21 = vadd.f32 %v862_v18, %v654_v19  ;;  %v657_v24 = vld [vmem:[#allocation2 + $0x50] sm:$0xff]  ;;  %v679_v26 = vadd.f32 %v862_v18, %v656_v23  ;;  %v682_v34 = vadd.f32 %v862_v18, %v659_v29  ;;  %v661_v35 = vld [vmem:[#allocation2 + $0x40] sm:$0xff]  ;;  %v664_v42 = vld [vmem:[#allocation2 + $0x38] sm:$0xff] }
 0x127   : > { %v680_v27 = vadd.f32 %v862_v18, %v657_v24  ;;  %v692_v31 = vmax.f32 %v676_v20, 0.0  ;;  %v662_v36 = vld [vmem:[#allocation2 + $0x20] sm:$0xff]  ;;  %v663_v37 = vld [vmem:[#allocation2 + $0x10] sm:$0xff]  ;;  %v694_v38 = vmax.f32 %v678_v25, 0.0  ;;  %v684_v47 = vadd.f32 %v862_v18, %v661_v35  ;;  %v667_v49 = vld [vmem:[#allocation2 + $0x78] sm:$0xff] }
 0x128   : > { %v660_v30 = vld [vmem:[#allocation2 + $0x48] sm:$0xff]  ;;  %v693_v32 = vmax.f32 %v677_v21, 0.0  ;;  %v695_v39 = vmax.f32 %v679_v26, 0.0  ;;  %v665_v43 = vld [vmem:[#allocation2 + $0x60] sm:$0xff]  ;;  %v698_v46 = vmax.f32 %v682_v34, 0.0  ;;  %v685_v48 = vadd.f32 %v862_v18, %v662_v36 }
 0x129   : > { %v696_v40 = vmax.f32 %v680_v27, 0.0  ;;  %v683_v41 = vadd.f32 %v862_v18, %v660_v30  ;;  %708 = vst [vmem:[%s1208_s3] sm:$0xff] %v692_v31  ;;  %v668_v50 = vld [vmem:[#allocation2 + $0x28] sm:$0xff]  ;;  %710 = vst [vmem:[%s1208_s3 + $0x10] sm:$0xff] %v694_v38  ;;  %v686_v52 = vadd.f32 %v862_v18, %v663_v37  ;;  %v687_v53 = vadd.f32 %v862_v18, %v664_v42 }
 0x12a   : > { %v658_v28 = vld [vmem:[#allocation2 + $0x68] sm:$0xff]  ;;  %v666_v44 = vld [vmem:[#allocation2 + $0x70] sm:$0xff]  ;;  %709 = vst [vmem:[%s1208_s3 + $0x8] sm:$0xff] %v693_v32  ;;  %711 = vst [vmem:[%s1208_s3 + $0x18] sm:$0xff] %v695_v39  ;;  %v688_v54 = vadd.f32 %v862_v18, %v665_v43  ;;  %v700_v55 = vmax.f32 %v684_v47, 0.0  ;;  %v701_v56 = vmax.f32 %v685_v48, 0.0  ;;  %v690_v58 = vadd.f32 %v862_v18, %v667_v49 }
 0x12b   : > { %v681_v33 = vadd.f32 %v862_v18, %v658_v28  ;;  %712 = vst [vmem:[%s1208_s3 + $0x20] sm:$0xff] %v696_v40  ;;  %v699_v51 = vmax.f32 %v683_v41, 0.0  ;;  %714 = vst [vmem:[%s1208_s3 + $0x30] sm:$0xff] %v698_v46  ;;  %v689_v57 = vadd.f32 %v862_v18, %v666_v44  ;;  %v702_v59 = vmax.f32 %v686_v52, 0.0 }
 0x12c   : > { %v703_v60 = vmax.f32 %v687_v53, 0.0  ;;  %v704_v61 = vmax.f32 %v688_v54, 0.0  ;;  %v691_v62 = vadd.f32 %v862_v18, %v668_v50  ;;  %716 = vst [vmem:[%s1208_s3 + $0x40] sm:$0xff] %v700_v55  ;;  %717 = vst [vmem:[%s1208_s3 + $0x48] sm:$0xff] %v701_v56  ;;  %v706_v0 = vmax.f32 %v690_v58, 0.0 }
 0x12d   : > { %v697_v45 = vmax.f32 %v681_v33, 0.0  ;;  %715 = vst [vmem:[%s1208_s3 + $0x38] sm:$0xff] %v699_v51  ;;  %v705_v63 = vmax.f32 %v689_v57, 0.0  ;;  %718 = vst [vmem:[%s1208_s3 + $0x50] sm:$0xff] %v702_v59 }
 0x12e   : > { %719 = vst [vmem:[%s1208_s3 + $0x58] sm:$0xff] %v703_v60  ;;  %720 = vst [vmem:[%s1208_s3 + $0x60] sm:$0xff] %v704_v61  ;;  %v707_v1 = vmax.f32 %v691_v62, 0.0 }
 0x12f   : > { %713 = vst [vmem:[%s1208_s3 + $0x28] sm:$0xff] %v697_v45  ;;  %721 = vst [vmem:[%s1208_s3 + $0x68] sm:$0xff] %v705_v63 }
 0x130   : > { %722 = vst [vmem:[%s1208_s3 + $0x70] sm:$0xff] %v706_v0  ;;  %723 = vst [vmem:[%s1208_s3 + $0x78] sm:$0xff] %v707_v1 }
 0x131 PF: > { %s13_s16 = sadd.s32 1, %s1026_s16   ;;  %s1209_s12 = smov %s1014_s13 }
 0x132   : > { %p10_p12 = scmp.ge.s32.totalorder %s13_s16, 7   ;;  %s1210_s13 = smov %s1084_s20 }
 0x133   : > { %s1211_s14 = smov %s1022_s15  ;;  %s1212_s15 = smov %s1214_s17 }
 0x134   :  { %12 = sbr.rel (!%p10_p12) target bundleno = 3 (0x3), region = 122 }

// kernel: _lambda_.25
= control target key start
LH: loop header
LB: loop body
LE: loop exit
PB: predicated region body
PF: predicated region fallthrough
CT: control target
= control target key end

     0   :  { %s1165_s15 = smov 0   ;;  %s1167_s16 = smov 0   ;;  %s1387_s0 = inlined_call_operand.vmem [shape: bf16[128,640], index: 0, kind: input, shape index: {}]   ;;  %s1388_s1 = inlined_call_operand.vmem [shape: bf16[640,128], index: 1, kind: input, shape index: {}]   ;;  %s1389_s2 = inlined_call_operand.vmem [shape: f32[1,128], index: 2, kind: input, shape index: {}]   ;;  %s1390_s3 = inlined_call_operand.vmem [shape: f32[128,128], index: 3, kind: input, shape index: {}]   ;;  %s1391_s4 = inlined_call_operand.vmem [shape: f32[128,128], index: 4, kind: output, shape index: {}]  }
   0x1   :  { %s1169_s17 = smov 0   ;;  %s1171_s18 = smov 0  }
   0x2   :  { %s1173_s19 = smov 0  }
   0x3 LB: > { %s26_s20 = sadd.s32 1, %s1133_s18  ;;  %p49_p1 = scmp.ne.s32.totalorder %s1125_s16, %s1121_s15  ;;  %s1137_s19 = sphi %s1173_s19, %s14_s19   ;;  %s1133_s18 = sphi %s1171_s18, %s1395_s18   ;;  %s1129_s17 = sphi %s1169_s17, %s1394_s17   ;;  %s1125_s16 = sphi %s1167_s16, %s1393_s16   ;;  %s1121_s15 = sphi %s1165_s15, %s1392_s15  }
   0x4   : > { %p27_p0 = scmp.ge.s32.totalorder %s26_s20, 5  ;;  %p50_p2 = scmp.eq.s32.totalorder %s1137_s19, 0 }
   0x5   : > { %s42_s22 = sadd.s32 1, %s1125_s16  ;;  %p948_p5 = scmp.ge.s32.totalorder %s1137_s19, 5 }
   0x6   : > { %s1397_s20 = smov (%p27_p0, %s26_s20), 0  ;;  %p51_p3 = por %p50_p2, %p49_p1 }
   0x7   : > { %s38_s21 = ssub.s32 %s1133_s18, %s1397_s20  ;;  %203 = sbr.rel (%p948_p5) target bundleno = 26 (0x1a), region = 24 }
   0x8   : > { %p40_p4 = scmp.eq.s32.totalorder %s38_s21, 0 }
   0xa   : > { %s1200_s23 = scalar_select %p40_p4, %s1125_s16, %s42_s22  }
   0xc   : > { %206 = sbr.rel (!%p51_p3) target bundleno = 26 (0x1a), region = 28  ;;  %s208_s24 = sand.u32 (%p51_p3), 1, %s1125_s16  }
   0xd   : > { %s950_s25 = sshll.u32 (%p51_p3), %s1133_s18, 2  ;;  %s949_s26 = sshll.u32 (%p51_p3), %s208_s24, 6 }
   0xe   : > { %s1208_s29 = scalar_lea.vmem (%p51_p3), %s1387_s0, %s950_s25  ;;  %s210_s30 = scalar_lea.vmem (%p51_p3), [#allocation3], %s949_s26 }
   0xf   : > { %v232_v0 = vld [vmem:[%s1208_s29] sm:$0xf] (%p51_p3)  ;;  %v234_v1 = vld [vmem:[%s1208_s29 + $0x14] sm:$0xf] (%p51_p3)  ;;  %v236_v2 = vld [vmem:[%s1208_s29 + $0x28] sm:$0xf] (%p51_p3) }
  0x10   : > { %233 = vst [vmem:[%s210_s30] sm:$0xf] (%p51_p3), %v232_v0  ;;  %235 = vst [vmem:[%s210_s30 + $0x4] sm:$0xf] (%p51_p3), %v234_v1  ;;  %v238_v3 = vld [vmem:[%s1208_s29 + $0x3c] sm:$0xf] (%p51_p3) }
  0x11   : > { %v240_v4 = vld [vmem:[%s1208_s29 + $0x50] sm:$0xf]  ;;  %237 = vst [vmem:[%s210_s30 + $0x8] sm:$0xf] %v236_v2  ;;  %239 = vst [vmem:[%s210_s30 + $0xc] sm:$0xf] %v238_v3 }
  0x12   : > { %241 = vst [vmem:[%s210_s30 + $0x10] sm:$0xf] %v240_v4  ;;  %v242_v5 = vld [vmem:[%s1208_s29 + $0x64] sm:$0xf]  ;;  %v244_v6 = vld [vmem:[%s1208_s29 + $0x78] sm:$0xf] }
  0x13   : > { %v246_v7 = vld [vmem:[%s1208_s29 + $0x8c] sm:$0xf]  ;;  %243 = vst [vmem:[%s210_s30 + $0x14] sm:$0xf] %v242_v5  ;;  %245 = vst [vmem:[%s210_s30 + $0x18] sm:$0xf] %v244_v6 }
  0x14   : > { %247 = vst [vmem:[%s210_s30 + $0x1c] sm:$0xf] %v246_v7  ;;  %v248_v8 = vld [vmem:[%s1208_s29 + $0xa0] sm:$0xf]  ;;  %v250_v9 = vld [vmem:[%s1208_s29 + $0xb4] sm:$0xf] }
  0x15   : > { %v252_v10 = vld [vmem:[%s1208_s29 + $0xc8] sm:$0xf]  ;;  %249 = vst [vmem:[%s210_s30 + $0x20] sm:$0xf] %v248_v8  ;;  %251 = vst [vmem:[%s210_s30 + $0x24] sm:$0xf] %v250_v9 }
  0x16   : > { %253 = vst [vmem:[%s210_s30 + $0x28] sm:$0xf] %v252_v10  ;;  %v254_v11 = vld [vmem:[%s1208_s29 + $0xdc] sm:$0xf]  ;;  %v256_v12 = vld [vmem:[%s1208_s29 + $0xf0] sm:$0xf] }
  0x17   : > { %v258_v13 = vld [vmem:[%s1208_s29 + $0x104] sm:$0xf]  ;;  %255 = vst [vmem:[%s210_s30 + $0x2c] sm:$0xf] %v254_v11  ;;  %257 = vst [vmem:[%s210_s30 + $0x30] sm:$0xf] %v256_v12 }
  0x18   : > { %259 = vst [vmem:[%s210_s30 + $0x34] sm:$0xf] %v258_v13  ;;  %v260_v14 = vld [vmem:[%s1208_s29 + $0x118] sm:$0xf]  ;;  %v262_v15 = vld [vmem:[%s1208_s29 + $0x12c] sm:$0xf] }
  0x19   : > { %261 = vst [vmem:[%s210_s30 + $0x38] sm:$0xf] %v260_v14  ;;  %263 = vst [vmem:[%s210_s30 + $0x3c] sm:$0xf] %v262_v15 }
  0x1a PF: > { %p951_p6 = scmp.ge.s32.totalorder %s1137_s19, 1  ;;  %p330_p7 = scmp.lt.s32.totalorder %s1137_s19, 6 }
  0x1c   : > { %p331_p8 = pnand %p951_p6, %p330_p7 }
  0x1d   : > { %s337_s5 = sand.u32 (!%p331_p8), 1, %s1121_s15   ;;  %s953_s6 = sshll.u32 (!%p331_p8), %s1129_s17, 4 }
  0x1e   : > { %334 = sbr.rel (%p331_p8) target bundleno = 312 (0x138), region = 73  ;;  %s952_s7 = sshll.u32 (!%p331_p8), %s337_s5, 6 }
  0x1f   : > { %p386_p9 = scmp.lt.s32.totalorder (!%p331_p8), %s953_s6, 79  ;;  %s1235_s12 = scalar_lea.vmem (!%p331_p8), [#allocation3], %s952_s7 }
  0x20   : > { %p955_p10 = scmp.ne.s32.totalorder (!%p331_p8), %s1129_s17, 0 }
  0x23   : > { %s1399_s6 = smov (!%p386_p9, %s953_s6), 79  ;;  %419 = sbr.rel (%p955_p10) target bundleno = 49 (0x31), region = 81 }
  0x24   : > { %s954_s8 = sshll.u32 %s1399_s6, 2 }
  0x25   : > { %s1233_s11 = scalar_lea.vmem %s1388_s1, %s954_s8 }
  0x28   : > { %v1139_v16 = vmov 0.0  }
  0x29   : > { %420 = vst [vmem:[#allocation2 + $0x30] sm:$0xff] %v1139_v16  ;;  %421 = vst [vmem:[#allocation2] sm:$0xff] %v1139_v16 }
  0x2a   : > { %422 = vst [vmem:[#allocation2 + $0x58] sm:$0xff] %v1139_v16  ;;  %423 = vst [vmem:[#allocation2 + $0x18] sm:$0xff] %v1139_v16 }
  0x2b   : > { %424 = vst [vmem:[#allocation2 + $0x50] sm:$0xff] %v1139_v16  ;;  %425 = vst [vmem:[#allocation2 + $0x68] sm:$0xff] %v1139_v16 }
  0x2c   : > { %426 = vst [vmem:[#allocation2 + $0x8] sm:$0xff] %v1139_v16  ;;  %427 = vst [vmem:[#allocation2 + $0x48] sm:$0xff] %v1139_v16 }
  0x2d   : > { %428 = vst [vmem:[#allocation2 + $0x40] sm:$0xff] %v1139_v16  ;;  %429 = vst [vmem:[#allocation2 + $0x20] sm:$0xff] %v1139_v16 }
  0x2e   : > { %430 = vst [vmem:[#allocation2 + $0x10] sm:$0xff] %v1139_v16  ;;  %431 = vst [vmem:[#allocation2 + $0x38] sm:$0xff] %v1139_v16 }
  0x2f   : > { %432 = vst [vmem:[#allocation2 + $0x60] sm:$0xff] %v1139_v16  ;;  %433 = vst [vmem:[#allocation2 + $0x70] sm:$0xff] %v1139_v16 }
  0x30   : > { %434 = vst [vmem:[#allocation2 + $0x78] sm:$0xff] %v1139_v16  ;;  %435 = vst [vmem:[#allocation2 + $0x28] sm:$0xff] %v1139_v16 }
  0x31 PF: > { %v1083_v17 = vld [vmem:[%s1233_s11 + $0x38] sm:$0xff]   ;;  %v1084_v18 = vld [vmem:[%s1233_s11 + $0x30] sm:$0xff]   ;;  %v1085_v19 = vld [vmem:[%s1233_s11 + $0x28] sm:$0xff]   ;;  %p972_p11 = scmp.ne.s32.totalorder %s1129_s17, 4 }
  0x32   : > { %994 = vmatprep.subr.bf16.mxu0 %v1083_v17  ;;  %1026 = vmatprep.subr.bf16.mxu1 %v1083_v17  ;;  %v1086_v20 = vld [vmem:[%s1233_s11 + $0x20] sm:$0xff]   ;;  %v1087_v23 = vld [vmem:[%s1233_s11 + $0x18] sm:$0xff]   ;;  %v1088_v24 = vld [vmem:[%s1233_s11 + $0x10] sm:$0xff]  }
  0x33   : > { %995 = vmatpush3.bf16.msra.mxu0 %v1083_v17  ;;  %1034 = vmatpush3.bf16.msra.mxu1 %v1083_v17  ;;  %v1091_v21 = vld [vmem:[%s1235_s12] sm:$0xff]   ;;  %v1089_v25 = vld [vmem:[%s1233_s11 + $0x8] sm:$0xff]   ;;  %v1095_v29 = vld [vmem:[%s1235_s12 + $0x10] sm:$0xff]  }
  0x34   : > { %996 = vmatprep.subr.bf16.mxu0 %v1084_v18  ;;  %1027 = vmatprep.subr.bf16.mxu1 %v1084_v18  ;;  %v1092_v22 = vld [vmem:[%s1235_s12 + $0x20] sm:$0xff]   ;;  %v1093_v27 = vld [vmem:[%s1235_s12 + $0x8] sm:$0xff]   ;;  %v1096_v30 = vld [vmem:[%s1235_s12 + $0x30] sm:$0xff]  }
  0x35   : > { %1010 = vmatprep.mubr.bf16.mxu0 %v1091_v21  ;;  %1018 = vmatprep.mubr.bf16.mxu1 %v1092_v22  ;;  %v1090_v26 = vld [vmem:[%s1233_s11] sm:$0xff]   ;;  %v1094_v28 = vld [vmem:[%s1235_s12 + $0x28] sm:$0xff]   ;;  %v1097_v31 = vld [vmem:[%s1235_s12 + $0x18] sm:$0xff]  }
  0x36   : > { %v1098_v32 = vld [vmem:[%s1235_s12 + $0x38] sm:$0xff]   ;;  %v446_v34 = vld [vmem:[#allocation2 + $0x10] sm:$0xff]  ;;  %v444_v38 = vld [vmem:[#allocation2 + $0x40] sm:$0xff] }
  0x37   : > { %997 = vmatpush3.bf16.msra.mxu0 %v1084_v18  ;;  %1035 = vmatpush3.bf16.msra.mxu1 %v1084_v18  ;;  %v438_v33 = vld [vmem:[#allocation2 + $0x58] sm:$0xff]  ;;  %v436_v37 = vld [vmem:[#allocation2 + $0x30] sm:$0xff]  ;;  %v437_v49 = vld [vmem:[#allocation2] sm:$0xff] }
  0x38   : > { %998 = vmatprep.subr.bf16.mxu0 %v1085_v19  ;;  %1028 = vmatprep.subr.bf16.mxu1 %v1085_v19  ;;  %v439_v43 = vld [vmem:[#allocation2 + $0x18] sm:$0xff]  ;;  %v445_v50 = vld [vmem:[#allocation2 + $0x20] sm:$0xff]  ;;  %v442_v55 = vld [vmem:[#allocation2 + $0x8] sm:$0xff] }
  0x39   : > { %v447_v44 = vld [vmem:[#allocation2 + $0x38] sm:$0xff]  ;;  %v440_v61 = vld [vmem:[#allocation2 + $0x50] sm:$0xff]  ;;  %v448_v62 = vld [vmem:[#allocation2 + $0x60] sm:$0xff] }
  0x3a   : > { %v450_v56 = vld [vmem:[#allocation2 + $0x78] sm:$0xff]  ;;  %v443_v3 = vld [vmem:[#allocation2 + $0x48] sm:$0xff]  ;;  %v449_v10 = vld [vmem:[#allocation2 + $0x70] sm:$0xff] }
  0x3b   : > { %999 = vmatpush3.bf16.msra.mxu0 %v1085_v19  ;;  %1036 = vmatpush3.bf16.msra.mxu1 %v1085_v19  ;;  %v451_v4 = vld [vmem:[#allocation2 + $0x28] sm:$0xff] }
  0x3c   : > { %1000 = vmatprep.subr.bf16.mxu0 %v1086_v20  ;;  %1029 = vmatprep.subr.bf16.mxu1 %v1086_v20  ;;  %v441_v9 = vld [vmem:[#allocation2 + $0x68] sm:$0xff] }
  0x3f   : > { %1001 = vmatpush3.bf16.msra.mxu0 %v1086_v20  ;;  %1037 = vmatpush3.bf16.msra.mxu1 %v1086_v20 }
  0x40   : > { %1002 = vmatprep.subr.bf16.mxu0 %v1087_v23  ;;  %1030 = vmatprep.subr.bf16.mxu1 %v1087_v23 }
  0x43   : > { %1003 = vmatpush3.bf16.msra.mxu0 %v1087_v23  ;;  %1038 = vmatpush3.bf16.msra.mxu1 %v1087_v23 }
  0x44   : > { %1004 = vmatprep.subr.bf16.mxu0 %v1088_v24  ;;  %1031 = vmatprep.subr.bf16.mxu1 %v1088_v24 }
  0x47   : > { %1005 = vmatpush3.bf16.msra.mxu0 %v1088_v24  ;;  %1039 = vmatpush3.bf16.msra.mxu1 %v1088_v24 }
  0x48   : > { %1006 = vmatprep.subr.bf16.mxu0 %v1089_v25  ;;  %1032 = vmatprep.subr.bf16.mxu1 %v1089_v25 }
  0x4b   : > { %1007 = vmatpush3.bf16.msra.mxu0 %v1089_v25  ;;  %1040 = vmatpush3.bf16.msra.mxu1 %v1089_v25 }
  0x4c   : > { %1008 = vmatprep.subr.bf16.mxu0 %v1090_v26  ;;  %1033 = vmatprep.subr.bf16.mxu1 %v1090_v26 }
  0x4f   : > { %1009 = vmatpush3.bf16.msra.mxu0 %v1090_v26  ;;  %1041 = vmatpush3.bf16.msra.mxu1 %v1090_v26 }
  0x52   : > { %1011 = vmatmul.mubr.bf16.vlgmr.msra.gmra.mxu0 %v1093_v27  ;;  %1019 = vmatmul.mubr.bf16.vlgmr.msra.gmra.mxu1 %v1094_v28 }
  0x53   : > { %1014 = vmatprep.mubr.bf16.mxu0 %v1095_v29  ;;  %1022 = vmatprep.mubr.bf16.mxu1 %v1096_v30 }
  0x5a   : > { %1015 = vmatmul.mubr.bf16.gmra.mxu0 %v1097_v31  ;;  %1023 = vmatmul.mubr.bf16.gmra.mxu1 %v1098_v32 }
 0x112   : > { %v1012_v35 = vpop.f32.mrf.mxu0  ;;  %v1020_v36 = vpop.f32.mrf.mxu1 }
 0x113   : > { %v679_v39 = vadd.f32 %v1012_v35, %v438_v33  ;;  %v687_v40 = vadd.f32 %v1020_v36, %v446_v34 }
 0x114   : > { %v614_v41 = vpop.f32.mrf.mxu0  ;;  %v646_v42 = vpop.f32.mrf.mxu1 }
 0x115   : > { %695 = vst [vmem:[#allocation2 + $0x58] sm:$0xff] %v679_v39  ;;  %703 = vst [vmem:[#allocation2 + $0x10] sm:$0xff] %v687_v40  ;;  %v677_v45 = vadd.f32 %v614_v41, %v436_v37  ;;  %v685_v46 = vadd.f32 %v646_v42, %v444_v38 }
 0x116   : > { %v1013_v47 = vpop.f32.mrf.mxu0  ;;  %v1021_v48 = vpop.f32.mrf.mxu1 }
 0x117   : > { %693 = vst [vmem:[#allocation2 + $0x30] sm:$0xff] %v677_v45  ;;  %701 = vst [vmem:[#allocation2 + $0x40] sm:$0xff] %v685_v46  ;;  %v680_v51 = vadd.f32 %v1013_v47, %v439_v43  ;;  %v688_v52 = vadd.f32 %v1021_v48, %v447_v44 }
 0x118   : > { %v617_v53 = vpop.f32.mrf.mxu0  ;;  %v649_v54 = vpop.f32.mrf.mxu1 }
 0x119   : > { %696 = vst [vmem:[#allocation2 + $0x18] sm:$0xff] %v680_v51  ;;  %704 = vst [vmem:[#allocation2 + $0x38] sm:$0xff] %v688_v52  ;;  %v678_v57 = vadd.f32 %v617_v53, %v437_v49  ;;  %v686_v58 = vadd.f32 %v649_v54, %v445_v50 }
 0x11a   : > { %v1016_v59 = vpop.f32.mrf.mxu0  ;;  %v1024_v60 = vpop.f32.mrf.mxu1 }
 0x11b   : > { %694 = vst [vmem:[#allocation2] sm:$0xff] %v678_v57  ;;  %702 = vst [vmem:[#allocation2 + $0x20] sm:$0xff] %v686_v58  ;;  %v683_v63 = vadd.f32 %v1016_v59, %v442_v55  ;;  %v691_v0 = vadd.f32 %v1024_v60, %v450_v56 }
 0x11c   : > { %v630_v1 = vpop.f32.mrf.mxu0  ;;  %v662_v2 = vpop.f32.mrf.mxu1 }
 0x11d   : > { %699 = vst [vmem:[#allocation2 + $0x8] sm:$0xff] %v683_v63  ;;  %707 = vst [vmem:[#allocation2 + $0x78] sm:$0xff] %v691_v0  ;;  %v681_v5 = vadd.f32 %v630_v1, %v440_v61  ;;  %v689_v6 = vadd.f32 %v662_v2, %v448_v62 }
 0x11e   : > { %v1017_v7 = vpop.f32.mrf.mxu0  ;;  %v1025_v8 = vpop.f32.mrf.mxu1 }
 0x11f   : > { %697 = vst [vmem:[#allocation2 + $0x50] sm:$0xff] %v681_v5  ;;  %705 = vst [vmem:[#allocation2 + $0x60] sm:$0xff] %v689_v6  ;;  %v684_v11 = vadd.f32 %v1017_v7, %v443_v3  ;;  %v692_v12 = vadd.f32 %v1025_v8, %v451_v4  ;;  %712 = sbr.rel (%p972_p11) target bundleno = 312 (0x138), region = 85 }
 0x120   : > { %v633_v13 = vpop.f32.mrf.mxu0  ;;  %v665_v14 = vpop.f32.mrf.mxu1 }
 0x121   : > { %700 = vst [vmem:[#allocation2 + $0x48] sm:$0xff] %v684_v11  ;;  %708 = vst [vmem:[#allocation2 + $0x28] sm:$0xff] %v692_v12  ;;  %v682_v15 = vadd.f32 %v633_v13, %v441_v9  ;;  %v690_v16 = vadd.f32 %v665_v14, %v449_v10 }
 0x123   : > { %698 = vst [vmem:[#allocation2 + $0x68] sm:$0xff] %v682_v15  ;;  %706 = vst [vmem:[#allocation2 + $0x70] sm:$0xff] %v690_v16 }
 0x124   : > { %v713_v17 = vld [vmem:[#allocation2 + $0x30] sm:$0xff]  ;;  %v1258_v18 = vld [vmem:[%s1389_s2] ss:$0 sm:$0xff]  ;;  %v753_v22 = vld [vmem:[%s1390_s3 + $0x8] sm:$0xff] }
 0x125   : > { %v752_v19 = vld [vmem:[%s1390_s3] sm:$0xff]  ;;  %v736_v20 = vadd.f32 %v1258_v18, %v713_v17  ;;  %v715_v23 = vld [vmem:[#allocation2 + $0x58] sm:$0xff]  ;;  %v754_v26 = vld [vmem:[%s1390_s3 + $0x10] sm:$0xff] }
 0x126   : > { %v714_v21 = vld [vmem:[#allocation2] sm:$0xff]  ;;  %v738_v25 = vadd.f32 %v1258_v18, %v715_v23  ;;  %v716_v27 = vld [vmem:[#allocation2 + $0x18] sm:$0xff]  ;;  %v717_v31 = vld [vmem:[#allocation2 + $0x50] sm:$0xff] }
 0x127   : > { %v737_v24 = vadd.f32 %v1258_v18, %v714_v21  ;;  %v755_v28 = vld [vmem:[%s1390_s3 + $0x18] sm:$0xff]  ;;  %v768_v29 = vadd.f32 %v752_v19, %v736_v20  ;;  %v739_v30 = vadd.f32 %v1258_v18, %v716_v27  ;;  %v756_v32 = vld [vmem:[%s1390_s3 + $0x20] sm:$0xff]  ;;  %v740_v36 = vadd.f32 %v1258_v18, %v717_v31  ;;  %v757_v38 = vld [vmem:[%s1390_s3 + $0x28] sm:$0xff] }
 0x128   : > { %v770_v35 = vadd.f32 %v754_v26, %v738_v25  ;;  %v719_v39 = vld [vmem:[#allocation2 + $0x8] sm:$0xff]  ;;  %v758_v40 = vld [vmem:[%s1390_s3 + $0x30] sm:$0xff]  ;;  %v759_v45 = vld [vmem:[%s1390_s3 + $0x38] sm:$0xff] }
 0x129   : > { %v769_v34 = vadd.f32 %v753_v22, %v737_v24  ;;  %v784_v41 = vmax.f32 %v768_v29, 0.0  ;;  %v771_v42 = vadd.f32 %v755_v28, %v739_v30  ;;  %v742_v43 = vadd.f32 %v1258_v18, %v719_v39  ;;  %v720_v44 = vld [vmem:[#allocation2 + $0x48] sm:$0xff]  ;;  %v721_v46 = vld [vmem:[#allocation2 + $0x40] sm:$0xff]  ;;  %v723_v58 = vld [vmem:[#allocation2 + $0x10] sm:$0xff] }
 0x12a   : > { %v718_v33 = vld [vmem:[#allocation2 + $0x68] sm:$0xff]  ;;  %v786_v48 = vmax.f32 %v770_v35, 0.0  ;;  %v772_v49 = vadd.f32 %v756_v32, %v740_v36  ;;  %v760_v51 = vld [vmem:[%s1390_s3 + $0x40] sm:$0xff]  ;;  %v743_v56 = vadd.f32 %v1258_v18, %v720_v44  ;;  %v744_v57 = vadd.f32 %v1258_v18, %v721_v46  ;;  %v762_v59 = vld [vmem:[%s1390_s3 + $0x50] sm:$0xff] }
 0x12b   : > { %v741_v37 = vadd.f32 %v1258_v18, %v718_v33  ;;  %v785_v47 = vmax.f32 %v769_v34, 0.0  ;;  %v722_v52 = vld [vmem:[#allocation2 + $0x20] sm:$0xff]  ;;  %v761_v53 = vld [vmem:[%s1390_s3 + $0x48] sm:$0xff]  ;;  %800 = vst [vmem:[%s1391_s4] sm:$0xff] %v784_v41  ;;  %v787_v54 = vmax.f32 %v771_v42, 0.0  ;;  %v774_v55 = vadd.f32 %v758_v40, %v742_v43  ;;  %v724_v60 = vld [vmem:[#allocation2 + $0x38] sm:$0xff] }
 0x12c   : > { %802 = vst [vmem:[%s1391_s4 + $0x10] sm:$0xff] %v786_v48  ;;  %v788_v61 = vmax.f32 %v772_v49, 0.0  ;;  %v745_v63 = vadd.f32 %v1258_v18, %v722_v52  ;;  %v746_v0 = vadd.f32 %v1258_v18, %v723_v58  ;;  %v763_v1 = vld [vmem:[%s1390_s3 + $0x58] sm:$0xff]  ;;  %v725_v2 = vld [vmem:[#allocation2 + $0x60] sm:$0xff]  ;;  %v775_v5 = vadd.f32 %v759_v45, %v743_v56  ;;  %v726_v8 = vld [vmem:[#allocation2 + $0x70] sm:$0xff] }
 0x12d   : > { %v773_v50 = vadd.f32 %v757_v38, %v741_v37  ;;  %801 = vst [vmem:[%s1391_s4 + $0x8] sm:$0xff] %v785_v47  ;;  %v764_v3 = vld [vmem:[%s1390_s3 + $0x60] sm:$0xff]  ;;  %803 = vst [vmem:[%s1391_s4 + $0x18] sm:$0xff] %v787_v54  ;;  %v790_v4 = vmax.f32 %v774_v55, 0.0  ;;  %v776_v6 = vadd.f32 %v760_v51, %v744_v57  ;;  %v747_v7 = vadd.f32 %v1258_v18, %v724_v60  ;;  %v765_v9 = vld [vmem:[%s1390_s3 + $0x68] sm:$0xff] }
 0x12e   : > { %v727_v10 = vld [vmem:[#allocation2 + $0x78] sm:$0xff]  ;;  %804 = vst [vmem:[%s1391_s4 + $0x20] sm:$0xff] %v788_v61  ;;  %v777_v11 = vadd.f32 %v761_v53, %v745_v63  ;;  %v778_v12 = vadd.f32 %v762_v59, %v746_v0  ;;  %v748_v13 = vadd.f32 %v1258_v18, %v725_v2  ;;  %v749_v14 = vadd.f32 %v1258_v18, %v726_v8  ;;  %v766_v15 = vld [vmem:[%s1390_s3 + $0x70] sm:$0xff]  ;;  %v728_v16 = vld [vmem:[#allocation2 + $0x28] sm:$0xff] }
 0x12f   : > { %v789_v62 = vmax.f32 %v773_v50, 0.0  ;;  %806 = vst [vmem:[%s1391_s4 + $0x30] sm:$0xff] %v790_v4  ;;  %v791_v17 = vmax.f32 %v775_v5, 0.0  ;;  %v792_v19 = vmax.f32 %v776_v6, 0.0  ;;  %v779_v20 = vadd.f32 %v763_v1, %v747_v7  ;;  %v767_v26 = vld [vmem:[%s1390_s3 + $0x78] sm:$0xff] }
 0x130   : > { %v750_v21 = vadd.f32 %v1258_v18, %v727_v10  ;;  %v793_v22 = vmax.f32 %v777_v11, 0.0  ;;  %v794_v23 = vmax.f32 %v778_v12, 0.0  ;;  %v780_v24 = vadd.f32 %v764_v3, %v748_v13 }
 0x131   : > { %805 = vst [vmem:[%s1391_s4 + $0x28] sm:$0xff] %v789_v62  ;;  %v781_v25 = vadd.f32 %v765_v9, %v749_v14  ;;  %807 = vst [vmem:[%s1391_s4 + $0x38] sm:$0xff] %v791_v17  ;;  %v795_v27 = vmax.f32 %v779_v20, 0.0  ;;  %v751_v29 = vadd.f32 %v1258_v18, %v728_v16 }
 0x132   : > { %808 = vst [vmem:[%s1391_s4 + $0x40] sm:$0xff] %v792_v19  ;;  %v782_v28 = vadd.f32 %v766_v15, %v750_v21  ;;  %809 = vst [vmem:[%s1391_s4 + $0x48] sm:$0xff] %v793_v22  ;;  %v796_v30 = vmax.f32 %v780_v24, 0.0 }
 0x133   : > { %810 = vst [vmem:[%s1391_s4 + $0x50] sm:$0xff] %v794_v23  ;;  %v797_v31 = vmax.f32 %v781_v25, 0.0  ;;  %811 = vst [vmem:[%s1391_s4 + $0x58] sm:$0xff] %v795_v27  ;;  %v783_v33 = vadd.f32 %v767_v26, %v751_v29 }
 0x134   : > { %v798_v32 = vmax.f32 %v782_v28, 0.0  ;;  %812 = vst [vmem:[%s1391_s4 + $0x60] sm:$0xff] %v796_v30 }
 0x135   : > { %813 = vst [vmem:[%s1391_s4 + $0x68] sm:$0xff] %v797_v31  ;;  %v799_v18 = vmax.f32 %v783_v33, 0.0 }
 0x136   : > { %814 = vst [vmem:[%s1391_s4 + $0x70] sm:$0xff] %v798_v32 }
 0x137   : > { %815 = vst [vmem:[%s1391_s4 + $0x78] sm:$0xff] %v799_v18 }
 0x138 PF: > { %s14_s19 = sadd.s32 1, %s1137_s19   ;;  %s1392_s15 = smov %s1125_s16 }
 0x139   : > { %p11_p12 = scmp.ge.s32.totalorder %s14_s19, 7   ;;  %s1393_s16 = smov %s1200_s23 }
 0x13a   : > { %s1394_s17 = smov %s1133_s18  ;;  %s1395_s18 = smov %s1397_s20 }
 0x13b   :  { %13 = sbr.rel (!%p11_p12) target bundleno = 3 (0x3), region = 129 }

// kernel: _lambda_.28
= control target key start
LH: loop header
LB: loop body
LE: loop exit
PB: predicated region body
PF: predicated region fallthrough
CT: control target
= control target key end

     0   :  { %s763_s12 = smov 0   ;;  %s765_s13 = smov 0   ;;  %s862_s0 = inlined_call_operand.vmem [shape: bf16[32,640], index: 0, kind: input, shape index: {}]   ;;  %s863_s1 = inlined_call_operand.vmem [shape: bf16[640,128], index: 1, kind: input, shape index: {}]   ;;  %s864_s2 = inlined_call_operand.vmem [shape: f32[1,128], index: 2, kind: input, shape index: {}]   ;;  %s865_s3 = inlined_call_operand.vmem [shape: f32[32,128], index: 3, kind: output, shape index: {}]  }
   0x1   :  { %s767_s14 = smov 0   ;;  %s769_s15 = smov 0  }
   0x2   :  { %s771_s16 = smov 0  }
   0x3 LB: > { %s25_s17 = sadd.s32 1, %s736_s15  ;;  %p48_p1 = scmp.ne.s32.totalorder %s728_s13, %s724_s12  ;;  %s740_s16 = sphi %s771_s16, %s13_s16   ;;  %s736_s15 = sphi %s769_s15, %s869_s15   ;;  %s732_s14 = sphi %s767_s14, %s868_s14   ;;  %s728_s13 = sphi %s765_s13, %s867_s13   ;;  %s724_s12 = sphi %s763_s12, %s866_s12  }
   0x4   : > { %p26_p0 = scmp.ge.s32.totalorder %s25_s17, 5  ;;  %p49_p2 = scmp.eq.s32.totalorder %s740_s16, 0 }
   0x5   : > { %s41_s19 = sadd.s32 1, %s728_s13  ;;  %p597_p5 = scmp.ge.s32.totalorder %s740_s16, 5 }
   0x6   : > { %s871_s17 = smov (%p26_p0, %s25_s17), 0  ;;  %p50_p3 = por %p49_p2, %p48_p1 }
   0x7   : > { %s37_s18 = ssub.s32 %s736_s15, %s871_s17  ;;  %162 = sbr.rel (%p597_p5) target bundleno = 18 (0x12), region = 20 }
   0x8   : > { %p39_p4 = scmp.eq.s32.totalorder %s37_s18, 0 }
   0xa   : > { %s798_s20 = scalar_select %p39_p4, %s728_s13, %s41_s19  }
   0xc   : > { %165 = sbr.rel (!%p50_p3) target bundleno = 18 (0x12), region = 24  ;;  %s167_s21 = sand.u32 (%p50_p3), 1, %s728_s13  }
   0xd   : > { %s599_s22 = sshll.u32 (%p50_p3), %s736_s15, 2  ;;  %s598_s23 = sshll.u32 (%p50_p3), %s167_s21, 4 }
   0xe   : > { %s174_s26 = scalar_lea.vmem (%p50_p3), %s862_s0, %s599_s22  ;;  %s169_s27 = scalar_lea.vmem (%p50_p3), [#allocation3], %s598_s23 }
   0xf   : > { %v191_v0 = vld [vmem:[%s174_s26] sm:$0xf] (%p50_p3)  ;;  %v193_v1 = vld [vmem:[%s174_s26 + $0x14] sm:$0xf] (%p50_p3)  ;;  %v195_v2 = vld [vmem:[%s174_s26 + $0x28] sm:$0xf] (%p50_p3) }
  0x10   : > { %192 = vst [vmem:[%s169_s27] sm:$0xf] (%p50_p3), %v191_v0  ;;  %194 = vst [vmem:[%s169_s27 + $0x4] sm:$0xf] (%p50_p3), %v193_v1  ;;  %v197_v3 = vld [vmem:[%s174_s26 + $0x3c] sm:$0xf] (%p50_p3) }
  0x11   : > { %196 = vst [vmem:[%s169_s27 + $0x8] sm:$0xf] %v195_v2  ;;  %198 = vst [vmem:[%s169_s27 + $0xc] sm:$0xf] %v197_v3 }
  0x12 PF: > { %p600_p6 = scmp.ge.s32.totalorder %s740_s16, 1  ;;  %p241_p7 = scmp.lt.s32.totalorder %s740_s16, 6 }
  0x14   : > { %p242_p8 = pnand %p600_p6, %p241_p7 }
  0x15   : > { %s248_s28 = sand.u32 (!%p242_p8), 1, %s724_s12   ;;  %s602_s29 = sshll.u32 (!%p242_p8), %s732_s14, 4 }
  0x16   : > { %245 = sbr.rel (%p242_p8) target bundleno = 282 (0x11a), region = 69  ;;  %s810_s30 = sshll.u32 (!%p242_p8), %s248_s28, 4 }
  0x17   : > { %p287_p9 = scmp.lt.s32.totalorder (!%p242_p8), %s602_s29, 79  ;;  %s250_s8 = scalar_lea.vmem (!%p242_p8), [#allocation3], %s810_s30 }
  0x18   : > { %p604_p10 = scmp.ne.s32.totalorder (!%p242_p8), %s732_s14, 0 }
  0x1b   : > { %s873_s29 = smov (!%p287_p9, %s602_s29), 79  ;;  %311 = sbr.rel (%p604_p10) target bundleno = 35 (0x23), region = 77 }
  0x1c   : > { %s603_s4 = sshll.u32 %s873_s29, 2 }
  0x1d   : > { %s815_s7 = scalar_lea.vmem %s863_s1, %s603_s4 }
  0x20   : > { %v742_v4 = vmov 0.0  }
  0x21   : > { %312 = vst [vmem:[#allocation2 + $0x10] sm:$0xff] %v742_v4  ;;  %313 = vst [vmem:[#allocation2] sm:$0xff] %v742_v4 }
  0x22   : > { %314 = vst [vmem:[#allocation2 + $0x18] sm:$0xff] %v742_v4  ;;  %315 = vst [vmem:[#allocation2 + $0x8] sm:$0xff] %v742_v4 }
  0x23 PF: > { %v692_v5 = vld [vmem:[%s815_s7 + $0x38] sm:$0xff]   ;;  %v693_v6 = vld [vmem:[%s815_s7 + $0x30] sm:$0xff]   ;;  %v694_v7 = vld [vmem:[%s815_s7 + $0x28] sm:$0xff]   ;;  %p615_p11 = scmp.ne.s32.totalorder %s732_s14, 4 }
  0x24   : > { %631 = vmatprep.subr.bf16.mxu0 %v692_v5  ;;  %v695_v8 = vld [vmem:[%s815_s7 + $0x20] sm:$0xff]   ;;  %v696_v10 = vld [vmem:[%s815_s7 + $0x18] sm:$0xff]   ;;  %v697_v11 = vld [vmem:[%s815_s7 + $0x10] sm:$0xff]  }
  0x25   : > { %632 = vmatpush3.bf16.msra.mxu0 %v692_v5  ;;  %v700_v9 = vld [vmem:[%s250_s8] sm:$0xff]   ;;  %v698_v12 = vld [vmem:[%s815_s7 + $0x8] sm:$0xff]  }
  0x26   : > { %633 = vmatprep.subr.bf16.mxu0 %v693_v6  ;;  %647 = vmatprep.mubr.bf16.mxu0 %v700_v9  ;;  %v699_v13 = vld [vmem:[%s815_s7] sm:$0xff]   ;;  %v701_v14 = vld [vmem:[%s250_s8 + $0x8] sm:$0xff]  }
  0x28   : > { %v316_v17 = vld [vmem:[#allocation2 + $0x10] sm:$0xff]  ;;  %v317_v23 = vld [vmem:[#allocation2] sm:$0xff] }
  0x29   : > { %634 = vmatpush3.bf16.msra.mxu0 %v693_v6  ;;  %v318_v15 = vld [vmem:[#allocation2 + $0x18] sm:$0xff]  ;;  %v319_v20 = vld [vmem:[#allocation2 + $0x8] sm:$0xff] }
  0x2a   : > { %635 = vmatprep.subr.bf16.mxu0 %v694_v7 }
  0x2d   : > { %636 = vmatpush3.bf16.msra.mxu0 %v694_v7 }
  0x2e   : > { %637 = vmatprep.subr.bf16.mxu0 %v695_v8 }
  0x31   : > { %638 = vmatpush3.bf16.msra.mxu0 %v695_v8 }
  0x32   : > { %639 = vmatprep.subr.bf16.mxu0 %v696_v10 }
  0x35   : > { %640 = vmatpush3.bf16.msra.mxu0 %v696_v10 }
  0x36   : > { %641 = vmatprep.subr.bf16.mxu0 %v697_v11 }
  0x39   : > { %642 = vmatpush3.bf16.msra.mxu0 %v697_v11 }
  0x3a   : > { %643 = vmatprep.subr.bf16.mxu0 %v698_v12 }
  0x3d   : > { %644 = vmatpush3.bf16.msra.mxu0 %v698_v12 }
  0x3e   : > { %645 = vmatprep.subr.bf16.mxu0 %v699_v13 }
  0x41   : > { %646 = vmatpush3.bf16.msra.mxu0 %v699_v13 }
  0x44   : > { %648 = vmatmul.mubr.bf16.vlgmr.msra.gmra.mxu0 %v701_v14 }
 0x104   : > { %v649_v16 = vpop.f32.mrf.mxu0 }
 0x105   : > { %v451_v18 = vadd.f32 %v649_v16, %v318_v15 }
 0x106   : > { %v434_v19 = vpop.f32.mrf.mxu0 }
 0x107   : > { %455 = vst [vmem:[#allocation2 + $0x18] sm:$0xff] %v451_v18  ;;  %v449_v21 = vadd.f32 %v434_v19, %v316_v17 }
 0x108   : > { %v650_v22 = vpop.f32.mrf.mxu0 }
 0x109   : > { %453 = vst [vmem:[#allocation2 + $0x10] sm:$0xff] %v449_v21  ;;  %v452_v24 = vadd.f32 %v650_v22, %v319_v20  ;;  %460 = sbr.rel (%p615_p11) target bundleno = 282 (0x11a), region = 81 }
 0x10a   : > { %v437_v25 = vpop.f32.mrf.mxu0 }
 0x10b   : > { %456 = vst [vmem:[#allocation2 + $0x8] sm:$0xff] %v452_v24  ;;  %v450_v26 = vadd.f32 %v437_v25, %v317_v23 }
 0x10d   : > { %454 = vst [vmem:[#allocation2] sm:$0xff] %v450_v26 }
 0x10e   : > { %v616_v28 = vld [vmem:[%s864_s2] ss:$0 sm:$0xff]  ;;  %v463_v32 = vld [vmem:[#allocation2 + $0x18] sm:$0xff] }
 0x10f   : > { %v474_v34 = vadd.f32 %v616_v28, %v463_v32 }
 0x110   : > { %v461_v27 = vld [vmem:[#allocation2 + $0x10] sm:$0xff] }
 0x111   : > { %v472_v30 = vadd.f32 %v616_v28, %v461_v27  ;;  %v478_v38 = vmax.f32 %v474_v34, 0.0 }
 0x112   : > { %v464_v33 = vld [vmem:[#allocation2 + $0x8] sm:$0xff] }
 0x113   : > { %v475_v35 = vadd.f32 %v616_v28, %v464_v33  ;;  %v476_v36 = vmax.f32 %v472_v30, 0.0  ;;  %482 = vst [vmem:[%s865_s3 + $0x10] sm:$0xff] %v478_v38 }
 0x114   : > { %v462_v29 = vld [vmem:[#allocation2] sm:$0xff] }
 0x115   : > { %v473_v31 = vadd.f32 %v616_v28, %v462_v29  ;;  %v479_v39 = vmax.f32 %v475_v35, 0.0  ;;  %480 = vst [vmem:[%s865_s3] sm:$0xff] %v476_v36 }
 0x117   : > { %v477_v37 = vmax.f32 %v473_v31, 0.0  ;;  %483 = vst [vmem:[%s865_s3 + $0x18] sm:$0xff] %v479_v39 }
 0x119   : > { %481 = vst [vmem:[%s865_s3 + $0x8] sm:$0xff] %v477_v37 }
 0x11a PF: > { %s13_s16 = sadd.s32 1, %s740_s16   ;;  %s866_s12 = smov %s728_s13 }
 0x11b   : > { %p10_p12 = scmp.ge.s32.totalorder %s13_s16, 7   ;;  %s867_s13 = smov %s798_s20 }
 0x11c   : > { %s868_s14 = smov %s736_s15  ;;  %s869_s15 = smov %s871_s17 }
 0x11d   :  { %12 = sbr.rel (!%p10_p12) target bundleno = 3 (0x3), region = 122 }

// kernel: _lambda_.30
= control target key start
LH: loop header
LB: loop body
LE: loop exit
PB: predicated region body
PF: predicated region fallthrough
CT: control target
= control target key end

     0   :  { %s1129_s15 = smov 0   ;;  %s1131_s16 = smov 0   ;;  %s1257_s0 = inlined_call_operand.vmem [shape: bf16[32,1152], index: 0, kind: input, shape index: {}]   ;;  %s1258_s1 = inlined_call_operand.vmem [shape: bf16[1152,128], index: 1, kind: input, shape index: {}]   ;;  %s1259_s2 = inlined_call_operand.vmem [shape: f32[1,128], index: 2, kind: input, shape index: {}]   ;;  %s1260_s3 = inlined_call_operand.vmem [shape: f32[32,128], index: 3, kind: input, shape index: {}]   ;;  %s1261_s4 = inlined_call_operand.vmem [shape: f32[32,128], index: 4, kind: output, shape index: {}]  }
   0x1   :  { %s1133_s17 = smov 0   ;;  %s1135_s18 = smov 0  }
   0x2   :  { %s1137_s19 = smov 0  }
   0x3 LB: > { %s26_s20 = sadd.s32 1, %s1097_s18  ;;  %p49_p1 = scmp.ne.s32.totalorder %s1089_s16, %s1085_s15  ;;  %s1101_s19 = sphi %s1137_s19, %s14_s19   ;;  %s1097_s18 = sphi %s1135_s18, %s1265_s18   ;;  %s1093_s17 = sphi %s1133_s17, %s1264_s17   ;;  %s1089_s16 = sphi %s1131_s16, %s1263_s16   ;;  %s1085_s15 = sphi %s1129_s15, %s1262_s15  }
   0x4   : > { %p27_p0 = scmp.ge.s32.totalorder %s26_s20, 3  ;;  %p50_p2 = scmp.eq.s32.totalorder %s1101_s19, 0 }
   0x5   : > { %s42_s22 = sadd.s32 1, %s1089_s16  ;;  %p880_p5 = scmp.ge.s32.totalorder %s1101_s19, 3 }
   0x6   : > { %s1267_s20 = smov (%p27_p0, %s26_s20), 0  ;;  %p51_p3 = por %p50_p2, %p49_p1 }
   0x7   : > { %s38_s21 = ssub.s32 %s1097_s18, %s1267_s20  ;;  %203 = sbr.rel (%p880_p5) target bundleno = 21 (0x15), region = 24 }
   0x8   : > { %p40_p4 = scmp.eq.s32.totalorder %s38_s21, 0 }
   0xa   : > { %s1164_s23 = scalar_select %p40_p4, %s1089_s16, %s42_s22  }
   0xc   : > { %206 = sbr.rel (!%p51_p3) target bundleno = 21 (0x15), region = 28  ;;  %s208_s24 = sand.u32 (%p51_p3), 1, %s1089_s16  }
   0xd   : > { %s929_s25 = smul.u32 (%p51_p3), 12, %s1097_s18 }
   0xe   : > { %s988_s26 = smul.u32 (%p51_p3), 48, %s208_s24 }
   0xf   : > { %s216_s29 = scalar_lea.vmem (%p51_p3), %s1257_s0, %s929_s25 }
  0x10   : > { %v231_v0 = vld [vmem:[%s216_s29] sm:$0xff] (%p51_p3)  ;;  %v235_v2 = vld [vmem:[%s216_s29 + $0x48] sm:$0xff] (%p51_p3)  ;;  %s210_s30 = scalar_lea.vmem (%p51_p3), [#allocation3], %s988_s26  ;;  %v886_v6 = vld [vmem:[%s216_s29 + $0x50] sm:$0xf] (%p51_p3) }
  0x11   : > { %v233_v1 = vld [vmem:[%s216_s29 + $0x24] sm:$0xff]  ;;  %232 = vst [vmem:[%s210_s30] sm:$0xff] %v231_v0  ;;  %236 = vst [vmem:[%s210_s30 + $0x18] sm:$0xff] %v235_v2  ;;  %v237_v3 = vld [vmem:[%s216_s29 + $0x6c] sm:$0xff] }
  0x12   : > { %234 = vst [vmem:[%s210_s30 + $0xc] sm:$0xff] %v233_v1  ;;  %v882_v4 = vld [vmem:[%s216_s29 + $0x8] sm:$0xf]  ;;  %v884_v5 = vld [vmem:[%s216_s29 + $0x2c] sm:$0xf]  ;;  %238 = vst [vmem:[%s210_s30 + $0x24] sm:$0xff] %v237_v3 }
  0x13   : > { %883 = vst [vmem:[%s210_s30 + $0x8] sm:$0xf] %v882_v4  ;;  %885 = vst [vmem:[%s210_s30 + $0x14] sm:$0xf] %v884_v5  ;;  %v888_v7 = vld [vmem:[%s216_s29 + $0x74] sm:$0xf] }
  0x14   : > { %887 = vst [vmem:[%s210_s30 + $0x20] sm:$0xf] %v886_v6  ;;  %889 = vst [vmem:[%s210_s30 + $0x2c] sm:$0xf] %v888_v7 }
  0x15 PF: > { %p890_p6 = scmp.ge.s32.totalorder %s1101_s19, 1  ;;  %p271_p7 = scmp.lt.s32.totalorder %s1101_s19, 4 }
  0x17   : > { %p272_p8 = pnand %p890_p6, %p271_p7 }
  0x18   : > { %s278_s5 = sand.u32 (!%p272_p8), 1, %s1085_s15   ;;  %s327_s6 = smul.u32 (!%p272_p8), 48, %s1093_s17 }
  0x19   : > { %275 = sbr.rel (%p272_p8) target bundleno = 299 (0x12b), region = 58  ;;  %p892_p10 = scmp.ne.s32.totalorder (!%p272_p8), %s1093_s17, 0 }
  0x1a   : > { %s989_s7 = smul.u32 (!%p272_p8), 48, %s278_s5  ;;  %p328_p9 = scmp.lt.s32.totalorder (!%p272_p8), %s327_s6, 143 }
  0x1c   : > { %s1181_s12 = scalar_lea.vmem (!%p272_p8), [#allocation3], %s989_s7 }
  0x1e   : > { %s1269_s6 = smov (!%p328_p9, %s327_s6), 143  ;;  %361 = sbr.rel (%p892_p10) target bundleno = 38 (0x26), region = 66 }
  0x1f   : > { %s891_s8 = sshll.u32 %s1269_s6, 2 }
  0x20   : > { %s1179_s11 = scalar_lea.vmem %s1258_s1, %s891_s8 }
  0x23   : > { %v1103_v8 = vmov 0.0  }
  0x24   : > { %362 = vst [vmem:[#allocation2 + $0x10] sm:$0xff] %v1103_v8  ;;  %363 = vst [vmem:[#allocation2] sm:$0xff] %v1103_v8 }
  0x25   : > { %364 = vst [vmem:[#allocation2 + $0x18] sm:$0xff] %v1103_v8  ;;  %365 = vst [vmem:[#allocation2 + $0x8] sm:$0xff] %v1103_v8 }
  0x26 PF: > { %v1031_v9 = vld [vmem:[%s1179_s11 + $0x78] sm:$0xff]   ;;  %v1034_v12 = vld [vmem:[%s1179_s11 + $0x70] sm:$0xff]   ;;  %v1037_v15 = vld [vmem:[%s1179_s11 + $0x68] sm:$0xff]   ;;  %p923_p11 = scmp.ne.s32.totalorder %s1093_s17, 2 }
  0x27   : > { %v1032_v10 = vld [vmem:[%s1179_s11 + $0x38] sm:$0xff]   ;;  %930 = vmatprep.subr.bf16.mxu0 %v1031_v9  ;;  %v1035_v13 = vld [vmem:[%s1179_s11 + $0x30] sm:$0xff]   ;;  %v1038_v16 = vld [vmem:[%s1179_s11 + $0x28] sm:$0xff]  }
  0x28   : > { %v1033_v11 = vld [vmem:[%s1179_s11 + $0xb8] sm:$0xff]   ;;  %931 = vmatpush3.bf16.msra.mxu0 %v1032_v10  ;;  %v1036_v14 = vld [vmem:[%s1179_s11 + $0xb0] sm:$0xff]   ;;  %v1039_v17 = vld [vmem:[%s1179_s11 + $0xa8] sm:$0xff]  }
  0x29   : > { %968 = vmatprep.subr.bf16.mxu1 %v1033_v11  ;;  %932 = vmatprep.subr.bf16.mxu0 %v1034_v12  ;;  %v1040_v18 = vld [vmem:[%s1179_s11 + $0x60] sm:$0xff]   ;;  %v1043_v21 = vld [vmem:[%s1179_s11 + $0x58] sm:$0xff]   ;;  %v1046_v24 = vld [vmem:[%s1179_s11 + $0x50] sm:$0xff]  }
  0x2a   : > { %969 = vmatpush3.bf16.msra.mxu1 %v1033_v11  ;;  %v1041_v19 = vld [vmem:[%s1179_s11 + $0x20] sm:$0xff]   ;;  %v1045_v22 = vld [vmem:[%s1179_s11 + $0x98] sm:$0xff]   ;;  %v1048_v25 = vld [vmem:[%s1179_s11 + $0x90] sm:$0xff]  }
  0x2b   : > { %970 = vmatprep.subr.bf16.mxu1 %v1036_v14  ;;  %v1042_v20 = vld [vmem:[%s1179_s11 + $0xa0] sm:$0xff]   ;;  %v1044_v23 = vld [vmem:[%s1179_s11 + $0x18] sm:$0xff]   ;;  %v1047_v26 = vld [vmem:[%s1179_s11 + $0x10] sm:$0xff]  }
  0x2c   : > { %933 = vmatpush3.bf16.msra.mxu0 %v1035_v13  ;;  %v1049_v27 = vld [vmem:[%s1179_s11 + $0x48] sm:$0xff]   ;;  %v1052_v30 = vld [vmem:[%s1179_s11 + $0x40] sm:$0xff]   ;;  %v366_v44 = vld [vmem:[#allocation2 + $0x10] sm:$0xff] }
  0x2d   : > { %934 = vmatprep.subr.bf16.mxu0 %v1037_v15  ;;  %v1050_v28 = vld [vmem:[%s1179_s11 + $0x8] sm:$0xff]   ;;  %v1054_v31 = vld [vmem:[%s1179_s11 + $0x80] sm:$0xff]   ;;  %v368_v58 = vld [vmem:[#allocation2 + $0x18] sm:$0xff] }
  0x2e   : > { %971 = vmatpush3.bf16.msra.mxu1 %v1036_v14  ;;  %v1051_v29 = vld [vmem:[%s1179_s11 + $0x88] sm:$0xff]   ;;  %v1057_v32 = vld [vmem:[%s1181_s12 + $0x4] ss:$12 sps:$4 sm:$0xff]  }
  0x2f   : > { %972 = vmatprep.subr.bf16.mxu1 %v1039_v17  ;;  %v1058_v33 = vld [vmem:[%s1181_s12 + $0x8] ss:$12 sps:$4 sm:$0xff]   ;;  %634 = vmatprep.mubr.bf16.mxu0 %v1057_v32  ;;  %v1055_v35 = vld [vmem:[%s1181_s12] ss:$12 sps:$4 sm:$0xff]   ;;  %v1062_v38 = vld [vmem:[%s1181_s12 + $0x18] ss:$12 sps:$4 sm:$0xff]  }
  0x30   : > { %935 = vmatpush3.bf16.msra.mxu0 %v1038_v16  ;;  %v1053_v34 = vld [vmem:[%s1179_s11] sm:$0xff]   ;;  %984 = vmatprep.mubr.bf16.mxu1 %v1058_v33  ;;  %v1060_v36 = vld [vmem:[%s1181_s12 + $0x1c] ss:$12 sps:$4 sm:$0xff]  }
  0x31   : > { %936 = vmatprep.subr.bf16.mxu0 %v1040_v18  ;;  %v1059_v37 = vld [vmem:[%s1181_s12 + $0x20] ss:$12 sps:$4 sm:$0xff]  }
  0x32   : > { %973 = vmatpush3.bf16.msra.mxu1 %v1039_v17  ;;  %v367_v52 = vld [vmem:[#allocation2] sm:$0xff]  ;;  %v369_v0 = vld [vmem:[#allocation2 + $0x8] sm:$0xff] }
  0x33   : > { %974 = vmatprep.subr.bf16.mxu1 %v1042_v20 }
  0x34   : > { %937 = vmatpush3.bf16.msra.mxu0 %v1041_v19 }
  0x35   : > { %938 = vmatprep.subr.bf16.mxu0 %v1043_v21 }
  0x36   : > { %975 = vmatpush3.bf16.msra.mxu1 %v1042_v20 }
  0x37   : > { %976 = vmatprep.subr.bf16.mxu1 %v1045_v22 }
  0x38   : > { %939 = vmatpush3.bf16.msra.mxu0 %v1044_v23 }
  0x39   : > { %940 = vmatprep.subr.bf16.mxu0 %v1046_v24 }
  0x3a   : > { %977 = vmatpush3.bf16.msra.mxu1 %v1045_v22 }
  0x3b   : > { %978 = vmatprep.subr.bf16.mxu1 %v1048_v25 }
  0x3c   : > { %941 = vmatpush3.bf16.msra.mxu0 %v1047_v26 }
  0x3d   : > { %942 = vmatprep.subr.bf16.mxu0 %v1049_v27 }
  0x3e   : > { %979 = vmatpush3.bf16.msra.mxu1 %v1048_v25 }
  0x3f   : > { %980 = vmatprep.subr.bf16.mxu1 %v1051_v29 }
  0x40   : > { %943 = vmatpush3.bf16.msra.mxu0 %v1050_v28 }
  0x41   : > { %944 = vmatprep.subr.bf16.mxu0 %v1052_v30 }
  0x42   : > { %981 = vmatpush3.bf16.msra.mxu1 %v1051_v29 }
  0x43   : > { %982 = vmatprep.subr.bf16.mxu1 %v1054_v31 }
  0x44   : > { %945 = vmatpush3.bf16.msra.mxu0 %v1053_v34 }
  0x46   : > { %983 = vmatpush3.bf16.msra.mxu1 %v1054_v31 }
  0x47   : > { %635 = vmatmul.mubr.bf16.vlgmr.msra.gmra.mxu0 %v1055_v35 }
  0x48   : > { %642 = vmatprep.mubr.bf16.mxu0 %v1060_v36 }
  0x49   : > { %985 = vmatmul.mubr.bf16.vlgmr.msra.gmra.mxu1 %v1059_v37 }
  0x4f   : > { %643 = vmatmul.mubr.bf16.gmra.mxu0 %v1062_v38 }
 0x107   : > { %v946_v39 = vpop.f32.mrf.mxu0 }
 0x109   : > { %v947_v40 = vpop.f32.mrf.mxu0  ;;  %v986_v41 = vpop.f32.mrf.mxu1 }
 0x10a   : > { %v948_v42 = vadd.f32 %v947_v40, %v946_v39 }
 0x10b   : > { %v949_v43 = vpop.f32.mrf.mxu0  ;;  %v685_v45 = vpop.f32.mrf.mxu1 }
 0x10c   : > { %v686_v46 = vadd.f32 %v948_v42, %v685_v45 }
 0x10d   : > { %v950_v47 = vpop.f32.mrf.mxu0  ;;  %v987_v48 = vpop.f32.mrf.mxu1 }
 0x10e   : > { %v700_v49 = vadd.f32 %v686_v46, %v366_v44  ;;  %v951_v50 = vadd.f32 %v950_v47, %v949_v43 }
 0x10f   : > { %v952_v51 = vpop.f32.mrf.mxu0  ;;  %v688_v53 = vpop.f32.mrf.mxu1 }
 0x110   : > { %704 = vst [vmem:[#allocation2 + $0x10] sm:$0xff] %v700_v49  ;;  %v689_v54 = vadd.f32 %v951_v50, %v688_v53 }
 0x111   : > { %v953_v55 = vpop.f32.mrf.mxu0 }
 0x112   : > { %v701_v56 = vadd.f32 %v689_v54, %v367_v52  ;;  %v954_v57 = vadd.f32 %v953_v55, %v952_v51 }
 0x113   : > { %v955_v59 = vpop.f32.mrf.mxu0 }
 0x114   : > { %705 = vst [vmem:[#allocation2] sm:$0xff] %v701_v56  ;;  %v694_v60 = vadd.f32 %v986_v41, %v954_v57 }
 0x115   : > { %v956_v61 = vpop.f32.mrf.mxu0 }
 0x116   : > { %v702_v62 = vadd.f32 %v694_v60, %v368_v58  ;;  %v957_v63 = vadd.f32 %v956_v61, %v955_v59 }
 0x118   : > { %706 = vst [vmem:[#allocation2 + $0x18] sm:$0xff] %v702_v62  ;;  %v697_v1 = vadd.f32 %v987_v48, %v957_v63  ;;  %711 = sbr.rel (%p923_p11) target bundleno = 299 (0x12b), region = 70 }
 0x11a   : > { %v703_v2 = vadd.f32 %v697_v1, %v369_v0 }
 0x11c   : > { %707 = vst [vmem:[#allocation2 + $0x8] sm:$0xff] %v703_v2 }
 0x11d   : > { %v712_v3 = vld [vmem:[#allocation2 + $0x10] sm:$0xff]  ;;  %v924_v4 = vld [vmem:[%s1259_s2] ss:$0 sm:$0xff]  ;;  %v728_v8 = vld [vmem:[%s1260_s3 + $0x8] sm:$0xff] }
 0x11e   : > { %v727_v5 = vld [vmem:[%s1260_s3] sm:$0xff]  ;;  %v723_v6 = vadd.f32 %v924_v4, %v712_v3  ;;  %v729_v12 = vld [vmem:[%s1260_s3 + $0x10] sm:$0xff]  ;;  %v730_v14 = vld [vmem:[%s1260_s3 + $0x18] sm:$0xff] }
 0x11f   : > { %v713_v7 = vld [vmem:[#allocation2] sm:$0xff]  ;;  %v714_v9 = vld [vmem:[#allocation2 + $0x18] sm:$0xff] }
 0x120   : > { %v724_v10 = vadd.f32 %v924_v4, %v713_v7  ;;  %v725_v11 = vadd.f32 %v924_v4, %v714_v9  ;;  %v731_v15 = vadd.f32 %v727_v5, %v723_v6 }
 0x122   : > { %v732_v17 = vadd.f32 %v728_v8, %v724_v10  ;;  %v733_v18 = vadd.f32 %v729_v12, %v725_v11  ;;  %v735_v19 = vmax.f32 %v731_v15, 0.0 }
 0x123   : > { %v715_v13 = vld [vmem:[#allocation2 + $0x8] sm:$0xff] }
 0x124   : > { %v726_v16 = vadd.f32 %v924_v4, %v715_v13  ;;  %v736_v21 = vmax.f32 %v732_v17, 0.0  ;;  %v737_v22 = vmax.f32 %v733_v18, 0.0  ;;  %739 = vst [vmem:[%s1261_s4] sm:$0xff] %v735_v19 }
 0x126   : > { %v734_v20 = vadd.f32 %v730_v14, %v726_v16  ;;  %740 = vst [vmem:[%s1261_s4 + $0x8] sm:$0xff] %v736_v21  ;;  %741 = vst [vmem:[%s1261_s4 + $0x10] sm:$0xff] %v737_v22 }
 0x128   : > { %v738_v23 = vmax.f32 %v734_v20, 0.0 }
 0x12a   : > { %742 = vst [vmem:[%s1261_s4 + $0x18] sm:$0xff] %v738_v23 }
 0x12b PF: > { %s14_s19 = sadd.s32 1, %s1101_s19   ;;  %s1262_s15 = smov %s1089_s16 }
 0x12c   : > { %p11_p12 = scmp.ge.s32.totalorder %s14_s19, 5   ;;  %s1263_s16 = smov %s1164_s23 }
 0x12d   : > { %s1264_s17 = smov %s1097_s18  ;;  %s1265_s18 = smov %s1267_s20 }
 0x12e   :  { %13 = sbr.rel (!%p11_p12) target bundleno = 3 (0x3), region = 120 }

// kernel: _lambda_.29
= control target key start
LH: loop header
LB: loop body
LE: loop exit
PB: predicated region body
PF: predicated region fallthrough
CT: control target
= control target key end

     0   :  { %s306_s1 = inlined_call_operand.vmem [shape: bf16[128,128], index: 1, kind: input, shape index: {}]   ;;  %s307_s0 = inlined_call_operand.vmem [shape: bf16[32,128], index: 0, kind: input, shape index: {}]   ;;  %s308_s2 = inlined_call_operand.vmem [shape: f32[1,128], index: 2, kind: input, shape index: {}]   ;;  %s309_s3 = inlined_call_operand.vmem [shape: f32[32,128], index: 3, kind: output, shape index: {}]  }
   0x1   :  { %v231_v0 = vld [vmem:[%s306_s1 + $0x38] sm:$0xff]   ;;  %v232_v1 = vld [vmem:[%s306_s1 + $0x30] sm:$0xff]   ;;  %v233_v2 = vld [vmem:[%s306_s1 + $0x28] sm:$0xff]  }
   0x2   :  { %211 = vmatprep.subr.bf16.mxu0 %v231_v0  ;;  %v234_v3 = vld [vmem:[%s306_s1 + $0x20] sm:$0xff]   ;;  %v235_v5 = vld [vmem:[%s306_s1 + $0x18] sm:$0xff]   ;;  %v236_v6 = vld [vmem:[%s306_s1 + $0x10] sm:$0xff]  }
   0x3   :  { %212 = vmatpush3.bf16.msra.mxu0 %v231_v0  ;;  %v239_v4 = vld [vmem:[%s307_s0] sm:$0xff]   ;;  %v237_v7 = vld [vmem:[%s306_s1 + $0x8] sm:$0xff]  }
   0x4   :  { %213 = vmatprep.subr.bf16.mxu0 %v232_v1  ;;  %227 = vmatprep.mubr.bf16.mxu0 %v239_v4  ;;  %v238_v8 = vld [vmem:[%s306_s1] sm:$0xff]   ;;  %v240_v9 = vld [vmem:[%s307_s0 + $0x8] sm:$0xff]  }
   0x5   :  { %v200_v10 = vld [vmem:[%s308_s2] ss:$0 sm:$0xff] }
   0x7   :  { %214 = vmatpush3.bf16.msra.mxu0 %v232_v1 }
   0x8   :  { %215 = vmatprep.subr.bf16.mxu0 %v233_v2 }
   0xb   :  { %216 = vmatpush3.bf16.msra.mxu0 %v233_v2 }
   0xc   :  { %217 = vmatprep.subr.bf16.mxu0 %v234_v3 }
   0xf   :  { %218 = vmatpush3.bf16.msra.mxu0 %v234_v3 }
  0x10   :  { %219 = vmatprep.subr.bf16.mxu0 %v235_v5 }
  0x13   :  { %220 = vmatpush3.bf16.msra.mxu0 %v235_v5 }
  0x14   :  { %221 = vmatprep.subr.bf16.mxu0 %v236_v6 }
  0x17   :  { %222 = vmatpush3.bf16.msra.mxu0 %v236_v6 }
  0x18   :  { %223 = vmatprep.subr.bf16.mxu0 %v237_v7 }
  0x1b   :  { %224 = vmatpush3.bf16.msra.mxu0 %v237_v7 }
  0x1c   :  { %225 = vmatprep.subr.bf16.mxu0 %v238_v8 }
  0x1f   :  { %226 = vmatpush3.bf16.msra.mxu0 %v238_v8 }
  0x22   :  { %228 = vmatmul.mubr.bf16.vlgmr.msra.gmra.mxu0 %v240_v9 }
  0xe2   :  { %v229_v11 = vpop.f32.mrf.mxu0 }
  0xe3   :  { %v180_v12 = vadd.f32 %v229_v11, %v200_v10 }
  0xe4   :  { %v141_v13 = vpop.f32.mrf.mxu0 }
  0xe5   :  { %184 = vst [vmem:[%s309_s3 + $0x10] sm:$0xff] %v180_v12  ;;  %v178_v14 = vadd.f32 %v200_v10, %v141_v13 }
  0xe6   :  { %v230_v15 = vpop.f32.mrf.mxu0 }
  0xe7   :  { %182 = vst [vmem:[%s309_s3] sm:$0xff] %v178_v14  ;;  %v181_v16 = vadd.f32 %v230_v15, %v200_v10 }
  0xe8   :  { %v144_v17 = vpop.f32.mrf.mxu0 }
  0xe9   :  { %185 = vst [vmem:[%s309_s3 + $0x18] sm:$0xff] %v181_v16  ;;  %v179_v18 = vadd.f32 %v200_v10, %v144_v17 }
  0xeb   :  { %183 = vst [vmem:[%s309_s3 + $0x8] sm:$0xff] %v179_v18 }

// kernel: _lambda_.31
= control target key start
LH: loop header
LB: loop body
LE: loop exit
PB: predicated region body
PF: predicated region fallthrough
CT: control target
= control target key end

     0   :  { %s1037_s12 = smov 0   ;;  %s1039_s13 = smov 0   ;;  %s1153_s0 = inlined_call_operand.vmem [shape: bf16[32,1152], index: 0, kind: input, shape index: {}]   ;;  %s1154_s1 = inlined_call_operand.vmem [shape: bf16[1152,128], index: 1, kind: input, shape index: {}]   ;;  %s1155_s2 = inlined_call_operand.vmem [shape: f32[1,128], index: 2, kind: input, shape index: {}]   ;;  %s1156_s3 = inlined_call_operand.vmem [shape: f32[32,128], index: 3, kind: output, shape index: {}]  }
   0x1   :  { %s1041_s14 = smov 0   ;;  %s1043_s15 = smov 0  }
   0x2   :  { %s1045_s16 = smov 0  }
   0x3 LB: > { %s25_s17 = sadd.s32 1, %s1010_s15  ;;  %p48_p1 = scmp.ne.s32.totalorder %s1002_s13, %s998_s12  ;;  %s1014_s16 = sphi %s1045_s16, %s13_s16   ;;  %s1010_s15 = sphi %s1043_s15, %s1160_s15   ;;  %s1006_s14 = sphi %s1041_s14, %s1159_s14   ;;  %s1002_s13 = sphi %s1039_s13, %s1158_s13   ;;  %s998_s12 = sphi %s1037_s12, %s1157_s12  }
   0x4   : > { %p26_p0 = scmp.ge.s32.totalorder %s25_s17, 3  ;;  %p49_p2 = scmp.eq.s32.totalorder %s1014_s16, 0 }
   0x5   : > { %s41_s19 = sadd.s32 1, %s1002_s13  ;;  %p793_p5 = scmp.ge.s32.totalorder %s1014_s16, 3 }
   0x6   : > { %s1162_s17 = smov (%p26_p0, %s25_s17), 0  ;;  %p50_p3 = por %p49_p2, %p48_p1 }
   0x7   : > { %s37_s18 = ssub.s32 %s1010_s15, %s1162_s17  ;;  %162 = sbr.rel (%p793_p5) target bundleno = 21 (0x15), region = 20 }
   0x8   : > { %p39_p4 = scmp.eq.s32.totalorder %s37_s18, 0 }
   0xa   : > { %s1072_s20 = scalar_select %p39_p4, %s1002_s13, %s41_s19  }
   0xc   : > { %165 = sbr.rel (!%p50_p3) target bundleno = 21 (0x15), region = 24  ;;  %s167_s21 = sand.u32 (%p50_p3), 1, %s1002_s13  }
   0xd   : > { %s842_s22 = smul.u32 (%p50_p3), 12, %s1010_s15 }
   0xe   : > { %s901_s23 = smul.u32 (%p50_p3), 48, %s167_s21 }
   0xf   : > { %s175_s26 = scalar_lea.vmem (%p50_p3), %s1153_s0, %s842_s22 }
  0x10   : > { %v190_v0 = vld [vmem:[%s175_s26] sm:$0xff] (%p50_p3)  ;;  %v194_v2 = vld [vmem:[%s175_s26 + $0x48] sm:$0xff] (%p50_p3)  ;;  %s169_s27 = scalar_lea.vmem (%p50_p3), [#allocation3], %s901_s23  ;;  %v799_v6 = vld [vmem:[%s175_s26 + $0x50] sm:$0xf] (%p50_p3) }
  0x11   : > { %v192_v1 = vld [vmem:[%s175_s26 + $0x24] sm:$0xff]  ;;  %191 = vst [vmem:[%s169_s27] sm:$0xff] %v190_v0  ;;  %195 = vst [vmem:[%s169_s27 + $0x18] sm:$0xff] %v194_v2  ;;  %v196_v3 = vld [vmem:[%s175_s26 + $0x6c] sm:$0xff] }
  0x12   : > { %193 = vst [vmem:[%s169_s27 + $0xc] sm:$0xff] %v192_v1  ;;  %v795_v4 = vld [vmem:[%s175_s26 + $0x8] sm:$0xf]  ;;  %v797_v5 = vld [vmem:[%s175_s26 + $0x2c] sm:$0xf]  ;;  %197 = vst [vmem:[%s169_s27 + $0x24] sm:$0xff] %v196_v3 }
  0x13   : > { %796 = vst [vmem:[%s169_s27 + $0x8] sm:$0xf] %v795_v4  ;;  %798 = vst [vmem:[%s169_s27 + $0x14] sm:$0xf] %v797_v5  ;;  %v801_v7 = vld [vmem:[%s175_s26 + $0x74] sm:$0xf] }
  0x14   : > { %800 = vst [vmem:[%s169_s27 + $0x20] sm:$0xf] %v799_v6  ;;  %802 = vst [vmem:[%s169_s27 + $0x2c] sm:$0xf] %v801_v7 }
  0x15 PF: > { %p803_p6 = scmp.ge.s32.totalorder %s1014_s16, 1  ;;  %p230_p7 = scmp.lt.s32.totalorder %s1014_s16, 4 }
  0x17   : > { %p231_p8 = pnand %p803_p6, %p230_p7 }
  0x18   : > { %s237_s28 = sand.u32 (!%p231_p8), 1, %s998_s12   ;;  %s276_s29 = smul.u32 (!%p231_p8), 48, %s1006_s14 }
  0x19   : > { %234 = sbr.rel (%p231_p8) target bundleno = 297 (0x129), region = 54  ;;  %p805_p10 = scmp.ne.s32.totalorder (!%p231_p8), %s1006_s14, 0 }
  0x1a   : > { %s902_s30 = smul.u32 (!%p231_p8), 48, %s237_s28  ;;  %p277_p9 = scmp.lt.s32.totalorder (!%p231_p8), %s276_s29, 143 }
  0x1c   : > { %s1089_s8 = scalar_lea.vmem (!%p231_p8), [#allocation3], %s902_s30 }
  0x1e   : > { %s1164_s29 = smov (!%p277_p9, %s276_s29), 143  ;;  %301 = sbr.rel (%p805_p10) target bundleno = 38 (0x26), region = 62 }
  0x1f   : > { %s804_s4 = sshll.u32 %s1164_s29, 2 }
  0x20   : > { %s1087_s7 = scalar_lea.vmem %s1154_s1, %s804_s4 }
  0x23   : > { %v1016_v8 = vmov 0.0  }
  0x24   : > { %302 = vst [vmem:[#allocation2 + $0x10] sm:$0xff] %v1016_v8  ;;  %303 = vst [vmem:[#allocation2] sm:$0xff] %v1016_v8 }
  0x25   : > { %304 = vst [vmem:[#allocation2 + $0x18] sm:$0xff] %v1016_v8  ;;  %305 = vst [vmem:[#allocation2 + $0x8] sm:$0xff] %v1016_v8 }
  0x26 PF: > { %v944_v9 = vld [vmem:[%s1087_s7 + $0x78] sm:$0xff]   ;;  %v947_v12 = vld [vmem:[%s1087_s7 + $0x70] sm:$0xff]   ;;  %v950_v15 = vld [vmem:[%s1087_s7 + $0x68] sm:$0xff]   ;;  %p836_p11 = scmp.ne.s32.totalorder %s1006_s14, 2 }
  0x27   : > { %v945_v10 = vld [vmem:[%s1087_s7 + $0x38] sm:$0xff]   ;;  %843 = vmatprep.subr.bf16.mxu0 %v944_v9  ;;  %v948_v13 = vld [vmem:[%s1087_s7 + $0x30] sm:$0xff]   ;;  %v951_v16 = vld [vmem:[%s1087_s7 + $0x28] sm:$0xff]  }
  0x28   : > { %v946_v11 = vld [vmem:[%s1087_s7 + $0xb8] sm:$0xff]   ;;  %844 = vmatpush3.bf16.msra.mxu0 %v945_v10  ;;  %v949_v14 = vld [vmem:[%s1087_s7 + $0xb0] sm:$0xff]   ;;  %v952_v17 = vld [vmem:[%s1087_s7 + $0xa8] sm:$0xff]  }
  0x29   : > { %881 = vmatprep.subr.bf16.mxu1 %v946_v11  ;;  %845 = vmatprep.subr.bf16.mxu0 %v947_v12  ;;  %v953_v18 = vld [vmem:[%s1087_s7 + $0x60] sm:$0xff]   ;;  %v956_v21 = vld [vmem:[%s1087_s7 + $0x58] sm:$0xff]   ;;  %v959_v24 = vld [vmem:[%s1087_s7 + $0x50] sm:$0xff]  }
  0x2a   : > { %882 = vmatpush3.bf16.msra.mxu1 %v946_v11  ;;  %v954_v19 = vld [vmem:[%s1087_s7 + $0x20] sm:$0xff]   ;;  %v958_v22 = vld [vmem:[%s1087_s7 + $0x98] sm:$0xff]   ;;  %v961_v25 = vld [vmem:[%s1087_s7 + $0x90] sm:$0xff]  }
  0x2b   : > { %883 = vmatprep.subr.bf16.mxu1 %v949_v14  ;;  %v955_v20 = vld [vmem:[%s1087_s7 + $0xa0] sm:$0xff]   ;;  %v957_v23 = vld [vmem:[%s1087_s7 + $0x18] sm:$0xff]   ;;  %v960_v26 = vld [vmem:[%s1087_s7 + $0x10] sm:$0xff]  }
  0x2c   : > { %846 = vmatpush3.bf16.msra.mxu0 %v948_v13  ;;  %v962_v27 = vld [vmem:[%s1087_s7 + $0x48] sm:$0xff]   ;;  %v965_v30 = vld [vmem:[%s1087_s7 + $0x40] sm:$0xff]   ;;  %v306_v44 = vld [vmem:[#allocation2 + $0x10] sm:$0xff] }
  0x2d   : > { %847 = vmatprep.subr.bf16.mxu0 %v950_v15  ;;  %v963_v28 = vld [vmem:[%s1087_s7 + $0x8] sm:$0xff]   ;;  %v967_v31 = vld [vmem:[%s1087_s7 + $0x80] sm:$0xff]   ;;  %v308_v58 = vld [vmem:[#allocation2 + $0x18] sm:$0xff] }
  0x2e   : > { %884 = vmatpush3.bf16.msra.mxu1 %v949_v14  ;;  %v964_v29 = vld [vmem:[%s1087_s7 + $0x88] sm:$0xff]   ;;  %v970_v32 = vld [vmem:[%s1089_s8 + $0x4] ss:$12 sps:$4 sm:$0xff]  }
  0x2f   : > { %885 = vmatprep.subr.bf16.mxu1 %v952_v17  ;;  %v971_v33 = vld [vmem:[%s1089_s8 + $0x8] ss:$12 sps:$4 sm:$0xff]   ;;  %574 = vmatprep.mubr.bf16.mxu0 %v970_v32  ;;  %v968_v35 = vld [vmem:[%s1089_s8] ss:$12 sps:$4 sm:$0xff]   ;;  %v975_v38 = vld [vmem:[%s1089_s8 + $0x18] ss:$12 sps:$4 sm:$0xff]  }
  0x30   : > { %848 = vmatpush3.bf16.msra.mxu0 %v951_v16  ;;  %v966_v34 = vld [vmem:[%s1087_s7] sm:$0xff]   ;;  %897 = vmatprep.mubr.bf16.mxu1 %v971_v33  ;;  %v973_v36 = vld [vmem:[%s1089_s8 + $0x1c] ss:$12 sps:$4 sm:$0xff]  }
  0x31   : > { %849 = vmatprep.subr.bf16.mxu0 %v953_v18  ;;  %v972_v37 = vld [vmem:[%s1089_s8 + $0x20] ss:$12 sps:$4 sm:$0xff]  }
  0x32   : > { %886 = vmatpush3.bf16.msra.mxu1 %v952_v17  ;;  %v307_v52 = vld [vmem:[#allocation2] sm:$0xff]  ;;  %v309_v0 = vld [vmem:[#allocation2 + $0x8] sm:$0xff] }
  0x33   : > { %887 = vmatprep.subr.bf16.mxu1 %v955_v20 }
  0x34   : > { %850 = vmatpush3.bf16.msra.mxu0 %v954_v19 }
  0x35   : > { %851 = vmatprep.subr.bf16.mxu0 %v956_v21 }
  0x36   : > { %888 = vmatpush3.bf16.msra.mxu1 %v955_v20 }
  0x37   : > { %889 = vmatprep.subr.bf16.mxu1 %v958_v22 }
  0x38   : > { %852 = vmatpush3.bf16.msra.mxu0 %v957_v23 }
  0x39   : > { %853 = vmatprep.subr.bf16.mxu0 %v959_v24 }
  0x3a   : > { %890 = vmatpush3.bf16.msra.mxu1 %v958_v22 }
  0x3b   : > { %891 = vmatprep.subr.bf16.mxu1 %v961_v25 }
  0x3c   : > { %854 = vmatpush3.bf16.msra.mxu0 %v960_v26 }
  0x3d   : > { %855 = vmatprep.subr.bf16.mxu0 %v962_v27 }
  0x3e   : > { %892 = vmatpush3.bf16.msra.mxu1 %v961_v25 }
  0x3f   : > { %893 = vmatprep.subr.bf16.mxu1 %v964_v29 }
  0x40   : > { %856 = vmatpush3.bf16.msra.mxu0 %v963_v28 }
  0x41   : > { %857 = vmatprep.subr.bf16.mxu0 %v965_v30 }
  0x42   : > { %894 = vmatpush3.bf16.msra.mxu1 %v964_v29 }
  0x43   : > { %895 = vmatprep.subr.bf16.mxu1 %v967_v31 }
  0x44   : > { %858 = vmatpush3.bf16.msra.mxu0 %v966_v34 }
  0x46   : > { %896 = vmatpush3.bf16.msra.mxu1 %v967_v31 }
  0x47   : > { %575 = vmatmul.mubr.bf16.vlgmr.msra.gmra.mxu0 %v968_v35 }
  0x48   : > { %582 = vmatprep.mubr.bf16.mxu0 %v973_v36 }
  0x49   : > { %898 = vmatmul.mubr.bf16.vlgmr.msra.gmra.mxu1 %v972_v37 }
  0x4f   : > { %583 = vmatmul.mubr.bf16.gmra.mxu0 %v975_v38 }
 0x107   : > { %v859_v39 = vpop.f32.mrf.mxu0 }
 0x109   : > { %v860_v40 = vpop.f32.mrf.mxu0  ;;  %v899_v41 = vpop.f32.mrf.mxu1 }
 0x10a   : > { %v861_v42 = vadd.f32 %v860_v40, %v859_v39 }
 0x10b   : > { %v862_v43 = vpop.f32.mrf.mxu0  ;;  %v625_v45 = vpop.f32.mrf.mxu1 }
 0x10c   : > { %v626_v46 = vadd.f32 %v861_v42, %v625_v45 }
 0x10d   : > { %v863_v47 = vpop.f32.mrf.mxu0  ;;  %v900_v48 = vpop.f32.mrf.mxu1 }
 0x10e   : > { %v640_v49 = vadd.f32 %v626_v46, %v306_v44  ;;  %v864_v50 = vadd.f32 %v863_v47, %v862_v43 }
 0x10f   : > { %v865_v51 = vpop.f32.mrf.mxu0  ;;  %v628_v53 = vpop.f32.mrf.mxu1 }
 0x110   : > { %644 = vst [vmem:[#allocation2 + $0x10] sm:$0xff] %v640_v49  ;;  %v629_v54 = vadd.f32 %v864_v50, %v628_v53 }
 0x111   : > { %v866_v55 = vpop.f32.mrf.mxu0 }
 0x112   : > { %v641_v56 = vadd.f32 %v629_v54, %v307_v52  ;;  %v867_v57 = vadd.f32 %v866_v55, %v865_v51 }
 0x113   : > { %v868_v59 = vpop.f32.mrf.mxu0 }
 0x114   : > { %645 = vst [vmem:[#allocation2] sm:$0xff] %v641_v56  ;;  %v634_v60 = vadd.f32 %v899_v41, %v867_v57 }
 0x115   : > { %v869_v61 = vpop.f32.mrf.mxu0 }
 0x116   : > { %v642_v62 = vadd.f32 %v634_v60, %v308_v58  ;;  %v870_v63 = vadd.f32 %v869_v61, %v868_v59 }
 0x118   : > { %646 = vst [vmem:[#allocation2 + $0x18] sm:$0xff] %v642_v62  ;;  %v637_v1 = vadd.f32 %v900_v48, %v870_v63  ;;  %651 = sbr.rel (%p836_p11) target bundleno = 297 (0x129), region = 66 }
 0x11a   : > { %v643_v2 = vadd.f32 %v637_v1, %v309_v0 }
 0x11c   : > { %647 = vst [vmem:[#allocation2 + $0x8] sm:$0xff] %v643_v2 }
 0x11d   : > { %v652_v3 = vld [vmem:[#allocation2 + $0x10] sm:$0xff]  ;;  %v837_v4 = vld [vmem:[%s1155_s2] ss:$0 sm:$0xff] }
 0x11e   : > { %v653_v5 = vld [vmem:[#allocation2] sm:$0xff]  ;;  %v663_v6 = vadd.f32 %v837_v4, %v652_v3 }
 0x11f   : > { %v664_v7 = vadd.f32 %v837_v4, %v653_v5  ;;  %v654_v8 = vld [vmem:[#allocation2 + $0x18] sm:$0xff] }
 0x120   : > { %v665_v10 = vadd.f32 %v837_v4, %v654_v8  ;;  %v667_v12 = vmax.f32 %v663_v6, 0.0 }
 0x121   : > { %v668_v13 = vmax.f32 %v664_v7, 0.0 }
 0x122   : > { %v669_v14 = vmax.f32 %v665_v10, 0.0  ;;  %671 = vst [vmem:[%s1156_s3] sm:$0xff] %v667_v12 }
 0x123   : > { %v655_v9 = vld [vmem:[#allocation2 + $0x8] sm:$0xff]  ;;  %672 = vst [vmem:[%s1156_s3 + $0x8] sm:$0xff] %v668_v13 }
 0x124   : > { %v666_v11 = vadd.f32 %v837_v4, %v655_v9  ;;  %673 = vst [vmem:[%s1156_s3 + $0x10] sm:$0xff] %v669_v14 }
 0x126   : > { %v670_v15 = vmax.f32 %v666_v11, 0.0 }
 0x128   : > { %674 = vst [vmem:[%s1156_s3 + $0x18] sm:$0xff] %v670_v15 }
 0x129 PF: > { %s13_s16 = sadd.s32 1, %s1014_s16   ;;  %s1157_s12 = smov %s1002_s13 }
 0x12a   : > { %p10_p12 = scmp.ge.s32.totalorder %s13_s16, 5   ;;  %s1158_s13 = smov %s1072_s20 }
 0x12b   : > { %s1159_s14 = smov %s1010_s15  ;;  %s1160_s15 = smov %s1162_s17 }
 0x12c   :  { %12 = sbr.rel (!%p10_p12) target bundleno = 3 (0x3), region = 113 }

// kernel: _lambda_.33
= control target key start
LH: loop header
LB: loop body
LE: loop exit
PB: predicated region body
PF: predicated region fallthrough
CT: control target
= control target key end

     0   :  { %s1134_s12 = smov 0   ;;  %s1136_s13 = smov 0   ;;  %s1271_s0 = inlined_call_operand.vmem [shape: bf16[16,1152], index: 0, kind: input, shape index: {}]   ;;  %s1272_s1 = inlined_call_operand.vmem [shape: bf16[1152,256], index: 1, kind: input, shape index: {}]   ;;  %s1273_s2 = inlined_call_operand.vmem [shape: f32[1,256], index: 2, kind: input, shape index: {}]   ;;  %s1274_s3 = inlined_call_operand.vmem [shape: f32[16,256], index: 3, kind: output, shape index: {}]  }
   0x1   :  { %s1138_s14 = smov 0   ;;  %s1140_s15 = smov 0  }
   0x2   :  { %s1142_s16 = smov 0  }
   0x3 LB: > { %s25_s17 = sadd.s32 1, %s1106_s15  ;;  %p48_p1 = scmp.ne.s32.totalorder %s1098_s13, %s1094_s12  ;;  %s1110_s16 = sphi %s1142_s16, %s13_s16   ;;  %s1106_s15 = sphi %s1140_s15, %s1278_s15   ;;  %s1102_s14 = sphi %s1138_s14, %s1277_s14   ;;  %s1098_s13 = sphi %s1136_s13, %s1276_s13   ;;  %s1094_s12 = sphi %s1134_s12, %s1275_s12  }
   0x4   : > { %p26_p0 = scmp.ge.s32.totalorder %s25_s17, 3  ;;  %p49_p2 = scmp.eq.s32.totalorder %s1110_s16, 0 }
   0x5   : > { %s41_s19 = sadd.s32 1, %s1098_s13  ;;  %p884_p5 = scmp.ge.s32.totalorder %s1110_s16, 3 }
   0x6   : > { %s1280_s17 = smov (%p26_p0, %s25_s17), 0  ;;  %p50_p3 = por %p49_p2, %p48_p1 }
   0x7   : > { %s37_s18 = ssub.s32 %s1106_s15, %s1280_s17  ;;  %164 = sbr.rel (%p884_p5) target bundleno = 19 (0x13), region = 20 }
   0x8   : > { %p39_p4 = scmp.eq.s32.totalorder %s37_s18, 0 }
   0xa   : > { %s1169_s20 = scalar_select %p39_p4, %s1098_s13, %s41_s19  }
   0xc   : > { %167 = sbr.rel (!%p50_p3) target bundleno = 19 (0x13), region = 24  ;;  %s169_s21 = sand.u32 (%p50_p3), 1, %s1098_s13  }
   0xd   : > { %s950_s22 = smul.u32 (%p50_p3), 12, %s1106_s15 }
   0xe   : > { %s952_s23 = smul.u32 (%p50_p3), 24, %s169_s21 }
   0xf   : > { %s177_s26 = scalar_lea.vmem (%p50_p3), %s1271_s0, %s950_s22 }
  0x10   : > { %v192_v0 = vld [vmem:[%s177_s26] sm:$0xff] (%p50_p3)  ;;  %v886_v2 = vld [vmem:[%s177_s26 + $0x8] sm:$0xf] (%p50_p3)  ;;  %s171_s27 = scalar_lea.vmem (%p50_p3), [#allocation3], %s952_s23  ;;  %v888_v3 = vld [vmem:[%s177_s26 + $0x2c] sm:$0xf] (%p50_p3) }
  0x11   : > { %v194_v1 = vld [vmem:[%s177_s26 + $0x24] sm:$0xff]  ;;  %193 = vst [vmem:[%s171_s27] sm:$0xff] %v192_v0  ;;  %887 = vst [vmem:[%s171_s27 + $0x8] sm:$0xf] %v886_v2 }
  0x12   : > { %195 = vst [vmem:[%s171_s27 + $0xc] sm:$0xff] %v194_v1  ;;  %889 = vst [vmem:[%s171_s27 + $0x14] sm:$0xf] %v888_v3 }
  0x13 PF: > { %p890_p6 = scmp.ge.s32.totalorder %s1110_s16, 1  ;;  %p227_p7 = scmp.lt.s32.totalorder %s1110_s16, 4 }
  0x15   : > { %p228_p8 = pnand %p890_p6, %p227_p7 }
  0x16   : > { %s234_s28 = sand.u32 (!%p228_p8), 1, %s1094_s12   ;;  %s278_s29 = smul.u32 (!%p228_p8), 48, %s1102_s14 }
  0x17   : > { %231 = sbr.rel (%p228_p8) target bundleno = 319 (0x13f), region = 54  ;;  %p893_p10 = scmp.ne.s32.totalorder (!%p228_p8), %s1102_s14, 0 }
  0x18   : > { %s953_s30 = smul.u32 (!%p228_p8), 24, %s234_s28  ;;  %p280_p9 = scmp.lt.s32.totalorder (!%p228_p8), %s278_s29, 143 }
  0x1a   : > { %s1186_s8 = scalar_lea.vmem (!%p228_p8), [#allocation3], %s953_s30 }
  0x1c   : > { %s1282_s29 = smov (!%p280_p9, %s278_s29), 143  ;;  %311 = sbr.rel (%p893_p10) target bundleno = 36 (0x24), region = 62 }
  0x1d   : > { %s951_s4 = sshll.u32 %s1282_s29, 3 }
  0x1e   : > { %s1184_s7 = scalar_lea.vmem %s1272_s1, %s951_s4 }
  0x21   : > { %v1112_v4 = vmov 0.0  }
  0x22   : > { %312 = vst [vmem:[#allocation2 + $0x10] sm:$0xff] %v1112_v4  ;;  %313 = vst [vmem:[#allocation2] sm:$0xff] %v1112_v4 }
  0x23   : > { %314 = vst [vmem:[#allocation2 + $0x18] sm:$0xff] %v1112_v4  ;;  %315 = vst [vmem:[#allocation2 + $0x8] sm:$0xff] %v1112_v4 }
  0x24 PF: > { %v996_v5 = vld [vmem:[%s1184_s7 + $0x74] ss:$8 sps:$4 sm:$0xff]   ;;  %v998_v6 = vld [vmem:[%s1184_s7 + $0x70] ss:$8 sps:$4 sm:$0xff]   ;;  %v1113_v7 = vmov 0   ;;  %p945_p11 = scmp.ne.s32.totalorder %s1102_s14, 2 }
  0x25   : > { %703 = vmatprep.mubr.bf16.mxu1 %v1113_v7  ;;  %628 = vmatprep.subr.bf16.mxu0 %v996_v5  ;;  %v999_v8 = vld [vmem:[%s1184_s7 + $0x64] ss:$8 sps:$4 sm:$0xff]   ;;  %v1001_v9 = vld [vmem:[%s1184_s7 + $0x60] ss:$8 sps:$4 sm:$0xff]   ;;  %v1002_v10 = vld [vmem:[%s1184_s7 + $0x54] ss:$8 sps:$4 sm:$0xff]  }
  0x26   : > { %629 = vmatpush1.bf16.msra.mxu0 %v998_v6  ;;  %v1004_v11 = vld [vmem:[%s1184_s7 + $0x50] ss:$8 sps:$4 sm:$0xff]   ;;  %v1005_v12 = vld [vmem:[%s1184_s7 + $0x44] ss:$8 sps:$4 sm:$0xff]   ;;  %v1017_v13 = vld [vmem:[%s1184_s7 + $0x174] ss:$8 sps:$4 sm:$0xff]  }
  0x27   : > { %630 = vmatprep.subr.bf16.mxu0 %v999_v8  ;;  %v1019_v14 = vld [vmem:[%s1184_s7 + $0x170] ss:$8 sps:$4 sm:$0xff]   ;;  %v1007_v15 = vld [vmem:[%s1184_s7 + $0x40] ss:$8 sps:$4 sm:$0xff]   ;;  %v1008_v16 = vld [vmem:[%s1184_s7 + $0x34] ss:$8 sps:$4 sm:$0xff]   ;;  %671 = vmatprep.subr.bf16.mxu1 %v1017_v13 }
  0x28   : > { %v1023_v17 = vld [vmem:[%s1184_s7 + $0x164] ss:$8 sps:$4 sm:$0xff]   ;;  %672 = vmatpush1.bf16.msra.mxu1 %v1019_v14  ;;  %v1025_v18 = vld [vmem:[%s1184_s7 + $0x160] ss:$8 sps:$4 sm:$0xff]   ;;  %v1010_v19 = vld [vmem:[%s1184_s7 + $0x30] ss:$8 sps:$4 sm:$0xff]  }
  0x29   : > { %673 = vmatprep.subr.bf16.mxu1 %v1023_v17  ;;  %v1029_v20 = vld [vmem:[%s1184_s7 + $0x154] ss:$8 sps:$4 sm:$0xff]   ;;  %v1011_v21 = vld [vmem:[%s1184_s7 + $0x24] ss:$8 sps:$4 sm:$0xff]   ;;  %v1031_v22 = vld [vmem:[%s1184_s7 + $0x150] ss:$8 sps:$4 sm:$0xff]  }
  0x2a   : > { %631 = vmatpush1.bf16.msra.mxu0 %v1001_v9  ;;  %v1035_v23 = vld [vmem:[%s1184_s7 + $0x144] ss:$8 sps:$4 sm:$0xff]   ;;  %v1013_v24 = vld [vmem:[%s1184_s7 + $0x20] ss:$8 sps:$4 sm:$0xff]   ;;  %v1014_v25 = vld [vmem:[%s1184_s7 + $0x14] ss:$8 sps:$4 sm:$0xff]  }
  0x2b   : > { %632 = vmatprep.subr.bf16.mxu0 %v1002_v10  ;;  %v1037_v26 = vld [vmem:[%s1184_s7 + $0x140] ss:$8 sps:$4 sm:$0xff]   ;;  %v1041_v27 = vld [vmem:[%s1184_s7 + $0x134] ss:$8 sps:$4 sm:$0xff]   ;;  %v1016_v28 = vld [vmem:[%s1184_s7 + $0x10] ss:$8 sps:$4 sm:$0xff]  }
  0x2c   : > { %674 = vmatpush1.bf16.msra.mxu1 %v1025_v18  ;;  %v1020_v29 = vld [vmem:[%s1184_s7 + $0x4] ss:$8 sps:$4 sm:$0xff]   ;;  %v1043_v30 = vld [vmem:[%s1184_s7 + $0x130] ss:$8 sps:$4 sm:$0xff]   ;;  %v1022_v32 = vld [vmem:[%s1184_s7] ss:$8 sps:$4 sm:$0xff]  }
  0x2d   : > { %675 = vmatprep.subr.bf16.mxu1 %v1029_v20  ;;  %v1047_v31 = vld [vmem:[%s1184_s7 + $0x124] ss:$8 sps:$4 sm:$0xff]   ;;  %v1026_v33 = vld [vmem:[%s1184_s7 + $0xf4] ss:$8 sps:$4 sm:$0xff]   ;;  %v1049_v34 = vld [vmem:[%s1184_s7 + $0x120] ss:$8 sps:$4 sm:$0xff]  }
  0x2e   : > { %633 = vmatpush1.bf16.msra.mxu0 %v1004_v11  ;;  %v1053_v35 = vld [vmem:[%s1184_s7 + $0x114] ss:$8 sps:$4 sm:$0xff]   ;;  %v1028_v36 = vld [vmem:[%s1184_s7 + $0xf0] ss:$8 sps:$4 sm:$0xff]   ;;  %v1032_v37 = vld [vmem:[%s1184_s7 + $0xe4] ss:$8 sps:$4 sm:$0xff]  }
  0x2f   : > { %634 = vmatprep.subr.bf16.mxu0 %v1005_v12  ;;  %v1055_v38 = vld [vmem:[%s1184_s7 + $0x110] ss:$8 sps:$4 sm:$0xff]   ;;  %v1059_v39 = vld [vmem:[%s1184_s7 + $0x104] ss:$8 sps:$4 sm:$0xff]   ;;  %v1034_v41 = vld [vmem:[%s1184_s7 + $0xe0] ss:$8 sps:$4 sm:$0xff]  }
  0x30   : > { %676 = vmatpush1.bf16.msra.mxu1 %v1031_v22  ;;  %v1071_v40 = vld [vmem:[%s1186_s8 + $0x4] ss:$12 sps:$4 sm:$0xff]   ;;  %v1065_v46 = vld [vmem:[%s1186_s8 + $0x8] ss:$12 sps:$4 sm:$0xff]   ;;  %v1069_v56 = vld [vmem:[%s1186_s8] ss:$12 sps:$4 sm:$0xff]  }
  0x31   : > { %677 = vmatprep.subr.bf16.mxu1 %v1035_v23  ;;  %v1038_v42 = vld [vmem:[%s1184_s7 + $0xd4] ss:$8 sps:$4 sm:$0xff]   ;;  %660 = vmatprep.mubr.bf16.mxu0 %v1071_v40  ;;  %v1061_v43 = vld [vmem:[%s1184_s7 + $0x100] ss:$8 sps:$4 sm:$0xff]   ;;  %v1040_v44 = vld [vmem:[%s1184_s7 + $0xd0] ss:$8 sps:$4 sm:$0xff]  }
  0x32   : > { %635 = vmatpush1.bf16.msra.mxu0 %v1007_v15  ;;  %v1044_v45 = vld [vmem:[%s1184_s7 + $0xc4] ss:$8 sps:$4 sm:$0xff]   ;;  %v1046_v47 = vld [vmem:[%s1184_s7 + $0xc0] ss:$8 sps:$4 sm:$0xff]   ;;  %v1050_v48 = vld [vmem:[%s1184_s7 + $0xb4] ss:$8 sps:$4 sm:$0xff]  }
  0x33   : > { %636 = vmatprep.subr.bf16.mxu0 %v1008_v16  ;;  %v1052_v49 = vld [vmem:[%s1184_s7 + $0xb0] ss:$8 sps:$4 sm:$0xff]   ;;  %v1056_v50 = vld [vmem:[%s1184_s7 + $0xa4] ss:$8 sps:$4 sm:$0xff]   ;;  %v1058_v51 = vld [vmem:[%s1184_s7 + $0xa0] ss:$8 sps:$4 sm:$0xff]  }
  0x34   : > { %678 = vmatpush1.bf16.msra.mxu1 %v1037_v26  ;;  %v1062_v52 = vld [vmem:[%s1184_s7 + $0x94] ss:$8 sps:$4 sm:$0xff]   ;;  %v1064_v53 = vld [vmem:[%s1184_s7 + $0x90] ss:$8 sps:$4 sm:$0xff]   ;;  %v1066_v54 = vld [vmem:[%s1184_s7 + $0x84] ss:$8 sps:$4 sm:$0xff]  }
  0x35   : > { %679 = vmatprep.subr.bf16.mxu1 %v1041_v27  ;;  %v1068_v55 = vld [vmem:[%s1184_s7 + $0x80] ss:$8 sps:$4 sm:$0xff]   ;;  %v316_v59 = vld [vmem:[#allocation2 + $0x10] sm:$0xff]  ;;  %v318_v3 = vld [vmem:[#allocation2 + $0x18] sm:$0xff] }
  0x36   : > { %637 = vmatpush1.bf16.msra.mxu0 %v1010_v19  ;;  %v317_v63 = vld [vmem:[#allocation2] sm:$0xff]  ;;  %v319_v8 = vld [vmem:[#allocation2 + $0x8] sm:$0xff] }
  0x37   : > { %638 = vmatprep.subr.bf16.mxu0 %v1011_v21 }
  0x38   : > { %680 = vmatpush1.bf16.msra.mxu1 %v1043_v30 }
  0x39   : > { %681 = vmatprep.subr.bf16.mxu1 %v1047_v31 }
  0x3a   : > { %639 = vmatpush1.bf16.msra.mxu0 %v1013_v24 }
  0x3b   : > { %640 = vmatprep.subr.bf16.mxu0 %v1014_v25 }
  0x3c   : > { %682 = vmatpush1.bf16.msra.mxu1 %v1049_v34 }
  0x3d   : > { %683 = vmatprep.subr.bf16.mxu1 %v1053_v35 }
  0x3e   : > { %641 = vmatpush1.bf16.msra.mxu0 %v1016_v28 }
  0x3f   : > { %642 = vmatprep.subr.bf16.mxu0 %v1020_v29 }
  0x40   : > { %684 = vmatpush1.bf16.msra.mxu1 %v1055_v38 }
  0x41   : > { %685 = vmatprep.subr.bf16.mxu1 %v1059_v39 }
  0x42   : > { %643 = vmatpush1.bf16.msra.mxu0 %v1022_v32 }
  0x43   : > { %644 = vmatprep.subr.bf16.mxu0 %v1026_v33 }
  0x44   : > { %686 = vmatpush1.bf16.msra.mxu1 %v1061_v43 }
  0x46   : > { %645 = vmatpush2.bf16.msra.mxu0 %v1028_v36 }
  0x47   : > { %646 = vmatprep.subr.bf16.mxu0 %v1032_v37  ;;  %704 = vmatmul.mubr.bf16.vlgmr.msra.gmra.mxu1 %v1065_v46 }
  0x4a   : > { %647 = vmatpush2.bf16.msra.mxu0 %v1034_v41 }
  0x4b   : > { %648 = vmatprep.subr.bf16.mxu0 %v1038_v42 }
  0x4e   : > { %649 = vmatpush2.bf16.msra.mxu0 %v1040_v44 }
  0x4f   : > { %650 = vmatprep.subr.bf16.mxu0 %v1044_v45 }
  0x52   : > { %651 = vmatpush2.bf16.msra.mxu0 %v1046_v47 }
  0x53   : > { %652 = vmatprep.subr.bf16.mxu0 %v1050_v48 }
  0x56   : > { %653 = vmatpush2.bf16.msra.mxu0 %v1052_v49 }
  0x57   : > { %654 = vmatprep.subr.bf16.mxu0 %v1056_v50 }
  0x5a   : > { %655 = vmatpush2.bf16.msra.mxu0 %v1058_v51 }
  0x5b   : > { %656 = vmatprep.subr.bf16.mxu0 %v1062_v52 }
  0x5e   : > { %657 = vmatpush2.bf16.msra.mxu0 %v1064_v53 }
  0x5f   : > { %658 = vmatprep.subr.bf16.mxu0 %v1066_v54 }
  0x62   : > { %659 = vmatpush2.bf16.msra.mxu0 %v1068_v55 }
  0x65   : > { %661 = vmatmul.mubr.bf16.vlgmr.msra.gmra.mxu0 %v1069_v56 }
 0x107   : > { %v705_v57 = vpop.f32.mrf.mxu1 }
 0x109   : > { %v707_v58 = vpop.f32.mrf.mxu1 }
 0x10b   : > { %v709_v62 = vpop.f32.mrf.mxu1 }
 0x10d   : > { %v711_v7 = vpop.f32.mrf.mxu1 }
 0x125   : > { %v662_v60 = vpop.f32.mrf.mxu0 }
 0x126   : > { %v706_v61 = vadd.f32 %v705_v57, %v662_v60 }
 0x127   : > { %v664_v0 = vpop.f32.mrf.mxu0 }
 0x128   : > { %v714_v1 = vadd.f32 %v706_v61, %v316_v59  ;;  %v708_v2 = vadd.f32 %v707_v58, %v664_v0 }
 0x129   : > { %v666_v4 = vpop.f32.mrf.mxu0 }
 0x12a   : > { %718 = vst [vmem:[#allocation2 + $0x10] sm:$0xff] %v714_v1  ;;  %v715_v5 = vadd.f32 %v708_v2, %v317_v63  ;;  %v710_v6 = vadd.f32 %v709_v62, %v666_v4 }
 0x12b   : > { %v668_v9 = vpop.f32.mrf.mxu0 }
 0x12c   : > { %719 = vst [vmem:[#allocation2] sm:$0xff] %v715_v5  ;;  %v716_v10 = vadd.f32 %v710_v6, %v318_v3  ;;  %v712_v11 = vadd.f32 %v711_v7, %v668_v9  ;;  %725 = sbr.rel (%p945_p11) target bundleno = 319 (0x13f), region = 66 }
 0x12e   : > { %720 = vst [vmem:[#allocation2 + $0x18] sm:$0xff] %v716_v10  ;;  %v717_v12 = vadd.f32 %v712_v11, %v319_v8 }
 0x130   : > { %721 = vst [vmem:[#allocation2 + $0x8] sm:$0xff] %v717_v12 }
 0x131   : > { %v732_v13 = vlaneseq  ;;  %v730_v15 = vld [vmem:[%s1273_s2] sm:$0x3]  ;;  %v726_v16 = vld [vmem:[#allocation2 + $0x10] sm:$0xff] }
 0x133   : > { %v733_v14 = vshrl.u32 %v732_v13, 7  ;;  %v727_v19 = vld [vmem:[#allocation2] sm:$0xff] }
 0x135   : > { %v734_v17 = vsub.s32 0, %v733_v14  ;;  %v738_v18 = vsub.s32 1, %v733_v14  ;;  %v728_v20 = vld [vmem:[#allocation2 + $0x18] sm:$0xff] }
 0x137   : > { %v729_v21 = vld [vmem:[#allocation2 + $0x8] sm:$0xff]  ;;  %v735_v22 = vrot.slane %v730_v15, %v734_v17  ;;  %v739_v23 = vrot.slane %v730_v15, %v738_v18 }
 0x139   : > { %v742_v24 = vadd.f32 %v735_v22, %v726_v16  ;;  %v743_v25 = vadd.f32 %v739_v23, %v727_v19  ;;  %v744_v26 = vadd.f32 %v735_v22, %v728_v20  ;;  %v745_v27 = vadd.f32 %v739_v23, %v729_v21 }
 0x13b   : > { %v746_v28 = vmax.f32 %v742_v24, 0.0  ;;  %v747_v29 = vmax.f32 %v743_v25, 0.0  ;;  %v748_v30 = vmax.f32 %v744_v26, 0.0  ;;  %v749_v31 = vmax.f32 %v745_v27, 0.0 }
 0x13d   : > { %750 = vst [vmem:[%s1274_s3] sm:$0xff] %v746_v28  ;;  %751 = vst [vmem:[%s1274_s3 + $0x8] sm:$0xff] %v747_v29 }
 0x13e   : > { %752 = vst [vmem:[%s1274_s3 + $0x10] sm:$0xff] %v748_v30  ;;  %753 = vst [vmem:[%s1274_s3 + $0x18] sm:$0xff] %v749_v31 }
 0x13f PF: > { %s13_s16 = sadd.s32 1, %s1110_s16   ;;  %s1275_s12 = smov %s1098_s13 }
 0x140   : > { %p10_p12 = scmp.ge.s32.totalorder %s13_s16, 5   ;;  %s1276_s13 = smov %s1169_s20 }
 0x141   : > { %s1277_s14 = smov %s1106_s15  ;;  %s1278_s15 = smov %s1280_s17 }
 0x142   :  { %12 = sbr.rel (!%p10_p12) target bundleno = 3 (0x3), region = 113 }

// kernel: _lambda_.34
= control target key start
LH: loop header
LB: loop body
LE: loop exit
PB: predicated region body
PF: predicated region fallthrough
CT: control target
= control target key end

     0   :  { %v256_v1 = vmov 0   ;;  %v191_v18 = vlaneseq  ;;  %s343_s1 = inlined_call_operand.vmem [shape: bf16[128,256], index: 1, kind: input, shape index: {}]   ;;  %s344_s0 = inlined_call_operand.vmem [shape: bf16[16,128], index: 0, kind: input, shape index: {}]   ;;  %s345_s2 = inlined_call_operand.vmem [shape: f32[1,256], index: 2, kind: input, shape index: {}]   ;;  %s346_s3 = inlined_call_operand.vmem [shape: f32[16,256], index: 3, kind: output, shape index: {}]  }
   0x1   :  { %v231_v0 = vld [vmem:[%s343_s1 + $0x74] ss:$8 sps:$4 sm:$0xff]   ;;  %163 = vmatprep.mubr.bf16.mxu0 %v256_v1  ;;  %v233_v2 = vld [vmem:[%s343_s1 + $0x70] ss:$8 sps:$4 sm:$0xff]   ;;  %v234_v3 = vld [vmem:[%s343_s1 + $0x64] ss:$8 sps:$4 sm:$0xff]  }
   0x2   :  { %131 = vmatprep.subr.bf16.mxu0 %v231_v0  ;;  %v236_v4 = vld [vmem:[%s343_s1 + $0x60] ss:$8 sps:$4 sm:$0xff]   ;;  %v237_v5 = vld [vmem:[%s343_s1 + $0x54] ss:$8 sps:$4 sm:$0xff]   ;;  %v239_v6 = vld [vmem:[%s343_s1 + $0x50] ss:$8 sps:$4 sm:$0xff]  }
   0x3   :  { %132 = vmatpush1.bf16.msra.mxu0 %v233_v2  ;;  %v240_v7 = vld [vmem:[%s343_s1 + $0x44] ss:$8 sps:$4 sm:$0xff]   ;;  %v242_v8 = vld [vmem:[%s343_s1 + $0x40] ss:$8 sps:$4 sm:$0xff]   ;;  %v243_v9 = vld [vmem:[%s343_s1 + $0x34] ss:$8 sps:$4 sm:$0xff]  }
   0x4   :  { %133 = vmatprep.subr.bf16.mxu0 %v234_v3  ;;  %v245_v10 = vld [vmem:[%s343_s1 + $0x30] ss:$8 sps:$4 sm:$0xff]   ;;  %v246_v11 = vld [vmem:[%s343_s1 + $0x24] ss:$8 sps:$4 sm:$0xff]   ;;  %v248_v12 = vld [vmem:[%s343_s1 + $0x20] ss:$8 sps:$4 sm:$0xff]  }
   0x5   :  { %v249_v13 = vld [vmem:[%s343_s1 + $0x14] ss:$8 sps:$4 sm:$0xff]   ;;  %v251_v14 = vld [vmem:[%s343_s1 + $0x10] ss:$8 sps:$4 sm:$0xff]   ;;  %v252_v15 = vld [vmem:[%s343_s1 + $0x4] ss:$8 sps:$4 sm:$0xff]  }
   0x6   :  { %v254_v16 = vld [vmem:[%s343_s1] ss:$8 sps:$4 sm:$0xff]   ;;  %v192_v19 = vshrl.u32 %v191_v18, 7 }
   0x7   :  { %134 = vmatpush1.bf16.msra.mxu0 %v236_v4  ;;  %v255_v17 = vld [vmem:[%s344_s0] sm:$0xff]  }
   0x8   :  { %135 = vmatprep.subr.bf16.mxu0 %v237_v5  ;;  %v193_v20 = vsub.s32 0, %v192_v19  ;;  %v189_v21 = vld [vmem:[%s345_s2] sm:$0x3]  ;;  %v197_v22 = vsub.s32 1, %v192_v19 }
   0xa   :  { %v194_v23 = vrot.slane %v189_v21, %v193_v20  ;;  %v198_v24 = vrot.slane %v189_v21, %v197_v22 }
   0xb   :  { %136 = vmatpush1.bf16.msra.mxu0 %v239_v6 }
   0xc   :  { %137 = vmatprep.subr.bf16.mxu0 %v240_v7 }
   0xf   :  { %138 = vmatpush1.bf16.msra.mxu0 %v242_v8 }
  0x10   :  { %139 = vmatprep.subr.bf16.mxu0 %v243_v9 }
  0x13   :  { %140 = vmatpush1.bf16.msra.mxu0 %v245_v10 }
  0x14   :  { %141 = vmatprep.subr.bf16.mxu0 %v246_v11 }
  0x17   :  { %142 = vmatpush1.bf16.msra.mxu0 %v248_v12 }
  0x18   :  { %143 = vmatprep.subr.bf16.mxu0 %v249_v13 }
  0x1b   :  { %144 = vmatpush1.bf16.msra.mxu0 %v251_v14 }
  0x1c   :  { %145 = vmatprep.subr.bf16.mxu0 %v252_v15 }
  0x1f   :  { %146 = vmatpush1.bf16.msra.mxu0 %v254_v16 }
  0x22   :  { %164 = vmatmul.mubr.bf16.vlgmr.msra.gmra.mxu0 %v255_v17 }
  0xe2   :  { %v165_v25 = vpop.f32.mrf.mxu0 }
  0xe3   :  { %v201_v26 = vadd.f32 %v194_v23, %v165_v25 }
  0xe4   :  { %v167_v27 = vpop.f32.mrf.mxu0 }
  0xe5   :  { %205 = vst [vmem:[%s346_s3] sm:$0xff] %v201_v26  ;;  %v202_v28 = vadd.f32 %v198_v24, %v167_v27 }
  0xe6   :  { %v169_v29 = vpop.f32.mrf.mxu0 }
  0xe7   :  { %206 = vst [vmem:[%s346_s3 + $0x8] sm:$0xff] %v202_v28  ;;  %v203_v30 = vadd.f32 %v194_v23, %v169_v29 }
  0xe8   :  { %v171_v31 = vpop.f32.mrf.mxu0 }
  0xe9   :  { %207 = vst [vmem:[%s346_s3 + $0x10] sm:$0xff] %v203_v30  ;;  %v204_v32 = vadd.f32 %v198_v24, %v171_v31 }
  0xeb   :  { %208 = vst [vmem:[%s346_s3 + $0x18] sm:$0xff] %v204_v32 }

// kernel: _lambda_.36
= control target key start
LH: loop header
LB: loop body
LE: loop exit
PB: predicated region body
PF: predicated region fallthrough
CT: control target
= control target key end

     0   :  { %s1134_s12 = smov 0   ;;  %s1136_s13 = smov 0   ;;  %s1271_s0 = inlined_call_operand.vmem [shape: bf16[16,2304], index: 0, kind: input, shape index: {}]   ;;  %s1272_s1 = inlined_call_operand.vmem [shape: bf16[2304,256], index: 1, kind: input, shape index: {}]   ;;  %s1273_s2 = inlined_call_operand.vmem [shape: f32[1,256], index: 2, kind: input, shape index: {}]   ;;  %s1274_s3 = inlined_call_operand.vmem [shape: f32[16,256], index: 3, kind: output, shape index: {}]  }
   0x1   :  { %s1138_s14 = smov 0   ;;  %s1140_s15 = smov 0  }
   0x2   :  { %s1142_s16 = smov 0  }
   0x3 LB: > { %s25_s17 = sadd.s32 1, %s1106_s15  ;;  %p48_p1 = scmp.ne.s32.totalorder %s1098_s13, %s1094_s12  ;;  %s1110_s16 = sphi %s1142_s16, %s13_s16   ;;  %s1106_s15 = sphi %s1140_s15, %s1278_s15   ;;  %s1102_s14 = sphi %s1138_s14, %s1277_s14   ;;  %s1098_s13 = sphi %s1136_s13, %s1276_s13   ;;  %s1094_s12 = sphi %s1134_s12, %s1275_s12  }
   0x4   : > { %p26_p0 = scmp.ge.s32.totalorder %s25_s17, 6  ;;  %p49_p2 = scmp.eq.s32.totalorder %s1110_s16, 0 }
   0x5   : > { %s41_s19 = sadd.s32 1, %s1098_s13  ;;  %p884_p5 = scmp.ge.s32.totalorder %s1110_s16, 6 }
   0x6   : > { %s1280_s17 = smov (%p26_p0, %s25_s17), 0  ;;  %p50_p3 = por %p49_p2, %p48_p1 }
   0x7   : > { %s37_s18 = ssub.s32 %s1106_s15, %s1280_s17  ;;  %164 = sbr.rel (%p884_p5) target bundleno = 19 (0x13), region = 20 }
   0x8   : > { %p39_p4 = scmp.eq.s32.totalorder %s37_s18, 0 }
   0xa   : > { %s1169_s20 = scalar_select %p39_p4, %s1098_s13, %s41_s19  }
   0xc   : > { %167 = sbr.rel (!%p50_p3) target bundleno = 19 (0x13), region = 24  ;;  %s169_s21 = sand.u32 (%p50_p3), 1, %s1098_s13  }
   0xd   : > { %s950_s22 = smul.u32 (%p50_p3), 12, %s1106_s15 }
   0xe   : > { %s952_s23 = smul.u32 (%p50_p3), 24, %s169_s21 }
   0xf   : > { %s177_s26 = scalar_lea.vmem (%p50_p3), %s1271_s0, %s950_s22 }
  0x10   : > { %v192_v0 = vld [vmem:[%s177_s26] sm:$0xff] (%p50_p3)  ;;  %v194_v1 = vld [vmem:[%s177_s26 + $0x48] sm:$0xff] (%p50_p3)  ;;  %s171_s27 = scalar_lea.vmem (%p50_p3), [#allocation3], %s952_s23  ;;  %v888_v3 = vld [vmem:[%s177_s26 + $0x50] sm:$0xf] (%p50_p3) }
  0x11   : > { %v886_v2 = vld [vmem:[%s177_s26 + $0x8] sm:$0xf]  ;;  %193 = vst [vmem:[%s171_s27] sm:$0xff] %v192_v0  ;;  %195 = vst [vmem:[%s171_s27 + $0xc] sm:$0xff] %v194_v1 }
  0x12   : > { %887 = vst [vmem:[%s171_s27 + $0x8] sm:$0xf] %v886_v2  ;;  %889 = vst [vmem:[%s171_s27 + $0x14] sm:$0xf] %v888_v3 }
  0x13 PF: > { %p890_p6 = scmp.ge.s32.totalorder %s1110_s16, 1  ;;  %p227_p7 = scmp.lt.s32.totalorder %s1110_s16, 7 }
  0x15   : > { %p228_p8 = pnand %p890_p6, %p227_p7 }
  0x16   : > { %s234_s28 = sand.u32 (!%p228_p8), 1, %s1094_s12   ;;  %s278_s29 = smul.u32 (!%p228_p8), 48, %s1102_s14 }
  0x17   : > { %231 = sbr.rel (%p228_p8) target bundleno = 319 (0x13f), region = 54  ;;  %p893_p10 = scmp.ne.s32.totalorder (!%p228_p8), %s1102_s14, 0 }
  0x18   : > { %s953_s30 = smul.u32 (!%p228_p8), 24, %s234_s28  ;;  %p280_p9 = scmp.lt.s32.totalorder (!%p228_p8), %s278_s29, 287 }
  0x1a   : > { %s1186_s8 = scalar_lea.vmem (!%p228_p8), [#allocation3], %s953_s30 }
  0x1c   : > { %s1282_s29 = smov (!%p280_p9, %s278_s29), 287  ;;  %311 = sbr.rel (%p893_p10) target bundleno = 36 (0x24), region = 62 }
  0x1d   : > { %s951_s4 = sshll.u32 %s1282_s29, 3 }
  0x1e   : > { %s1184_s7 = scalar_lea.vmem %s1272_s1, %s951_s4 }
  0x21   : > { %v1112_v4 = vmov 0.0  }
  0x22   : > { %312 = vst [vmem:[#allocation2 + $0x10] sm:$0xff] %v1112_v4  ;;  %313 = vst [vmem:[#allocation2] sm:$0xff] %v1112_v4 }
  0x23   : > { %314 = vst [vmem:[#allocation2 + $0x18] sm:$0xff] %v1112_v4  ;;  %315 = vst [vmem:[#allocation2 + $0x8] sm:$0xff] %v1112_v4 }
  0x24 PF: > { %v996_v5 = vld [vmem:[%s1184_s7 + $0x74] ss:$8 sps:$4 sm:$0xff]   ;;  %v998_v6 = vld [vmem:[%s1184_s7 + $0x70] ss:$8 sps:$4 sm:$0xff]   ;;  %v1113_v7 = vmov 0   ;;  %p945_p11 = scmp.ne.s32.totalorder %s1102_s14, 5 }
  0x25   : > { %703 = vmatprep.mubr.bf16.mxu1 %v1113_v7  ;;  %628 = vmatprep.subr.bf16.mxu0 %v996_v5  ;;  %v999_v8 = vld [vmem:[%s1184_s7 + $0x64] ss:$8 sps:$4 sm:$0xff]   ;;  %v1001_v9 = vld [vmem:[%s1184_s7 + $0x60] ss:$8 sps:$4 sm:$0xff]   ;;  %v1002_v10 = vld [vmem:[%s1184_s7 + $0x54] ss:$8 sps:$4 sm:$0xff]  }
  0x26   : > { %629 = vmatpush1.bf16.msra.mxu0 %v998_v6  ;;  %v1004_v11 = vld [vmem:[%s1184_s7 + $0x50] ss:$8 sps:$4 sm:$0xff]   ;;  %v1005_v12 = vld [vmem:[%s1184_s7 + $0x44] ss:$8 sps:$4 sm:$0xff]   ;;  %v1017_v13 = vld [vmem:[%s1184_s7 + $0x174] ss:$8 sps:$4 sm:$0xff]  }
  0x27   : > { %630 = vmatprep.subr.bf16.mxu0 %v999_v8  ;;  %v1019_v14 = vld [vmem:[%s1184_s7 + $0x170] ss:$8 sps:$4 sm:$0xff]   ;;  %v1007_v15 = vld [vmem:[%s1184_s7 + $0x40] ss:$8 sps:$4 sm:$0xff]   ;;  %v1008_v16 = vld [vmem:[%s1184_s7 + $0x34] ss:$8 sps:$4 sm:$0xff]   ;;  %671 = vmatprep.subr.bf16.mxu1 %v1017_v13 }
  0x28   : > { %v1023_v17 = vld [vmem:[%s1184_s7 + $0x164] ss:$8 sps:$4 sm:$0xff]   ;;  %672 = vmatpush1.bf16.msra.mxu1 %v1019_v14  ;;  %v1025_v18 = vld [vmem:[%s1184_s7 + $0x160] ss:$8 sps:$4 sm:$0xff]   ;;  %v1010_v19 = vld [vmem:[%s1184_s7 + $0x30] ss:$8 sps:$4 sm:$0xff]  }
  0x29   : > { %673 = vmatprep.subr.bf16.mxu1 %v1023_v17  ;;  %v1029_v20 = vld [vmem:[%s1184_s7 + $0x154] ss:$8 sps:$4 sm:$0xff]   ;;  %v1011_v21 = vld [vmem:[%s1184_s7 + $0x24] ss:$8 sps:$4 sm:$0xff]   ;;  %v1031_v22 = vld [vmem:[%s1184_s7 + $0x150] ss:$8 sps:$4 sm:$0xff]  }
  0x2a   : > { %631 = vmatpush1.bf16.msra.mxu0 %v1001_v9  ;;  %v1035_v23 = vld [vmem:[%s1184_s7 + $0x144] ss:$8 sps:$4 sm:$0xff]   ;;  %v1013_v24 = vld [vmem:[%s1184_s7 + $0x20] ss:$8 sps:$4 sm:$0xff]   ;;  %v1014_v25 = vld [vmem:[%s1184_s7 + $0x14] ss:$8 sps:$4 sm:$0xff]  }
  0x2b   : > { %632 = vmatprep.subr.bf16.mxu0 %v1002_v10  ;;  %v1037_v26 = vld [vmem:[%s1184_s7 + $0x140] ss:$8 sps:$4 sm:$0xff]   ;;  %v1041_v27 = vld [vmem:[%s1184_s7 + $0x134] ss:$8 sps:$4 sm:$0xff]   ;;  %v1016_v28 = vld [vmem:[%s1184_s7 + $0x10] ss:$8 sps:$4 sm:$0xff]  }
  0x2c   : > { %674 = vmatpush1.bf16.msra.mxu1 %v1025_v18  ;;  %v1020_v29 = vld [vmem:[%s1184_s7 + $0x4] ss:$8 sps:$4 sm:$0xff]   ;;  %v1043_v30 = vld [vmem:[%s1184_s7 + $0x130] ss:$8 sps:$4 sm:$0xff]   ;;  %v1022_v32 = vld [vmem:[%s1184_s7] ss:$8 sps:$4 sm:$0xff]  }
  0x2d   : > { %675 = vmatprep.subr.bf16.mxu1 %v1029_v20  ;;  %v1047_v31 = vld [vmem:[%s1184_s7 + $0x124] ss:$8 sps:$4 sm:$0xff]   ;;  %v1026_v33 = vld [vmem:[%s1184_s7 + $0xf4] ss:$8 sps:$4 sm:$0xff]   ;;  %v1049_v34 = vld [vmem:[%s1184_s7 + $0x120] ss:$8 sps:$4 sm:$0xff]  }
  0x2e   : > { %633 = vmatpush1.bf16.msra.mxu0 %v1004_v11  ;;  %v1053_v35 = vld [vmem:[%s1184_s7 + $0x114] ss:$8 sps:$4 sm:$0xff]   ;;  %v1028_v36 = vld [vmem:[%s1184_s7 + $0xf0] ss:$8 sps:$4 sm:$0xff]   ;;  %v1032_v37 = vld [vmem:[%s1184_s7 + $0xe4] ss:$8 sps:$4 sm:$0xff]  }
  0x2f   : > { %634 = vmatprep.subr.bf16.mxu0 %v1005_v12  ;;  %v1055_v38 = vld [vmem:[%s1184_s7 + $0x110] ss:$8 sps:$4 sm:$0xff]   ;;  %v1059_v39 = vld [vmem:[%s1184_s7 + $0x104] ss:$8 sps:$4 sm:$0xff]   ;;  %v1034_v41 = vld [vmem:[%s1184_s7 + $0xe0] ss:$8 sps:$4 sm:$0xff]  }
  0x30   : > { %676 = vmatpush1.bf16.msra.mxu1 %v1031_v22  ;;  %v1071_v40 = vld [vmem:[%s1186_s8 + $0x4] ss:$12 sps:$4 sm:$0xff]   ;;  %v1065_v46 = vld [vmem:[%s1186_s8 + $0x8] ss:$12 sps:$4 sm:$0xff]   ;;  %v1069_v56 = vld [vmem:[%s1186_s8] ss:$12 sps:$4 sm:$0xff]  }
  0x31   : > { %677 = vmatprep.subr.bf16.mxu1 %v1035_v23  ;;  %v1038_v42 = vld [vmem:[%s1184_s7 + $0xd4] ss:$8 sps:$4 sm:$0xff]   ;;  %660 = vmatprep.mubr.bf16.mxu0 %v1071_v40  ;;  %v1061_v43 = vld [vmem:[%s1184_s7 + $0x100] ss:$8 sps:$4 sm:$0xff]   ;;  %v1040_v44 = vld [vmem:[%s1184_s7 + $0xd0] ss:$8 sps:$4 sm:$0xff]  }
  0x32   : > { %635 = vmatpush1.bf16.msra.mxu0 %v1007_v15  ;;  %v1044_v45 = vld [vmem:[%s1184_s7 + $0xc4] ss:$8 sps:$4 sm:$0xff]   ;;  %v1046_v47 = vld [vmem:[%s1184_s7 + $0xc0] ss:$8 sps:$4 sm:$0xff]   ;;  %v1050_v48 = vld [vmem:[%s1184_s7 + $0xb4] ss:$8 sps:$4 sm:$0xff]  }
  0x33   : > { %636 = vmatprep.subr.bf16.mxu0 %v1008_v16  ;;  %v1052_v49 = vld [vmem:[%s1184_s7 + $0xb0] ss:$8 sps:$4 sm:$0xff]   ;;  %v1056_v50 = vld [vmem:[%s1184_s7 + $0xa4] ss:$8 sps:$4 sm:$0xff]   ;;  %v1058_v51 = vld [vmem:[%s1184_s7 + $0xa0] ss:$8 sps:$4 sm:$0xff]  }
  0x34   : > { %678 = vmatpush1.bf16.msra.mxu1 %v1037_v26  ;;  %v1062_v52 = vld [vmem:[%s1184_s7 + $0x94] ss:$8 sps:$4 sm:$0xff]   ;;  %v1064_v53 = vld [vmem:[%s1184_s7 + $0x90] ss:$8 sps:$4 sm:$0xff]   ;;  %v1066_v54 = vld [vmem:[%s1184_s7 + $0x84] ss:$8 sps:$4 sm:$0xff]  }
  0x35   : > { %679 = vmatprep.subr.bf16.mxu1 %v1041_v27  ;;  %v1068_v55 = vld [vmem:[%s1184_s7 + $0x80] ss:$8 sps:$4 sm:$0xff]   ;;  %v316_v59 = vld [vmem:[#allocation2 + $0x10] sm:$0xff]  ;;  %v318_v3 = vld [vmem:[#allocation2 + $0x18] sm:$0xff] }
  0x36   : > { %637 = vmatpush1.bf16.msra.mxu0 %v1010_v19  ;;  %v317_v63 = vld [vmem:[#allocation2] sm:$0xff]  ;;  %v319_v8 = vld [vmem:[#allocation2 + $0x8] sm:$0xff] }
  0x37   : > { %638 = vmatprep.subr.bf16.mxu0 %v1011_v21 }
  0x38   : > { %680 = vmatpush1.bf16.msra.mxu1 %v1043_v30 }
  0x39   : > { %681 = vmatprep.subr.bf16.mxu1 %v1047_v31 }
  0x3a   : > { %639 = vmatpush1.bf16.msra.mxu0 %v1013_v24 }
  0x3b   : > { %640 = vmatprep.subr.bf16.mxu0 %v1014_v25 }
  0x3c   : > { %682 = vmatpush1.bf16.msra.mxu1 %v1049_v34 }
  0x3d   : > { %683 = vmatprep.subr.bf16.mxu1 %v1053_v35 }
  0x3e   : > { %641 = vmatpush1.bf16.msra.mxu0 %v1016_v28 }
  0x3f   : > { %642 = vmatprep.subr.bf16.mxu0 %v1020_v29 }
  0x40   : > { %684 = vmatpush1.bf16.msra.mxu1 %v1055_v38 }
  0x41   : > { %685 = vmatprep.subr.bf16.mxu1 %v1059_v39 }
  0x42   : > { %643 = vmatpush1.bf16.msra.mxu0 %v1022_v32 }
  0x43   : > { %644 = vmatprep.subr.bf16.mxu0 %v1026_v33 }
  0x44   : > { %686 = vmatpush1.bf16.msra.mxu1 %v1061_v43 }
  0x46   : > { %645 = vmatpush2.bf16.msra.mxu0 %v1028_v36 }
  0x47   : > { %646 = vmatprep.subr.bf16.mxu0 %v1032_v37  ;;  %704 = vmatmul.mubr.bf16.vlgmr.msra.gmra.mxu1 %v1065_v46 }
  0x4a   : > { %647 = vmatpush2.bf16.msra.mxu0 %v1034_v41 }
  0x4b   : > { %648 = vmatprep.subr.bf16.mxu0 %v1038_v42 }
  0x4e   : > { %649 = vmatpush2.bf16.msra.mxu0 %v1040_v44 }
  0x4f   : > { %650 = vmatprep.subr.bf16.mxu0 %v1044_v45 }
  0x52   : > { %651 = vmatpush2.bf16.msra.mxu0 %v1046_v47 }
  0x53   : > { %652 = vmatprep.subr.bf16.mxu0 %v1050_v48 }
  0x56   : > { %653 = vmatpush2.bf16.msra.mxu0 %v1052_v49 }
  0x57   : > { %654 = vmatprep.subr.bf16.mxu0 %v1056_v50 }
  0x5a   : > { %655 = vmatpush2.bf16.msra.mxu0 %v1058_v51 }
  0x5b   : > { %656 = vmatprep.subr.bf16.mxu0 %v1062_v52 }
  0x5e   : > { %657 = vmatpush2.bf16.msra.mxu0 %v1064_v53 }
  0x5f   : > { %658 = vmatprep.subr.bf16.mxu0 %v1066_v54 }
  0x62   : > { %659 = vmatpush2.bf16.msra.mxu0 %v1068_v55 }
  0x65   : > { %661 = vmatmul.mubr.bf16.vlgmr.msra.gmra.mxu0 %v1069_v56 }
 0x107   : > { %v705_v57 = vpop.f32.mrf.mxu1 }
 0x109   : > { %v707_v58 = vpop.f32.mrf.mxu1 }
 0x10b   : > { %v709_v62 = vpop.f32.mrf.mxu1 }
 0x10d   : > { %v711_v7 = vpop.f32.mrf.mxu1 }
 0x125   : > { %v662_v60 = vpop.f32.mrf.mxu0 }
 0x126   : > { %v706_v61 = vadd.f32 %v705_v57, %v662_v60 }
 0x127   : > { %v664_v0 = vpop.f32.mrf.mxu0 }
 0x128   : > { %v714_v1 = vadd.f32 %v706_v61, %v316_v59  ;;  %v708_v2 = vadd.f32 %v707_v58, %v664_v0 }
 0x129   : > { %v666_v4 = vpop.f32.mrf.mxu0 }
 0x12a   : > { %718 = vst [vmem:[#allocation2 + $0x10] sm:$0xff] %v714_v1  ;;  %v715_v5 = vadd.f32 %v708_v2, %v317_v63  ;;  %v710_v6 = vadd.f32 %v709_v62, %v666_v4 }
 0x12b   : > { %v668_v9 = vpop.f32.mrf.mxu0 }
 0x12c   : > { %719 = vst [vmem:[#allocation2] sm:$0xff] %v715_v5  ;;  %v716_v10 = vadd.f32 %v710_v6, %v318_v3  ;;  %v712_v11 = vadd.f32 %v711_v7, %v668_v9  ;;  %725 = sbr.rel (%p945_p11) target bundleno = 319 (0x13f), region = 66 }
 0x12e   : > { %720 = vst [vmem:[#allocation2 + $0x18] sm:$0xff] %v716_v10  ;;  %v717_v12 = vadd.f32 %v712_v11, %v319_v8 }
 0x130   : > { %721 = vst [vmem:[#allocation2 + $0x8] sm:$0xff] %v717_v12 }
 0x131   : > { %v732_v13 = vlaneseq  ;;  %v730_v15 = vld [vmem:[%s1273_s2] sm:$0x3]  ;;  %v726_v16 = vld [vmem:[#allocation2 + $0x10] sm:$0xff] }
 0x133   : > { %v733_v14 = vshrl.u32 %v732_v13, 7  ;;  %v727_v19 = vld [vmem:[#allocation2] sm:$0xff] }
 0x135   : > { %v734_v17 = vsub.s32 0, %v733_v14  ;;  %v738_v18 = vsub.s32 1, %v733_v14  ;;  %v728_v20 = vld [vmem:[#allocation2 + $0x18] sm:$0xff] }
 0x137   : > { %v729_v21 = vld [vmem:[#allocation2 + $0x8] sm:$0xff]  ;;  %v735_v22 = vrot.slane %v730_v15, %v734_v17  ;;  %v739_v23 = vrot.slane %v730_v15, %v738_v18 }
 0x139   : > { %v742_v24 = vadd.f32 %v735_v22, %v726_v16  ;;  %v743_v25 = vadd.f32 %v739_v23, %v727_v19  ;;  %v744_v26 = vadd.f32 %v735_v22, %v728_v20  ;;  %v745_v27 = vadd.f32 %v739_v23, %v729_v21 }
 0x13b   : > { %v746_v28 = vmax.f32 %v742_v24, 0.0  ;;  %v747_v29 = vmax.f32 %v743_v25, 0.0  ;;  %v748_v30 = vmax.f32 %v744_v26, 0.0  ;;  %v749_v31 = vmax.f32 %v745_v27, 0.0 }
 0x13d   : > { %750 = vst [vmem:[%s1274_s3] sm:$0xff] %v746_v28  ;;  %751 = vst [vmem:[%s1274_s3 + $0x8] sm:$0xff] %v747_v29 }
 0x13e   : > { %752 = vst [vmem:[%s1274_s3 + $0x10] sm:$0xff] %v748_v30  ;;  %753 = vst [vmem:[%s1274_s3 + $0x18] sm:$0xff] %v749_v31 }
 0x13f PF: > { %s13_s16 = sadd.s32 1, %s1110_s16   ;;  %s1275_s12 = smov %s1098_s13 }
 0x140   : > { %p10_p12 = scmp.ge.s32.totalorder %s13_s16, 8   ;;  %s1276_s13 = smov %s1169_s20 }
 0x141   : > { %s1277_s14 = smov %s1106_s15  ;;  %s1278_s15 = smov %s1280_s17 }
 0x142   :  { %12 = sbr.rel (!%p10_p12) target bundleno = 3 (0x3), region = 113 }

// kernel: _lambda_.35
= control target key start
LH: loop header
LB: loop body
LE: loop exit
PB: predicated region body
PF: predicated region fallthrough
CT: control target
= control target key end

     0   :  { %s1237_s15 = smov 0   ;;  %s1239_s16 = smov 0   ;;  %s1386_s0 = inlined_call_operand.vmem [shape: bf16[16,2304], index: 0, kind: input, shape index: {}]   ;;  %s1387_s1 = inlined_call_operand.vmem [shape: bf16[2304,256], index: 1, kind: input, shape index: {}]   ;;  %s1388_s2 = inlined_call_operand.vmem [shape: f32[1,256], index: 2, kind: input, shape index: {}]   ;;  %s1389_s3 = inlined_call_operand.vmem [shape: f32[16,256], index: 3, kind: input, shape index: {}]   ;;  %s1390_s4 = inlined_call_operand.vmem [shape: f32[16,256], index: 4, kind: output, shape index: {}]  }
   0x1   :  { %s1241_s17 = smov 0   ;;  %s1243_s18 = smov 0  }
   0x2   :  { %s1245_s19 = smov 0  }
   0x3 LB: > { %s26_s20 = sadd.s32 1, %s1204_s18  ;;  %p49_p1 = scmp.ne.s32.totalorder %s1196_s16, %s1192_s15  ;;  %s1208_s19 = sphi %s1245_s19, %s14_s19   ;;  %s1204_s18 = sphi %s1243_s18, %s1394_s18   ;;  %s1200_s17 = sphi %s1241_s17, %s1393_s17   ;;  %s1196_s16 = sphi %s1239_s16, %s1392_s16   ;;  %s1192_s15 = sphi %s1237_s15, %s1391_s15  }
   0x4   : > { %p27_p0 = scmp.ge.s32.totalorder %s26_s20, 6  ;;  %p50_p2 = scmp.eq.s32.totalorder %s1208_s19, 0 }
   0x5   : > { %s42_s22 = sadd.s32 1, %s1196_s16  ;;  %p982_p5 = scmp.ge.s32.totalorder %s1208_s19, 6 }
   0x6   : > { %s1396_s20 = smov (%p27_p0, %s26_s20), 0  ;;  %p51_p3 = por %p50_p2, %p49_p1 }
   0x7   : > { %s38_s21 = ssub.s32 %s1204_s18, %s1396_s20  ;;  %208 = sbr.rel (%p982_p5) target bundleno = 19 (0x13), region = 24 }
   0x8   : > { %p40_p4 = scmp.eq.s32.totalorder %s38_s21, 0 }
   0xa   : > { %s1272_s23 = scalar_select %p40_p4, %s1196_s16, %s42_s22  }
   0xc   : > { %211 = sbr.rel (!%p51_p3) target bundleno = 19 (0x13), region = 28  ;;  %s213_s24 = sand.u32 (%p51_p3), 1, %s1196_s16  }
   0xd   : > { %s1048_s25 = smul.u32 (%p51_p3), 12, %s1204_s18 }
   0xe   : > { %s1050_s26 = smul.u32 (%p51_p3), 24, %s213_s24 }
   0xf   : > { %s221_s29 = scalar_lea.vmem (%p51_p3), %s1386_s0, %s1048_s25 }
  0x10   : > { %v236_v0 = vld [vmem:[%s221_s29] sm:$0xff] (%p51_p3)  ;;  %v238_v1 = vld [vmem:[%s221_s29 + $0x48] sm:$0xff] (%p51_p3)  ;;  %s215_s30 = scalar_lea.vmem (%p51_p3), [#allocation3], %s1050_s26  ;;  %v986_v3 = vld [vmem:[%s221_s29 + $0x50] sm:$0xf] (%p51_p3) }
  0x11   : > { %v984_v2 = vld [vmem:[%s221_s29 + $0x8] sm:$0xf]  ;;  %237 = vst [vmem:[%s215_s30] sm:$0xff] %v236_v0  ;;  %239 = vst [vmem:[%s215_s30 + $0xc] sm:$0xff] %v238_v1 }
  0x12   : > { %985 = vst [vmem:[%s215_s30 + $0x8] sm:$0xf] %v984_v2  ;;  %987 = vst [vmem:[%s215_s30 + $0x14] sm:$0xf] %v986_v3 }
  0x13 PF: > { %p988_p6 = scmp.ge.s32.totalorder %s1208_s19, 1  ;;  %p271_p7 = scmp.lt.s32.totalorder %s1208_s19, 7 }
  0x15   : > { %p272_p8 = pnand %p988_p6, %p271_p7 }
  0x16   : > { %s278_s5 = sand.u32 (!%p272_p8), 1, %s1192_s15   ;;  %s334_s6 = smul.u32 (!%p272_p8), 48, %s1200_s17 }
  0x17   : > { %275 = sbr.rel (%p272_p8) target bundleno = 321 (0x141), region = 58  ;;  %p991_p10 = scmp.ne.s32.totalorder (!%p272_p8), %s1200_s17, 0 }
  0x18   : > { %s1051_s7 = smul.u32 (!%p272_p8), 24, %s278_s5  ;;  %p336_p9 = scmp.lt.s32.totalorder (!%p272_p8), %s334_s6, 287 }
  0x1a   : > { %s1289_s12 = scalar_lea.vmem (!%p272_p8), [#allocation3], %s1051_s7 }
  0x1c   : > { %s1398_s6 = smov (!%p336_p9, %s334_s6), 287  ;;  %379 = sbr.rel (%p991_p10) target bundleno = 36 (0x24), region = 66 }
  0x1d   : > { %s1049_s8 = sshll.u32 %s1398_s6, 3 }
  0x1e   : > { %s1287_s11 = scalar_lea.vmem %s1387_s1, %s1049_s8 }
  0x21   : > { %v1210_v4 = vmov 0.0  }
  0x22   : > { %380 = vst [vmem:[#allocation2 + $0x10] sm:$0xff] %v1210_v4  ;;  %381 = vst [vmem:[#allocation2] sm:$0xff] %v1210_v4 }
  0x23   : > { %382 = vst [vmem:[#allocation2 + $0x18] sm:$0xff] %v1210_v4  ;;  %383 = vst [vmem:[#allocation2 + $0x8] sm:$0xff] %v1210_v4 }
  0x24 PF: > { %v1094_v5 = vld [vmem:[%s1287_s11 + $0x74] ss:$8 sps:$4 sm:$0xff]   ;;  %v1096_v6 = vld [vmem:[%s1287_s11 + $0x70] ss:$8 sps:$4 sm:$0xff]   ;;  %v1211_v7 = vmov 0   ;;  %p1043_p11 = scmp.ne.s32.totalorder %s1200_s17, 5 }
  0x25   : > { %771 = vmatprep.mubr.bf16.mxu1 %v1211_v7  ;;  %696 = vmatprep.subr.bf16.mxu0 %v1094_v5  ;;  %v1097_v8 = vld [vmem:[%s1287_s11 + $0x64] ss:$8 sps:$4 sm:$0xff]   ;;  %v1099_v9 = vld [vmem:[%s1287_s11 + $0x60] ss:$8 sps:$4 sm:$0xff]   ;;  %v1100_v10 = vld [vmem:[%s1287_s11 + $0x54] ss:$8 sps:$4 sm:$0xff]  }
  0x26   : > { %697 = vmatpush1.bf16.msra.mxu0 %v1096_v6  ;;  %v1102_v11 = vld [vmem:[%s1287_s11 + $0x50] ss:$8 sps:$4 sm:$0xff]   ;;  %v1103_v12 = vld [vmem:[%s1287_s11 + $0x44] ss:$8 sps:$4 sm:$0xff]   ;;  %v1115_v13 = vld [vmem:[%s1287_s11 + $0x174] ss:$8 sps:$4 sm:$0xff]  }
  0x27   : > { %698 = vmatprep.subr.bf16.mxu0 %v1097_v8  ;;  %v1117_v14 = vld [vmem:[%s1287_s11 + $0x170] ss:$8 sps:$4 sm:$0xff]   ;;  %v1105_v15 = vld [vmem:[%s1287_s11 + $0x40] ss:$8 sps:$4 sm:$0xff]   ;;  %v1106_v16 = vld [vmem:[%s1287_s11 + $0x34] ss:$8 sps:$4 sm:$0xff]   ;;  %739 = vmatprep.subr.bf16.mxu1 %v1115_v13 }
  0x28   : > { %v1121_v17 = vld [vmem:[%s1287_s11 + $0x164] ss:$8 sps:$4 sm:$0xff]   ;;  %740 = vmatpush1.bf16.msra.mxu1 %v1117_v14  ;;  %v1123_v18 = vld [vmem:[%s1287_s11 + $0x160] ss:$8 sps:$4 sm:$0xff]   ;;  %v1108_v19 = vld [vmem:[%s1287_s11 + $0x30] ss:$8 sps:$4 sm:$0xff]  }
  0x29   : > { %741 = vmatprep.subr.bf16.mxu1 %v1121_v17  ;;  %v1127_v20 = vld [vmem:[%s1287_s11 + $0x154] ss:$8 sps:$4 sm:$0xff]   ;;  %v1109_v21 = vld [vmem:[%s1287_s11 + $0x24] ss:$8 sps:$4 sm:$0xff]   ;;  %v1129_v22 = vld [vmem:[%s1287_s11 + $0x150] ss:$8 sps:$4 sm:$0xff]  }
  0x2a   : > { %699 = vmatpush1.bf16.msra.mxu0 %v1099_v9  ;;  %v1133_v23 = vld [vmem:[%s1287_s11 + $0x144] ss:$8 sps:$4 sm:$0xff]   ;;  %v1111_v24 = vld [vmem:[%s1287_s11 + $0x20] ss:$8 sps:$4 sm:$0xff]   ;;  %v1112_v25 = vld [vmem:[%s1287_s11 + $0x14] ss:$8 sps:$4 sm:$0xff]  }
  0x2b   : > { %700 = vmatprep.subr.bf16.mxu0 %v1100_v10  ;;  %v1135_v26 = vld [vmem:[%s1287_s11 + $0x140] ss:$8 sps:$4 sm:$0xff]   ;;  %v1139_v27 = vld [vmem:[%s1287_s11 + $0x134] ss:$8 sps:$4 sm:$0xff]   ;;  %v1114_v28 = vld [vmem:[%s1287_s11 + $0x10] ss:$8 sps:$4 sm:$0xff]  }
  0x2c   : > { %742 = vmatpush1.bf16.msra.mxu1 %v1123_v18  ;;  %v1118_v29 = vld [vmem:[%s1287_s11 + $0x4] ss:$8 sps:$4 sm:$0xff]   ;;  %v1141_v30 = vld [vmem:[%s1287_s11 + $0x130] ss:$8 sps:$4 sm:$0xff]   ;;  %v1120_v32 = vld [vmem:[%s1287_s11] ss:$8 sps:$4 sm:$0xff]  }
  0x2d   : > { %743 = vmatprep.subr.bf16.mxu1 %v1127_v20  ;;  %v1145_v31 = vld [vmem:[%s1287_s11 + $0x124] ss:$8 sps:$4 sm:$0xff]   ;;  %v1124_v33 = vld [vmem:[%s1287_s11 + $0xf4] ss:$8 sps:$4 sm:$0xff]   ;;  %v1147_v34 = vld [vmem:[%s1287_s11 + $0x120] ss:$8 sps:$4 sm:$0xff]  }
  0x2e   : > { %701 = vmatpush1.bf16.msra.mxu0 %v1102_v11  ;;  %v1151_v35 = vld [vmem:[%s1287_s11 + $0x114] ss:$8 sps:$4 sm:$0xff]   ;;  %v1126_v36 = vld [vmem:[%s1287_s11 + $0xf0] ss:$8 sps:$4 sm:$0xff]   ;;  %v1130_v37 = vld [vmem:[%s1287_s11 + $0xe4] ss:$8 sps:$4 sm:$0xff]  }
  0x2f   : > { %702 = vmatprep.subr.bf16.mxu0 %v1103_v12  ;;  %v1153_v38 = vld [vmem:[%s1287_s11 + $0x110] ss:$8 sps:$4 sm:$0xff]   ;;  %v1157_v39 = vld [vmem:[%s1287_s11 + $0x104] ss:$8 sps:$4 sm:$0xff]   ;;  %v1132_v41 = vld [vmem:[%s1287_s11 + $0xe0] ss:$8 sps:$4 sm:$0xff]  }
  0x30   : > { %744 = vmatpush1.bf16.msra.mxu1 %v1129_v22  ;;  %v1169_v40 = vld [vmem:[%s1289_s12 + $0x4] ss:$12 sps:$4 sm:$0xff]   ;;  %v1163_v46 = vld [vmem:[%s1289_s12 + $0x8] ss:$12 sps:$4 sm:$0xff]   ;;  %v1167_v56 = vld [vmem:[%s1289_s12] ss:$12 sps:$4 sm:$0xff]  }
  0x31   : > { %745 = vmatprep.subr.bf16.mxu1 %v1133_v23  ;;  %v1136_v42 = vld [vmem:[%s1287_s11 + $0xd4] ss:$8 sps:$4 sm:$0xff]   ;;  %728 = vmatprep.mubr.bf16.mxu0 %v1169_v40  ;;  %v1159_v43 = vld [vmem:[%s1287_s11 + $0x100] ss:$8 sps:$4 sm:$0xff]   ;;  %v1138_v44 = vld [vmem:[%s1287_s11 + $0xd0] ss:$8 sps:$4 sm:$0xff]  }
  0x32   : > { %703 = vmatpush1.bf16.msra.mxu0 %v1105_v15  ;;  %v1142_v45 = vld [vmem:[%s1287_s11 + $0xc4] ss:$8 sps:$4 sm:$0xff]   ;;  %v1144_v47 = vld [vmem:[%s1287_s11 + $0xc0] ss:$8 sps:$4 sm:$0xff]   ;;  %v1148_v48 = vld [vmem:[%s1287_s11 + $0xb4] ss:$8 sps:$4 sm:$0xff]  }
  0x33   : > { %704 = vmatprep.subr.bf16.mxu0 %v1106_v16  ;;  %v1150_v49 = vld [vmem:[%s1287_s11 + $0xb0] ss:$8 sps:$4 sm:$0xff]   ;;  %v1154_v50 = vld [vmem:[%s1287_s11 + $0xa4] ss:$8 sps:$4 sm:$0xff]   ;;  %v1156_v51 = vld [vmem:[%s1287_s11 + $0xa0] ss:$8 sps:$4 sm:$0xff]  }
  0x34   : > { %746 = vmatpush1.bf16.msra.mxu1 %v1135_v26  ;;  %v1160_v52 = vld [vmem:[%s1287_s11 + $0x94] ss:$8 sps:$4 sm:$0xff]   ;;  %v1162_v53 = vld [vmem:[%s1287_s11 + $0x90] ss:$8 sps:$4 sm:$0xff]   ;;  %v1164_v54 = vld [vmem:[%s1287_s11 + $0x84] ss:$8 sps:$4 sm:$0xff]  }
  0x35   : > { %747 = vmatprep.subr.bf16.mxu1 %v1139_v27  ;;  %v1166_v55 = vld [vmem:[%s1287_s11 + $0x80] ss:$8 sps:$4 sm:$0xff]   ;;  %v384_v59 = vld [vmem:[#allocation2 + $0x10] sm:$0xff]  ;;  %v386_v3 = vld [vmem:[#allocation2 + $0x18] sm:$0xff] }
  0x36   : > { %705 = vmatpush1.bf16.msra.mxu0 %v1108_v19  ;;  %v385_v63 = vld [vmem:[#allocation2] sm:$0xff]  ;;  %v387_v8 = vld [vmem:[#allocation2 + $0x8] sm:$0xff] }
  0x37   : > { %706 = vmatprep.subr.bf16.mxu0 %v1109_v21 }
  0x38   : > { %748 = vmatpush1.bf16.msra.mxu1 %v1141_v30 }
  0x39   : > { %749 = vmatprep.subr.bf16.mxu1 %v1145_v31 }
  0x3a   : > { %707 = vmatpush1.bf16.msra.mxu0 %v1111_v24 }
  0x3b   : > { %708 = vmatprep.subr.bf16.mxu0 %v1112_v25 }
  0x3c   : > { %750 = vmatpush1.bf16.msra.mxu1 %v1147_v34 }
  0x3d   : > { %751 = vmatprep.subr.bf16.mxu1 %v1151_v35 }
  0x3e   : > { %709 = vmatpush1.bf16.msra.mxu0 %v1114_v28 }
  0x3f   : > { %710 = vmatprep.subr.bf16.mxu0 %v1118_v29 }
  0x40   : > { %752 = vmatpush1.bf16.msra.mxu1 %v1153_v38 }
  0x41   : > { %753 = vmatprep.subr.bf16.mxu1 %v1157_v39 }
  0x42   : > { %711 = vmatpush1.bf16.msra.mxu0 %v1120_v32 }
  0x43   : > { %712 = vmatprep.subr.bf16.mxu0 %v1124_v33 }
  0x44   : > { %754 = vmatpush1.bf16.msra.mxu1 %v1159_v43 }
  0x46   : > { %713 = vmatpush2.bf16.msra.mxu0 %v1126_v36 }
  0x47   : > { %714 = vmatprep.subr.bf16.mxu0 %v1130_v37  ;;  %772 = vmatmul.mubr.bf16.vlgmr.msra.gmra.mxu1 %v1163_v46 }
  0x4a   : > { %715 = vmatpush2.bf16.msra.mxu0 %v1132_v41 }
  0x4b   : > { %716 = vmatprep.subr.bf16.mxu0 %v1136_v42 }
  0x4e   : > { %717 = vmatpush2.bf16.msra.mxu0 %v1138_v44 }
  0x4f   : > { %718 = vmatprep.subr.bf16.mxu0 %v1142_v45 }
  0x52   : > { %719 = vmatpush2.bf16.msra.mxu0 %v1144_v47 }
  0x53   : > { %720 = vmatprep.subr.bf16.mxu0 %v1148_v48 }
  0x56   : > { %721 = vmatpush2.bf16.msra.mxu0 %v1150_v49 }
  0x57   : > { %722 = vmatprep.subr.bf16.mxu0 %v1154_v50 }
  0x5a   : > { %723 = vmatpush2.bf16.msra.mxu0 %v1156_v51 }
  0x5b   : > { %724 = vmatprep.subr.bf16.mxu0 %v1160_v52 }
  0x5e   : > { %725 = vmatpush2.bf16.msra.mxu0 %v1162_v53 }
  0x5f   : > { %726 = vmatprep.subr.bf16.mxu0 %v1164_v54 }
  0x62   : > { %727 = vmatpush2.bf16.msra.mxu0 %v1166_v55 }
  0x65   : > { %729 = vmatmul.mubr.bf16.vlgmr.msra.gmra.mxu0 %v1167_v56 }
 0x107   : > { %v773_v57 = vpop.f32.mrf.mxu1 }
 0x109   : > { %v775_v58 = vpop.f32.mrf.mxu1 }
 0x10b   : > { %v777_v62 = vpop.f32.mrf.mxu1 }
 0x10d   : > { %v779_v7 = vpop.f32.mrf.mxu1 }
 0x125   : > { %v730_v60 = vpop.f32.mrf.mxu0 }
 0x126   : > { %v774_v61 = vadd.f32 %v773_v57, %v730_v60 }
 0x127   : > { %v732_v0 = vpop.f32.mrf.mxu0 }
 0x128   : > { %v782_v1 = vadd.f32 %v774_v61, %v384_v59  ;;  %v776_v2 = vadd.f32 %v775_v58, %v732_v0 }
 0x129   : > { %v734_v4 = vpop.f32.mrf.mxu0 }
 0x12a   : > { %786 = vst [vmem:[#allocation2 + $0x10] sm:$0xff] %v782_v1  ;;  %v783_v5 = vadd.f32 %v776_v2, %v385_v63  ;;  %v778_v6 = vadd.f32 %v777_v62, %v734_v4 }
 0x12b   : > { %v736_v9 = vpop.f32.mrf.mxu0 }
 0x12c   : > { %787 = vst [vmem:[#allocation2] sm:$0xff] %v783_v5  ;;  %v784_v10 = vadd.f32 %v778_v6, %v386_v3  ;;  %v780_v11 = vadd.f32 %v779_v7, %v736_v9  ;;  %793 = sbr.rel (%p1043_p11) target bundleno = 321 (0x141), region = 70 }
 0x12e   : > { %788 = vst [vmem:[#allocation2 + $0x18] sm:$0xff] %v784_v10  ;;  %v785_v12 = vadd.f32 %v780_v11, %v387_v8 }
 0x130   : > { %789 = vst [vmem:[#allocation2 + $0x8] sm:$0xff] %v785_v12 }
 0x131   : > { %v800_v13 = vlaneseq  ;;  %v798_v15 = vld [vmem:[%s1388_s2] sm:$0x3]  ;;  %v794_v16 = vld [vmem:[#allocation2 + $0x10] sm:$0xff]  ;;  %v815_v25 = vld [vmem:[%s1389_s3 + $0x8] sm:$0xff] }
 0x132   : > { %v814_v23 = vld [vmem:[%s1389_s3] sm:$0xff]  ;;  %v816_v26 = vld [vmem:[%s1389_s3 + $0x10] sm:$0xff]  ;;  %v817_v27 = vld [vmem:[%s1389_s3 + $0x18] sm:$0xff] }
 0x133   : > { %v801_v14 = vshrl.u32 %v800_v13, 7  ;;  %v795_v19 = vld [vmem:[#allocation2] sm:$0xff] }
 0x135   : > { %v802_v17 = vsub.s32 0, %v801_v14  ;;  %v806_v18 = vsub.s32 1, %v801_v14  ;;  %v796_v20 = vld [vmem:[#allocation2 + $0x18] sm:$0xff] }
 0x137   : > { %v797_v21 = vld [vmem:[#allocation2 + $0x8] sm:$0xff]  ;;  %v803_v22 = vrot.slane %v798_v15, %v802_v17  ;;  %v807_v24 = vrot.slane %v798_v15, %v806_v18 }
 0x139   : > { %v810_v28 = vadd.f32 %v803_v22, %v794_v16  ;;  %v811_v29 = vadd.f32 %v807_v24, %v795_v19  ;;  %v812_v30 = vadd.f32 %v803_v22, %v796_v20  ;;  %v813_v31 = vadd.f32 %v807_v24, %v797_v21 }
 0x13b   : > { %v818_v32 = vadd.f32 %v814_v23, %v810_v28  ;;  %v819_v33 = vadd.f32 %v815_v25, %v811_v29  ;;  %v820_v34 = vadd.f32 %v816_v26, %v812_v30  ;;  %v821_v35 = vadd.f32 %v817_v27, %v813_v31 }
 0x13d   : > { %v822_v36 = vmax.f32 %v818_v32, 0.0  ;;  %v823_v37 = vmax.f32 %v819_v33, 0.0  ;;  %v824_v38 = vmax.f32 %v820_v34, 0.0  ;;  %v825_v39 = vmax.f32 %v821_v35, 0.0 }
 0x13f   : > { %826 = vst [vmem:[%s1390_s4] sm:$0xff] %v822_v36  ;;  %827 = vst [vmem:[%s1390_s4 + $0x8] sm:$0xff] %v823_v37 }
 0x140   : > { %828 = vst [vmem:[%s1390_s4 + $0x10] sm:$0xff] %v824_v38  ;;  %829 = vst [vmem:[%s1390_s4 + $0x18] sm:$0xff] %v825_v39 }
 0x141 PF: > { %s14_s19 = sadd.s32 1, %s1208_s19   ;;  %s1391_s15 = smov %s1196_s16 }
 0x142   : > { %p11_p12 = scmp.ge.s32.totalorder %s14_s19, 8   ;;  %s1392_s16 = smov %s1272_s23 }
 0x143   : > { %s1393_s17 = smov %s1204_s18  ;;  %s1394_s18 = smov %s1396_s20 }
 0x144   :  { %13 = sbr.rel (!%p11_p12) target bundleno = 3 (0x3), region = 120 }

// kernel: _lambda_.38
= control target key start
LH: loop header
LB: loop body
LE: loop exit
PB: predicated region body
PF: predicated region fallthrough
CT: control target
= control target key end

     0   :  { %s1788_s0 = inlined_call_operand.vmem [shape: bf16[16,2304], index: 0, kind: input, shape index: {}]   ;;  %s1789_s1 = inlined_call_operand.vmem [shape: bf16[2304,512], index: 1, kind: input, shape index: {}]   ;;  %s1790_s2 = inlined_call_operand.vmem [shape: f32[1,512], index: 2, kind: input, shape index: {}]   ;;  %s1791_s3 = inlined_call_operand.vmem [shape: f32[16,512], index: 3, kind: output, shape index: {}]  }
   0x1   :  { %1793 = sst [smem:[#allocation7_spill]] %s1788_s0 }
   0x2   :  { %1794 = sst [smem:[#allocation8_spill]] %s1789_s1 }
   0x3   :  { %s1451_s12 = smov 0   ;;  %s1453_s13 = smov 0  }
   0x4   :  { %s1455_s14 = smov 0   ;;  %s1457_s15 = smov 0  }
   0x5   :  { %s1459_s16 = smov 0   ;;  %s1461_s17 = smov 0  }
   0x6   :  { %s1463_s18 = smov 0   ;;  %s1465_s19 = smov 0  }
   0x7   :  { %s1467_s20 = smov 0   ;;  %s1469_s21 = smov 0  }
   0x8   :  { %s1471_s22 = smov 0  }
   0x9 LB: > { %s1095_s23 = sadd.s32 4294967295, %s1427_s22   ;;  %s25_s24 = sadd.s32 1, %s1419_s20  ;;  %s1427_s22 = sphi %s1471_s22, %s13_s22   ;;  %s1423_s21 = sphi %s1469_s21, %s1811_s21   ;;  %s1419_s20 = sphi %s1467_s20, %s1810_s20   ;;  %s1415_s19 = sphi %s1465_s19, %s1809_s19   ;;  %s1411_s18 = sphi %s1463_s18, %s1808_s18   ;;  %s1407_s17 = sphi %s1461_s17, %s1807_s17   ;;  %s1403_s16 = sphi %s1459_s16, %s1806_s16   ;;  %s1399_s15 = sphi %s1457_s15, %s1805_s15   ;;  %s1395_s14 = sphi %s1455_s14, %s1804_s14   ;;  %s1391_s13 = sphi %s1453_s13, %s1803_s13   ;;  %s1387_s12 = sphi %s1451_s12, %s1802_s12  }
   0xa   : > { %p26_p0 = scmp.ge.s32.totalorder %s25_s24, 6  ;;  %s28_s25 = sadd.s32 1, %s1423_s21 }
   0xb   : > { %s41_s26 = sadd.s32 1, %s1407_s17  ;;  %p48_p1 = scmp.ne.s32.totalorder %s1407_s17, %s1403_s16 }
   0xc   : > { %s1813_s24 = smov (%p26_p0, %s25_s24), 0  ;;  %s1815_s25 = smov (!%p26_p0, %s28_s25), %s1423_s21 }
   0xd   : > { %s37_s27 = ssub.s32 %s1419_s20, %s1813_s24  ;;  %p49_p2 = scmp.eq.s32.totalorder %s1427_s22, 0 }
   0xe   : > { %p30_p3 = scmp.ge.s32.totalorder %s1815_s25, 2  ;;  %p39_p4 = scmp.eq.s32.totalorder %s37_s27, 0 }
   0xf   : > { %p1518_p5 = por %p49_p2, %p48_p1  ;;  %s69_s29 = sadd.s32 1, %s1399_s15 }
  0x10   : > { %s1817_s25 = smov (%p30_p3, %s1815_s25), 0  ;;  %p76_p6 = scmp.ne.s32.totalorder %s1399_s15, %s1395_s14 }
  0x11   : > { %1796 = sst [smem:[#allocation6_spill]] %s1817_s25  ;;  %s65_s4 = ssub.s32 %s1423_s21, %s1817_s25 }
  0x12   : > { %s1526_s30 = scalar_select %p39_p4, %s1407_s17, %s41_s26  }
  0x13   : > { %s66_s5 = sor.u32 %s65_s4, %s37_s27  ;;  %p121_p7 = scmp.eq.s32.totalorder %s65_s4, 0 }
  0x14   : > { %p67_p8 = scmp.eq.s32.totalorder %s66_s5, 0  ;;  %p1532_p9 = por %p76_p6, %p49_p2 }
  0x15   : > { %s123_s7 = sadd.s32 1, %s1391_s13  ;;  %p133_p10 = scmp.ne.s32.totalorder %s1391_s13, %s1387_s12 }
  0x16   : > { %s1540_s8 = scalar_select %p67_p8, %s1399_s15, %s69_s29  }
  0x17   : > { %s1543_s9 = scalar_select %p121_p7, %s1391_s13, %s123_s7  }
  0x18   : > { %p134_p11 = scmp.eq.s32.totalorder %s1095_s23, 11  ;;  %p1098_p13 = scmp.ge.s32.totalorder %s1427_s22, 12 }
  0x1a   : > { %p1545_p12 = por %p134_p11, %p133_p10  ;;  %156 = sbr.rel (%p1098_p13) target bundleno = 76 (0x4c), region = 16 }
  0x1f   : > { %159 = sbr.rel (!%p1518_p5) target bundleno = 42 (0x2a), region = 20  ;;  %s161_s11 = sand.u32 (%p1518_p5), 1, %s1407_s17  }
  0x20   : > { %s1168_s26 = smul.u32 (%p1518_p5), 12, %s1419_s20  ;;  %s1799_s0 = sld [smem:[#allocation7_spill]] (%p1518_p5) }
  0x21   : > { %s1171_s27 = smul.u32 (%p1518_p5), 24, %s161_s11 }
  0x23   : > { %s163_s23 = scalar_lea.vmem (%p1518_p5), [#allocation3], %s1171_s27 }
  0x26   : > { %s169_s5 = scalar_lea.vmem %s1799_s0, %s1168_s26 }
  0x27   : > { %v184_v0 = vld [vmem:[%s169_s5] sm:$0xff]  ;;  %v186_v1 = vld [vmem:[%s169_s5 + $0x48] sm:$0xff]  ;;  %v1102_v3 = vld [vmem:[%s169_s5 + $0x50] sm:$0xf] }
  0x28   : > { %v1100_v2 = vld [vmem:[%s169_s5 + $0x8] sm:$0xf]  ;;  %185 = vst [vmem:[%s163_s23] sm:$0xff] %v184_v0  ;;  %187 = vst [vmem:[%s163_s23 + $0xc] sm:$0xff] %v186_v1 }
  0x29   : > { %1101 = vst [vmem:[%s163_s23 + $0x8] sm:$0xf] %v1100_v2  ;;  %1103 = vst [vmem:[%s163_s23 + $0x14] sm:$0xf] %v1102_v3 }
  0x2a PF: > { %205 = sbr.rel (!%p1532_p9) target bundleno = 76 (0x4c), region = 46  ;;  %s207_s28 = sand.u32 (%p1532_p9), 1, %s1399_s15  }
  0x2b   : > { %s1172_s7 = smul.u32 (%p1532_p9), 384, %s207_s28  ;;  %s1104_s11 = sshll.u32 (%p1532_p9), %s1423_s21, 1 }
  0x2c   : > { %s1169_s26 = smul.u32 (%p1532_p9), 192, %s1419_s20  ;;  %s1800_s1 = sld [smem:[#allocation8_spill]] (%p1532_p9) }
  0x2d   : > { %s1570_s6 = scalar_lea.vmem (%p1532_p9), [#allocation4], %s1172_s7 }
  0x2e   : > { %s213_s29 = sadd.s32 (%p1532_p9), %s1169_s26, %s1104_s11 }
  0x2f   : > { %s1106_s4 = sshll.u32 %s213_s29, 2 }
  0x32   : > { %s1565_s25 = scalar_lea.vmem %s1800_s1, %s1106_s4 }
  0x33   : > { %v338_v4 = vld [vmem:[%s1565_s25] sm:$0xff]  ;;  %v340_v5 = vld [vmem:[%s1565_s25 + $0x10] sm:$0xff] }
  0x34   : > { %v342_v6 = vld [vmem:[%s1565_s25 + $0x20] sm:$0xff]  ;;  %339 = vst [vmem:[%s1570_s6] sm:$0xff] %v338_v4  ;;  %341 = vst [vmem:[%s1570_s6 + $0x8] sm:$0xff] %v340_v5  ;;  %v344_v7 = vld [vmem:[%s1565_s25 + $0x30] sm:$0xff] }
  0x35   : > { %343 = vst [vmem:[%s1570_s6 + $0x10] sm:$0xff] %v342_v6  ;;  %v346_v8 = vld [vmem:[%s1565_s25 + $0x40] sm:$0xff]  ;;  %v348_v9 = vld [vmem:[%s1565_s25 + $0x50] sm:$0xff]  ;;  %345 = vst [vmem:[%s1570_s6 + $0x18] sm:$0xff] %v344_v7 }
  0x36   : > { %347 = vst [vmem:[%s1570_s6 + $0x20] sm:$0xff] %v346_v8  ;;  %349 = vst [vmem:[%s1570_s6 + $0x28] sm:$0xff] %v348_v9  ;;  %v350_v10 = vld [vmem:[%s1565_s25 + $0x60] sm:$0xff]  ;;  %v352_v11 = vld [vmem:[%s1565_s25 + $0x70] sm:$0xff] }
  0x37   : > { %v354_v12 = vld [vmem:[%s1565_s25 + $0x80] sm:$0xff]  ;;  %351 = vst [vmem:[%s1570_s6 + $0x30] sm:$0xff] %v350_v10  ;;  %353 = vst [vmem:[%s1570_s6 + $0x38] sm:$0xff] %v352_v11  ;;  %v356_v13 = vld [vmem:[%s1565_s25 + $0x90] sm:$0xff] }
  0x38   : > { %355 = vst [vmem:[%s1570_s6 + $0x40] sm:$0xff] %v354_v12  ;;  %v358_v14 = vld [vmem:[%s1565_s25 + $0xa0] sm:$0xff]  ;;  %v360_v15 = vld [vmem:[%s1565_s25 + $0xb0] sm:$0xff]  ;;  %357 = vst [vmem:[%s1570_s6 + $0x48] sm:$0xff] %v356_v13 }
  0x39   : > { %359 = vst [vmem:[%s1570_s6 + $0x50] sm:$0xff] %v358_v14  ;;  %361 = vst [vmem:[%s1570_s6 + $0x58] sm:$0xff] %v360_v15  ;;  %v362_v16 = vld [vmem:[%s1565_s25 + $0xc0] sm:$0xff]  ;;  %v364_v17 = vld [vmem:[%s1565_s25 + $0xd0] sm:$0xff] }
  0x3a   : > { %v366_v18 = vld [vmem:[%s1565_s25 + $0xe0] sm:$0xff]  ;;  %363 = vst [vmem:[%s1570_s6 + $0x60] sm:$0xff] %v362_v16  ;;  %365 = vst [vmem:[%s1570_s6 + $0x68] sm:$0xff] %v364_v17  ;;  %v368_v19 = vld [vmem:[%s1565_s25 + $0xf0] sm:$0xff] }
  0x3b   : > { %367 = vst [vmem:[%s1570_s6 + $0x70] sm:$0xff] %v366_v18  ;;  %v370_v20 = vld [vmem:[%s1565_s25 + $0x100] sm:$0xff]  ;;  %v372_v21 = vld [vmem:[%s1565_s25 + $0x110] sm:$0xff]  ;;  %369 = vst [vmem:[%s1570_s6 + $0x78] sm:$0xff] %v368_v19 }
  0x3c   : > { %371 = vst [vmem:[%s1570_s6 + $0x80] sm:$0xff] %v370_v20  ;;  %373 = vst [vmem:[%s1570_s6 + $0x88] sm:$0xff] %v372_v21  ;;  %v374_v22 = vld [vmem:[%s1565_s25 + $0x120] sm:$0xff]  ;;  %v376_v23 = vld [vmem:[%s1565_s25 + $0x130] sm:$0xff] }
  0x3d   : > { %v378_v24 = vld [vmem:[%s1565_s25 + $0x140] sm:$0xff]  ;;  %375 = vst [vmem:[%s1570_s6 + $0x90] sm:$0xff] %v374_v22  ;;  %377 = vst [vmem:[%s1570_s6 + $0x98] sm:$0xff] %v376_v23  ;;  %v380_v25 = vld [vmem:[%s1565_s25 + $0x150] sm:$0xff] }
  0x3e   : > { %379 = vst [vmem:[%s1570_s6 + $0xa0] sm:$0xff] %v378_v24  ;;  %v382_v26 = vld [vmem:[%s1565_s25 + $0x160] sm:$0xff]  ;;  %v384_v27 = vld [vmem:[%s1565_s25 + $0x170] sm:$0xff]  ;;  %381 = vst [vmem:[%s1570_s6 + $0xa8] sm:$0xff] %v380_v25 }
  0x3f   : > { %383 = vst [vmem:[%s1570_s6 + $0xb0] sm:$0xff] %v382_v26  ;;  %385 = vst [vmem:[%s1570_s6 + $0xb8] sm:$0xff] %v384_v27  ;;  %v386_v28 = vld [vmem:[%s1565_s25 + $0x180] sm:$0xff]  ;;  %v388_v29 = vld [vmem:[%s1565_s25 + $0x190] sm:$0xff] }
  0x40   : > { %v390_v30 = vld [vmem:[%s1565_s25 + $0x1a0] sm:$0xff]  ;;  %387 = vst [vmem:[%s1570_s6 + $0xc0] sm:$0xff] %v386_v28  ;;  %389 = vst [vmem:[%s1570_s6 + $0xc8] sm:$0xff] %v388_v29  ;;  %v392_v31 = vld [vmem:[%s1565_s25 + $0x1b0] sm:$0xff] }
  0x41   : > { %391 = vst [vmem:[%s1570_s6 + $0xd0] sm:$0xff] %v390_v30  ;;  %v394_v32 = vld [vmem:[%s1565_s25 + $0x1c0] sm:$0xff]  ;;  %v396_v33 = vld [vmem:[%s1565_s25 + $0x1d0] sm:$0xff]  ;;  %393 = vst [vmem:[%s1570_s6 + $0xd8] sm:$0xff] %v392_v31 }
  0x42   : > { %395 = vst [vmem:[%s1570_s6 + $0xe0] sm:$0xff] %v394_v32  ;;  %397 = vst [vmem:[%s1570_s6 + $0xe8] sm:$0xff] %v396_v33  ;;  %v398_v34 = vld [vmem:[%s1565_s25 + $0x1e0] sm:$0xff]  ;;  %v400_v35 = vld [vmem:[%s1565_s25 + $0x1f0] sm:$0xff] }
  0x43   : > { %v402_v36 = vld [vmem:[%s1565_s25 + $0x200] sm:$0xff]  ;;  %399 = vst [vmem:[%s1570_s6 + $0xf0] sm:$0xff] %v398_v34  ;;  %401 = vst [vmem:[%s1570_s6 + $0xf8] sm:$0xff] %v400_v35  ;;  %v404_v37 = vld [vmem:[%s1565_s25 + $0x210] sm:$0xff] }
  0x44   : > { %403 = vst [vmem:[%s1570_s6 + $0x100] sm:$0xff] %v402_v36  ;;  %v406_v38 = vld [vmem:[%s1565_s25 + $0x220] sm:$0xff]  ;;  %v408_v39 = vld [vmem:[%s1565_s25 + $0x230] sm:$0xff]  ;;  %405 = vst [vmem:[%s1570_s6 + $0x108] sm:$0xff] %v404_v37 }
  0x45   : > { %407 = vst [vmem:[%s1570_s6 + $0x110] sm:$0xff] %v406_v38  ;;  %409 = vst [vmem:[%s1570_s6 + $0x118] sm:$0xff] %v408_v39  ;;  %v410_v40 = vld [vmem:[%s1565_s25 + $0x240] sm:$0xff]  ;;  %v412_v41 = vld [vmem:[%s1565_s25 + $0x250] sm:$0xff] }
  0x46   : > { %v414_v42 = vld [vmem:[%s1565_s25 + $0x260] sm:$0xff]  ;;  %411 = vst [vmem:[%s1570_s6 + $0x120] sm:$0xff] %v410_v40  ;;  %413 = vst [vmem:[%s1570_s6 + $0x128] sm:$0xff] %v412_v41  ;;  %v416_v43 = vld [vmem:[%s1565_s25 + $0x270] sm:$0xff] }
  0x47   : > { %415 = vst [vmem:[%s1570_s6 + $0x130] sm:$0xff] %v414_v42  ;;  %v418_v44 = vld [vmem:[%s1565_s25 + $0x280] sm:$0xff]  ;;  %v420_v45 = vld [vmem:[%s1565_s25 + $0x290] sm:$0xff]  ;;  %417 = vst [vmem:[%s1570_s6 + $0x138] sm:$0xff] %v416_v43 }
  0x48   : > { %419 = vst [vmem:[%s1570_s6 + $0x140] sm:$0xff] %v418_v44  ;;  %421 = vst [vmem:[%s1570_s6 + $0x148] sm:$0xff] %v420_v45  ;;  %v422_v46 = vld [vmem:[%s1565_s25 + $0x2a0] sm:$0xff]  ;;  %v424_v47 = vld [vmem:[%s1565_s25 + $0x2b0] sm:$0xff] }
  0x49   : > { %v426_v48 = vld [vmem:[%s1565_s25 + $0x2c0] sm:$0xff]  ;;  %423 = vst [vmem:[%s1570_s6 + $0x150] sm:$0xff] %v422_v46  ;;  %425 = vst [vmem:[%s1570_s6 + $0x158] sm:$0xff] %v424_v47  ;;  %v428_v49 = vld [vmem:[%s1565_s25 + $0x2d0] sm:$0xff] }
  0x4a   : > { %427 = vst [vmem:[%s1570_s6 + $0x160] sm:$0xff] %v426_v48  ;;  %v430_v50 = vld [vmem:[%s1565_s25 + $0x2e0] sm:$0xff]  ;;  %v432_v51 = vld [vmem:[%s1565_s25 + $0x2f0] sm:$0xff]  ;;  %429 = vst [vmem:[%s1570_s6 + $0x168] sm:$0xff] %v428_v49 }
  0x4b   : > { %431 = vst [vmem:[%s1570_s6 + $0x170] sm:$0xff] %v430_v50  ;;  %433 = vst [vmem:[%s1570_s6 + $0x178] sm:$0xff] %v432_v51 }
  0x4c PF: > { %p1107_p0 = scmp.ge.s32.totalorder %s1427_s22, 1  ;;  %p446_p1 = scmp.lt.s32.totalorder %s1427_s22, 13 }
  0x4e   : > { %p447_p2 = pnand %p1107_p0, %p446_p1 }
  0x4f   : > { %s453_s0 = sand.u32 (!%p447_p2), 1, %s1403_s16   ;;  %s460_s5 = sand.u32 (!%p447_p2), 1, %s1395_s14  }
  0x50   : > { %450 = sbr.rel (%p447_p2) target bundleno = 386 (0x182), region = 88  ;;  %s487_s28 = sand.u32 (!%p447_p2), 1, %s1387_s12  }
  0x51   : > { %s1173_s23 = smul.u32 (!%p447_p2), 24, %s453_s0  ;;  %s1108_s7 = sshll.u32 (!%p447_p2), %s487_s28, 5 }
  0x52   : > { %s1174_s25 = smul.u32 (!%p447_p2), 384, %s460_s5  ;;  %s1109_s11 = sshll.u32 (!%p447_p2), %s1415_s19, 1 }
  0x53   : > { %p495_p3 = scmp.lt.s32.totalorder (!%p447_p2), %s1109_s11, 3  ;;  %s1677_s27 = scalar_lea.vmem (!%p447_p2), [#allocation3], %s1173_s23 }
  0x54   : > { %s1679_s6 = scalar_lea.vmem (!%p447_p2), [#allocation4], %s1174_s25  ;;  %s1681_s1 = scalar_lea.vmem (!%p447_p2), [#allocation5], %s1108_s7 }
  0x55   : > { %s1819_s11 = smov (!%p495_p3, %s1109_s11), 3  ;;  %p1110_p4 = scmp.ne.s32.totalorder %s1411_s18, 0 }
  0x56   : > { %s497_s4 = scalar_lea.vmem %s1790_s2, %s1819_s11 }
  0x57   : > { %505 = sbr.rel (%p1110_p4) target bundleno = 95 (0x5f), region = 100 }
  0x5c   : > { %v1429_v52 = vmov 0.0  }
  0x5d   : > { %506 = vst [vmem:[#allocation2 + $0x10] sm:$0xff] %v1429_v52  ;;  %507 = vst [vmem:[#allocation2] sm:$0xff] %v1429_v52 }
  0x5e   : > { %508 = vst [vmem:[#allocation2 + $0x18] sm:$0xff] %v1429_v52  ;;  %509 = vst [vmem:[#allocation2 + $0x8] sm:$0xff] %v1429_v52 }
  0x5f PF: > { %v1265_v53 = vld [vmem:[%s1679_s6 + $0x74] ss:$8 sps:$4 sm:$0xff]   ;;  %v1267_v54 = vld [vmem:[%s1679_s6 + $0x70] ss:$8 sps:$4 sm:$0xff]   ;;  %v1430_v55 = vmov 0   ;;  %p1162_p5 = scmp.ne.s32.totalorder %s1411_s18, 5 }
  0x60   : > { %897 = vmatprep.mubr.bf16.mxu1 %v1430_v55  ;;  %822 = vmatprep.subr.bf16.mxu0 %v1265_v53  ;;  %v1268_v56 = vld [vmem:[%s1679_s6 + $0x64] ss:$8 sps:$4 sm:$0xff]   ;;  %v1270_v57 = vld [vmem:[%s1679_s6 + $0x60] ss:$8 sps:$4 sm:$0xff]   ;;  %v1271_v58 = vld [vmem:[%s1679_s6 + $0x54] ss:$8 sps:$4 sm:$0xff]  }
  0x61   : > { %823 = vmatpush1.bf16.msra.mxu0 %v1267_v54  ;;  %v1273_v59 = vld [vmem:[%s1679_s6 + $0x50] ss:$8 sps:$4 sm:$0xff]   ;;  %v1274_v60 = vld [vmem:[%s1679_s6 + $0x44] ss:$8 sps:$4 sm:$0xff]   ;;  %v1286_v61 = vld [vmem:[%s1679_s6 + $0x174] ss:$8 sps:$4 sm:$0xff]  }
  0x62   : > { %824 = vmatprep.subr.bf16.mxu0 %v1268_v56  ;;  %v1288_v62 = vld [vmem:[%s1679_s6 + $0x170] ss:$8 sps:$4 sm:$0xff]   ;;  %v1276_v63 = vld [vmem:[%s1679_s6 + $0x40] ss:$8 sps:$4 sm:$0xff]   ;;  %v1277_v0 = vld [vmem:[%s1679_s6 + $0x34] ss:$8 sps:$4 sm:$0xff]   ;;  %865 = vmatprep.subr.bf16.mxu1 %v1286_v61 }
  0x63   : > { %v1292_v1 = vld [vmem:[%s1679_s6 + $0x164] ss:$8 sps:$4 sm:$0xff]   ;;  %866 = vmatpush1.bf16.msra.mxu1 %v1288_v62  ;;  %v1294_v2 = vld [vmem:[%s1679_s6 + $0x160] ss:$8 sps:$4 sm:$0xff]   ;;  %v1279_v3 = vld [vmem:[%s1679_s6 + $0x30] ss:$8 sps:$4 sm:$0xff]  }
  0x64   : > { %867 = vmatprep.subr.bf16.mxu1 %v1292_v1  ;;  %v1298_v4 = vld [vmem:[%s1679_s6 + $0x154] ss:$8 sps:$4 sm:$0xff]   ;;  %v1280_v5 = vld [vmem:[%s1679_s6 + $0x24] ss:$8 sps:$4 sm:$0xff]   ;;  %v1300_v6 = vld [vmem:[%s1679_s6 + $0x150] ss:$8 sps:$4 sm:$0xff]  }
  0x65   : > { %825 = vmatpush1.bf16.msra.mxu0 %v1270_v57  ;;  %v1304_v7 = vld [vmem:[%s1679_s6 + $0x144] ss:$8 sps:$4 sm:$0xff]   ;;  %v1282_v8 = vld [vmem:[%s1679_s6 + $0x20] ss:$8 sps:$4 sm:$0xff]   ;;  %v1283_v9 = vld [vmem:[%s1679_s6 + $0x14] ss:$8 sps:$4 sm:$0xff]  }
  0x66   : > { %826 = vmatprep.subr.bf16.mxu0 %v1271_v58  ;;  %v1306_v10 = vld [vmem:[%s1679_s6 + $0x140] ss:$8 sps:$4 sm:$0xff]   ;;  %v1310_v11 = vld [vmem:[%s1679_s6 + $0x134] ss:$8 sps:$4 sm:$0xff]   ;;  %v1285_v12 = vld [vmem:[%s1679_s6 + $0x10] ss:$8 sps:$4 sm:$0xff]  }
  0x67   : > { %868 = vmatpush1.bf16.msra.mxu1 %v1294_v2  ;;  %v1289_v13 = vld [vmem:[%s1679_s6 + $0x4] ss:$8 sps:$4 sm:$0xff]   ;;  %v1312_v14 = vld [vmem:[%s1679_s6 + $0x130] ss:$8 sps:$4 sm:$0xff]   ;;  %v1291_v16 = vld [vmem:[%s1679_s6] ss:$8 sps:$4 sm:$0xff]  }
  0x68   : > { %869 = vmatprep.subr.bf16.mxu1 %v1298_v4  ;;  %v1316_v15 = vld [vmem:[%s1679_s6 + $0x124] ss:$8 sps:$4 sm:$0xff]   ;;  %v1295_v17 = vld [vmem:[%s1679_s6 + $0xf4] ss:$8 sps:$4 sm:$0xff]   ;;  %v1318_v18 = vld [vmem:[%s1679_s6 + $0x120] ss:$8 sps:$4 sm:$0xff]  }
  0x69   : > { %827 = vmatpush1.bf16.msra.mxu0 %v1273_v59  ;;  %v1322_v19 = vld [vmem:[%s1679_s6 + $0x114] ss:$8 sps:$4 sm:$0xff]   ;;  %v1297_v20 = vld [vmem:[%s1679_s6 + $0xf0] ss:$8 sps:$4 sm:$0xff]   ;;  %v1301_v21 = vld [vmem:[%s1679_s6 + $0xe4] ss:$8 sps:$4 sm:$0xff]  }
  0x6a   : > { %828 = vmatprep.subr.bf16.mxu0 %v1274_v60  ;;  %v1324_v22 = vld [vmem:[%s1679_s6 + $0x110] ss:$8 sps:$4 sm:$0xff]   ;;  %v1328_v23 = vld [vmem:[%s1679_s6 + $0x104] ss:$8 sps:$4 sm:$0xff]   ;;  %v1303_v25 = vld [vmem:[%s1679_s6 + $0xe0] ss:$8 sps:$4 sm:$0xff]  }
  0x6b   : > { %870 = vmatpush1.bf16.msra.mxu1 %v1300_v6  ;;  %v1340_v24 = vld [vmem:[%s1677_s27 + $0x4] ss:$12 sps:$4 sm:$0xff]   ;;  %v1334_v30 = vld [vmem:[%s1677_s27 + $0x8] ss:$12 sps:$4 sm:$0xff]   ;;  %v1338_v40 = vld [vmem:[%s1677_s27] ss:$12 sps:$4 sm:$0xff]  }
  0x6c   : > { %871 = vmatprep.subr.bf16.mxu1 %v1304_v7  ;;  %v1307_v26 = vld [vmem:[%s1679_s6 + $0xd4] ss:$8 sps:$4 sm:$0xff]   ;;  %854 = vmatprep.mubr.bf16.mxu0 %v1340_v24  ;;  %v1330_v27 = vld [vmem:[%s1679_s6 + $0x100] ss:$8 sps:$4 sm:$0xff]   ;;  %v1309_v28 = vld [vmem:[%s1679_s6 + $0xd0] ss:$8 sps:$4 sm:$0xff]  }
  0x6d   : > { %829 = vmatpush1.bf16.msra.mxu0 %v1276_v63  ;;  %v1313_v29 = vld [vmem:[%s1679_s6 + $0xc4] ss:$8 sps:$4 sm:$0xff]   ;;  %v1315_v31 = vld [vmem:[%s1679_s6 + $0xc0] ss:$8 sps:$4 sm:$0xff]   ;;  %v1319_v32 = vld [vmem:[%s1679_s6 + $0xb4] ss:$8 sps:$4 sm:$0xff]  }
  0x6e   : > { %830 = vmatprep.subr.bf16.mxu0 %v1277_v0  ;;  %v1321_v33 = vld [vmem:[%s1679_s6 + $0xb0] ss:$8 sps:$4 sm:$0xff]   ;;  %v1325_v34 = vld [vmem:[%s1679_s6 + $0xa4] ss:$8 sps:$4 sm:$0xff]   ;;  %v1327_v35 = vld [vmem:[%s1679_s6 + $0xa0] ss:$8 sps:$4 sm:$0xff]  }
  0x6f   : > { %872 = vmatpush1.bf16.msra.mxu1 %v1306_v10  ;;  %v1331_v36 = vld [vmem:[%s1679_s6 + $0x94] ss:$8 sps:$4 sm:$0xff]   ;;  %v1333_v37 = vld [vmem:[%s1679_s6 + $0x90] ss:$8 sps:$4 sm:$0xff]   ;;  %v1335_v38 = vld [vmem:[%s1679_s6 + $0x84] ss:$8 sps:$4 sm:$0xff]  }
  0x70   : > { %873 = vmatprep.subr.bf16.mxu1 %v1310_v11  ;;  %v1337_v39 = vld [vmem:[%s1679_s6 + $0x80] ss:$8 sps:$4 sm:$0xff]   ;;  %v511_v47 = vld [vmem:[#allocation2] sm:$0xff]  ;;  %v513_v56 = vld [vmem:[#allocation2 + $0x8] sm:$0xff] }
  0x71   : > { %831 = vmatpush1.bf16.msra.mxu0 %v1279_v3  ;;  %v510_v43 = vld [vmem:[#allocation2 + $0x10] sm:$0xff]  ;;  %v512_v51 = vld [vmem:[#allocation2 + $0x18] sm:$0xff] }
  0x72   : > { %832 = vmatprep.subr.bf16.mxu0 %v1280_v5 }
  0x73   : > { %874 = vmatpush1.bf16.msra.mxu1 %v1312_v14 }
  0x74   : > { %875 = vmatprep.subr.bf16.mxu1 %v1316_v15 }
  0x75   : > { %833 = vmatpush1.bf16.msra.mxu0 %v1282_v8 }
  0x76   : > { %834 = vmatprep.subr.bf16.mxu0 %v1283_v9 }
  0x77   : > { %876 = vmatpush1.bf16.msra.mxu1 %v1318_v18 }
  0x78   : > { %877 = vmatprep.subr.bf16.mxu1 %v1322_v19 }
  0x79   : > { %835 = vmatpush1.bf16.msra.mxu0 %v1285_v12 }
  0x7a   : > { %836 = vmatprep.subr.bf16.mxu0 %v1289_v13 }
  0x7b   : > { %878 = vmatpush1.bf16.msra.mxu1 %v1324_v22 }
  0x7c   : > { %879 = vmatprep.subr.bf16.mxu1 %v1328_v23 }
  0x7d   : > { %837 = vmatpush1.bf16.msra.mxu0 %v1291_v16 }
  0x7e   : > { %838 = vmatprep.subr.bf16.mxu0 %v1295_v17 }
  0x7f   : > { %880 = vmatpush1.bf16.msra.mxu1 %v1330_v27 }
  0x81   : > { %839 = vmatpush2.bf16.msra.mxu0 %v1297_v20 }
  0x82   : > { %840 = vmatprep.subr.bf16.mxu0 %v1301_v21  ;;  %898 = vmatmul.mubr.bf16.vlgmr.msra.gmra.mxu1 %v1334_v30 }
  0x85   : > { %841 = vmatpush2.bf16.msra.mxu0 %v1303_v25 }
  0x86   : > { %842 = vmatprep.subr.bf16.mxu0 %v1307_v26 }
  0x89   : > { %843 = vmatpush2.bf16.msra.mxu0 %v1309_v28 }
  0x8a   : > { %844 = vmatprep.subr.bf16.mxu0 %v1313_v29 }
  0x8d   : > { %845 = vmatpush2.bf16.msra.mxu0 %v1315_v31 }
  0x8e   : > { %846 = vmatprep.subr.bf16.mxu0 %v1319_v32 }
  0x91   : > { %847 = vmatpush2.bf16.msra.mxu0 %v1321_v33 }
  0x92   : > { %848 = vmatprep.subr.bf16.mxu0 %v1325_v34 }
  0x95   : > { %849 = vmatpush2.bf16.msra.mxu0 %v1327_v35 }
  0x96   : > { %850 = vmatprep.subr.bf16.mxu0 %v1331_v36 }
  0x99   : > { %851 = vmatpush2.bf16.msra.mxu0 %v1333_v37 }
  0x9a   : > { %852 = vmatprep.subr.bf16.mxu0 %v1335_v38 }
  0x9d   : > { %853 = vmatpush2.bf16.msra.mxu0 %v1337_v39 }
  0xa0   : > { %855 = vmatmul.mubr.bf16.vlgmr.msra.gmra.mxu0 %v1338_v40 }
 0x142   : > { %v899_v41 = vpop.f32.mrf.mxu1 }
 0x144   : > { %v901_v42 = vpop.f32.mrf.mxu1 }
 0x146   : > { %v903_v46 = vpop.f32.mrf.mxu1 }
 0x148   : > { %v905_v55 = vpop.f32.mrf.mxu1 }
 0x160   : > { %v856_v44 = vpop.f32.mrf.mxu0 }
 0x161   : > { %v900_v45 = vadd.f32 %v899_v41, %v856_v44 }
 0x162   : > { %v858_v48 = vpop.f32.mrf.mxu0 }
 0x163   : > { %v908_v49 = vadd.f32 %v900_v45, %v510_v43  ;;  %v902_v50 = vadd.f32 %v901_v42, %v858_v48 }
 0x164   : > { %v860_v52 = vpop.f32.mrf.mxu0 }
 0x165   : > { %912 = vst [vmem:[#allocation2 + $0x10] sm:$0xff] %v908_v49  ;;  %v909_v53 = vadd.f32 %v902_v50, %v511_v47  ;;  %v904_v54 = vadd.f32 %v903_v46, %v860_v52 }
 0x166   : > { %v862_v57 = vpop.f32.mrf.mxu0 }
 0x167   : > { %913 = vst [vmem:[#allocation2] sm:$0xff] %v909_v53  ;;  %v910_v58 = vadd.f32 %v904_v54, %v512_v51  ;;  %v906_v59 = vadd.f32 %v905_v55, %v862_v57  ;;  %919 = sbr.rel (%p1162_p5) target bundleno = 378 (0x17a), region = 104 }
 0x169   : > { %914 = vst [vmem:[#allocation2 + $0x18] sm:$0xff] %v910_v58  ;;  %v911_v60 = vadd.f32 %v906_v59, %v513_v56 }
 0x16b   : > { %915 = vst [vmem:[#allocation2 + $0x8] sm:$0xff] %v911_v60 }
 0x16c   : > { %v926_v61 = vlaneseq  ;;  %v924_v63 = vld [vmem:[%s497_s4] sm:$0x3]  ;;  %v920_v0 = vld [vmem:[#allocation2 + $0x10] sm:$0xff] }
 0x16e   : > { %v927_v62 = vshrl.u32 %v926_v61, 7  ;;  %v921_v3 = vld [vmem:[#allocation2] sm:$0xff] }
 0x170   : > { %v928_v1 = vsub.s32 0, %v927_v62  ;;  %v932_v2 = vsub.s32 1, %v927_v62  ;;  %v922_v4 = vld [vmem:[#allocation2 + $0x18] sm:$0xff] }
 0x172   : > { %v923_v5 = vld [vmem:[#allocation2 + $0x8] sm:$0xff]  ;;  %v929_v6 = vrot.slane %v924_v63, %v928_v1  ;;  %v933_v7 = vrot.slane %v924_v63, %v932_v2 }
 0x174   : > { %v936_v8 = vadd.f32 %v929_v6, %v920_v0  ;;  %v937_v9 = vadd.f32 %v933_v7, %v921_v3  ;;  %v938_v10 = vadd.f32 %v929_v6, %v922_v4  ;;  %v939_v11 = vadd.f32 %v933_v7, %v923_v5 }
 0x176   : > { %v940_v12 = vmax.f32 %v936_v8, 0.0  ;;  %v941_v13 = vmax.f32 %v937_v9, 0.0  ;;  %v942_v14 = vmax.f32 %v938_v10, 0.0  ;;  %v943_v15 = vmax.f32 %v939_v11, 0.0 }
 0x178   : > { %944 = vst [vmem:[%s1681_s1] sm:$0xff] %v940_v12  ;;  %945 = vst [vmem:[%s1681_s1 + $0x8] sm:$0xff] %v941_v13 }
 0x179   : > { %946 = vst [vmem:[%s1681_s1 + $0x10] sm:$0xff] %v942_v14  ;;  %947 = vst [vmem:[%s1681_s1 + $0x18] sm:$0xff] %v943_v15 }
 0x17a PF: > { %954 = sbr.rel (!%p1545_p12) target bundleno = 386 (0x182), region = 108  ;;  %s1170_s16 = sshll.u32 (%p1545_p12), %s1415_s19, 4 }
 0x17b   : > { %s960_s5 = scalar_lea.vmem (%p1545_p12), %s1791_s3, %s1170_s16 }
 0x17f   : > { %v973_v16 = vld [vmem:[%s1681_s1] sm:$0xff]  ;;  %v975_v17 = vld [vmem:[%s1681_s1 + $0x8] sm:$0xff] }
 0x180   : > { %v977_v18 = vld [vmem:[%s1681_s1 + $0x10] sm:$0xff]  ;;  %v979_v19 = vld [vmem:[%s1681_s1 + $0x18] sm:$0xff]  ;;  %974 = vst [vmem:[%s960_s5] sm:$0xff] %v973_v16  ;;  %976 = vst [vmem:[%s960_s5 + $0x8] sm:$0xff] %v975_v17 }
 0x181   : > { %978 = vst [vmem:[%s960_s5 + $0x20] sm:$0xff] %v977_v18  ;;  %980 = vst [vmem:[%s960_s5 + $0x28] sm:$0xff] %v979_v19 }
 0x182 PF: > { %s13_s22 = sadd.s32 1, %s1427_s22   ;;  %s1801_s10 = sld [smem:[#allocation6_spill]] }
 0x183   : > { %p10_p6 = scmp.ge.s32.totalorder %s13_s22, 14   ;;  %s1802_s12 = smov %s1391_s13 }
 0x184   : > { %s1803_s13 = smov %s1543_s9  ;;  %s1804_s14 = smov %s1399_s15 }
 0x185   : > { %s1805_s15 = smov %s1540_s8  ;;  %s1806_s16 = smov %s1407_s17 }
 0x186   : > { %s1807_s17 = smov %s1526_s30  ;;  %s1808_s18 = smov %s1419_s20 }
 0x187   : > { %s1809_s19 = smov %s1423_s21  ;;  %s1810_s20 = smov %s1813_s24 }
 0x188   : > { %s1811_s21 = smov %s1801_s10  ;;  %12 = sbr.rel (!%p10_p6) target bundleno = 9 (0x9), region = 179 }

// kernel: _lambda_.39
= control target key start
LH: loop header
LB: loop body
LE: loop exit
PB: predicated region body
PF: predicated region fallthrough
CT: control target
= control target key end

     0   :  { %s1053_s12 = smov 0   ;;  %s1055_s13 = smov 0   ;;  %s1241_s0 = inlined_call_operand.vmem [shape: bf16[16,256], index: 0, kind: input, shape index: {}]   ;;  %s1242_s1 = inlined_call_operand.vmem [shape: bf16[256,512], index: 1, kind: input, shape index: {}]   ;;  %s1243_s2 = inlined_call_operand.vmem [shape: f32[1,512], index: 2, kind: input, shape index: {}]   ;;  %s1244_s3 = inlined_call_operand.vmem [shape: f32[16,512], index: 3, kind: output, shape index: {}]  }
   0x1   :  { %s1057_s14 = smov 0   ;;  %s1059_s15 = smov 0  }
   0x2   :  { %s1061_s16 = smov 0  }
   0x3 LB: > { %s28_s17 = sadd.s32 1, %s1027_s15  ;;  %s849_s18 = sadd.s32 4294967295, %s1031_s16   ;;  %s1031_s16 = sphi %s1061_s16, %s13_s16   ;;  %s1027_s15 = sphi %s1059_s15, %s1249_s15   ;;  %s1023_s14 = sphi %s1057_s14, %s1248_s14   ;;  %s1019_s13 = sphi %s1055_s13, %s1247_s13   ;;  %s1015_s12 = sphi %s1053_s12, %s1246_s12  }
   0x4   : > { %p30_p0 = scmp.ge.s32.totalorder %s28_s17, 2  ;;  %p76_p1 = scmp.ne.s32.totalorder %s1019_s13, %s1015_s12 }
   0x5   : > { %p77_p2 = scmp.eq.s32.totalorder %s1031_s16, 0  ;;  %p134_p4 = scmp.eq.s32.totalorder %s849_s18, 1 }
   0x6   : > { %s1251_s17 = smov (%p30_p0, %s28_s17), 0  ;;  %s69_s20 = sadd.s32 1, %s1019_s13 }
   0x7   : > { %p78_p3 = por %p77_p2, %p76_p1  ;;  %s65_s19 = ssub.s32 %s1027_s15, %s1251_s17 }
   0x8   : > { %p67_p5 = scmp.eq.s32.totalorder %s65_s19, 0  ;;  %p1088_p6 = por %p134_p4, %p76_p1 }
   0x9   : > { %p853_p7 = scmp.ge.s32.totalorder %s1031_s16, 2 }
   0xa   : > { %s1093_s22 = scalar_select %p67_p5, %s1019_s13, %s69_s20  }
   0xb   : > { %171 = sbr.rel (%p853_p7) target bundleno = 36 (0x24), region = 20 }
  0x10   : > { %174 = sbr.rel (!%p78_p3) target bundleno = 36 (0x24), region = 24  ;;  %s176_s23 = sand.u32 (%p78_p3), 1, %s1019_s13  }
  0x11   : > { %s900_s24 = sshll.u32 (%p78_p3), %s1027_s15, 3  ;;  %s854_s25 = sshll.u32 (%p78_p3), %s176_s23, 8 }
  0x12   : > { %s1101_s28 = scalar_lea.vmem (%p78_p3), %s1242_s1, %s900_s24  ;;  %s1106_s29 = scalar_lea.vmem (%p78_p3), [#allocation3], %s854_s25 }
  0x13   : > { %v275_v0 = vld [vmem:[%s1101_s28] sm:$0xff] (%p78_p3)  ;;  %v277_v1 = vld [vmem:[%s1101_s28 + $0x10] sm:$0xff] (%p78_p3) }
  0x14   : > { %v279_v2 = vld [vmem:[%s1101_s28 + $0x20] sm:$0xff] (%p78_p3)  ;;  %276 = vst [vmem:[%s1106_s29] sm:$0xff] (%p78_p3), %v275_v0  ;;  %278 = vst [vmem:[%s1106_s29 + $0x8] sm:$0xff] (%p78_p3), %v277_v1  ;;  %v281_v3 = vld [vmem:[%s1101_s28 + $0x30] sm:$0xff] (%p78_p3) }
  0x15   : > { %280 = vst [vmem:[%s1106_s29 + $0x10] sm:$0xff] %v279_v2  ;;  %v283_v4 = vld [vmem:[%s1101_s28 + $0x40] sm:$0xff]  ;;  %v285_v5 = vld [vmem:[%s1101_s28 + $0x50] sm:$0xff]  ;;  %282 = vst [vmem:[%s1106_s29 + $0x18] sm:$0xff] %v281_v3 }
  0x16   : > { %284 = vst [vmem:[%s1106_s29 + $0x20] sm:$0xff] %v283_v4  ;;  %286 = vst [vmem:[%s1106_s29 + $0x28] sm:$0xff] %v285_v5  ;;  %v287_v6 = vld [vmem:[%s1101_s28 + $0x60] sm:$0xff]  ;;  %v289_v7 = vld [vmem:[%s1101_s28 + $0x70] sm:$0xff] }
  0x17   : > { %v291_v8 = vld [vmem:[%s1101_s28 + $0x80] sm:$0xff]  ;;  %288 = vst [vmem:[%s1106_s29 + $0x30] sm:$0xff] %v287_v6  ;;  %290 = vst [vmem:[%s1106_s29 + $0x38] sm:$0xff] %v289_v7  ;;  %v293_v9 = vld [vmem:[%s1101_s28 + $0x90] sm:$0xff] }
  0x18   : > { %292 = vst [vmem:[%s1106_s29 + $0x40] sm:$0xff] %v291_v8  ;;  %v295_v10 = vld [vmem:[%s1101_s28 + $0xa0] sm:$0xff]  ;;  %v297_v11 = vld [vmem:[%s1101_s28 + $0xb0] sm:$0xff]  ;;  %294 = vst [vmem:[%s1106_s29 + $0x48] sm:$0xff] %v293_v9 }
  0x19   : > { %296 = vst [vmem:[%s1106_s29 + $0x50] sm:$0xff] %v295_v10  ;;  %298 = vst [vmem:[%s1106_s29 + $0x58] sm:$0xff] %v297_v11  ;;  %v299_v12 = vld [vmem:[%s1101_s28 + $0xc0] sm:$0xff]  ;;  %v301_v13 = vld [vmem:[%s1101_s28 + $0xd0] sm:$0xff] }
  0x1a   : > { %v303_v14 = vld [vmem:[%s1101_s28 + $0xe0] sm:$0xff]  ;;  %300 = vst [vmem:[%s1106_s29 + $0x60] sm:$0xff] %v299_v12  ;;  %302 = vst [vmem:[%s1106_s29 + $0x68] sm:$0xff] %v301_v13  ;;  %v305_v15 = vld [vmem:[%s1101_s28 + $0xf0] sm:$0xff] }
  0x1b   : > { %304 = vst [vmem:[%s1106_s29 + $0x70] sm:$0xff] %v303_v14  ;;  %v307_v16 = vld [vmem:[%s1101_s28 + $0x100] sm:$0xff]  ;;  %v309_v17 = vld [vmem:[%s1101_s28 + $0x110] sm:$0xff]  ;;  %306 = vst [vmem:[%s1106_s29 + $0x78] sm:$0xff] %v305_v15 }
  0x1c   : > { %308 = vst [vmem:[%s1106_s29 + $0x80] sm:$0xff] %v307_v16  ;;  %310 = vst [vmem:[%s1106_s29 + $0x88] sm:$0xff] %v309_v17  ;;  %v311_v18 = vld [vmem:[%s1101_s28 + $0x120] sm:$0xff]  ;;  %v313_v19 = vld [vmem:[%s1101_s28 + $0x130] sm:$0xff] }
  0x1d   : > { %v315_v20 = vld [vmem:[%s1101_s28 + $0x140] sm:$0xff]  ;;  %312 = vst [vmem:[%s1106_s29 + $0x90] sm:$0xff] %v311_v18  ;;  %314 = vst [vmem:[%s1106_s29 + $0x98] sm:$0xff] %v313_v19  ;;  %v317_v21 = vld [vmem:[%s1101_s28 + $0x150] sm:$0xff] }
  0x1e   : > { %316 = vst [vmem:[%s1106_s29 + $0xa0] sm:$0xff] %v315_v20  ;;  %v319_v22 = vld [vmem:[%s1101_s28 + $0x160] sm:$0xff]  ;;  %v321_v23 = vld [vmem:[%s1101_s28 + $0x170] sm:$0xff]  ;;  %318 = vst [vmem:[%s1106_s29 + $0xa8] sm:$0xff] %v317_v21 }
  0x1f   : > { %320 = vst [vmem:[%s1106_s29 + $0xb0] sm:$0xff] %v319_v22  ;;  %322 = vst [vmem:[%s1106_s29 + $0xb8] sm:$0xff] %v321_v23  ;;  %v323_v24 = vld [vmem:[%s1101_s28 + $0x180] sm:$0xff]  ;;  %v325_v25 = vld [vmem:[%s1101_s28 + $0x190] sm:$0xff] }
  0x20   : > { %v327_v26 = vld [vmem:[%s1101_s28 + $0x1a0] sm:$0xff]  ;;  %324 = vst [vmem:[%s1106_s29 + $0xc0] sm:$0xff] %v323_v24  ;;  %326 = vst [vmem:[%s1106_s29 + $0xc8] sm:$0xff] %v325_v25  ;;  %v329_v27 = vld [vmem:[%s1101_s28 + $0x1b0] sm:$0xff] }
  0x21   : > { %328 = vst [vmem:[%s1106_s29 + $0xd0] sm:$0xff] %v327_v26  ;;  %v331_v28 = vld [vmem:[%s1101_s28 + $0x1c0] sm:$0xff]  ;;  %v333_v29 = vld [vmem:[%s1101_s28 + $0x1d0] sm:$0xff]  ;;  %330 = vst [vmem:[%s1106_s29 + $0xd8] sm:$0xff] %v329_v27 }
  0x22   : > { %332 = vst [vmem:[%s1106_s29 + $0xe0] sm:$0xff] %v331_v28  ;;  %334 = vst [vmem:[%s1106_s29 + $0xe8] sm:$0xff] %v333_v29  ;;  %v335_v30 = vld [vmem:[%s1101_s28 + $0x1e0] sm:$0xff]  ;;  %v337_v31 = vld [vmem:[%s1101_s28 + $0x1f0] sm:$0xff] }
  0x23   : > { %336 = vst [vmem:[%s1106_s29 + $0xf0] sm:$0xff] %v335_v30  ;;  %338 = vst [vmem:[%s1106_s29 + $0xf8] sm:$0xff] %v337_v31 }
  0x24 PF: > { %p857_p8 = scmp.ge.s32.totalorder %s1031_s16, 1  ;;  %p351_p9 = scmp.lt.s32.totalorder %s1031_s16, 3 }
  0x26   : > { %p352_p10 = pnand %p857_p8, %p351_p9 }
  0x27   : > { %s358_s30 = sand.u32 (!%p352_p10), 1, %s1015_s12   ;;  %s860_s10 = sshll.u32 (!%p352_p10), %s1023_s14, 1 }
  0x28   : > { %355 = sbr.rel (%p352_p10) target bundleno = 320 (0x140), region = 66  ;;  %s858_s4 = sshll.u32 (!%p352_p10), %s358_s30, 8 }
  0x29   : > { %s1177_s7 = scalar_lea.vmem (!%p352_p10), [#allocation3], %s858_s4  ;;  %p409_p11 = scmp.lt.s32.totalorder (!%p352_p10), %s860_s10, 3 }
  0x2a   : > { %s859_s20 = sshll.u32 (!%p352_p10), %s358_s30, 5 }
  0x2b   : > { %s393_s23 = scalar_lea.vmem (!%p352_p10), [#allocation4], %s859_s20 }
  0x2d   : > { %v992_v32 = vld [vmem:[%s1241_s0 + $0x4] ss:$8 sps:$4 sm:$0xff]   ;;  %v942_v33 = vld [vmem:[%s1177_s7 + $0x74] ss:$8 sps:$4 sm:$0xff]   ;;  %v944_v34 = vld [vmem:[%s1177_s7 + $0x70] ss:$8 sps:$4 sm:$0xff]   ;;  %v691_v2 = vlaneseq }
  0x2e   : > { %663 = vmatprep.mubr.bf16.mxu0 %v992_v32  ;;  %631 = vmatprep.subr.bf16.mxu0 %v942_v33  ;;  %v945_v35 = vld [vmem:[%s1177_s7 + $0x64] ss:$8 sps:$4 sm:$0xff]   ;;  %v947_v36 = vld [vmem:[%s1177_s7 + $0x60] ss:$8 sps:$4 sm:$0xff]   ;;  %v948_v37 = vld [vmem:[%s1177_s7 + $0x54] ss:$8 sps:$4 sm:$0xff]  }
  0x2f   : > { %632 = vmatpush1.bf16.msra.mxu0 %v944_v34  ;;  %v950_v38 = vld [vmem:[%s1177_s7 + $0x50] ss:$8 sps:$4 sm:$0xff]   ;;  %v951_v39 = vld [vmem:[%s1177_s7 + $0x44] ss:$8 sps:$4 sm:$0xff]   ;;  %v953_v40 = vld [vmem:[%s1177_s7 + $0x40] ss:$8 sps:$4 sm:$0xff]  }
  0x30   : > { %633 = vmatprep.subr.bf16.mxu0 %v945_v35  ;;  %v954_v41 = vld [vmem:[%s1177_s7 + $0x34] ss:$8 sps:$4 sm:$0xff]   ;;  %v956_v42 = vld [vmem:[%s1177_s7 + $0x30] ss:$8 sps:$4 sm:$0xff]   ;;  %v957_v43 = vld [vmem:[%s1177_s7 + $0x24] ss:$8 sps:$4 sm:$0xff]  }
  0x31   : > { %v959_v44 = vld [vmem:[%s1177_s7 + $0x20] ss:$8 sps:$4 sm:$0xff]   ;;  %v960_v45 = vld [vmem:[%s1177_s7 + $0x14] ss:$8 sps:$4 sm:$0xff]   ;;  %v962_v46 = vld [vmem:[%s1177_s7 + $0x10] ss:$8 sps:$4 sm:$0xff]  }
  0x32   : > { %v963_v47 = vld [vmem:[%s1177_s7 + $0x4] ss:$8 sps:$4 sm:$0xff]   ;;  %v965_v48 = vld [vmem:[%s1177_s7] ss:$8 sps:$4 sm:$0xff]   ;;  %v966_v49 = vld [vmem:[%s1177_s7 + $0xf4] ss:$8 sps:$4 sm:$0xff]  }
  0x33   : > { %634 = vmatpush1.bf16.msra.mxu0 %v947_v36  ;;  %v968_v50 = vld [vmem:[%s1177_s7 + $0xf0] ss:$8 sps:$4 sm:$0xff]   ;;  %v969_v51 = vld [vmem:[%s1177_s7 + $0xe4] ss:$8 sps:$4 sm:$0xff]   ;;  %v971_v52 = vld [vmem:[%s1177_s7 + $0xe0] ss:$8 sps:$4 sm:$0xff]  }
  0x34   : > { %635 = vmatprep.subr.bf16.mxu0 %v948_v37  ;;  %v972_v53 = vld [vmem:[%s1177_s7 + $0xd4] ss:$8 sps:$4 sm:$0xff]   ;;  %v974_v54 = vld [vmem:[%s1177_s7 + $0xd0] ss:$8 sps:$4 sm:$0xff]   ;;  %v975_v55 = vld [vmem:[%s1177_s7 + $0xc4] ss:$8 sps:$4 sm:$0xff]  }
  0x35   : > { %v977_v56 = vld [vmem:[%s1177_s7 + $0xc0] ss:$8 sps:$4 sm:$0xff]   ;;  %v978_v57 = vld [vmem:[%s1177_s7 + $0xb4] ss:$8 sps:$4 sm:$0xff]   ;;  %v980_v58 = vld [vmem:[%s1177_s7 + $0xb0] ss:$8 sps:$4 sm:$0xff]  }
  0x36   : > { %v981_v59 = vld [vmem:[%s1177_s7 + $0xa4] ss:$8 sps:$4 sm:$0xff]   ;;  %v983_v60 = vld [vmem:[%s1177_s7 + $0xa0] ss:$8 sps:$4 sm:$0xff]   ;;  %v984_v61 = vld [vmem:[%s1177_s7 + $0x94] ss:$8 sps:$4 sm:$0xff]  }
  0x37   : > { %636 = vmatpush1.bf16.msra.mxu0 %v950_v38  ;;  %v986_v62 = vld [vmem:[%s1177_s7 + $0x90] ss:$8 sps:$4 sm:$0xff]   ;;  %v987_v63 = vld [vmem:[%s1177_s7 + $0x84] ss:$8 sps:$4 sm:$0xff]   ;;  %v989_v0 = vld [vmem:[%s1177_s7 + $0x80] ss:$8 sps:$4 sm:$0xff]  }
  0x38   : > { %637 = vmatprep.subr.bf16.mxu0 %v951_v39  ;;  %v990_v1 = vld [vmem:[%s1241_s0] ss:$8 sps:$4 sm:$0xff]   ;;  %s1253_s10 = smov (!%p409_p11, %s860_s10), 3  ;;  %v692_v3 = vshrl.u32 %v691_v2, 7  ;;  %s901_s12 = sshll.u32 (%p1088_p6), %s1023_s14, 4 }
  0x39   : > { %s411_s19 = scalar_lea.vmem %s1243_s2, %s1253_s10  ;;  %s721_s26 = scalar_lea.vmem (%p1088_p6), %s1244_s3, %s901_s12 }
  0x3a   : > { %v693_v4 = vsub.s32 0, %v692_v3  ;;  %v689_v5 = vld [vmem:[%s411_s19] sm:$0x3]  ;;  %v697_v6 = vsub.s32 1, %v692_v3 }
  0x3b   : > { %638 = vmatpush1.bf16.msra.mxu0 %v953_v40 }
  0x3c   : > { %639 = vmatprep.subr.bf16.mxu0 %v954_v41  ;;  %v694_v7 = vrot.slane %v689_v5, %v693_v4  ;;  %v698_v8 = vrot.slane %v689_v5, %v697_v6 }
  0x3f   : > { %640 = vmatpush1.bf16.msra.mxu0 %v956_v42 }
  0x40   : > { %641 = vmatprep.subr.bf16.mxu0 %v957_v43 }
  0x43   : > { %642 = vmatpush1.bf16.msra.mxu0 %v959_v44 }
  0x44   : > { %643 = vmatprep.subr.bf16.mxu0 %v960_v45 }
  0x47   : > { %644 = vmatpush1.bf16.msra.mxu0 %v962_v46 }
  0x48   : > { %645 = vmatprep.subr.bf16.mxu0 %v963_v47 }
  0x4b   : > { %646 = vmatpush1.bf16.msra.mxu0 %v965_v48 }
  0x4c   : > { %647 = vmatprep.subr.bf16.mxu0 %v966_v49 }
  0x4f   : > { %648 = vmatpush2.bf16.msra.mxu0 %v968_v50 }
  0x50   : > { %649 = vmatprep.subr.bf16.mxu0 %v969_v51 }
  0x53   : > { %650 = vmatpush2.bf16.msra.mxu0 %v971_v52 }
  0x54   : > { %651 = vmatprep.subr.bf16.mxu0 %v972_v53 }
  0x57   : > { %652 = vmatpush2.bf16.msra.mxu0 %v974_v54 }
  0x58   : > { %653 = vmatprep.subr.bf16.mxu0 %v975_v55 }
  0x5b   : > { %654 = vmatpush2.bf16.msra.mxu0 %v977_v56 }
  0x5c   : > { %655 = vmatprep.subr.bf16.mxu0 %v978_v57 }
  0x5f   : > { %656 = vmatpush2.bf16.msra.mxu0 %v980_v58 }
  0x60   : > { %657 = vmatprep.subr.bf16.mxu0 %v981_v59 }
  0x63   : > { %658 = vmatpush2.bf16.msra.mxu0 %v983_v60 }
  0x64   : > { %659 = vmatprep.subr.bf16.mxu0 %v984_v61 }
  0x67   : > { %660 = vmatpush2.bf16.msra.mxu0 %v986_v62 }
  0x68   : > { %661 = vmatprep.subr.bf16.mxu0 %v987_v63 }
  0x6b   : > { %662 = vmatpush2.bf16.msra.mxu0 %v989_v0 }
  0x6e   : > { %664 = vmatmul.mubr.bf16.vlgmr.msra.gmra.mxu0 %v990_v1 }
 0x12e   : > { %v665_v9 = vpop.f32.mrf.mxu0 }
 0x12f   : > { %v701_v10 = vadd.f32 %v694_v7, %v665_v9 }
 0x130   : > { %v667_v11 = vpop.f32.mrf.mxu0 }
 0x131   : > { %705 = vst [vmem:[%s393_s23] sm:$0xff] %v701_v10  ;;  %v702_v12 = vadd.f32 %v698_v8, %v667_v11 }
 0x132   : > { %v669_v13 = vpop.f32.mrf.mxu0 }
 0x133   : > { %706 = vst [vmem:[%s393_s23 + $0x8] sm:$0xff] %v702_v12  ;;  %v703_v14 = vadd.f32 %v694_v7, %v669_v13  ;;  %715 = sbr.rel (!%p1088_p6) target bundleno = 320 (0x140), region = 82 }
 0x134   : > { %v671_v15 = vpop.f32.mrf.mxu0 }
 0x135   : > { %707 = vst [vmem:[%s393_s23 + $0x10] sm:$0xff] %v703_v14  ;;  %v704_v16 = vadd.f32 %v698_v8, %v671_v15 }
 0x137   : > { %708 = vst [vmem:[%s393_s23 + $0x18] sm:$0xff] %v704_v16 }
 0x138   : > { %v734_v17 = vld [vmem:[%s393_s23] sm:$0xff] }
 0x139   : > { %735 = vst [vmem:[%s721_s26] sm:$0xff] %v734_v17 }
 0x13a   : > { %v736_v18 = vld [vmem:[%s393_s23 + $0x8] sm:$0xff] }
 0x13b   : > { %737 = vst [vmem:[%s721_s26 + $0x8] sm:$0xff] %v736_v18 }
 0x13c   : > { %v738_v19 = vld [vmem:[%s393_s23 + $0x10] sm:$0xff] }
 0x13d   : > { %739 = vst [vmem:[%s721_s26 + $0x20] sm:$0xff] %v738_v19 }
 0x13e   : > { %v740_v20 = vld [vmem:[%s393_s23 + $0x18] sm:$0xff] }
 0x13f   : > { %741 = vst [vmem:[%s721_s26 + $0x28] sm:$0xff] %v740_v20 }
 0x140 PF: > { %s13_s16 = sadd.s32 1, %s1031_s16   ;;  %s1246_s12 = smov %s1019_s13 }
 0x141   : > { %p10_p12 = scmp.ge.s32.totalorder %s13_s16, 4   ;;  %s1247_s13 = smov %s1093_s22 }
 0x142   : > { %s1248_s14 = smov %s1027_s15  ;;  %s1249_s15 = smov %s1251_s17 }
 0x143   :  { %12 = sbr.rel (!%p10_p12) target bundleno = 3 (0x3), region = 142 }

// kernel: _lambda_.41
= control target key start
LH: loop header
LB: loop body
LE: loop exit
PB: predicated region body
PF: predicated region fallthrough
CT: control target
= control target key end

     0   :  { %s2025_s0 = inlined_call_operand.vmem [shape: bf16[16,4608], index: 0, kind: input, shape index: {}]   ;;  %s2026_s1 = inlined_call_operand.vmem [shape: bf16[4608,512], index: 1, kind: input, shape index: {}]   ;;  %s2027_s2 = inlined_call_operand.vmem [shape: f32[1,512], index: 2, kind: input, shape index: {}]   ;;  %s2028_s3 = inlined_call_operand.vmem [shape: f32[16,512], index: 3, kind: output, shape index: {}]  }
   0x1   :  { %2030 = sst [smem:[#allocation7_spill]] %s2025_s0 }
   0x2   :  { %2031 = sst [smem:[#allocation8_spill]] %s2026_s1 }
   0x3   :  { %s1639_s12 = smov 0   ;;  %s1641_s13 = smov 0  }
   0x4   :  { %s1643_s14 = smov 0   ;;  %s1645_s15 = smov 0  }
   0x5   :  { %s1647_s16 = smov 0   ;;  %s1649_s17 = smov 0  }
   0x6   :  { %s1651_s18 = smov 0   ;;  %s1653_s19 = smov 0  }
   0x7   :  { %s1655_s20 = smov 0   ;;  %s1657_s21 = smov 0  }
   0x8   :  { %s1659_s22 = smov 0  }
   0x9 LB: > { %s1244_s23 = sadd.s32 4294967295, %s1616_s22   ;;  %s25_s24 = sadd.s32 1, %s1608_s20  ;;  %s1616_s22 = sphi %s1659_s22, %s13_s22   ;;  %s1612_s21 = sphi %s1657_s21, %s2048_s21   ;;  %s1608_s20 = sphi %s1655_s20, %s2047_s20   ;;  %s1604_s19 = sphi %s1653_s19, %s2046_s19   ;;  %s1600_s18 = sphi %s1651_s18, %s2045_s18   ;;  %s1596_s17 = sphi %s1649_s17, %s2044_s17   ;;  %s1592_s16 = sphi %s1647_s16, %s2043_s16   ;;  %s1588_s15 = sphi %s1645_s15, %s2042_s15   ;;  %s1584_s14 = sphi %s1643_s14, %s2041_s14   ;;  %s1580_s13 = sphi %s1641_s13, %s2040_s13   ;;  %s1576_s12 = sphi %s1639_s12, %s2039_s12  }
   0xa   : > { %p26_p0 = scmp.ge.s32.totalorder %s25_s24, 9  ;;  %s28_s25 = sadd.s32 1, %s1612_s21 }
   0xb   : > { %s41_s26 = sadd.s32 1, %s1596_s17  ;;  %p48_p1 = scmp.ne.s32.totalorder %s1596_s17, %s1592_s16 }
   0xc   : > { %s2050_s24 = smov (%p26_p0, %s25_s24), 0  ;;  %s2052_s25 = smov (!%p26_p0, %s28_s25), %s1612_s21 }
   0xd   : > { %s37_s27 = ssub.s32 %s1608_s20, %s2050_s24  ;;  %p49_p2 = scmp.eq.s32.totalorder %s1616_s22, 0 }
   0xe   : > { %p30_p3 = scmp.ge.s32.totalorder %s2052_s25, 2  ;;  %p39_p4 = scmp.eq.s32.totalorder %s37_s27, 0 }
   0xf   : > { %p1706_p5 = por %p49_p2, %p48_p1  ;;  %s69_s29 = sadd.s32 1, %s1588_s15 }
  0x10   : > { %s2054_s25 = smov (%p30_p3, %s2052_s25), 0  ;;  %p76_p6 = scmp.ne.s32.totalorder %s1588_s15, %s1584_s14 }
  0x11   : > { %2033 = sst [smem:[#allocation6_spill]] %s2054_s25  ;;  %s65_s4 = ssub.s32 %s1612_s21, %s2054_s25 }
  0x12   : > { %s1714_s30 = scalar_select %p39_p4, %s1596_s17, %s41_s26  }
  0x13   : > { %s66_s5 = sor.u32 %s65_s4, %s37_s27  ;;  %p121_p7 = scmp.eq.s32.totalorder %s65_s4, 0 }
  0x14   : > { %p67_p8 = scmp.eq.s32.totalorder %s66_s5, 0  ;;  %p1720_p9 = por %p76_p6, %p49_p2 }
  0x15   : > { %s123_s7 = sadd.s32 1, %s1580_s13  ;;  %p133_p10 = scmp.ne.s32.totalorder %s1580_s13, %s1576_s12 }
  0x16   : > { %s1728_s8 = scalar_select %p67_p8, %s1588_s15, %s69_s29  }
  0x17   : > { %s1731_s9 = scalar_select %p121_p7, %s1580_s13, %s123_s7  }
  0x18   : > { %p134_p11 = scmp.eq.s32.totalorder %s1244_s23, 17  ;;  %p1247_p13 = scmp.ge.s32.totalorder %s1616_s22, 18 }
  0x1a   : > { %p1733_p12 = por %p134_p11, %p133_p10  ;;  %156 = sbr.rel (%p1247_p13) target bundleno = 85 (0x55), region = 16 }
  0x1f   : > { %159 = sbr.rel (!%p1706_p5) target bundleno = 43 (0x2b), region = 20  ;;  %s161_s11 = sand.u32 (%p1706_p5), 1, %s1596_s17  }
  0x20   : > { %s1336_s26 = sshll.u32 (%p1706_p5), %s1608_s20, 4  ;;  %s1248_s27 = sshll.u32 (%p1706_p5), %s161_s11, 5 }
  0x21   : > { %s2036_s0 = sld [smem:[#allocation7_spill]] (%p1706_p5)  ;;  %s163_s23 = scalar_lea.vmem (%p1706_p5), [#allocation3], %s1248_s27 }
  0x27   : > { %s169_s5 = scalar_lea.vmem %s2036_s0, %s1336_s26 }
  0x28   : > { %v182_v0 = vld [vmem:[%s169_s5] sm:$0xff]  ;;  %v184_v1 = vld [vmem:[%s169_s5 + $0x8] sm:$0xff]  ;;  %v186_v2 = vld [vmem:[%s169_s5 + $0x90] sm:$0xff] }
  0x29   : > { %183 = vst [vmem:[%s163_s23] sm:$0xff] %v182_v0  ;;  %185 = vst [vmem:[%s163_s23 + $0x8] sm:$0xff] %v184_v1  ;;  %v188_v3 = vld [vmem:[%s169_s5 + $0x98] sm:$0xff] }
  0x2a   : > { %187 = vst [vmem:[%s163_s23 + $0x10] sm:$0xff] %v186_v2  ;;  %189 = vst [vmem:[%s163_s23 + $0x18] sm:$0xff] %v188_v3 }
  0x2b PF: > { %195 = sbr.rel (!%p1720_p9) target bundleno = 85 (0x55), region = 43  ;;  %s197_s28 = sand.u32 (%p1720_p9), 1, %s1588_s15  }
  0x2c   : > { %s1253_s7 = sshll.u32 (%p1720_p9), %s1612_s21, 1  ;;  %s1251_s11 = sshll.u32 (%p1720_p9), %s197_s28, 9 }
  0x2d   : > { %s1337_s26 = sshll.u32 (%p1720_p9), %s1608_s20, 8  ;;  %s2037_s1 = sld [smem:[#allocation8_spill]] (%p1720_p9) }
  0x2e   : > { %s203_s29 = sadd.s32 (%p1720_p9), %s1337_s26, %s1253_s7  ;;  %s1758_s6 = scalar_lea.vmem (%p1720_p9), [#allocation4], %s1251_s11 }
  0x2f   : > { %s1255_s4 = sshll.u32 (%p1720_p9), %s203_s29, 2 }
  0x33   : > { %s1753_s25 = scalar_lea.vmem %s2037_s1, %s1255_s4 }
  0x34   : > { %v360_v4 = vld [vmem:[%s1753_s25] sm:$0xff]  ;;  %v362_v5 = vld [vmem:[%s1753_s25 + $0x10] sm:$0xff] }
  0x35   : > { %v364_v6 = vld [vmem:[%s1753_s25 + $0x20] sm:$0xff]  ;;  %361 = vst [vmem:[%s1758_s6] sm:$0xff] %v360_v4  ;;  %363 = vst [vmem:[%s1758_s6 + $0x8] sm:$0xff] %v362_v5  ;;  %v366_v7 = vld [vmem:[%s1753_s25 + $0x30] sm:$0xff] }
  0x36   : > { %365 = vst [vmem:[%s1758_s6 + $0x10] sm:$0xff] %v364_v6  ;;  %v368_v8 = vld [vmem:[%s1753_s25 + $0x40] sm:$0xff]  ;;  %v370_v9 = vld [vmem:[%s1753_s25 + $0x50] sm:$0xff]  ;;  %367 = vst [vmem:[%s1758_s6 + $0x18] sm:$0xff] %v366_v7 }
  0x37   : > { %369 = vst [vmem:[%s1758_s6 + $0x20] sm:$0xff] %v368_v8  ;;  %371 = vst [vmem:[%s1758_s6 + $0x28] sm:$0xff] %v370_v9  ;;  %v372_v10 = vld [vmem:[%s1753_s25 + $0x60] sm:$0xff]  ;;  %v374_v11 = vld [vmem:[%s1753_s25 + $0x70] sm:$0xff] }
  0x38   : > { %v376_v12 = vld [vmem:[%s1753_s25 + $0x80] sm:$0xff]  ;;  %373 = vst [vmem:[%s1758_s6 + $0x30] sm:$0xff] %v372_v10  ;;  %375 = vst [vmem:[%s1758_s6 + $0x38] sm:$0xff] %v374_v11  ;;  %v378_v13 = vld [vmem:[%s1753_s25 + $0x90] sm:$0xff] }
  0x39   : > { %377 = vst [vmem:[%s1758_s6 + $0x40] sm:$0xff] %v376_v12  ;;  %v380_v14 = vld [vmem:[%s1753_s25 + $0xa0] sm:$0xff]  ;;  %v382_v15 = vld [vmem:[%s1753_s25 + $0xb0] sm:$0xff]  ;;  %379 = vst [vmem:[%s1758_s6 + $0x48] sm:$0xff] %v378_v13 }
  0x3a   : > { %381 = vst [vmem:[%s1758_s6 + $0x50] sm:$0xff] %v380_v14  ;;  %383 = vst [vmem:[%s1758_s6 + $0x58] sm:$0xff] %v382_v15  ;;  %v384_v16 = vld [vmem:[%s1753_s25 + $0xc0] sm:$0xff]  ;;  %v386_v17 = vld [vmem:[%s1753_s25 + $0xd0] sm:$0xff] }
  0x3b   : > { %v388_v18 = vld [vmem:[%s1753_s25 + $0xe0] sm:$0xff]  ;;  %385 = vst [vmem:[%s1758_s6 + $0x60] sm:$0xff] %v384_v16  ;;  %387 = vst [vmem:[%s1758_s6 + $0x68] sm:$0xff] %v386_v17  ;;  %v390_v19 = vld [vmem:[%s1753_s25 + $0xf0] sm:$0xff] }
  0x3c   : > { %389 = vst [vmem:[%s1758_s6 + $0x70] sm:$0xff] %v388_v18  ;;  %v392_v20 = vld [vmem:[%s1753_s25 + $0x100] sm:$0xff]  ;;  %v394_v21 = vld [vmem:[%s1753_s25 + $0x110] sm:$0xff]  ;;  %391 = vst [vmem:[%s1758_s6 + $0x78] sm:$0xff] %v390_v19 }
  0x3d   : > { %393 = vst [vmem:[%s1758_s6 + $0x80] sm:$0xff] %v392_v20  ;;  %395 = vst [vmem:[%s1758_s6 + $0x88] sm:$0xff] %v394_v21  ;;  %v396_v22 = vld [vmem:[%s1753_s25 + $0x120] sm:$0xff]  ;;  %v398_v23 = vld [vmem:[%s1753_s25 + $0x130] sm:$0xff] }
  0x3e   : > { %v400_v24 = vld [vmem:[%s1753_s25 + $0x140] sm:$0xff]  ;;  %397 = vst [vmem:[%s1758_s6 + $0x90] sm:$0xff] %v396_v22  ;;  %399 = vst [vmem:[%s1758_s6 + $0x98] sm:$0xff] %v398_v23  ;;  %v402_v25 = vld [vmem:[%s1753_s25 + $0x150] sm:$0xff] }
  0x3f   : > { %401 = vst [vmem:[%s1758_s6 + $0xa0] sm:$0xff] %v400_v24  ;;  %v404_v26 = vld [vmem:[%s1753_s25 + $0x160] sm:$0xff]  ;;  %v406_v27 = vld [vmem:[%s1753_s25 + $0x170] sm:$0xff]  ;;  %403 = vst [vmem:[%s1758_s6 + $0xa8] sm:$0xff] %v402_v25 }
  0x40   : > { %405 = vst [vmem:[%s1758_s6 + $0xb0] sm:$0xff] %v404_v26  ;;  %407 = vst [vmem:[%s1758_s6 + $0xb8] sm:$0xff] %v406_v27  ;;  %v408_v28 = vld [vmem:[%s1753_s25 + $0x180] sm:$0xff]  ;;  %v410_v29 = vld [vmem:[%s1753_s25 + $0x190] sm:$0xff] }
  0x41   : > { %v412_v30 = vld [vmem:[%s1753_s25 + $0x1a0] sm:$0xff]  ;;  %409 = vst [vmem:[%s1758_s6 + $0xc0] sm:$0xff] %v408_v28  ;;  %411 = vst [vmem:[%s1758_s6 + $0xc8] sm:$0xff] %v410_v29  ;;  %v414_v31 = vld [vmem:[%s1753_s25 + $0x1b0] sm:$0xff] }
  0x42   : > { %413 = vst [vmem:[%s1758_s6 + $0xd0] sm:$0xff] %v412_v30  ;;  %v416_v32 = vld [vmem:[%s1753_s25 + $0x1c0] sm:$0xff]  ;;  %v418_v33 = vld [vmem:[%s1753_s25 + $0x1d0] sm:$0xff]  ;;  %415 = vst [vmem:[%s1758_s6 + $0xd8] sm:$0xff] %v414_v31 }
  0x43   : > { %417 = vst [vmem:[%s1758_s6 + $0xe0] sm:$0xff] %v416_v32  ;;  %419 = vst [vmem:[%s1758_s6 + $0xe8] sm:$0xff] %v418_v33  ;;  %v420_v34 = vld [vmem:[%s1753_s25 + $0x1e0] sm:$0xff]  ;;  %v422_v35 = vld [vmem:[%s1753_s25 + $0x1f0] sm:$0xff] }
  0x44   : > { %v424_v36 = vld [vmem:[%s1753_s25 + $0x200] sm:$0xff]  ;;  %421 = vst [vmem:[%s1758_s6 + $0xf0] sm:$0xff] %v420_v34  ;;  %423 = vst [vmem:[%s1758_s6 + $0xf8] sm:$0xff] %v422_v35  ;;  %v426_v37 = vld [vmem:[%s1753_s25 + $0x210] sm:$0xff] }
  0x45   : > { %425 = vst [vmem:[%s1758_s6 + $0x100] sm:$0xff] %v424_v36  ;;  %v428_v38 = vld [vmem:[%s1753_s25 + $0x220] sm:$0xff]  ;;  %v430_v39 = vld [vmem:[%s1753_s25 + $0x230] sm:$0xff]  ;;  %427 = vst [vmem:[%s1758_s6 + $0x108] sm:$0xff] %v426_v37 }
  0x46   : > { %429 = vst [vmem:[%s1758_s6 + $0x110] sm:$0xff] %v428_v38  ;;  %431 = vst [vmem:[%s1758_s6 + $0x118] sm:$0xff] %v430_v39  ;;  %v432_v40 = vld [vmem:[%s1753_s25 + $0x240] sm:$0xff]  ;;  %v434_v41 = vld [vmem:[%s1753_s25 + $0x250] sm:$0xff] }
  0x47   : > { %v436_v42 = vld [vmem:[%s1753_s25 + $0x260] sm:$0xff]  ;;  %433 = vst [vmem:[%s1758_s6 + $0x120] sm:$0xff] %v432_v40  ;;  %435 = vst [vmem:[%s1758_s6 + $0x128] sm:$0xff] %v434_v41  ;;  %v438_v43 = vld [vmem:[%s1753_s25 + $0x270] sm:$0xff] }
  0x48   : > { %437 = vst [vmem:[%s1758_s6 + $0x130] sm:$0xff] %v436_v42  ;;  %v440_v44 = vld [vmem:[%s1753_s25 + $0x280] sm:$0xff]  ;;  %v442_v45 = vld [vmem:[%s1753_s25 + $0x290] sm:$0xff]  ;;  %439 = vst [vmem:[%s1758_s6 + $0x138] sm:$0xff] %v438_v43 }
  0x49   : > { %441 = vst [vmem:[%s1758_s6 + $0x140] sm:$0xff] %v440_v44  ;;  %443 = vst [vmem:[%s1758_s6 + $0x148] sm:$0xff] %v442_v45  ;;  %v444_v46 = vld [vmem:[%s1753_s25 + $0x2a0] sm:$0xff]  ;;  %v446_v47 = vld [vmem:[%s1753_s25 + $0x2b0] sm:$0xff] }
  0x4a   : > { %v448_v48 = vld [vmem:[%s1753_s25 + $0x2c0] sm:$0xff]  ;;  %445 = vst [vmem:[%s1758_s6 + $0x150] sm:$0xff] %v444_v46  ;;  %447 = vst [vmem:[%s1758_s6 + $0x158] sm:$0xff] %v446_v47  ;;  %v450_v49 = vld [vmem:[%s1753_s25 + $0x2d0] sm:$0xff] }
  0x4b   : > { %449 = vst [vmem:[%s1758_s6 + $0x160] sm:$0xff] %v448_v48  ;;  %v452_v50 = vld [vmem:[%s1753_s25 + $0x2e0] sm:$0xff]  ;;  %v454_v51 = vld [vmem:[%s1753_s25 + $0x2f0] sm:$0xff]  ;;  %451 = vst [vmem:[%s1758_s6 + $0x168] sm:$0xff] %v450_v49 }
  0x4c   : > { %453 = vst [vmem:[%s1758_s6 + $0x170] sm:$0xff] %v452_v50  ;;  %455 = vst [vmem:[%s1758_s6 + $0x178] sm:$0xff] %v454_v51  ;;  %v456_v52 = vld [vmem:[%s1753_s25 + $0x300] sm:$0xff]  ;;  %v458_v53 = vld [vmem:[%s1753_s25 + $0x310] sm:$0xff] }
  0x4d   : > { %v460_v54 = vld [vmem:[%s1753_s25 + $0x320] sm:$0xff]  ;;  %457 = vst [vmem:[%s1758_s6 + $0x180] sm:$0xff] %v456_v52  ;;  %459 = vst [vmem:[%s1758_s6 + $0x188] sm:$0xff] %v458_v53  ;;  %v462_v55 = vld [vmem:[%s1753_s25 + $0x330] sm:$0xff] }
  0x4e   : > { %461 = vst [vmem:[%s1758_s6 + $0x190] sm:$0xff] %v460_v54  ;;  %v464_v56 = vld [vmem:[%s1753_s25 + $0x340] sm:$0xff]  ;;  %v466_v57 = vld [vmem:[%s1753_s25 + $0x350] sm:$0xff]  ;;  %463 = vst [vmem:[%s1758_s6 + $0x198] sm:$0xff] %v462_v55 }
  0x4f   : > { %465 = vst [vmem:[%s1758_s6 + $0x1a0] sm:$0xff] %v464_v56  ;;  %467 = vst [vmem:[%s1758_s6 + $0x1a8] sm:$0xff] %v466_v57  ;;  %v468_v58 = vld [vmem:[%s1753_s25 + $0x360] sm:$0xff]  ;;  %v470_v59 = vld [vmem:[%s1753_s25 + $0x370] sm:$0xff] }
  0x50   : > { %v472_v60 = vld [vmem:[%s1753_s25 + $0x380] sm:$0xff]  ;;  %469 = vst [vmem:[%s1758_s6 + $0x1b0] sm:$0xff] %v468_v58  ;;  %471 = vst [vmem:[%s1758_s6 + $0x1b8] sm:$0xff] %v470_v59  ;;  %v474_v61 = vld [vmem:[%s1753_s25 + $0x390] sm:$0xff] }
  0x51   : > { %473 = vst [vmem:[%s1758_s6 + $0x1c0] sm:$0xff] %v472_v60  ;;  %v476_v62 = vld [vmem:[%s1753_s25 + $0x3a0] sm:$0xff]  ;;  %v478_v63 = vld [vmem:[%s1753_s25 + $0x3b0] sm:$0xff]  ;;  %475 = vst [vmem:[%s1758_s6 + $0x1c8] sm:$0xff] %v474_v61 }
  0x52   : > { %477 = vst [vmem:[%s1758_s6 + $0x1d0] sm:$0xff] %v476_v62  ;;  %479 = vst [vmem:[%s1758_s6 + $0x1d8] sm:$0xff] %v478_v63  ;;  %v480_v0 = vld [vmem:[%s1753_s25 + $0x3c0] sm:$0xff]  ;;  %v482_v1 = vld [vmem:[%s1753_s25 + $0x3d0] sm:$0xff] }
  0x53   : > { %v484_v2 = vld [vmem:[%s1753_s25 + $0x3e0] sm:$0xff]  ;;  %481 = vst [vmem:[%s1758_s6 + $0x1e0] sm:$0xff] %v480_v0  ;;  %483 = vst [vmem:[%s1758_s6 + $0x1e8] sm:$0xff] %v482_v1  ;;  %v486_v3 = vld [vmem:[%s1753_s25 + $0x3f0] sm:$0xff] }
  0x54   : > { %485 = vst [vmem:[%s1758_s6 + $0x1f0] sm:$0xff] %v484_v2  ;;  %487 = vst [vmem:[%s1758_s6 + $0x1f8] sm:$0xff] %v486_v3 }
  0x55 PF: > { %p1256_p0 = scmp.ge.s32.totalorder %s1616_s22, 1  ;;  %p500_p1 = scmp.lt.s32.totalorder %s1616_s22, 19 }
  0x57   : > { %p501_p2 = pnand %p1256_p0, %p500_p1 }
  0x58   : > { %s507_s0 = sand.u32 (!%p501_p2), 1, %s1592_s16   ;;  %s514_s5 = sand.u32 (!%p501_p2), 1, %s1584_s14  }
  0x59   : > { %504 = sbr.rel (%p501_p2) target bundleno = 396 (0x18c), region = 85  ;;  %s1257_s23 = sshll.u32 (!%p501_p2), %s507_s0, 5 }
  0x5a   : > { %s1258_s28 = sshll.u32 (!%p501_p2), %s514_s5, 9  ;;  %s541_s7 = sand.u32 (!%p501_p2), 1, %s1576_s12  }
  0x5b   : > { %s1260_s11 = sshll.u32 (!%p501_p2), %s1604_s19, 1  ;;  %s1259_s25 = sshll.u32 (!%p501_p2), %s541_s7, 5 }
  0x5c   : > { %p549_p3 = scmp.lt.s32.totalorder (!%p501_p2), %s1260_s11, 3  ;;  %s1897_s27 = scalar_lea.vmem (!%p501_p2), [#allocation3], %s1257_s23 }
  0x5d   : > { %s1899_s6 = scalar_lea.vmem (!%p501_p2), [#allocation4], %s1258_s28  ;;  %s1901_s1 = scalar_lea.vmem (!%p501_p2), [#allocation5], %s1259_s25 }
  0x5e   : > { %s2056_s11 = smov (!%p549_p3, %s1260_s11), 3  ;;  %p1261_p4 = scmp.ne.s32.totalorder %s1600_s18, 0 }
  0x5f   : > { %s551_s4 = scalar_lea.vmem %s2027_s2, %s2056_s11 }
  0x60   : > { %558 = sbr.rel (%p1261_p4) target bundleno = 104 (0x68), region = 97 }
  0x65   : > { %v1618_v4 = vmov 0.0  }
  0x66   : > { %559 = vst [vmem:[#allocation2 + $0x10] sm:$0xff] %v1618_v4  ;;  %560 = vst [vmem:[#allocation2] sm:$0xff] %v1618_v4 }
  0x67   : > { %561 = vst [vmem:[#allocation2 + $0x18] sm:$0xff] %v1618_v4  ;;  %562 = vst [vmem:[#allocation2 + $0x8] sm:$0xff] %v1618_v4 }
  0x68 PF: > { %v1428_v5 = vld [vmem:[%s1899_s6 + $0x74] ss:$8 sps:$4 sm:$0xff]   ;;  %v1432_v7 = vld [vmem:[%s1899_s6 + $0x70] ss:$8 sps:$4 sm:$0xff]   ;;  %v1434_v9 = vld [vmem:[%s1899_s6 + $0x64] ss:$8 sps:$4 sm:$0xff]  }
  0x69   : > { %v1430_v6 = vld [vmem:[%s1899_s6 + $0x174] ss:$8 sps:$4 sm:$0xff]   ;;  %975 = vmatprep.subr.bf16.mxu0 %v1428_v5  ;;  %v1433_v8 = vld [vmem:[%s1899_s6 + $0x170] ss:$8 sps:$4 sm:$0xff]   ;;  %v1436_v10 = vld [vmem:[%s1899_s6 + $0x164] ss:$8 sps:$4 sm:$0xff]  }
  0x6a   : > { %1018 = vmatprep.subr.bf16.mxu1 %v1430_v6  ;;  %976 = vmatpush1.bf16.msra.mxu0 %v1432_v7  ;;  %v1438_v11 = vld [vmem:[%s1899_s6 + $0x60] ss:$8 sps:$4 sm:$0xff]   ;;  %v1440_v13 = vld [vmem:[%s1899_s6 + $0x54] ss:$8 sps:$4 sm:$0xff]   ;;  %v1444_v15 = vld [vmem:[%s1899_s6 + $0x50] ss:$8 sps:$4 sm:$0xff]  }
  0x6b   : > { %1019 = vmatpush1.bf16.msra.mxu1 %v1433_v8  ;;  %977 = vmatprep.subr.bf16.mxu0 %v1434_v9  ;;  %v1439_v12 = vld [vmem:[%s1899_s6 + $0x160] ss:$8 sps:$4 sm:$0xff]   ;;  %v1442_v14 = vld [vmem:[%s1899_s6 + $0x154] ss:$8 sps:$4 sm:$0xff]   ;;  %v1445_v16 = vld [vmem:[%s1899_s6 + $0x150] ss:$8 sps:$4 sm:$0xff]  }
  0x6c   : > { %1020 = vmatprep.subr.bf16.mxu1 %v1436_v10  ;;  %v1446_v17 = vld [vmem:[%s1899_s6 + $0x44] ss:$8 sps:$4 sm:$0xff]   ;;  %v1450_v19 = vld [vmem:[%s1899_s6 + $0x40] ss:$8 sps:$4 sm:$0xff]   ;;  %v1452_v21 = vld [vmem:[%s1899_s6 + $0x34] ss:$8 sps:$4 sm:$0xff]  }
  0x6d   : > { %v1448_v18 = vld [vmem:[%s1899_s6 + $0x144] ss:$8 sps:$4 sm:$0xff]   ;;  %v1451_v20 = vld [vmem:[%s1899_s6 + $0x140] ss:$8 sps:$4 sm:$0xff]   ;;  %v1454_v22 = vld [vmem:[%s1899_s6 + $0x134] ss:$8 sps:$4 sm:$0xff]  }
  0x6e   : > { %978 = vmatpush1.bf16.msra.mxu0 %v1438_v11  ;;  %v1456_v23 = vld [vmem:[%s1899_s6 + $0x30] ss:$8 sps:$4 sm:$0xff]   ;;  %v1458_v25 = vld [vmem:[%s1899_s6 + $0x24] ss:$8 sps:$4 sm:$0xff]   ;;  %v1462_v27 = vld [vmem:[%s1899_s6 + $0x20] ss:$8 sps:$4 sm:$0xff]  }
  0x6f   : > { %1021 = vmatpush1.bf16.msra.mxu1 %v1439_v12  ;;  %979 = vmatprep.subr.bf16.mxu0 %v1440_v13  ;;  %v1457_v24 = vld [vmem:[%s1899_s6 + $0x130] ss:$8 sps:$4 sm:$0xff]   ;;  %v1460_v26 = vld [vmem:[%s1899_s6 + $0x124] ss:$8 sps:$4 sm:$0xff]   ;;  %v1463_v28 = vld [vmem:[%s1899_s6 + $0x120] ss:$8 sps:$4 sm:$0xff]  }
  0x70   : > { %1022 = vmatprep.subr.bf16.mxu1 %v1442_v14  ;;  %v1464_v29 = vld [vmem:[%s1899_s6 + $0x14] ss:$8 sps:$4 sm:$0xff]   ;;  %v1468_v31 = vld [vmem:[%s1899_s6 + $0x10] ss:$8 sps:$4 sm:$0xff]   ;;  %v1470_v33 = vld [vmem:[%s1899_s6 + $0x4] ss:$8 sps:$4 sm:$0xff]  }
  0x71   : > { %v1466_v30 = vld [vmem:[%s1899_s6 + $0x114] ss:$8 sps:$4 sm:$0xff]   ;;  %v1469_v32 = vld [vmem:[%s1899_s6 + $0x110] ss:$8 sps:$4 sm:$0xff]   ;;  %v1472_v34 = vld [vmem:[%s1899_s6 + $0x104] ss:$8 sps:$4 sm:$0xff]  }
  0x72   : > { %980 = vmatpush1.bf16.msra.mxu0 %v1444_v15  ;;  %v1474_v35 = vld [vmem:[%s1899_s6] ss:$8 sps:$4 sm:$0xff]   ;;  %v1476_v37 = vld [vmem:[%s1899_s6 + $0xf4] ss:$8 sps:$4 sm:$0xff]   ;;  %v1480_v39 = vld [vmem:[%s1899_s6 + $0xf0] ss:$8 sps:$4 sm:$0xff]  }
  0x73   : > { %1023 = vmatpush1.bf16.msra.mxu1 %v1445_v16  ;;  %981 = vmatprep.subr.bf16.mxu0 %v1446_v17  ;;  %v1475_v36 = vld [vmem:[%s1899_s6 + $0x100] ss:$8 sps:$4 sm:$0xff]   ;;  %v1478_v38 = vld [vmem:[%s1899_s6 + $0x1f4] ss:$8 sps:$4 sm:$0xff]   ;;  %v1481_v40 = vld [vmem:[%s1899_s6 + $0x1f0] ss:$8 sps:$4 sm:$0xff]  }
  0x74   : > { %1024 = vmatprep.subr.bf16.mxu1 %v1448_v18  ;;  %v1482_v41 = vld [vmem:[%s1899_s6 + $0xe4] ss:$8 sps:$4 sm:$0xff]   ;;  %v1486_v43 = vld [vmem:[%s1899_s6 + $0xe0] ss:$8 sps:$4 sm:$0xff]   ;;  %v1488_v45 = vld [vmem:[%s1899_s6 + $0xd4] ss:$8 sps:$4 sm:$0xff]  }
  0x75   : > { %v1484_v42 = vld [vmem:[%s1899_s6 + $0x1e4] ss:$8 sps:$4 sm:$0xff]   ;;  %v1487_v44 = vld [vmem:[%s1899_s6 + $0x1e0] ss:$8 sps:$4 sm:$0xff]   ;;  %v1490_v46 = vld [vmem:[%s1899_s6 + $0x1d4] ss:$8 sps:$4 sm:$0xff]  }
  0x76   : > { %982 = vmatpush1.bf16.msra.mxu0 %v1450_v19  ;;  %v1492_v47 = vld [vmem:[%s1899_s6 + $0xd0] ss:$8 sps:$4 sm:$0xff]   ;;  %v1494_v49 = vld [vmem:[%s1899_s6 + $0xc4] ss:$8 sps:$4 sm:$0xff]   ;;  %v1498_v51 = vld [vmem:[%s1899_s6 + $0xc0] ss:$8 sps:$4 sm:$0xff]  }
  0x77   : > { %1025 = vmatpush1.bf16.msra.mxu1 %v1451_v20  ;;  %983 = vmatprep.subr.bf16.mxu0 %v1452_v21  ;;  %v1493_v48 = vld [vmem:[%s1899_s6 + $0x1d0] ss:$8 sps:$4 sm:$0xff]   ;;  %v1496_v50 = vld [vmem:[%s1899_s6 + $0x1c4] ss:$8 sps:$4 sm:$0xff]   ;;  %v1499_v53 = vld [vmem:[%s1899_s6 + $0x1c0] ss:$8 sps:$4 sm:$0xff]  }
  0x78   : > { %1026 = vmatprep.subr.bf16.mxu1 %v1454_v22  ;;  %v1526_v52 = vld [vmem:[%s1897_s27 + $0x4] ss:$16 sps:$4 sm:$0xff]   ;;  %v1529_v56 = vld [vmem:[%s1897_s27 + $0xc] ss:$16 sps:$4 sm:$0xff]   ;;  %v1504_v57 = vld [vmem:[%s1899_s6 + $0xb0] ss:$8 sps:$4 sm:$0xff]  }
  0x79   : > { %v1500_v54 = vld [vmem:[%s1899_s6 + $0xb4] ss:$8 sps:$4 sm:$0xff]   ;;  %1007 = vmatprep.mubr.bf16.mxu0 %v1526_v52  ;;  %1050 = vmatprep.mubr.bf16.mxu1 %v1529_v56  ;;  %v1505_v58 = vld [vmem:[%s1899_s6 + $0x1b0] ss:$8 sps:$4 sm:$0xff]   ;;  %v1506_v59 = vld [vmem:[%s1899_s6 + $0xa4] ss:$8 sps:$4 sm:$0xff]  }
  0x7a   : > { %984 = vmatpush1.bf16.msra.mxu0 %v1456_v23  ;;  %v1502_v55 = vld [vmem:[%s1899_s6 + $0x1b4] ss:$8 sps:$4 sm:$0xff]   ;;  %v1508_v60 = vld [vmem:[%s1899_s6 + $0x1a4] ss:$8 sps:$4 sm:$0xff]   ;;  %v1510_v61 = vld [vmem:[%s1899_s6 + $0xa0] ss:$8 sps:$4 sm:$0xff]  }
  0x7b   : > { %1027 = vmatpush1.bf16.msra.mxu1 %v1457_v24  ;;  %985 = vmatprep.subr.bf16.mxu0 %v1458_v25  ;;  %v1511_v62 = vld [vmem:[%s1899_s6 + $0x1a0] ss:$8 sps:$4 sm:$0xff]   ;;  %v1512_v63 = vld [vmem:[%s1899_s6 + $0x94] ss:$8 sps:$4 sm:$0xff]   ;;  %v1516_v1 = vld [vmem:[%s1899_s6 + $0x90] ss:$8 sps:$4 sm:$0xff]  }
  0x7c   : > { %1028 = vmatprep.subr.bf16.mxu1 %v1460_v26  ;;  %v1514_v0 = vld [vmem:[%s1899_s6 + $0x194] ss:$8 sps:$4 sm:$0xff]   ;;  %v1517_v2 = vld [vmem:[%s1899_s6 + $0x190] ss:$8 sps:$4 sm:$0xff]   ;;  %v1518_v3 = vld [vmem:[%s1899_s6 + $0x84] ss:$8 sps:$4 sm:$0xff]  }
  0x7d   : > { %v1520_v4 = vld [vmem:[%s1899_s6 + $0x184] ss:$8 sps:$4 sm:$0xff]   ;;  %v1522_v5 = vld [vmem:[%s1899_s6 + $0x80] ss:$8 sps:$4 sm:$0xff]   ;;  %v563_v10 = vld [vmem:[#allocation2 + $0x10] sm:$0xff]  ;;  %p1330_p5 = scmp.ne.s32.totalorder %s1600_s18, 8 }
  0x7e   : > { %986 = vmatpush1.bf16.msra.mxu0 %v1462_v27  ;;  %v1523_v6 = vld [vmem:[%s1899_s6 + $0x180] ss:$8 sps:$4 sm:$0xff]   ;;  %v565_v19 = vld [vmem:[#allocation2 + $0x18] sm:$0xff] }
  0x7f   : > { %1029 = vmatpush1.bf16.msra.mxu1 %v1463_v28  ;;  %987 = vmatprep.subr.bf16.mxu0 %v1464_v29  ;;  %v1524_v7 = vld [vmem:[%s1897_s27] ss:$16 sps:$4 sm:$0xff]   ;;  %v1527_v8 = vld [vmem:[%s1897_s27 + $0x8] ss:$16 sps:$4 sm:$0xff]  }
  0x80   : > { %1030 = vmatprep.subr.bf16.mxu1 %v1466_v30  ;;  %v564_v14 = vld [vmem:[#allocation2] sm:$0xff]  ;;  %v566_v24 = vld [vmem:[#allocation2 + $0x8] sm:$0xff] }
  0x82   : > { %988 = vmatpush1.bf16.msra.mxu0 %v1468_v31 }
  0x83   : > { %1031 = vmatpush1.bf16.msra.mxu1 %v1469_v32  ;;  %989 = vmatprep.subr.bf16.mxu0 %v1470_v33 }
  0x84   : > { %1032 = vmatprep.subr.bf16.mxu1 %v1472_v34 }
  0x86   : > { %990 = vmatpush1.bf16.msra.mxu0 %v1474_v35 }
  0x87   : > { %1033 = vmatpush1.bf16.msra.mxu1 %v1475_v36  ;;  %991 = vmatprep.subr.bf16.mxu0 %v1476_v37 }
  0x88   : > { %1034 = vmatprep.subr.bf16.mxu1 %v1478_v38 }
  0x8a   : > { %992 = vmatpush2.bf16.msra.mxu0 %v1480_v39 }
  0x8b   : > { %1035 = vmatpush2.bf16.msra.mxu1 %v1481_v40  ;;  %993 = vmatprep.subr.bf16.mxu0 %v1482_v41 }
  0x8c   : > { %1036 = vmatprep.subr.bf16.mxu1 %v1484_v42 }
  0x8e   : > { %994 = vmatpush2.bf16.msra.mxu0 %v1486_v43 }
  0x8f   : > { %1037 = vmatpush2.bf16.msra.mxu1 %v1487_v44  ;;  %995 = vmatprep.subr.bf16.mxu0 %v1488_v45 }
  0x90   : > { %1038 = vmatprep.subr.bf16.mxu1 %v1490_v46 }
  0x92   : > { %996 = vmatpush2.bf16.msra.mxu0 %v1492_v47 }
  0x93   : > { %1039 = vmatpush2.bf16.msra.mxu1 %v1493_v48  ;;  %997 = vmatprep.subr.bf16.mxu0 %v1494_v49 }
  0x94   : > { %1040 = vmatprep.subr.bf16.mxu1 %v1496_v50 }
  0x96   : > { %998 = vmatpush2.bf16.msra.mxu0 %v1498_v51 }
  0x97   : > { %1041 = vmatpush2.bf16.msra.mxu1 %v1499_v53  ;;  %999 = vmatprep.subr.bf16.mxu0 %v1500_v54 }
  0x98   : > { %1042 = vmatprep.subr.bf16.mxu1 %v1502_v55 }
  0x9a   : > { %1000 = vmatpush2.bf16.msra.mxu0 %v1504_v57 }
  0x9b   : > { %1043 = vmatpush2.bf16.msra.mxu1 %v1505_v58  ;;  %1001 = vmatprep.subr.bf16.mxu0 %v1506_v59 }
  0x9c   : > { %1044 = vmatprep.subr.bf16.mxu1 %v1508_v60 }
  0x9e   : > { %1002 = vmatpush2.bf16.msra.mxu0 %v1510_v61 }
  0x9f   : > { %1045 = vmatpush2.bf16.msra.mxu1 %v1511_v62  ;;  %1003 = vmatprep.subr.bf16.mxu0 %v1512_v63 }
  0xa0   : > { %1046 = vmatprep.subr.bf16.mxu1 %v1514_v0 }
  0xa2   : > { %1004 = vmatpush2.bf16.msra.mxu0 %v1516_v1 }
  0xa3   : > { %1047 = vmatpush2.bf16.msra.mxu1 %v1517_v2  ;;  %1005 = vmatprep.subr.bf16.mxu0 %v1518_v3 }
  0xa4   : > { %1048 = vmatprep.subr.bf16.mxu1 %v1520_v4 }
  0xa6   : > { %1006 = vmatpush2.bf16.msra.mxu0 %v1522_v5 }
  0xa7   : > { %1049 = vmatpush2.bf16.msra.mxu1 %v1523_v6 }
  0xa9   : > { %1008 = vmatmul.mubr.bf16.vlgmr.msra.gmra.mxu0 %v1524_v7 }
  0xaa   : > { %1051 = vmatmul.mubr.bf16.vlgmr.msra.gmra.mxu1 %v1527_v8 }
 0x169   : > { %v1009_v9 = vpop.f32.mrf.mxu0 }
 0x16a   : > { %v1052_v11 = vpop.f32.mrf.mxu1 }
 0x16b   : > { %v1053_v12 = vadd.f32 %v1052_v11, %v1009_v9  ;;  %v1011_v13 = vpop.f32.mrf.mxu0 }
 0x16c   : > { %v1054_v15 = vpop.f32.mrf.mxu1 }
 0x16d   : > { %v1061_v16 = vadd.f32 %v1053_v12, %v563_v10  ;;  %v1055_v17 = vadd.f32 %v1054_v15, %v1011_v13  ;;  %v1013_v18 = vpop.f32.mrf.mxu0 }
 0x16e   : > { %v1056_v20 = vpop.f32.mrf.mxu1 }
 0x16f   : > { %1065 = vst [vmem:[#allocation2 + $0x10] sm:$0xff] %v1061_v16  ;;  %v1062_v21 = vadd.f32 %v1055_v17, %v564_v14  ;;  %v1057_v22 = vadd.f32 %v1056_v20, %v1013_v18  ;;  %v1015_v23 = vpop.f32.mrf.mxu0 }
 0x170   : > { %v1058_v25 = vpop.f32.mrf.mxu1 }
 0x171   : > { %1066 = vst [vmem:[#allocation2] sm:$0xff] %v1062_v21  ;;  %v1063_v26 = vadd.f32 %v1057_v22, %v565_v19  ;;  %v1059_v27 = vadd.f32 %v1058_v25, %v1015_v23  ;;  %1072 = sbr.rel (%p1330_p5) target bundleno = 388 (0x184), region = 101 }
 0x173   : > { %1067 = vst [vmem:[#allocation2 + $0x18] sm:$0xff] %v1063_v26  ;;  %v1064_v28 = vadd.f32 %v1059_v27, %v566_v24 }
 0x175   : > { %1068 = vst [vmem:[#allocation2 + $0x8] sm:$0xff] %v1064_v28 }
 0x176   : > { %v1079_v29 = vlaneseq  ;;  %v1077_v31 = vld [vmem:[%s551_s4] sm:$0x3]  ;;  %v1073_v32 = vld [vmem:[#allocation2 + $0x10] sm:$0xff] }
 0x178   : > { %v1080_v30 = vshrl.u32 %v1079_v29, 7  ;;  %v1074_v35 = vld [vmem:[#allocation2] sm:$0xff] }
 0x17a   : > { %v1081_v33 = vsub.s32 0, %v1080_v30  ;;  %v1085_v34 = vsub.s32 1, %v1080_v30  ;;  %v1075_v36 = vld [vmem:[#allocation2 + $0x18] sm:$0xff] }
 0x17c   : > { %v1076_v37 = vld [vmem:[#allocation2 + $0x8] sm:$0xff]  ;;  %v1082_v38 = vrot.slane %v1077_v31, %v1081_v33  ;;  %v1086_v39 = vrot.slane %v1077_v31, %v1085_v34 }
 0x17e   : > { %v1089_v40 = vadd.f32 %v1082_v38, %v1073_v32  ;;  %v1090_v41 = vadd.f32 %v1086_v39, %v1074_v35  ;;  %v1091_v42 = vadd.f32 %v1082_v38, %v1075_v36  ;;  %v1092_v43 = vadd.f32 %v1086_v39, %v1076_v37 }
 0x180   : > { %v1093_v44 = vmax.f32 %v1089_v40, 0.0  ;;  %v1094_v45 = vmax.f32 %v1090_v41, 0.0  ;;  %v1095_v46 = vmax.f32 %v1091_v42, 0.0  ;;  %v1096_v47 = vmax.f32 %v1092_v43, 0.0 }
 0x182   : > { %1097 = vst [vmem:[%s1901_s1] sm:$0xff] %v1093_v44  ;;  %1098 = vst [vmem:[%s1901_s1 + $0x8] sm:$0xff] %v1094_v45 }
 0x183   : > { %1099 = vst [vmem:[%s1901_s1 + $0x10] sm:$0xff] %v1095_v46  ;;  %1100 = vst [vmem:[%s1901_s1 + $0x18] sm:$0xff] %v1096_v47 }
 0x184 PF: > { %1107 = sbr.rel (!%p1733_p12) target bundleno = 396 (0x18c), region = 105  ;;  %s1338_s16 = sshll.u32 (%p1733_p12), %s1604_s19, 4 }
 0x185   : > { %s1113_s5 = scalar_lea.vmem (%p1733_p12), %s2028_s3, %s1338_s16 }
 0x189   : > { %v1126_v48 = vld [vmem:[%s1901_s1] sm:$0xff]  ;;  %v1128_v49 = vld [vmem:[%s1901_s1 + $0x8] sm:$0xff] }
 0x18a   : > { %v1130_v50 = vld [vmem:[%s1901_s1 + $0x10] sm:$0xff]  ;;  %v1132_v51 = vld [vmem:[%s1901_s1 + $0x18] sm:$0xff]  ;;  %1127 = vst [vmem:[%s1113_s5] sm:$0xff] %v1126_v48  ;;  %1129 = vst [vmem:[%s1113_s5 + $0x8] sm:$0xff] %v1128_v49 }
 0x18b   : > { %1131 = vst [vmem:[%s1113_s5 + $0x20] sm:$0xff] %v1130_v50  ;;  %1133 = vst [vmem:[%s1113_s5 + $0x28] sm:$0xff] %v1132_v51 }
 0x18c PF: > { %s13_s22 = sadd.s32 1, %s1616_s22   ;;  %s2038_s10 = sld [smem:[#allocation6_spill]] }
 0x18d   : > { %p10_p6 = scmp.ge.s32.totalorder %s13_s22, 20   ;;  %s2039_s12 = smov %s1580_s13 }
 0x18e   : > { %s2040_s13 = smov %s1731_s9  ;;  %s2041_s14 = smov %s1588_s15 }
 0x18f   : > { %s2042_s15 = smov %s1728_s8  ;;  %s2043_s16 = smov %s1596_s17 }
 0x190   : > { %s2044_s17 = smov %s1714_s30  ;;  %s2045_s18 = smov %s1608_s20 }
 0x191   : > { %s2046_s19 = smov %s1612_s21  ;;  %s2047_s20 = smov %s2050_s24 }
 0x192   : > { %s2048_s21 = smov %s2038_s10  ;;  %12 = sbr.rel (!%p10_p6) target bundleno = 9 (0x9), region = 170 }

// kernel: _lambda_.40
= control target key start
LH: loop header
LB: loop body
LE: loop exit
PB: predicated region body
PF: predicated region fallthrough
CT: control target
= control target key end

     0   :  { %s2167_s0 = inlined_call_operand.vmem [shape: bf16[16,4608], index: 0, kind: input, shape index: {}]   ;;  %s2168_s1 = inlined_call_operand.vmem [shape: bf16[4608,512], index: 1, kind: input, shape index: {}]   ;;  %s2169_s2 = inlined_call_operand.vmem [shape: f32[1,512], index: 2, kind: input, shape index: {}]   ;;  %s2170_s3 = inlined_call_operand.vmem [shape: f32[16,512], index: 3, kind: input, shape index: {}]   ;;  %s2171_s4 = inlined_call_operand.vmem [shape: f32[16,512], index: 4, kind: output, shape index: {}]  }
   0x1   :  { %2174 = sst [smem:[#allocation10_spill]] %s2167_s0 }
   0x2   :  { %s1758_s15 = smov 0   ;;  %s1760_s16 = smov 0  }
   0x3   :  { %s1762_s17 = smov 0   ;;  %s1764_s18 = smov 0  }
   0x4   :  { %s1766_s19 = smov 0   ;;  %s1768_s20 = smov 0  }
   0x5   :  { %s1770_s21 = smov 0   ;;  %s1772_s22 = smov 0  }
   0x6   :  { %s1774_s23 = smov 0   ;;  %s1776_s24 = smov 0  }
   0x7   :  { %s1778_s25 = smov 0  }
   0x8 LB: > { %s1353_s26 = sadd.s32 4294967295, %s1730_s25   ;;  %s26_s27 = sadd.s32 1, %s1722_s23  ;;  %s1730_s25 = sphi %s1778_s25, %s14_s25   ;;  %s1726_s24 = sphi %s1776_s24, %s2195_s24   ;;  %s1722_s23 = sphi %s1774_s23, %s2194_s23   ;;  %s1718_s22 = sphi %s1772_s22, %s2193_s22   ;;  %s1714_s21 = sphi %s1770_s21, %s2192_s21   ;;  %s1710_s20 = sphi %s1768_s20, %s2191_s20   ;;  %s1706_s19 = sphi %s1766_s19, %s2190_s19   ;;  %s1702_s18 = sphi %s1764_s18, %s2189_s18   ;;  %s1698_s17 = sphi %s1762_s17, %s2188_s17   ;;  %s1694_s16 = sphi %s1760_s16, %s2187_s16   ;;  %s1690_s15 = sphi %s1758_s15, %s2186_s15  }
   0x9   : > { %p27_p0 = scmp.ge.s32.totalorder %s26_s27, 9  ;;  %s29_s28 = sadd.s32 1, %s1726_s24 }
   0xa   : > { %s42_s29 = sadd.s32 1, %s1710_s20  ;;  %p49_p1 = scmp.ne.s32.totalorder %s1710_s20, %s1706_s19 }
   0xb   : > { %s2197_s27 = smov (%p27_p0, %s26_s27), 0  ;;  %s2199_s28 = smov (!%p27_p0, %s29_s28), %s1726_s24 }
   0xc   : > { %2175 = sst [smem:[#allocation7_spill]] %s2197_s27  ;;  %s38_s30 = ssub.s32 %s1722_s23, %s2197_s27 }
   0xd   : > { %p50_p2 = scmp.eq.s32.totalorder %s1730_s25, 0  ;;  %p31_p3 = scmp.ge.s32.totalorder %s2199_s28, 2 }
   0xe   : > { %p40_p4 = scmp.eq.s32.totalorder %s38_s30, 0  ;;  %s70_s6 = sadd.s32 1, %s1702_s18 }
   0xf   : > { %p1827_p5 = por %p50_p2, %p49_p1  ;;  %s2201_s28 = smov (%p31_p3, %s2199_s28), 0 }
  0x10   : > { %2177 = sst [smem:[#allocation8_spill]] %s2201_s28  ;;  %s66_s8 = ssub.s32 %s1726_s24, %s2201_s28 }
  0x11   : > { %s1835_s7 = scalar_select %p40_p4, %s1710_s20, %s42_s29  }
  0x12   : > { %p77_p6 = scmp.ne.s32.totalorder %s1702_s18, %s1698_s17  ;;  %s67_s9 = sor.u32 %s66_s8, %s38_s30 }
  0x13   : > { %2178 = sst [smem:[#allocation9_spill]] %s1835_s7  ;;  %p122_p7 = scmp.eq.s32.totalorder %s66_s8, 0 }
  0x14   : > { %p68_p8 = scmp.eq.s32.totalorder %s67_s9, 0  ;;  %p1843_p9 = por %p77_p6, %p50_p2 }
  0x15   : > { %s124_s11 = sadd.s32 1, %s1694_s16  ;;  %p131_p10 = scmp.ne.s32.totalorder %s1694_s16, %s1690_s15 }
  0x16   : > { %s1851_s12 = scalar_select %p68_p8, %s1702_s18, %s70_s6  }
  0x17   : > { %s1854_s13 = scalar_select %p122_p7, %s1694_s16, %s124_s11  }
  0x18   : > { %p1858_p11 = por %p131_p10, %p50_p2  ;;  %p163_p12 = scmp.eq.s32.totalorder %s1353_s26, 17 }
  0x19   : > { %p1356_p0 = scmp.ge.s32.totalorder %s1730_s25, 18 }
  0x1a   : > { %p1862_p13 = por %p163_p12, %p131_p10 }
  0x1b   : > { %185 = sbr.rel (%p1356_p0) target bundleno = 89 (0x59), region = 16 }
  0x20   : > { %188 = sbr.rel (!%p1827_p5) target bundleno = 44 (0x2c), region = 20  ;;  %s190_s30 = sand.u32 (%p1827_p5), 1, %s1710_s20  }
  0x21   : > { %s1449_s6 = sshll.u32 (%p1827_p5), %s1722_s23, 4  ;;  %s1357_s8 = sshll.u32 (%p1827_p5), %s190_s30, 5 }
  0x22   : > { %s2182_s0 = sld [smem:[#allocation10_spill]] (%p1827_p5)  ;;  %s192_s26 = scalar_lea.vmem (%p1827_p5), [#allocation3], %s1357_s8 }
  0x28   : > { %s198_s28 = scalar_lea.vmem %s2182_s0, %s1449_s6 }
  0x29   : > { %v211_v0 = vld [vmem:[%s198_s28] sm:$0xff]  ;;  %v213_v1 = vld [vmem:[%s198_s28 + $0x8] sm:$0xff]  ;;  %v215_v2 = vld [vmem:[%s198_s28 + $0x90] sm:$0xff] }
  0x2a   : > { %212 = vst [vmem:[%s192_s26] sm:$0xff] %v211_v0  ;;  %214 = vst [vmem:[%s192_s26 + $0x8] sm:$0xff] %v213_v1  ;;  %v217_v3 = vld [vmem:[%s198_s28 + $0x98] sm:$0xff] }
  0x2b   : > { %216 = vst [vmem:[%s192_s26 + $0x10] sm:$0xff] %v215_v2  ;;  %218 = vst [vmem:[%s192_s26 + $0x18] sm:$0xff] %v217_v3 }
  0x2c PF: > { %224 = sbr.rel (!%p1843_p9) target bundleno = 83 (0x53), region = 43  ;;  %s226_s5 = sand.u32 (%p1843_p9), 1, %s1702_s18  }
  0x2d   : > { %s1362_s30 = sshll.u32 (%p1843_p9), %s1726_s24, 1  ;;  %s1360_s9 = sshll.u32 (%p1843_p9), %s226_s5, 9 }
  0x2e   : > { %s1450_s6 = sshll.u32 (%p1843_p9), %s1722_s23, 8  ;;  %s1887_s28 = scalar_lea.vmem (%p1843_p9), [#allocation4], %s1360_s9 }
  0x2f   : > { %s232_s11 = sadd.s32 (%p1843_p9), %s1450_s6, %s1362_s30 }
  0x30   : > { %s1364_s0 = sshll.u32 (%p1843_p9), %s232_s11, 2 }
  0x31   : > { %s1882_s7 = scalar_lea.vmem %s2168_s1, %s1364_s0 }
  0x32   : > { %v389_v4 = vld [vmem:[%s1882_s7] sm:$0xff]  ;;  %v391_v5 = vld [vmem:[%s1882_s7 + $0x10] sm:$0xff] }
  0x33   : > { %v393_v6 = vld [vmem:[%s1882_s7 + $0x20] sm:$0xff]  ;;  %390 = vst [vmem:[%s1887_s28] sm:$0xff] %v389_v4  ;;  %392 = vst [vmem:[%s1887_s28 + $0x8] sm:$0xff] %v391_v5  ;;  %v395_v7 = vld [vmem:[%s1882_s7 + $0x30] sm:$0xff] }
  0x34   : > { %394 = vst [vmem:[%s1887_s28 + $0x10] sm:$0xff] %v393_v6  ;;  %v397_v8 = vld [vmem:[%s1882_s7 + $0x40] sm:$0xff]  ;;  %v399_v9 = vld [vmem:[%s1882_s7 + $0x50] sm:$0xff]  ;;  %396 = vst [vmem:[%s1887_s28 + $0x18] sm:$0xff] %v395_v7 }
  0x35   : > { %398 = vst [vmem:[%s1887_s28 + $0x20] sm:$0xff] %v397_v8  ;;  %400 = vst [vmem:[%s1887_s28 + $0x28] sm:$0xff] %v399_v9  ;;  %v401_v10 = vld [vmem:[%s1882_s7 + $0x60] sm:$0xff]  ;;  %v403_v11 = vld [vmem:[%s1882_s7 + $0x70] sm:$0xff] }
  0x36   : > { %v405_v12 = vld [vmem:[%s1882_s7 + $0x80] sm:$0xff]  ;;  %402 = vst [vmem:[%s1887_s28 + $0x30] sm:$0xff] %v401_v10  ;;  %404 = vst [vmem:[%s1887_s28 + $0x38] sm:$0xff] %v403_v11  ;;  %v407_v13 = vld [vmem:[%s1882_s7 + $0x90] sm:$0xff] }
  0x37   : > { %406 = vst [vmem:[%s1887_s28 + $0x40] sm:$0xff] %v405_v12  ;;  %v409_v14 = vld [vmem:[%s1882_s7 + $0xa0] sm:$0xff]  ;;  %v411_v15 = vld [vmem:[%s1882_s7 + $0xb0] sm:$0xff]  ;;  %408 = vst [vmem:[%s1887_s28 + $0x48] sm:$0xff] %v407_v13 }
  0x38   : > { %410 = vst [vmem:[%s1887_s28 + $0x50] sm:$0xff] %v409_v14  ;;  %412 = vst [vmem:[%s1887_s28 + $0x58] sm:$0xff] %v411_v15  ;;  %v413_v16 = vld [vmem:[%s1882_s7 + $0xc0] sm:$0xff]  ;;  %v415_v17 = vld [vmem:[%s1882_s7 + $0xd0] sm:$0xff] }
  0x39   : > { %v417_v18 = vld [vmem:[%s1882_s7 + $0xe0] sm:$0xff]  ;;  %414 = vst [vmem:[%s1887_s28 + $0x60] sm:$0xff] %v413_v16  ;;  %416 = vst [vmem:[%s1887_s28 + $0x68] sm:$0xff] %v415_v17  ;;  %v419_v19 = vld [vmem:[%s1882_s7 + $0xf0] sm:$0xff] }
  0x3a   : > { %418 = vst [vmem:[%s1887_s28 + $0x70] sm:$0xff] %v417_v18  ;;  %v421_v20 = vld [vmem:[%s1882_s7 + $0x100] sm:$0xff]  ;;  %v423_v21 = vld [vmem:[%s1882_s7 + $0x110] sm:$0xff]  ;;  %420 = vst [vmem:[%s1887_s28 + $0x78] sm:$0xff] %v419_v19 }
  0x3b   : > { %422 = vst [vmem:[%s1887_s28 + $0x80] sm:$0xff] %v421_v20  ;;  %424 = vst [vmem:[%s1887_s28 + $0x88] sm:$0xff] %v423_v21  ;;  %v425_v22 = vld [vmem:[%s1882_s7 + $0x120] sm:$0xff]  ;;  %v427_v23 = vld [vmem:[%s1882_s7 + $0x130] sm:$0xff] }
  0x3c   : > { %v429_v24 = vld [vmem:[%s1882_s7 + $0x140] sm:$0xff]  ;;  %426 = vst [vmem:[%s1887_s28 + $0x90] sm:$0xff] %v425_v22  ;;  %428 = vst [vmem:[%s1887_s28 + $0x98] sm:$0xff] %v427_v23  ;;  %v431_v25 = vld [vmem:[%s1882_s7 + $0x150] sm:$0xff] }
  0x3d   : > { %430 = vst [vmem:[%s1887_s28 + $0xa0] sm:$0xff] %v429_v24  ;;  %v433_v26 = vld [vmem:[%s1882_s7 + $0x160] sm:$0xff]  ;;  %v435_v27 = vld [vmem:[%s1882_s7 + $0x170] sm:$0xff]  ;;  %432 = vst [vmem:[%s1887_s28 + $0xa8] sm:$0xff] %v431_v25 }
  0x3e   : > { %434 = vst [vmem:[%s1887_s28 + $0xb0] sm:$0xff] %v433_v26  ;;  %436 = vst [vmem:[%s1887_s28 + $0xb8] sm:$0xff] %v435_v27  ;;  %v437_v28 = vld [vmem:[%s1882_s7 + $0x180] sm:$0xff]  ;;  %v439_v29 = vld [vmem:[%s1882_s7 + $0x190] sm:$0xff] }
  0x3f   : > { %v441_v30 = vld [vmem:[%s1882_s7 + $0x1a0] sm:$0xff]  ;;  %438 = vst [vmem:[%s1887_s28 + $0xc0] sm:$0xff] %v437_v28  ;;  %440 = vst [vmem:[%s1887_s28 + $0xc8] sm:$0xff] %v439_v29  ;;  %v443_v31 = vld [vmem:[%s1882_s7 + $0x1b0] sm:$0xff] }
  0x40   : > { %442 = vst [vmem:[%s1887_s28 + $0xd0] sm:$0xff] %v441_v30  ;;  %v445_v32 = vld [vmem:[%s1882_s7 + $0x1c0] sm:$0xff]  ;;  %v447_v33 = vld [vmem:[%s1882_s7 + $0x1d0] sm:$0xff]  ;;  %444 = vst [vmem:[%s1887_s28 + $0xd8] sm:$0xff] %v443_v31 }
  0x41   : > { %446 = vst [vmem:[%s1887_s28 + $0xe0] sm:$0xff] %v445_v32  ;;  %448 = vst [vmem:[%s1887_s28 + $0xe8] sm:$0xff] %v447_v33  ;;  %v449_v34 = vld [vmem:[%s1882_s7 + $0x1e0] sm:$0xff]  ;;  %v451_v35 = vld [vmem:[%s1882_s7 + $0x1f0] sm:$0xff] }
  0x42   : > { %v453_v36 = vld [vmem:[%s1882_s7 + $0x200] sm:$0xff]  ;;  %450 = vst [vmem:[%s1887_s28 + $0xf0] sm:$0xff] %v449_v34  ;;  %452 = vst [vmem:[%s1887_s28 + $0xf8] sm:$0xff] %v451_v35  ;;  %v455_v37 = vld [vmem:[%s1882_s7 + $0x210] sm:$0xff] }
  0x43   : > { %454 = vst [vmem:[%s1887_s28 + $0x100] sm:$0xff] %v453_v36  ;;  %v457_v38 = vld [vmem:[%s1882_s7 + $0x220] sm:$0xff]  ;;  %v459_v39 = vld [vmem:[%s1882_s7 + $0x230] sm:$0xff]  ;;  %456 = vst [vmem:[%s1887_s28 + $0x108] sm:$0xff] %v455_v37 }
  0x44   : > { %458 = vst [vmem:[%s1887_s28 + $0x110] sm:$0xff] %v457_v38  ;;  %460 = vst [vmem:[%s1887_s28 + $0x118] sm:$0xff] %v459_v39  ;;  %v461_v40 = vld [vmem:[%s1882_s7 + $0x240] sm:$0xff]  ;;  %v463_v41 = vld [vmem:[%s1882_s7 + $0x250] sm:$0xff] }
  0x45   : > { %v465_v42 = vld [vmem:[%s1882_s7 + $0x260] sm:$0xff]  ;;  %462 = vst [vmem:[%s1887_s28 + $0x120] sm:$0xff] %v461_v40  ;;  %464 = vst [vmem:[%s1887_s28 + $0x128] sm:$0xff] %v463_v41  ;;  %v467_v43 = vld [vmem:[%s1882_s7 + $0x270] sm:$0xff] }
  0x46   : > { %466 = vst [vmem:[%s1887_s28 + $0x130] sm:$0xff] %v465_v42  ;;  %v469_v44 = vld [vmem:[%s1882_s7 + $0x280] sm:$0xff]  ;;  %v471_v45 = vld [vmem:[%s1882_s7 + $0x290] sm:$0xff]  ;;  %468 = vst [vmem:[%s1887_s28 + $0x138] sm:$0xff] %v467_v43 }
  0x47   : > { %470 = vst [vmem:[%s1887_s28 + $0x140] sm:$0xff] %v469_v44  ;;  %472 = vst [vmem:[%s1887_s28 + $0x148] sm:$0xff] %v471_v45  ;;  %v473_v46 = vld [vmem:[%s1882_s7 + $0x2a0] sm:$0xff]  ;;  %v475_v47 = vld [vmem:[%s1882_s7 + $0x2b0] sm:$0xff] }
  0x48   : > { %v477_v48 = vld [vmem:[%s1882_s7 + $0x2c0] sm:$0xff]  ;;  %474 = vst [vmem:[%s1887_s28 + $0x150] sm:$0xff] %v473_v46  ;;  %476 = vst [vmem:[%s1887_s28 + $0x158] sm:$0xff] %v475_v47  ;;  %v479_v49 = vld [vmem:[%s1882_s7 + $0x2d0] sm:$0xff] }
  0x49   : > { %478 = vst [vmem:[%s1887_s28 + $0x160] sm:$0xff] %v477_v48  ;;  %v481_v50 = vld [vmem:[%s1882_s7 + $0x2e0] sm:$0xff]  ;;  %v483_v51 = vld [vmem:[%s1882_s7 + $0x2f0] sm:$0xff]  ;;  %480 = vst [vmem:[%s1887_s28 + $0x168] sm:$0xff] %v479_v49 }
  0x4a   : > { %482 = vst [vmem:[%s1887_s28 + $0x170] sm:$0xff] %v481_v50  ;;  %484 = vst [vmem:[%s1887_s28 + $0x178] sm:$0xff] %v483_v51  ;;  %v485_v52 = vld [vmem:[%s1882_s7 + $0x300] sm:$0xff]  ;;  %v487_v53 = vld [vmem:[%s1882_s7 + $0x310] sm:$0xff] }
  0x4b   : > { %v489_v54 = vld [vmem:[%s1882_s7 + $0x320] sm:$0xff]  ;;  %486 = vst [vmem:[%s1887_s28 + $0x180] sm:$0xff] %v485_v52  ;;  %488 = vst [vmem:[%s1887_s28 + $0x188] sm:$0xff] %v487_v53  ;;  %v491_v55 = vld [vmem:[%s1882_s7 + $0x330] sm:$0xff] }
  0x4c   : > { %490 = vst [vmem:[%s1887_s28 + $0x190] sm:$0xff] %v489_v54  ;;  %v493_v56 = vld [vmem:[%s1882_s7 + $0x340] sm:$0xff]  ;;  %v495_v57 = vld [vmem:[%s1882_s7 + $0x350] sm:$0xff]  ;;  %492 = vst [vmem:[%s1887_s28 + $0x198] sm:$0xff] %v491_v55 }
  0x4d   : > { %494 = vst [vmem:[%s1887_s28 + $0x1a0] sm:$0xff] %v493_v56  ;;  %496 = vst [vmem:[%s1887_s28 + $0x1a8] sm:$0xff] %v495_v57  ;;  %v497_v58 = vld [vmem:[%s1882_s7 + $0x360] sm:$0xff]  ;;  %v499_v59 = vld [vmem:[%s1882_s7 + $0x370] sm:$0xff] }
  0x4e   : > { %v501_v60 = vld [vmem:[%s1882_s7 + $0x380] sm:$0xff]  ;;  %498 = vst [vmem:[%s1887_s28 + $0x1b0] sm:$0xff] %v497_v58  ;;  %500 = vst [vmem:[%s1887_s28 + $0x1b8] sm:$0xff] %v499_v59  ;;  %v503_v61 = vld [vmem:[%s1882_s7 + $0x390] sm:$0xff] }
  0x4f   : > { %502 = vst [vmem:[%s1887_s28 + $0x1c0] sm:$0xff] %v501_v60  ;;  %v505_v62 = vld [vmem:[%s1882_s7 + $0x3a0] sm:$0xff]  ;;  %v507_v63 = vld [vmem:[%s1882_s7 + $0x3b0] sm:$0xff]  ;;  %504 = vst [vmem:[%s1887_s28 + $0x1c8] sm:$0xff] %v503_v61 }
  0x50   : > { %506 = vst [vmem:[%s1887_s28 + $0x1d0] sm:$0xff] %v505_v62  ;;  %508 = vst [vmem:[%s1887_s28 + $0x1d8] sm:$0xff] %v507_v63  ;;  %v509_v0 = vld [vmem:[%s1882_s7 + $0x3c0] sm:$0xff]  ;;  %v511_v1 = vld [vmem:[%s1882_s7 + $0x3d0] sm:$0xff] }
  0x51   : > { %v513_v2 = vld [vmem:[%s1882_s7 + $0x3e0] sm:$0xff]  ;;  %510 = vst [vmem:[%s1887_s28 + $0x1e0] sm:$0xff] %v509_v0  ;;  %512 = vst [vmem:[%s1887_s28 + $0x1e8] sm:$0xff] %v511_v1  ;;  %v515_v3 = vld [vmem:[%s1882_s7 + $0x3f0] sm:$0xff] }
  0x52   : > { %514 = vst [vmem:[%s1887_s28 + $0x1f0] sm:$0xff] %v513_v2  ;;  %516 = vst [vmem:[%s1887_s28 + $0x1f8] sm:$0xff] %v515_v3 }
  0x53 PF: > { %530 = sbr.rel (!%p1858_p11) target bundleno = 89 (0x59), region = 85  ;;  %s532_s0 = sand.u32 (%p1858_p11), 1, %s1694_s16  }
  0x54   : > { %s1451_s27 = sshll.u32 (%p1858_p11), %s1726_s24, 4  ;;  %s1365_s10 = sshll.u32 (%p1858_p11), %s532_s0, 5 }
  0x55   : > { %s540_s30 = scalar_lea.vmem (%p1858_p11), %s2170_s3, %s1451_s27  ;;  %s534_s9 = scalar_lea.vmem (%p1858_p11), [#allocation5], %s1365_s10 }
  0x56   : > { %v553_v4 = vld [vmem:[%s540_s30] sm:$0xff] (%p1858_p11)  ;;  %v555_v5 = vld [vmem:[%s540_s30 + $0x8] sm:$0xff] (%p1858_p11) }
  0x57   : > { %v557_v6 = vld [vmem:[%s540_s30 + $0x20] sm:$0xff] (%p1858_p11)  ;;  %554 = vst [vmem:[%s534_s9] sm:$0xff] (%p1858_p11), %v553_v4  ;;  %556 = vst [vmem:[%s534_s9 + $0x8] sm:$0xff] (%p1858_p11), %v555_v5  ;;  %v559_v7 = vld [vmem:[%s540_s30 + $0x28] sm:$0xff] (%p1858_p11) }
  0x58   : > { %558 = vst [vmem:[%s534_s9 + $0x10] sm:$0xff] %v557_v6  ;;  %560 = vst [vmem:[%s534_s9 + $0x18] sm:$0xff] %v559_v7 }
  0x59 PF: > { %p1368_p1 = scmp.ge.s32.totalorder %s1730_s25, 1  ;;  %p565_p2 = scmp.lt.s32.totalorder %s1730_s25, 19 }
  0x5b   : > { %p566_p3 = pnand %p1368_p1, %p565_p2 }
  0x5c   : > { %s572_s7 = sand.u32 (!%p566_p3), 1, %s1706_s19   ;;  %s579_s14 = sand.u32 (!%p566_p3), 1, %s1698_s17  }
  0x5d   : > { %569 = sbr.rel (%p566_p3) target bundleno = 403 (0x193), region = 108  ;;  %s1369_s6 = sshll.u32 (!%p566_p3), %s572_s7, 5 }
  0x5e   : > { %s1370_s11 = sshll.u32 (!%p566_p3), %s579_s14, 9  ;;  %s586_s8 = sand.u32 (!%p566_p3), 1, %s1690_s15  }
  0x5f   : > { %s1373_s28 = sshll.u32 (!%p566_p3), %s1718_s22, 1  ;;  %s1371_s0 = sshll.u32 (!%p566_p3), %s586_s8, 5 }
  0x60   : > { %p627_p4 = scmp.lt.s32.totalorder (!%p566_p3), %s1373_s28, 3  ;;  %s2033_s5 = scalar_lea.vmem (!%p566_p3), [#allocation3], %s1369_s6 }
  0x61   : > { %s2035_s30 = scalar_lea.vmem (!%p566_p3), [#allocation4], %s1370_s11  ;;  %s2037_s9 = scalar_lea.vmem (!%p566_p3), [#allocation5], %s1371_s0 }
  0x62   : > { %s2203_s28 = smov (!%p627_p4, %s1373_s28), 3  ;;  %s2039_s17 = scalar_lea.vmem [#allocation6], %s1371_s0 }
  0x63   : > { %s629_s26 = scalar_lea.vmem %s2169_s2, %s2203_s28  ;;  %p1374_p5 = scmp.ne.s32.totalorder %s1714_s21, 0 }
  0x65   : > { %638 = sbr.rel (%p1374_p5) target bundleno = 109 (0x6d), region = 124 }
  0x6a   : > { %v1732_v8 = vmov 0.0  }
  0x6b   : > { %639 = vst [vmem:[#allocation2 + $0x10] sm:$0xff] %v1732_v8  ;;  %640 = vst [vmem:[#allocation2] sm:$0xff] %v1732_v8 }
  0x6c   : > { %641 = vst [vmem:[#allocation2 + $0x18] sm:$0xff] %v1732_v8  ;;  %642 = vst [vmem:[#allocation2 + $0x8] sm:$0xff] %v1732_v8 }
  0x6d PF: > { %v1542_v9 = vld [vmem:[%s2035_s30 + $0x74] ss:$8 sps:$4 sm:$0xff]   ;;  %v1546_v11 = vld [vmem:[%s2035_s30 + $0x70] ss:$8 sps:$4 sm:$0xff]   ;;  %v1548_v13 = vld [vmem:[%s2035_s30 + $0x64] ss:$8 sps:$4 sm:$0xff]  }
  0x6e   : > { %v1544_v10 = vld [vmem:[%s2035_s30 + $0x174] ss:$8 sps:$4 sm:$0xff]   ;;  %1055 = vmatprep.subr.bf16.mxu0 %v1542_v9  ;;  %v1547_v12 = vld [vmem:[%s2035_s30 + $0x170] ss:$8 sps:$4 sm:$0xff]   ;;  %v1550_v14 = vld [vmem:[%s2035_s30 + $0x164] ss:$8 sps:$4 sm:$0xff]  }
  0x6f   : > { %1098 = vmatprep.subr.bf16.mxu1 %v1544_v10  ;;  %1056 = vmatpush1.bf16.msra.mxu0 %v1546_v11  ;;  %v1552_v15 = vld [vmem:[%s2035_s30 + $0x60] ss:$8 sps:$4 sm:$0xff]   ;;  %v1554_v17 = vld [vmem:[%s2035_s30 + $0x54] ss:$8 sps:$4 sm:$0xff]   ;;  %v1558_v19 = vld [vmem:[%s2035_s30 + $0x50] ss:$8 sps:$4 sm:$0xff]  }
  0x70   : > { %1099 = vmatpush1.bf16.msra.mxu1 %v1547_v12  ;;  %1057 = vmatprep.subr.bf16.mxu0 %v1548_v13  ;;  %v1553_v16 = vld [vmem:[%s2035_s30 + $0x160] ss:$8 sps:$4 sm:$0xff]   ;;  %v1556_v18 = vld [vmem:[%s2035_s30 + $0x154] ss:$8 sps:$4 sm:$0xff]   ;;  %v1559_v20 = vld [vmem:[%s2035_s30 + $0x150] ss:$8 sps:$4 sm:$0xff]  }
  0x71   : > { %1100 = vmatprep.subr.bf16.mxu1 %v1550_v14  ;;  %v1560_v21 = vld [vmem:[%s2035_s30 + $0x44] ss:$8 sps:$4 sm:$0xff]   ;;  %v1564_v23 = vld [vmem:[%s2035_s30 + $0x40] ss:$8 sps:$4 sm:$0xff]   ;;  %v1566_v25 = vld [vmem:[%s2035_s30 + $0x34] ss:$8 sps:$4 sm:$0xff]  }
  0x72   : > { %v1562_v22 = vld [vmem:[%s2035_s30 + $0x144] ss:$8 sps:$4 sm:$0xff]   ;;  %v1565_v24 = vld [vmem:[%s2035_s30 + $0x140] ss:$8 sps:$4 sm:$0xff]   ;;  %v1568_v26 = vld [vmem:[%s2035_s30 + $0x134] ss:$8 sps:$4 sm:$0xff]  }
  0x73   : > { %1058 = vmatpush1.bf16.msra.mxu0 %v1552_v15  ;;  %v1570_v27 = vld [vmem:[%s2035_s30 + $0x30] ss:$8 sps:$4 sm:$0xff]   ;;  %v1572_v29 = vld [vmem:[%s2035_s30 + $0x24] ss:$8 sps:$4 sm:$0xff]   ;;  %v1576_v31 = vld [vmem:[%s2035_s30 + $0x20] ss:$8 sps:$4 sm:$0xff]  }
  0x74   : > { %1101 = vmatpush1.bf16.msra.mxu1 %v1553_v16  ;;  %1059 = vmatprep.subr.bf16.mxu0 %v1554_v17  ;;  %v1571_v28 = vld [vmem:[%s2035_s30 + $0x130] ss:$8 sps:$4 sm:$0xff]   ;;  %v1574_v30 = vld [vmem:[%s2035_s30 + $0x124] ss:$8 sps:$4 sm:$0xff]   ;;  %v1577_v32 = vld [vmem:[%s2035_s30 + $0x120] ss:$8 sps:$4 sm:$0xff]  }
  0x75   : > { %1102 = vmatprep.subr.bf16.mxu1 %v1556_v18  ;;  %v1578_v33 = vld [vmem:[%s2035_s30 + $0x14] ss:$8 sps:$4 sm:$0xff]   ;;  %v1582_v35 = vld [vmem:[%s2035_s30 + $0x10] ss:$8 sps:$4 sm:$0xff]   ;;  %v1584_v37 = vld [vmem:[%s2035_s30 + $0x4] ss:$8 sps:$4 sm:$0xff]  }
  0x76   : > { %v1580_v34 = vld [vmem:[%s2035_s30 + $0x114] ss:$8 sps:$4 sm:$0xff]   ;;  %v1583_v36 = vld [vmem:[%s2035_s30 + $0x110] ss:$8 sps:$4 sm:$0xff]   ;;  %v1586_v38 = vld [vmem:[%s2035_s30 + $0x104] ss:$8 sps:$4 sm:$0xff]  }
  0x77   : > { %1060 = vmatpush1.bf16.msra.mxu0 %v1558_v19  ;;  %v1588_v39 = vld [vmem:[%s2035_s30] ss:$8 sps:$4 sm:$0xff]   ;;  %v1590_v41 = vld [vmem:[%s2035_s30 + $0xf4] ss:$8 sps:$4 sm:$0xff]   ;;  %v1594_v43 = vld [vmem:[%s2035_s30 + $0xf0] ss:$8 sps:$4 sm:$0xff]  }
  0x78   : > { %1103 = vmatpush1.bf16.msra.mxu1 %v1559_v20  ;;  %1061 = vmatprep.subr.bf16.mxu0 %v1560_v21  ;;  %v1589_v40 = vld [vmem:[%s2035_s30 + $0x100] ss:$8 sps:$4 sm:$0xff]   ;;  %v1592_v42 = vld [vmem:[%s2035_s30 + $0x1f4] ss:$8 sps:$4 sm:$0xff]   ;;  %v1595_v44 = vld [vmem:[%s2035_s30 + $0x1f0] ss:$8 sps:$4 sm:$0xff]  }
  0x79   : > { %1104 = vmatprep.subr.bf16.mxu1 %v1562_v22  ;;  %v1596_v45 = vld [vmem:[%s2035_s30 + $0xe4] ss:$8 sps:$4 sm:$0xff]   ;;  %v1600_v47 = vld [vmem:[%s2035_s30 + $0xe0] ss:$8 sps:$4 sm:$0xff]   ;;  %v1602_v49 = vld [vmem:[%s2035_s30 + $0xd4] ss:$8 sps:$4 sm:$0xff]  }
  0x7a   : > { %v1598_v46 = vld [vmem:[%s2035_s30 + $0x1e4] ss:$8 sps:$4 sm:$0xff]   ;;  %v1601_v48 = vld [vmem:[%s2035_s30 + $0x1e0] ss:$8 sps:$4 sm:$0xff]   ;;  %v1604_v50 = vld [vmem:[%s2035_s30 + $0x1d4] ss:$8 sps:$4 sm:$0xff]  }
  0x7b   : > { %1062 = vmatpush1.bf16.msra.mxu0 %v1564_v23  ;;  %v1606_v51 = vld [vmem:[%s2035_s30 + $0xd0] ss:$8 sps:$4 sm:$0xff]   ;;  %v1608_v53 = vld [vmem:[%s2035_s30 + $0xc4] ss:$8 sps:$4 sm:$0xff]   ;;  %v1612_v55 = vld [vmem:[%s2035_s30 + $0xc0] ss:$8 sps:$4 sm:$0xff]  }
  0x7c   : > { %1105 = vmatpush1.bf16.msra.mxu1 %v1565_v24  ;;  %1063 = vmatprep.subr.bf16.mxu0 %v1566_v25  ;;  %v1607_v52 = vld [vmem:[%s2035_s30 + $0x1d0] ss:$8 sps:$4 sm:$0xff]   ;;  %v1610_v54 = vld [vmem:[%s2035_s30 + $0x1c4] ss:$8 sps:$4 sm:$0xff]   ;;  %v1613_v57 = vld [vmem:[%s2035_s30 + $0x1c0] ss:$8 sps:$4 sm:$0xff]  }
  0x7d   : > { %1106 = vmatprep.subr.bf16.mxu1 %v1568_v26  ;;  %v1640_v56 = vld [vmem:[%s2033_s5 + $0x4] ss:$16 sps:$4 sm:$0xff]   ;;  %v1643_v60 = vld [vmem:[%s2033_s5 + $0xc] ss:$16 sps:$4 sm:$0xff]   ;;  %v1618_v61 = vld [vmem:[%s2035_s30 + $0xb0] ss:$8 sps:$4 sm:$0xff]  }
  0x7e   : > { %v1614_v58 = vld [vmem:[%s2035_s30 + $0xb4] ss:$8 sps:$4 sm:$0xff]   ;;  %1087 = vmatprep.mubr.bf16.mxu0 %v1640_v56  ;;  %1130 = vmatprep.mubr.bf16.mxu1 %v1643_v60  ;;  %v1619_v62 = vld [vmem:[%s2035_s30 + $0x1b0] ss:$8 sps:$4 sm:$0xff]   ;;  %v1620_v63 = vld [vmem:[%s2035_s30 + $0xa4] ss:$8 sps:$4 sm:$0xff]  }
  0x7f   : > { %1064 = vmatpush1.bf16.msra.mxu0 %v1570_v27  ;;  %v1616_v59 = vld [vmem:[%s2035_s30 + $0x1b4] ss:$8 sps:$4 sm:$0xff]   ;;  %v1622_v0 = vld [vmem:[%s2035_s30 + $0x1a4] ss:$8 sps:$4 sm:$0xff]   ;;  %v1624_v1 = vld [vmem:[%s2035_s30 + $0xa0] ss:$8 sps:$4 sm:$0xff]  }
  0x80   : > { %1107 = vmatpush1.bf16.msra.mxu1 %v1571_v28  ;;  %1065 = vmatprep.subr.bf16.mxu0 %v1572_v29  ;;  %v1625_v2 = vld [vmem:[%s2035_s30 + $0x1a0] ss:$8 sps:$4 sm:$0xff]   ;;  %v1626_v3 = vld [vmem:[%s2035_s30 + $0x94] ss:$8 sps:$4 sm:$0xff]   ;;  %v1630_v5 = vld [vmem:[%s2035_s30 + $0x90] ss:$8 sps:$4 sm:$0xff]  }
  0x81   : > { %1108 = vmatprep.subr.bf16.mxu1 %v1574_v30  ;;  %v1628_v4 = vld [vmem:[%s2035_s30 + $0x194] ss:$8 sps:$4 sm:$0xff]   ;;  %v1631_v6 = vld [vmem:[%s2035_s30 + $0x190] ss:$8 sps:$4 sm:$0xff]   ;;  %v1632_v7 = vld [vmem:[%s2035_s30 + $0x84] ss:$8 sps:$4 sm:$0xff]  }
  0x82   : > { %v1634_v8 = vld [vmem:[%s2035_s30 + $0x184] ss:$8 sps:$4 sm:$0xff]   ;;  %v1636_v9 = vld [vmem:[%s2035_s30 + $0x80] ss:$8 sps:$4 sm:$0xff]   ;;  %v643_v14 = vld [vmem:[#allocation2 + $0x10] sm:$0xff]  ;;  %p1443_p6 = scmp.ne.s32.totalorder %s1714_s21, 8 }
  0x83   : > { %1066 = vmatpush1.bf16.msra.mxu0 %v1576_v31  ;;  %v1637_v10 = vld [vmem:[%s2035_s30 + $0x180] ss:$8 sps:$4 sm:$0xff]   ;;  %v645_v23 = vld [vmem:[#allocation2 + $0x18] sm:$0xff] }
  0x84   : > { %1109 = vmatpush1.bf16.msra.mxu1 %v1577_v32  ;;  %1067 = vmatprep.subr.bf16.mxu0 %v1578_v33  ;;  %v1638_v11 = vld [vmem:[%s2033_s5] ss:$16 sps:$4 sm:$0xff]   ;;  %v1641_v12 = vld [vmem:[%s2033_s5 + $0x8] ss:$16 sps:$4 sm:$0xff]  }
  0x85   : > { %1110 = vmatprep.subr.bf16.mxu1 %v1580_v34  ;;  %v644_v18 = vld [vmem:[#allocation2] sm:$0xff]  ;;  %v646_v28 = vld [vmem:[#allocation2 + $0x8] sm:$0xff] }
  0x87   : > { %1068 = vmatpush1.bf16.msra.mxu0 %v1582_v35 }
  0x88   : > { %1111 = vmatpush1.bf16.msra.mxu1 %v1583_v36  ;;  %1069 = vmatprep.subr.bf16.mxu0 %v1584_v37 }
  0x89   : > { %1112 = vmatprep.subr.bf16.mxu1 %v1586_v38 }
  0x8b   : > { %1070 = vmatpush1.bf16.msra.mxu0 %v1588_v39 }
  0x8c   : > { %1113 = vmatpush1.bf16.msra.mxu1 %v1589_v40  ;;  %1071 = vmatprep.subr.bf16.mxu0 %v1590_v41 }
  0x8d   : > { %1114 = vmatprep.subr.bf16.mxu1 %v1592_v42 }
  0x8f   : > { %1072 = vmatpush2.bf16.msra.mxu0 %v1594_v43 }
  0x90   : > { %1115 = vmatpush2.bf16.msra.mxu1 %v1595_v44  ;;  %1073 = vmatprep.subr.bf16.mxu0 %v1596_v45 }
  0x91   : > { %1116 = vmatprep.subr.bf16.mxu1 %v1598_v46 }
  0x93   : > { %1074 = vmatpush2.bf16.msra.mxu0 %v1600_v47 }
  0x94   : > { %1117 = vmatpush2.bf16.msra.mxu1 %v1601_v48  ;;  %1075 = vmatprep.subr.bf16.mxu0 %v1602_v49 }
  0x95   : > { %1118 = vmatprep.subr.bf16.mxu1 %v1604_v50 }
  0x97   : > { %1076 = vmatpush2.bf16.msra.mxu0 %v1606_v51 }
  0x98   : > { %1119 = vmatpush2.bf16.msra.mxu1 %v1607_v52  ;;  %1077 = vmatprep.subr.bf16.mxu0 %v1608_v53 }
  0x99   : > { %1120 = vmatprep.subr.bf16.mxu1 %v1610_v54 }
  0x9b   : > { %1078 = vmatpush2.bf16.msra.mxu0 %v1612_v55 }
  0x9c   : > { %1121 = vmatpush2.bf16.msra.mxu1 %v1613_v57  ;;  %1079 = vmatprep.subr.bf16.mxu0 %v1614_v58 }
  0x9d   : > { %1122 = vmatprep.subr.bf16.mxu1 %v1616_v59 }
  0x9f   : > { %1080 = vmatpush2.bf16.msra.mxu0 %v1618_v61 }
  0xa0   : > { %1123 = vmatpush2.bf16.msra.mxu1 %v1619_v62  ;;  %1081 = vmatprep.subr.bf16.mxu0 %v1620_v63 }
  0xa1   : > { %1124 = vmatprep.subr.bf16.mxu1 %v1622_v0 }
  0xa3   : > { %1082 = vmatpush2.bf16.msra.mxu0 %v1624_v1 }
  0xa4   : > { %1125 = vmatpush2.bf16.msra.mxu1 %v1625_v2  ;;  %1083 = vmatprep.subr.bf16.mxu0 %v1626_v3 }
  0xa5   : > { %1126 = vmatprep.subr.bf16.mxu1 %v1628_v4 }
  0xa7   : > { %1084 = vmatpush2.bf16.msra.mxu0 %v1630_v5 }
  0xa8   : > { %1127 = vmatpush2.bf16.msra.mxu1 %v1631_v6  ;;  %1085 = vmatprep.subr.bf16.mxu0 %v1632_v7 }
  0xa9   : > { %1128 = vmatprep.subr.bf16.mxu1 %v1634_v8 }
  0xab   : > { %1086 = vmatpush2.bf16.msra.mxu0 %v1636_v9 }
  0xac   : > { %1129 = vmatpush2.bf16.msra.mxu1 %v1637_v10 }
  0xae   : > { %1088 = vmatmul.mubr.bf16.vlgmr.msra.gmra.mxu0 %v1638_v11 }
  0xaf   : > { %1131 = vmatmul.mubr.bf16.vlgmr.msra.gmra.mxu1 %v1641_v12 }
 0x16e   : > { %v1089_v13 = vpop.f32.mrf.mxu0 }
 0x16f   : > { %v1132_v15 = vpop.f32.mrf.mxu1 }
 0x170   : > { %v1133_v16 = vadd.f32 %v1132_v15, %v1089_v13  ;;  %v1091_v17 = vpop.f32.mrf.mxu0 }
 0x171   : > { %v1134_v19 = vpop.f32.mrf.mxu1 }
 0x172   : > { %v1141_v20 = vadd.f32 %v1133_v16, %v643_v14  ;;  %v1135_v21 = vadd.f32 %v1134_v19, %v1091_v17  ;;  %v1093_v22 = vpop.f32.mrf.mxu0 }
 0x173   : > { %v1136_v24 = vpop.f32.mrf.mxu1 }
 0x174   : > { %1145 = vst [vmem:[#allocation2 + $0x10] sm:$0xff] %v1141_v20  ;;  %v1142_v25 = vadd.f32 %v1135_v21, %v644_v18  ;;  %v1137_v26 = vadd.f32 %v1136_v24, %v1093_v22  ;;  %v1095_v27 = vpop.f32.mrf.mxu0 }
 0x175   : > { %v1138_v29 = vpop.f32.mrf.mxu1 }
 0x176   : > { %1146 = vst [vmem:[#allocation2] sm:$0xff] %v1142_v25  ;;  %v1143_v30 = vadd.f32 %v1137_v26, %v645_v23  ;;  %v1139_v31 = vadd.f32 %v1138_v29, %v1095_v27  ;;  %1152 = sbr.rel (%p1443_p6) target bundleno = 395 (0x18b), region = 128 }
 0x178   : > { %1147 = vst [vmem:[#allocation2 + $0x18] sm:$0xff] %v1143_v30  ;;  %v1144_v32 = vadd.f32 %v1139_v31, %v646_v28 }
 0x17a   : > { %1148 = vst [vmem:[#allocation2 + $0x8] sm:$0xff] %v1144_v32 }
 0x17b   : > { %v1159_v33 = vlaneseq  ;;  %v1157_v35 = vld [vmem:[%s629_s26] sm:$0x3]  ;;  %v1153_v36 = vld [vmem:[#allocation2 + $0x10] sm:$0xff]  ;;  %v1174_v45 = vld [vmem:[%s2037_s9 + $0x8] sm:$0xff] }
 0x17c   : > { %v1173_v43 = vld [vmem:[%s2037_s9] sm:$0xff]  ;;  %v1175_v46 = vld [vmem:[%s2037_s9 + $0x10] sm:$0xff]  ;;  %v1176_v47 = vld [vmem:[%s2037_s9 + $0x18] sm:$0xff] }
 0x17d   : > { %v1160_v34 = vshrl.u32 %v1159_v33, 7  ;;  %v1154_v39 = vld [vmem:[#allocation2] sm:$0xff] }
 0x17f   : > { %v1161_v37 = vsub.s32 0, %v1160_v34  ;;  %v1165_v38 = vsub.s32 1, %v1160_v34  ;;  %v1155_v40 = vld [vmem:[#allocation2 + $0x18] sm:$0xff] }
 0x181   : > { %v1156_v41 = vld [vmem:[#allocation2 + $0x8] sm:$0xff]  ;;  %v1162_v42 = vrot.slane %v1157_v35, %v1161_v37  ;;  %v1166_v44 = vrot.slane %v1157_v35, %v1165_v38 }
 0x183   : > { %v1169_v48 = vadd.f32 %v1162_v42, %v1153_v36  ;;  %v1170_v49 = vadd.f32 %v1166_v44, %v1154_v39  ;;  %v1171_v50 = vadd.f32 %v1162_v42, %v1155_v40  ;;  %v1172_v51 = vadd.f32 %v1166_v44, %v1156_v41 }
 0x185   : > { %v1177_v52 = vadd.f32 %v1173_v43, %v1169_v48  ;;  %v1178_v53 = vadd.f32 %v1174_v45, %v1170_v49  ;;  %v1179_v54 = vadd.f32 %v1175_v46, %v1171_v50  ;;  %v1180_v55 = vadd.f32 %v1176_v47, %v1172_v51 }
 0x187   : > { %v1181_v56 = vmax.f32 %v1177_v52, 0.0  ;;  %v1182_v57 = vmax.f32 %v1178_v53, 0.0  ;;  %v1183_v58 = vmax.f32 %v1179_v54, 0.0  ;;  %v1184_v59 = vmax.f32 %v1180_v55, 0.0 }
 0x189   : > { %1185 = vst [vmem:[%s2039_s17] sm:$0xff] %v1181_v56  ;;  %1186 = vst [vmem:[%s2039_s17 + $0x8] sm:$0xff] %v1182_v57 }
 0x18a   : > { %1187 = vst [vmem:[%s2039_s17 + $0x10] sm:$0xff] %v1183_v58  ;;  %1188 = vst [vmem:[%s2039_s17 + $0x18] sm:$0xff] %v1184_v59 }
 0x18b PF: > { %1195 = sbr.rel (!%p1862_p13) target bundleno = 403 (0x193), region = 132  ;;  %s1452_s21 = sshll.u32 (%p1862_p13), %s1718_s22, 4 }
 0x18c   : > { %s1201_s6 = scalar_lea.vmem (%p1862_p13), %s2171_s4, %s1452_s21 }
 0x190   : > { %v1214_v60 = vld [vmem:[%s2039_s17] sm:$0xff]  ;;  %v1216_v61 = vld [vmem:[%s2039_s17 + $0x8] sm:$0xff] }
 0x191   : > { %v1218_v62 = vld [vmem:[%s2039_s17 + $0x10] sm:$0xff]  ;;  %v1220_v63 = vld [vmem:[%s2039_s17 + $0x18] sm:$0xff]  ;;  %1215 = vst [vmem:[%s1201_s6] sm:$0xff] %v1214_v60  ;;  %1217 = vst [vmem:[%s1201_s6 + $0x8] sm:$0xff] %v1216_v61 }
 0x192   : > { %1219 = vst [vmem:[%s1201_s6 + $0x20] sm:$0xff] %v1218_v62  ;;  %1221 = vst [vmem:[%s1201_s6 + $0x28] sm:$0xff] %v1220_v63 }
 0x193 PF: > { %s14_s25 = sadd.s32 1, %s1730_s25   ;;  %s2183_s22 = sld [smem:[#allocation9_spill]] }
 0x194   : > { %p11_p7 = scmp.ge.s32.totalorder %s14_s25, 20   ;;  %s2184_s29 = sld [smem:[#allocation7_spill]] }
 0x195   : > { %s2185_s11 = sld [smem:[#allocation8_spill]]  ;;  %s2186_s15 = smov %s1694_s16 }
 0x196   : > { %s2187_s16 = smov %s1854_s13  ;;  %s2188_s17 = smov %s1702_s18 }
 0x197   : > { %s2189_s18 = smov %s1851_s12  ;;  %s2190_s19 = smov %s1710_s20 }
 0x198   : > { %s2192_s21 = smov %s1722_s23  ;;  %13 = sbr.rel (!%p11_p7) target bundleno = 8 (0x8), region = 205 }
 0x199   : > { %s2191_s20 = smov %s2183_s22  ;;  %s2193_s22 = smov %s1726_s24 }
 0x19a   : > { %s2194_s23 = smov %s2184_s29 }
 0x19b   : > { %s2195_s24 = smov %s2185_s11 }

// kernel: _lambda_.43
= control target key start
LH: loop header
LB: loop body
LE: loop exit
PB: predicated region body
PF: predicated region fallthrough
CT: control target
= control target key end

     0   :  { %v39_v21 = vlaneseq  ;;  %vm367_vm0 = vcmask 1041409   ;;  %vm370_vm1 = vcmask 1042434   ;;  %vm373_vm2 = vcmask 1043459   ;;  %s1075_s1 = inlined_call_operand.vmem [shape: bf16[512,128], index: 1, kind: input, shape index: {}]   ;;  %s1076_s0 = inlined_call_operand.vmem [shape: f32[8,1,512], index: 0, kind: input, shape index: {}]   ;;  %s1077_s2 = inlined_call_operand.vmem [shape: f32[1,128], index: 2, kind: input, shape index: {}]   ;;  %s1078_s3 = inlined_call_operand.vmem [shape: f32[8,128], index: 3, kind: output, shape index: {}]  }
   0x1   :  { %v791_v0 = vld [vmem:[%s1075_s1 + $0x78] sm:$0xff]   ;;  %v795_v4 = vld [vmem:[%s1075_s1 + $0x70] sm:$0xff]   ;;  %v799_v8 = vld [vmem:[%s1075_s1 + $0x68] sm:$0xff]   ;;  %vm376_vm3 = vcmask 1044484   ;;  %vm379_vm4 = vcmask 1045509   ;;  %vm382_vm5 = vcmask 1046534  }
   0x2   :  { %v792_v1 = vld [vmem:[%s1075_s1 + $0xf8] sm:$0xff]   ;;  %747 = vmatprep.subr.bf16.mxu0 %v791_v0  ;;  %v796_v5 = vld [vmem:[%s1075_s1 + $0xf0] sm:$0xff]   ;;  %v800_v9 = vld [vmem:[%s1075_s1 + $0xe8] sm:$0xff]   ;;  %v40_v26 = vshrl.u32 %v39_v21, 7  ;;  %vm385_vm6 = vcmask 1047559  }
   0x3   :  { %v793_v2 = vld [vmem:[%s1075_s1 + $0x38] sm:$0xff]   ;;  %769 = vmatprep.subr.bf16.mxu1 %v792_v1  ;;  %v797_v6 = vld [vmem:[%s1075_s1 + $0x30] sm:$0xff]   ;;  %v801_v10 = vld [vmem:[%s1075_s1 + $0x28] sm:$0xff]  }
   0x4   :  { %v794_v3 = vld [vmem:[%s1075_s1 + $0xb8] sm:$0xff]   ;;  %748 = vmatpush3.bf16.msra.mxu0 %v793_v2  ;;  %v798_v7 = vld [vmem:[%s1075_s1 + $0xb0] sm:$0xff]   ;;  %v802_v11 = vld [vmem:[%s1075_s1 + $0xa8] sm:$0xff]   ;;  %v45_v31 = vsub.s32 1, %v40_v26  ;;  %v933_v33 = vsub.s32 3, %v40_v26  ;;  %v938_v35 = vsub.s32 0, %v40_v26 }
   0x5   :  { %770 = vmatpush3.bf16.msra.mxu1 %v794_v3  ;;  %749 = vmatprep.subr.bf16.mxu0 %v795_v4  ;;  %v803_v12 = vld [vmem:[%s1075_s1 + $0x60] sm:$0xff]   ;;  %v807_v16 = vld [vmem:[%s1075_s1 + $0x58] sm:$0xff]   ;;  %v811_v20 = vld [vmem:[%s1075_s1 + $0x50] sm:$0xff]   ;;  %v943_v37 = vsub.s32 2, %v40_v26 }
   0x6   :  { %771 = vmatprep.subr.bf16.mxu1 %v796_v5  ;;  %v804_v13 = vld [vmem:[%s1075_s1 + $0xe0] sm:$0xff]   ;;  %v808_v17 = vld [vmem:[%s1075_s1 + $0xd8] sm:$0xff]   ;;  %v812_v22 = vld [vmem:[%s1075_s1 + $0xd0] sm:$0xff]  }
   0x7   :  { %v805_v14 = vld [vmem:[%s1075_s1 + $0x20] sm:$0xff]   ;;  %v809_v18 = vld [vmem:[%s1075_s1 + $0x18] sm:$0xff]   ;;  %v813_v23 = vld [vmem:[%s1075_s1 + $0x10] sm:$0xff]  }
   0x8   :  { %750 = vmatpush3.bf16.msra.mxu0 %v797_v6  ;;  %v806_v15 = vld [vmem:[%s1075_s1 + $0xa0] sm:$0xff]   ;;  %v810_v19 = vld [vmem:[%s1075_s1 + $0x98] sm:$0xff]   ;;  %v814_v24 = vld [vmem:[%s1075_s1 + $0x90] sm:$0xff]  }
   0x9   :  { %772 = vmatpush3.bf16.msra.mxu1 %v798_v7  ;;  %751 = vmatprep.subr.bf16.mxu0 %v799_v8  ;;  %v815_v25 = vld [vmem:[%s1075_s1 + $0x48] sm:$0xff]   ;;  %v819_v30 = vld [vmem:[%s1075_s1 + $0x40] sm:$0xff]   ;;  %v968_v42 = vld [vmem:[%s1076_s0 + $0x10] sm:$0xf] }
   0xa   :  { %773 = vmatprep.subr.bf16.mxu1 %v800_v9  ;;  %v816_v27 = vld [vmem:[%s1075_s1 + $0xc8] sm:$0xff]   ;;  %v820_v32 = vld [vmem:[%s1075_s1 + $0xc0] sm:$0xff]   ;;  %v973_v43 = vld [vmem:[%s1076_s0 + $0x14] sm:$0xf]  ;;  %v110_v51 = vrot.slane %v968_v42, %v45_v31 }
   0xb   :  { %v817_v28 = vld [vmem:[%s1075_s1 + $0x8] sm:$0xff]   ;;  %v821_v34 = vld [vmem:[%s1075_s1] sm:$0xff]   ;;  %v983_v48 = vld [vmem:[%s1076_s0 + $0x18] sm:$0xf]  ;;  %v126_v52 = vrot.slane %v973_v43, %v45_v31 }
   0xc   :  { %752 = vmatpush3.bf16.msra.mxu0 %v801_v10  ;;  %v818_v29 = vld [vmem:[%s1075_s1 + $0x88] sm:$0xff]   ;;  %v822_v36 = vld [vmem:[%s1075_s1 + $0x80] sm:$0xff]   ;;  %v988_v49 = vld [vmem:[%s1076_s0 + $0x1c] sm:$0xf]  ;;  %v142_v54 = vrot.slane %v983_v48, %v45_v31  ;;  %v216_v60 = vpack.c.bf16 %v110_v51, %v110_v51  ;;  %v150_v21 = vrot.slane %v983_v48, %v933_v33 }
   0xd   :  { %774 = vmatpush3.bf16.msra.mxu1 %v802_v11  ;;  %753 = vmatprep.subr.bf16.mxu0 %v803_v12  ;;  %v948_v38 = vld [vmem:[%s1076_s0] sm:$0xf]  ;;  %v953_v39 = vld [vmem:[%s1076_s0 + $0x4] sm:$0xf]  ;;  %v958_v40 = vld [vmem:[%s1076_s0 + $0x8] sm:$0xf]  ;;  %v158_v55 = vrot.slane %v988_v49, %v45_v31  ;;  %v220_v61 = vpack.c.bf16 %v126_v52, %v126_v52 }
   0xe   :  { %775 = vmatprep.subr.bf16.mxu1 %v804_v13  ;;  %v963_v41 = vld [vmem:[%s1076_s0 + $0xc] sm:$0xf]  ;;  %v46_v44 = vrot.slane %v948_v38, %v45_v31  ;;  %v62_v45 = vrot.slane %v953_v39, %v45_v31  ;;  %v78_v46 = vrot.slane %v958_v40, %v45_v31  ;;  %v54_v47 = vrot.slane %v948_v38, %v933_v33 }
   0xf   :  { %v94_v50 = vrot.slane %v963_v41, %v45_v31  ;;  %v70_v53 = vrot.slane %v953_v39, %v933_v33  ;;  %v224_v62 = vpack.c.bf16 %v142_v54, %v142_v54  ;;  %v228_v63 = vpack.c.bf16 %v158_v55, %v158_v55 }
  0x10   :  { %754 = vmatpush3.bf16.msra.mxu0 %v805_v14  ;;  %v200_v56 = vpack.c.bf16 %v46_v44, %v46_v44  ;;  %v204_v57 = vpack.c.bf16 %v62_v45, %v62_v45  ;;  %v208_v58 = vpack.c.bf16 %v78_v46, %v78_v46  ;;  %v351_v4 = vunpack.c.l.b16 %v216_v60 }
  0x11   :  { %776 = vmatpush3.bf16.msra.mxu1 %v806_v15  ;;  %755 = vmatprep.subr.bf16.mxu0 %v807_v16  ;;  %v212_v59 = vpack.c.bf16 %v94_v50, %v94_v50  ;;  %v355_v5 = vunpack.c.l.b16 %v220_v61  ;;  %v359_v6 = vunpack.c.l.b16 %v224_v62  ;;  %v363_v7 = vunpack.c.l.b16 %v228_v63 }
  0x12   :  { %777 = vmatprep.subr.bf16.mxu1 %v808_v17  ;;  %v335_v0 = vunpack.c.l.b16 %v200_v56  ;;  %v339_v1 = vunpack.c.l.b16 %v204_v57  ;;  %v343_v2 = vunpack.c.l.b16 %v208_v58  ;;  %v86_v9 = vrot.slane %v958_v40, %v933_v33 }
  0x13   :  { %v347_v3 = vunpack.c.l.b16 %v212_v59  ;;  %v393_v12 = vrot.slane %v351_v4, 4  ;;  %v395_v13 = vrot.slane %v355_v5, 3  ;;  %v397_v15 = vrot.slane %v359_v6, 2 }
  0x14   :  { %756 = vmatpush3.bf16.msra.mxu0 %v809_v18  ;;  %v387_v8 = vrot.slane %v339_v1, 7  ;;  %v389_v10 = vrot.slane %v343_v2, 6  ;;  %v399_v16 = vrot.slane %v363_v7, 1  ;;  %v102_v17 = vrot.slane %v963_v41, %v933_v33 }
  0x15   :  { %778 = vmatpush3.bf16.msra.mxu1 %v810_v19  ;;  %757 = vmatprep.subr.bf16.mxu0 %v811_v20  ;;  %v391_v11 = vrot.slane %v347_v3, 5  ;;  %v118_v19 = vrot.slane %v968_v42, %v933_v33  ;;  %v134_v20 = vrot.slane %v973_v43, %v933_v33  ;;  %v42_v63 = vrot.slane %v948_v38, %v938_v35 }
  0x16   :  { %779 = vmatprep.subr.bf16.mxu1 %v812_v22  ;;  %v388_v14 = vsel %vm367_vm0, %v387_v8, %v335_v0  ;;  %v58_v1 = vrot.slane %v953_v39, %v938_v35  ;;  %v74_v2 = vrot.slane %v958_v40, %v938_v35  ;;  %v90_v3 = vrot.slane %v963_v41, %v938_v35 }
  0x17   :  { %v390_v18 = vsel %vm370_vm1, %v389_v10, %v388_v14  ;;  %v222_v31 = vpack.c.bf16 %v134_v20, %v134_v20  ;;  %v106_v5 = vrot.slane %v968_v42, %v938_v35  ;;  %v122_v6 = vrot.slane %v973_v43, %v938_v35 }
  0x18   :  { %758 = vmatpush3.bf16.msra.mxu0 %v813_v23  ;;  %v392_v22 = vsel %vm373_vm2, %v391_v11, %v390_v18  ;;  %v166_v23 = vrot.slane %v988_v49, %v933_v33  ;;  %v138_v7 = vrot.slane %v983_v48, %v938_v35  ;;  %v199_v10 = vpack.c.bf16 %v42_v63, %v42_v63 }
  0x19   :  { %780 = vmatpush3.bf16.msra.mxu1 %v814_v24  ;;  %759 = vmatprep.subr.bf16.mxu0 %v815_v25  ;;  %v202_v24 = vpack.c.bf16 %v54_v47, %v54_v47  ;;  %v206_v25 = vpack.c.bf16 %v70_v53, %v70_v53  ;;  %v394_v26 = vsel %vm376_vm3, %v393_v12, %v392_v22  ;;  %v357_v51 = vunpack.c.l.b16 %v222_v31 }
  0x1a   :  { %781 = vmatprep.subr.bf16.mxu1 %v816_v27  ;;  %v210_v27 = vpack.c.bf16 %v86_v9, %v86_v9  ;;  %v154_v9 = vrot.slane %v988_v49, %v938_v35  ;;  %v203_v11 = vpack.c.bf16 %v58_v1, %v58_v1  ;;  %v211_v14 = vpack.c.bf16 %v90_v3, %v90_v3 }
  0x1b   :  { %v337_v44 = vunpack.c.l.b16 %v202_v24  ;;  %v341_v45 = vunpack.c.l.b16 %v206_v25  ;;  %v423_v59 = vrot.slane %v357_v51, 3  ;;  %v223_v18 = vpack.c.bf16 %v138_v7, %v138_v7 }
  0x1c   :  { %760 = vmatpush3.bf16.msra.mxu0 %v817_v28  ;;  %v214_v28 = vpack.c.bf16 %v102_v17, %v102_v17  ;;  %v345_v46 = vunpack.c.l.b16 %v210_v27  ;;  %v219_v17 = vpack.c.bf16 %v122_v6, %v122_v6  ;;  %v338_v22 = vunpack.c.l.b16 %v203_v11 }
  0x1d   :  { %782 = vmatpush3.bf16.msra.mxu1 %v818_v29  ;;  %761 = vmatprep.subr.bf16.mxu0 %v819_v30  ;;  %v218_v29 = vpack.c.bf16 %v118_v19, %v118_v19  ;;  %v396_v30 = vsel %vm379_vm4, %v395_v13, %v394_v26  ;;  %v415_v55 = vrot.slane %v341_v45, 7  ;;  %v207_v13 = vpack.c.bf16 %v74_v2, %v74_v2 }
  0x1e   :  { %783 = vmatprep.subr.bf16.mxu1 %v820_v32  ;;  %v226_v32 = vpack.c.bf16 %v150_v21, %v150_v21  ;;  %v349_v33 = vunpack.c.l.b16 %v214_v28  ;;  %v417_v56 = vrot.slane %v345_v46, 6  ;;  %v227_v19 = vpack.c.bf16 %v154_v9, %v154_v9 }
  0x1f   :  { %v353_v47 = vunpack.c.l.b16 %v218_v29  ;;  %v416_v60 = vsel %vm367_vm0, %v415_v55, %v337_v44  ;;  %v334_v21 = vunpack.c.l.b16 %v199_v10  ;;  %v346_v25 = vunpack.c.l.b16 %v211_v14 }
  0x20   :  { %762 = vmatpush3.bf16.msra.mxu0 %v821_v34  ;;  %v230_v34 = vpack.c.bf16 %v166_v23, %v166_v23  ;;  %v361_v53 = vunpack.c.l.b16 %v226_v32  ;;  %v419_v57 = vrot.slane %v349_v33, 5  ;;  %v418_v0 = vsel %vm370_vm1, %v417_v56, %v416_v60 }
  0x21   :  { %784 = vmatpush3.bf16.msra.mxu1 %v822_v36  ;;  %v398_v36 = vsel %vm382_vm5, %v397_v15, %v396_v30  ;;  %v421_v58 = vrot.slane %v353_v47, 4  ;;  %v215_v15 = vpack.c.bf16 %v106_v5, %v106_v5  ;;  %v342_v23 = vunpack.c.l.b16 %v207_v13 }
  0x22   :  { %v400_v50 = vsel %vm385_vm6, %v399_v16, %v398_v36  ;;  %v365_v54 = vunpack.c.l.b16 %v230_v34  ;;  %v425_v61 = vrot.slane %v361_v53, 2  ;;  %v420_v4 = vsel %vm373_vm2, %v419_v57, %v418_v0 }
  0x23   :  { %v430_v52 = vpack.c.b16 %v400_v50, %v400_v50  ;;  %v422_v8 = vsel %vm376_vm3, %v421_v58, %v420_v4  ;;  %v350_v35 = vunpack.c.l.b16 %v215_v15  ;;  %v354_v26 = vunpack.c.l.b16 %v219_v17 }
  0x24   :  { %v427_v62 = vrot.slane %v365_v54, 1  ;;  %v424_v12 = vsel %vm379_vm4, %v423_v59, %v422_v8  ;;  %v358_v27 = vunpack.c.l.b16 %v223_v18  ;;  %v362_v28 = vunpack.c.l.b16 %v227_v19 }
  0x25   :  { %661 = vmatprep.mubr.bf16.mxu0 %v430_v52  ;;  %v426_v16 = vsel %vm382_vm5, %v425_v61, %v424_v12  ;;  %v366_v29 = vrot.slane %v338_v22, 7  ;;  %v369_v30 = vrot.slane %v342_v23, 6  ;;  %v372_v31 = vrot.slane %v346_v25, 5  ;;  %v714_v25 = vld [vmem:[%s1077_s2] ss:$0 sm:$0xff] }
  0x26   :  { %v428_v20 = vsel %vm385_vm6, %v427_v62, %v426_v16  ;;  %v375_v32 = vrot.slane %v350_v35, 4  ;;  %v378_v34 = vrot.slane %v354_v26, 3  ;;  %v50_v36 = vrot.slane %v948_v38, %v943_v37 }
  0x27   :  { %v432_v24 = vpack.c.b16 %v428_v20, %v428_v20  ;;  %v368_v44 = vsel %vm367_vm0, %v366_v29, %v334_v21  ;;  %v381_v45 = vrot.slane %v358_v27, 2  ;;  %v384_v46 = vrot.slane %v362_v28, 1 }
  0x28   :  { %v66_v50 = vrot.slane %v953_v39, %v943_v37  ;;  %v371_v33 = vsel %vm370_vm1, %v369_v30, %v368_v44  ;;  %v82_v47 = vrot.slane %v958_v40, %v943_v37  ;;  %v98_v51 = vrot.slane %v963_v41, %v943_v37 }
  0x29   :  { %701 = vmatprep.mubr.bf16.mxu1 %v432_v24  ;;  %v114_v52 = vrot.slane %v968_v42, %v943_v37  ;;  %v374_v38 = vsel %vm373_vm2, %v372_v31, %v371_v33  ;;  %v130_v53 = vrot.slane %v973_v43, %v943_v37  ;;  %v146_v54 = vrot.slane %v983_v48, %v943_v37 }
  0x2a   :  { %v162_v39 = vrot.slane %v988_v49, %v943_v37  ;;  %v377_v55 = vsel %vm376_vm3, %v375_v32, %v374_v38  ;;  %v201_v40 = vpack.c.bf16 %v50_v36, %v50_v36  ;;  %v205_v56 = vpack.c.bf16 %v66_v50, %v66_v50 }
  0x2b   :  { %v209_v57 = vpack.c.bf16 %v82_v47, %v82_v47  ;;  %v380_v41 = vsel %vm379_vm4, %v378_v34, %v377_v55  ;;  %v213_v58 = vpack.c.bf16 %v98_v51, %v98_v51  ;;  %v217_v42 = vpack.c.bf16 %v114_v52, %v114_v52 }
  0x2c   :  { %v221_v59 = vpack.c.bf16 %v130_v53, %v130_v53  ;;  %v383_v60 = vsel %vm382_vm5, %v381_v45, %v380_v41  ;;  %v225_v61 = vpack.c.bf16 %v146_v54, %v146_v54  ;;  %v229_v43 = vpack.c.bf16 %v162_v39, %v162_v39 }
  0x2d   :  { %v336_v62 = vunpack.c.l.b16 %v201_v40  ;;  %v386_v48 = vsel %vm385_vm6, %v384_v46, %v383_v60  ;;  %v340_v63 = vunpack.c.l.b16 %v205_v56  ;;  %v344_v0 = vunpack.c.l.b16 %v209_v57 }
  0x2e   :  { %v348_v37 = vunpack.c.l.b16 %v213_v58  ;;  %v429_v49 = vpack.c.b16 %v386_v48, %v386_v48  ;;  %v352_v1 = vunpack.c.l.b16 %v217_v42  ;;  %v356_v2 = vunpack.c.l.b16 %v221_v59 }
  0x2f   :  { %v360_v3 = vunpack.c.l.b16 %v225_v61  ;;  %v364_v4 = vunpack.c.l.b16 %v229_v43  ;;  %v401_v5 = vrot.slane %v340_v63, 7  ;;  %v403_v6 = vrot.slane %v344_v0, 6 }
  0x30   :  { %v405_v7 = vrot.slane %v348_v37, 5  ;;  %662 = vmatmul.mubr.bf16.vlgmr.msra.gmra.mxu0 %v429_v49  ;;  %v407_v8 = vrot.slane %v352_v1, 4  ;;  %v409_v10 = vrot.slane %v356_v2, 3 }
  0x31   :  { %v402_v9 = vsel %vm367_vm0, %v401_v5, %v336_v62  ;;  %v411_v12 = vrot.slane %v360_v3, 2  ;;  %v413_v14 = vrot.slane %v364_v4, 1 }
  0x32   :  { %v404_v11 = vsel %vm370_vm1, %v403_v6, %v402_v9 }
  0x33   :  { %v406_v13 = vsel %vm373_vm2, %v405_v7, %v404_v11 }
  0x34   :  { %v408_v15 = vsel %vm376_vm3, %v407_v8, %v406_v13 }
  0x35   :  { %v410_v16 = vsel %vm379_vm4, %v409_v10, %v408_v15 }
  0x36   :  { %v412_v17 = vsel %vm382_vm5, %v411_v12, %v410_v16 }
  0x37   :  { %v414_v18 = vsel %vm385_vm6, %v413_v14, %v412_v17 }
  0x38   :  { %v431_v19 = vpack.c.b16 %v414_v18, %v414_v18 }
  0x3a   :  { %702 = vmatmul.mubr.bf16.vlgmr.msra.gmra.mxu1 %v431_v19 }
  0xf0   :  { %v763_v20 = vpop.f32.mrf.mxu0 }
  0xf2   :  { %v764_v21 = vpop.f32.mrf.mxu0 }
  0xf3   :  { %v765_v24 = vadd.f32 %v764_v21, %v763_v20 }
  0xf4   :  { %v766_v22 = vpop.f32.mrf.mxu0 }
  0xf5   :  { %v664_v26 = vadd.f32 %v765_v24, %v714_v25 }
  0xf6   :  { %v767_v23 = vpop.f32.mrf.mxu0 }
  0xfa   :  { %v785_v35 = vpop.f32.mrf.mxu1 }
  0xfc   :  { %v786_v27 = vpop.f32.mrf.mxu1 }
  0xfd   :  { %v787_v28 = vadd.f32 %v786_v27, %v785_v35 }
  0xfe   :  { %v788_v29 = vpop.f32.mrf.mxu1 }
  0xff   :  { %v704_v30 = vadd.f32 %v787_v28, %v664_v26 }
 0x100   :  { %v789_v31 = vpop.f32.mrf.mxu1 }
 0x101   :  { %709 = vst [vmem:[%s1078_s3] sm:$0xff] %v704_v30 }

</bundles_post_ra>
